<compile_context>
chip_gen: v5e
topology: v5e:2x2
jax: 0.10.0
libtpu: 0.0.40
codegen_flags: <defaults>
</compile_context>

<pallas_src>
import jax
import jax.numpy as jnp
from jax.experimental import pallas as pl
from jax.experimental.pallas import tpu as pltpu


SLAB = 128       # lane-dense feature slab: [online D | target D | zero pad]
BLOCK_M = 512    # A_hat row tile (accumulator rows)
BLOCK_K = 1024   # A_hat contraction tile (bf16 tile = 1 MiB; 2 buffers fit everywhere)


def _round_up(x, m):
    return ((x + m - 1) // m) * m


# ---------------------------------------------------------------------------
# Fused BUIR_NB forward kernel
# ---------------------------------------------------------------------------
def _make_fused_buir_kernel(bm, bk, n_layers):
    inv_layers = 1.0 / float(n_layers + 1)

    def kernel(emb_hbm, a_ref, w_ref, b_ref, p_ref, pb_ref, out_ref,
               x_prev, xw, acc, init_sem):
        l = pl.program_id(0)
        i = pl.program_id(1)
        k = pl.program_id(2)
        nk = pl.num_programs(2)

        # One-time init: DMA the packed embedding slab HBM -> resident output block.
        # out_ref doubles as the running (L+1)-layer sum, so no separate emb residency.
        @pl.when((l == 0) & (i == 0) & (k == 0))
        def _():
            cp = pltpu.make_async_copy(emb_hbm, out_ref, init_sem)
            cp.start()
            cp.wait()

        ks = pl.multiple_of(k * bk, bk)

        # Lazy per-k-block X @ W: computed during the i==0 sweep of every layer, right
        # before its first use, hidden under row-block 0's A-tile DMA.  Layer 0 reads
        # the embeddings from out_ref (still untouched during the i==0 sweep); later
        # layers read the bf16 previous-layer activations.
        @pl.when((i == 0) & (l == 0))
        def _():
            xw[pl.ds(ks, bk), :] = jnp.dot(
                out_ref[pl.ds(ks, bk), :].astype(jnp.bfloat16), w_ref[0],
                preferred_element_type=jnp.float32).astype(jnp.bfloat16)

        @pl.when((i == 0) & (l > 0))
        def _():
            xw[pl.ds(ks, bk), :] = jnp.dot(
                x_prev[pl.ds(ks, bk), :], w_ref[0],
                preferred_element_type=jnp.float32).astype(jnp.bfloat16)

        # Tiled contraction: acc(row block) += A[i,k] @ XW[k rows]  (bf16 MXU, f32 acc).
        @pl.when(k == 0)
        def _():
            acc[...] = jnp.zeros_like(acc)

        acc[...] += jnp.dot(a_ref[...], xw[pl.ds(ks, bk), :],
                            preferred_element_type=jnp.float32)

        # Row-block finalize: bias add (hoisted out of the k loop), running-sum update,
        # and on the LAST layer the fused mean + predictor (per row block, so it
        # overlaps with the A stream of later row blocks).
        @pl.when(k == nk - 1)
        def _():
            rs = pl.multiple_of(i * bm, bm)
            new_x = acc[...] + b_ref[0]
            summed = out_ref[pl.ds(rs, bm), :] + new_x

            @pl.when(l < n_layers - 1)
            def _():
                out_ref[pl.ds(rs, bm), :] = summed
                x_prev[pl.ds(rs, bm), :] = new_x.astype(jnp.bfloat16)

            # p_ref is block-diagonal [pred_W.T | identity]: online columns get the
            # nn.Linear, target columns pass through unchanged (kept f32 -> exact).
            @pl.when(l == n_layers - 1)
            def _():
                mean_rows = summed * inv_layers
                out_ref[pl.ds(rs, bm), :] = (
                    jnp.dot(mean_rows, p_ref[...],
                            preferred_element_type=jnp.float32) + pb_ref[...])

    return kernel


def fused_buir_forward_slab(emb_slab, a_pad, w_blocks, b_blocks, p_block, pb_row,
                            n_layers, *, bm=BLOCK_M, bk=BLOCK_K):
    n_pad, slab = emb_slab.shape
    assert slab == SLAB and n_pad % bm == 0 and n_pad % bk == 0
    grid = (n_layers, n_pad // bm, n_pad // bk)
    kernel = _make_fused_buir_kernel(bm, bk, n_layers)
    return pl.pallas_call(
        kernel,
        out_shape=jax.ShapeDtypeStruct((n_pad, SLAB), jnp.float32),
        grid=grid,
        in_specs=[
            pl.BlockSpec(memory_space=pl.ANY),                         # emb slab in HBM
            pl.BlockSpec((bm, bk), lambda l, i, k: (i, k)),            # A_hat tiles bf16
            pl.BlockSpec((1, SLAB, SLAB), lambda l, i, k: (l, 0, 0)),  # per-layer W bf16
            pl.BlockSpec((1, 1, SLAB), lambda l, i, k: (l, 0, 0)),     # per-layer bias
            pl.BlockSpec((SLAB, SLAB), lambda l, i, k: (0, 0)),        # predictor block
            pl.BlockSpec((1, SLAB), lambda l, i, k: (0, 0)),           # predictor bias
        ],
        out_specs=pl.BlockSpec((n_pad, SLAB), lambda l, i, k: (0, 0)),
        scratch_shapes=[
            pltpu.VMEM((n_pad, SLAB), jnp.bfloat16),   # previous-layer activations
            pltpu.VMEM((n_pad, SLAB), jnp.bfloat16),   # XW for the current layer
            pltpu.VMEM((bm, SLAB), jnp.float32),       # row-block f32 accumulator
            pltpu.SemaphoreType.DMA,                   # one-time emb DMA semaphore
        ],
        compiler_params=pltpu.CompilerParams(
            # Layers are sequential and the resident slabs are shared state across row
            # blocks -> all axes stay "arbitrary" in this fused formulation.
            dimension_semantics=("arbitrary", "arbitrary", "arbitrary"),
            vmem_limit_bytes=48 * 1024 * 1024,
        ),
        # Constant-index inputs (p_ref/pb_ref) could use pipeline_mode=pl.Buffered(1)
        # for a small VMEM saving; left at defaults for robustness.
    )(emb_slab, a_pad, w_blocks, b_blocks, p_block, pb_row)


# ---------------------------------------------------------------------------
# BUIR_NB forward (JAX glue: parameter packing + batch row gather)
# ---------------------------------------------------------------------------
def buir_nb_forward(params, a_hat, user_count, item_count, latent_size, n_layers,
                    users, items):
    d = latent_size
    assert 2 * d <= SLAB, "latent_size too large for the 128-wide fused slab"
    assert BLOCK_K % BLOCK_M == 0
    n = user_count + item_count
    n_pad = _round_up(n, max(BLOCK_M, BLOCK_K))

    # Pack online + target encoders column-wise into one lane-dense slab (f32).
    emb_slab = jnp.zeros((n_pad, SLAB), jnp.float32)
    emb_slab = emb_slab.at[:n, :d].set(params["online_emb"])
    emb_slab = emb_slab.at[:n, d:2 * d].set(params["target_emb"])

    # Block-diagonal per-layer GCN weights (bf16) / biases (f32).
    w_blocks = jnp.zeros((n_layers, SLAB, SLAB), jnp.bfloat16)
    b_blocks = jnp.zeros((n_layers, 1, SLAB), jnp.float32)
    for l in range(n_layers):
        w_blocks = w_blocks.at[l, :d, :d].set(
            params["online_ws"][l].astype(jnp.bfloat16))
        w_blocks = w_blocks.at[l, d:2 * d, d:2 * d].set(
            params["target_ws"][l].astype(jnp.bfloat16))
        b_blocks = b_blocks.at[l, 0, :d].set(params["online_bs"][l])
        b_blocks = b_blocks.at[l, 0, d:2 * d].set(params["target_bs"][l])

    # Predictor nn.Linear fused as a block-diagonal matmul on the final mean slab:
    # online columns -> x @ W_p.T + b_p ; target columns -> identity (pass-through).
    p_block = jnp.zeros((SLAB, SLAB), jnp.float32)
    p_block = p_block.at[:d, :d].set(params["pred_w"].T)
    p_block = p_block.at[d:2 * d, d:2 * d].set(jnp.eye(d, dtype=jnp.float32))
    pb_row = jnp.zeros((1, SLAB), jnp.float32).at[0, :d].set(params["pred_b"])

    # A_hat built directly in the streamed bf16 dtype (f32 accumulation in-kernel).
    # Padded rows/cols are zero, so padding never contaminates real rows.
    a_pad = jnp.zeros((n_pad, n_pad), jnp.bfloat16)
    a_pad = a_pad.at[:n, :n].set(a_hat.astype(jnp.bfloat16))

    out = fused_buir_forward_slab(emb_slab, a_pad, w_blocks, b_blocks,
                                  p_block, pb_row, n_layers)

    # Batch row gather (same as the PyTorch fancy indexing) -- plain JAX glue.
    urows = users
    irows = user_count + items
    u_pred = out[urows, :d]
    u_target = out[urows, d:2 * d]
    i_pred = out[irows, :d]
    i_target = out[irows, d:2 * d]
    return u_pred, u_target, i_pred, i_target


# ---------------------------------------------------------------------------
# Pure-JAX reference (f32) for correctness checking
# ---------------------------------------------------------------------------
def reference_forward(params, a_hat, user_count, n_layers, users, items):
    def encoder(emb, ws, bs):
        x = emb
        s = x
        for w, b in zip(ws, bs):
            x = a_hat @ (x @ w) + b[None, :]
            s = s + x
        return s / float(n_layers + 1)

    on = encoder(params["online_emb"], params["online_ws"], params["online_bs"])
    tg = encoder(params["target_emb"], params["target_ws"], params["target_bs"])
    pred = on @ params["pred_w"].T + params["pred_b"][None, :]
    return (pred[users], tg[users],
            pred[user_count + items], tg[user_count + items])


# ---------------------------------------------------------------------------
# Deterministic setup
# ---------------------------------------------------------------------------
def xavier_uniform(key, shape):
    fan_in, fan_out = shape[0], shape[1]
    bound = (6.0 / (fan_in + fan_out)) ** 0.5
    return jax.random.uniform(key, shape, jnp.float32, -bound, bound)


def build_norm_adj(user_count, item_count):
    """Binary symmetric bipartite adjacency -> GCN-normalized dense A_hat (f32)."""
    n = user_count + item_count
    a = jnp.zeros((n, n), jnp.float32)
    rows, cols = [], []
    for u in range(user_count):
        for k in range(3):  # 3 deterministic interactions per user
            it = (u * 3 + k * 5) % item_count
            rows += [u, user_count + it]
            cols += [user_count + it, u]
    rows = jnp.array(rows, jnp.int32)
    cols = jnp.array(cols, jnp.int32)
    a = a.at[rows, cols].set(1.0)
    a_sl = a + jnp.eye(n, dtype=jnp.float32)              # add self-loops
    deg = jnp.sum(a_sl, axis=1)
    d_inv_sqrt = 1.0 / jnp.sqrt(deg)
    return d_inv_sqrt[:, None] * a_sl * d_inv_sqrt[None, :]


if __name__ == "__main__":
    user_count, item_count, latent_size, n_layers = 8, 16, 32, 3
    N = user_count + item_count

    key = jax.random.PRNGKey(0)
    k_emb, k_w, k_b, k_pw, k_pb = jax.random.split(key, 5)

    # Online encoder params (xavier embeddings, glorot conv weights). GCNConv's default
    # bias init is zeros; small nonzero biases are used here purely to numerically
    # exercise the fused bias-add path (forward semantics are parameter-agnostic).
    online_emb = xavier_uniform(k_emb, (N, latent_size))
    wkeys = jax.random.split(k_w, n_layers)
    bkeys = jax.random.split(k_b, n_layers)
    online_ws = [xavier_uniform(wkeys[l], (latent_size, latent_size))
                 for l in range(n_layers)]
    online_bs = [0.05 * jax.random.normal(bkeys[l], (latent_size,), jnp.float32)
                 for l in range(n_layers)]

    # _init_target: target params are copies of online params (kept as separate tensors;
    # the fused kernel still computes both encoders, matching the module's forward).
    target_emb = online_emb
    target_ws = list(online_ws)
    target_bs = list(online_bs)

    # predictor nn.Linear(latent, latent): uniform(-1/sqrt(D), 1/sqrt(D))
    pbound = latent_size ** -0.5
    pred_w = jax.random.uniform(k_pw, (latent_size, latent_size), jnp.float32,
                                -pbound, pbound)
    pred_b = jax.random.uniform(k_pb, (latent_size,), jnp.float32, -pbound, pbound)

    params = dict(online_emb=online_emb, online_ws=online_ws, online_bs=online_bs,
                  target_emb=target_emb, target_ws=target_ws, target_bs=target_bs,
                  pred_w=pred_w, pred_b=pred_b)

    a_hat = build_norm_adj(user_count, item_count)

    # batch of (user, item) indices, as in inputs = {'user': ..., 'item': ...}
    users = jnp.array([0, 1, 2, 3, 4, 5, 6, 7], jnp.int32)
    items = jnp.array([3, 7, 1, 9, 0, 12, 5, 15], jnp.int32)

    outs = buir_nb_forward(params, a_hat, user_count, item_count, latent_size,
                           n_layers, users, items)
    outs = jax.block_until_ready(outs)
    u_pred, u_target, i_pred, i_target = outs

    assert u_pred.shape == (users.shape[0], latent_size)
    assert u_target.shape == (users.shape[0], latent_size)
    assert i_pred.shape == (items.shape[0], latent_size)
    assert i_target.shape == (items.shape[0], latent_size)

    # Numerical check vs pure-JAX f32 reference (kernel streams A_hat / X / W in bf16
    # with f32 accumulation -> ~1e-2 level errors expected).
    refs = reference_forward(params, a_hat, user_count, n_layers, users, items)
    for got, want in zip(outs, refs):
        max_err = float(jnp.max(jnp.abs(got - want)))
        assert jnp.allclose(got, want, atol=2.5e-2, rtol=2.5e-2), max_err

    print("KERNEL_OK")
</pallas_src>

<mosaic_0001>
module attributes {stable_mosaic.version = 11 : i64} {
  func.func @kernel(%arg0: i32, %arg1: i32, %arg2: i32, %arg3: memref<1024x128xf32, #tpu.memory_space<any>>, %arg4: memref<512x1024xbf16, #tpu.memory_space<vmem>>, %arg5: memref<1x128x128xbf16, #tpu.memory_space<vmem>>, %arg6: memref<1x1x128xf32, #tpu.memory_space<vmem>>, %arg7: memref<128x128xf32, #tpu.memory_space<vmem>>, %arg8: memref<1x128xf32, #tpu.memory_space<vmem>>, %arg9: memref<1024x128xf32, #tpu.memory_space<vmem>>, %arg10: memref<1024x128xbf16, #tpu.memory_space<vmem>>, %arg11: memref<1024x128xbf16, #tpu.memory_space<vmem>>, %arg12: memref<512x128xf32, #tpu.memory_space<vmem>>, %arg13: memref<!tpu.dma_semaphore, #tpu.memory_space<semaphore_mem>>) attributes {dimension_semantics = [#tpu.dimension_semantics<arbitrary>, #tpu.dimension_semantics<arbitrary>, #tpu.dimension_semantics<arbitrary>], iteration_bounds = array<i64: 3, 2, 1>, scalar_prefetch = 0 : i64, scratch_operands = 4 : i64, tpu.core_type = #tpu.core_type<tc>, window_params = [{}, {transform_indices = @transform_1, window_bounds = array<i64: 512, 1024>}, {transform_indices = @transform_2, window_bounds = array<i64: 1, 128, 128>}, {transform_indices = @transform_3, window_bounds = array<i64: 1, 1, 128>}, {pipeline_mode = #tpu.pipeline_mode<synchronous>, transform_indices = @transform_4, window_bounds = array<i64: 128, 128>}, {pipeline_mode = #tpu.pipeline_mode<synchronous>, transform_indices = @transform_5, window_bounds = array<i64: 1, 128>}, {pipeline_mode = #tpu.pipeline_mode<synchronous>, transform_indices = @transform_6, window_bounds = array<i64: 1024, 128>}]} {
    %c0_i32 = arith.constant 0 : i32
    %0 = arith.cmpi eq, %arg0, %c0_i32 : i32
    %c0_i32_0 = arith.constant 0 : i32
    %1 = arith.cmpi eq, %arg1, %c0_i32_0 : i32
    %2 = arith.andi %0, %1 : i1
    %c0_i32_1 = arith.constant 0 : i32
    %3 = arith.cmpi eq, %arg2, %c0_i32_1 : i32
    %4 = arith.andi %2, %3 : i1
    %5 = arith.extui %4 : i1 to i32
    %c0_i32_2 = arith.constant 0 : i32
    %6 = arith.cmpi ne, %5, %c0_i32_2 : i32
    scf.if %6 {
      tpu.enqueue_dma source(%arg3 : memref<1024x128xf32, #tpu.memory_space<any>>) target(%arg9 : memref<1024x128xf32, #tpu.memory_space<vmem>>) target_semaphore(%arg13 : memref<!tpu.dma_semaphore, #tpu.memory_space<semaphore_mem>>)
      tpu.wait_dma2 semaphore(%arg13 : memref<!tpu.dma_semaphore, #tpu.memory_space<semaphore_mem>>) src(%arg3 : memref<1024x128xf32, #tpu.memory_space<any>>) dst(%arg9 : memref<1024x128xf32, #tpu.memory_space<vmem>>)
    } else {
    }
    %c1024_i32 = arith.constant 1024 : i32
    %7 = arith.muli %arg2, %c1024_i32 : i32
    %8 = tpu.assume_multiple %7, 1024 : i32
    %c0_i32_3 = arith.constant 0 : i32
    %9 = arith.cmpi eq, %arg1, %c0_i32_3 : i32
    %c0_i32_4 = arith.constant 0 : i32
    %10 = arith.cmpi eq, %arg0, %c0_i32_4 : i32
    %11 = arith.andi %9, %10 : i1
    %12 = arith.extui %11 : i1 to i32
    %c0_i32_5 = arith.constant 0 : i32
    %13 = arith.cmpi ne, %12, %c0_i32_5 : i32
    scf.if %13 {
      %32 = arith.index_cast %8 : i32 to index
      %c0_19 = arith.constant 0 : index
      %33 = vector.load %arg9[%32, %c0_19] : memref<1024x128xf32, #tpu.memory_space<vmem>>, vector<1024x128xf32>
      %34 = arith.truncf %33 : vector<1024x128xf32> to vector<1024x128xbf16>
      %c0_20 = arith.constant 0 : index
      %c0_21 = arith.constant 0 : index
      %c0_22 = arith.constant 0 : index
      %35 = vector.load %arg5[%c0_20, %c0_21, %c0_22] : memref<1x128x128xbf16, #tpu.memory_space<vmem>>, vector<1x128x128xbf16>
      %36 = vector.shape_cast %35 : vector<1x128x128xbf16> to vector<128x128xbf16>
      %cst_23 = arith.constant dense<0.000000e+00> : vector<1024x128xf32>
      %37 = tpu.matmul %34, %36, %cst_23 {dimension_numbers = #tpu.dot_dimension_numbers<[1], [0], [0], [1], [0, 0, 1, 1], [], []>} : vector<1024x128xbf16>, vector<128x128xbf16>, vector<1024x128xf32> -> vector<1024x128xf32>
      %38 = arith.truncf %37 : vector<1024x128xf32> to vector<1024x128xbf16>
      %39 = arith.index_cast %8 : i32 to index
      %c0_24 = arith.constant 0 : index
      %40 = vector.load %arg11[%39, %c0_24] : memref<1024x128xbf16, #tpu.memory_space<vmem>>, vector<1024x128xbf16>
      tpu.vector_store %arg11[%39, %c0_24], %38 {strides = array<i32>} : memref<1024x128xbf16, #tpu.memory_space<vmem>>, vector<1024x128xbf16>,
    } else {
    }
    %c0_i32_6 = arith.constant 0 : i32
    %14 = arith.cmpi eq, %arg1, %c0_i32_6 : i32
    %c0_i32_7 = arith.constant 0 : i32
    %15 = arith.cmpi sgt, %arg0, %c0_i32_7 : i32
    %16 = arith.andi %14, %15 : i1
    %17 = arith.extui %16 : i1 to i32
    %c0_i32_8 = arith.constant 0 : i32
    %18 = arith.cmpi ne, %17, %c0_i32_8 : i32
    scf.if %18 {
      %32 = arith.index_cast %8 : i32 to index
      %c0_19 = arith.constant 0 : index
      %33 = vector.load %arg10[%32, %c0_19] : memref<1024x128xbf16, #tpu.memory_space<vmem>>, vector<1024x128xbf16>
      %c0_20 = arith.constant 0 : index
      %c0_21 = arith.constant 0 : index
      %c0_22 = arith.constant 0 : index
      %34 = vector.load %arg5[%c0_20, %c0_21, %c0_22] : memref<1x128x128xbf16, #tpu.memory_space<vmem>>, vector<1x128x128xbf16>
      %35 = vector.shape_cast %34 : vector<1x128x128xbf16> to vector<128x128xbf16>
      %cst_23 = arith.constant dense<0.000000e+00> : vector<1024x128xf32>
      %36 = tpu.matmul %33, %35, %cst_23 {dimension_numbers = #tpu.dot_dimension_numbers<[1], [0], [0], [1], [0, 0, 1, 1], [], []>} : vector<1024x128xbf16>, vector<128x128xbf16>, vector<1024x128xf32> -> vector<1024x128xf32>
      %37 = arith.truncf %36 : vector<1024x128xf32> to vector<1024x128xbf16>
      %38 = arith.index_cast %8 : i32 to index
      %c0_24 = arith.constant 0 : index
      %39 = vector.load %arg11[%38, %c0_24] : memref<1024x128xbf16, #tpu.memory_space<vmem>>, vector<1024x128xbf16>
      tpu.vector_store %arg11[%38, %c0_24], %37 {strides = array<i32>} : memref<1024x128xbf16, #tpu.memory_space<vmem>>, vector<1024x128xbf16>,
    } else {
    }
    %c0_i32_9 = arith.constant 0 : i32
    %19 = arith.cmpi eq, %arg2, %c0_i32_9 : i32
    %20 = arith.extui %19 : i1 to i32
    %c0_i32_10 = arith.constant 0 : i32
    %21 = arith.cmpi ne, %20, %c0_i32_10 : i32
    scf.if %21 {
      %cst_19 = arith.constant 0.000000e+00 : f32
      %32 = vector.broadcast %cst_19 : f32 to vector<512x128xf32>
      %c0_20 = arith.constant 0 : index
      %c0_21 = arith.constant 0 : index
      %33 = vector.load %arg12[%c0_20, %c0_21] : memref<512x128xf32, #tpu.memory_space<vmem>>, vector<512x128xf32>
      tpu.vector_store %arg12[%c0_20, %c0_21], %32 {strides = array<i32>} : memref<512x128xf32, #tpu.memory_space<vmem>>, vector<512x128xf32>,
    } else {
    }
    %c0 = arith.constant 0 : index
    %c0_11 = arith.constant 0 : index
    %22 = vector.load %arg12[%c0, %c0_11] : memref<512x128xf32, #tpu.memory_space<vmem>>, vector<512x128xf32>
    %c0_12 = arith.constant 0 : index
    %c0_13 = arith.constant 0 : index
    %23 = vector.load %arg4[%c0_12, %c0_13] : memref<512x1024xbf16, #tpu.memory_space<vmem>>, vector<512x1024xbf16>
    %24 = arith.index_cast %8 : i32 to index
    %c0_14 = arith.constant 0 : index
    %25 = vector.load %arg11[%24, %c0_14] : memref<1024x128xbf16, #tpu.memory_space<vmem>>, vector<1024x128xbf16>
    %cst = arith.constant dense<0.000000e+00> : vector<512x128xf32>
    %26 = tpu.matmul %23, %25, %cst {dimension_numbers = #tpu.dot_dimension_numbers<[1], [0], [0], [1], [0, 0, 1, 1], [], []>} : vector<512x1024xbf16>, vector<1024x128xbf16>, vector<512x128xf32> -> vector<512x128xf32>
    %27 = arith.addf %22, %26 : vector<512x128xf32>
    %c0_15 = arith.constant 0 : index
    %c0_16 = arith.constant 0 : index
    %28 = vector.load %arg12[%c0_15, %c0_16] : memref<512x128xf32, #tpu.memory_space<vmem>>, vector<512x128xf32>
    tpu.vector_store %arg12[%c0_15, %c0_16], %27 {strides = array<i32>} : memref<512x128xf32, #tpu.memory_space<vmem>>, vector<512x128xf32>,
    %c0_i32_17 = arith.constant 0 : i32
    %29 = arith.cmpi eq, %arg2, %c0_i32_17 : i32
    %30 = arith.extui %29 : i1 to i32
    %c0_i32_18 = arith.constant 0 : i32
    %31 = arith.cmpi ne, %30, %c0_i32_18 : i32
    scf.if %31 {
      %c512_i32 = arith.constant 512 : i32
      %32 = arith.muli %arg1, %c512_i32 : i32
      %33 = tpu.assume_multiple %32, 512 : i32
      %c0_19 = arith.constant 0 : index
      %c0_20 = arith.constant 0 : index
      %34 = vector.load %arg12[%c0_19, %c0_20] : memref<512x128xf32, #tpu.memory_space<vmem>>, vector<512x128xf32>
      %c0_21 = arith.constant 0 : index
      %c0_22 = arith.constant 0 : index
      %c0_23 = arith.constant 0 : index
      %35 = vector.load %arg6[%c0_21, %c0_22, %c0_23] : memref<1x1x128xf32, #tpu.memory_space<vmem>>, vector<1x1x128xf32>
      %36 = vector.shape_cast %35 : vector<1x1x128xf32> to vector<1x128xf32>
      %37 = vector.broadcast %36 : vector<1x128xf32> to vector<512x128xf32>
      %38 = arith.addf %34, %37 : vector<512x128xf32>
      %39 = arith.index_cast %33 : i32 to index
      %c0_24 = arith.constant 0 : index
      %40 = vector.load %arg9[%39, %c0_24] : memref<1024x128xf32, #tpu.memory_space<vmem>>, vector<512x128xf32>
      %41 = arith.addf %40, %38 : vector<512x128xf32>
      %c2_i32 = arith.constant 2 : i32
      %42 = arith.cmpi slt, %arg0, %c2_i32 : i32
      %43 = arith.extui %42 : i1 to i32
      %c0_i32_25 = arith.constant 0 : i32
      %44 = arith.cmpi ne, %43, %c0_i32_25 : i32
      scf.if %44 {
        %48 = arith.index_cast %33 : i32 to index
        %c0_28 = arith.constant 0 : index
        %49 = vector.load %arg9[%48, %c0_28] : memref<1024x128xf32, #tpu.memory_space<vmem>>, vector<512x128xf32>
        tpu.vector_store %arg9[%48, %c0_28], %41 {strides = array<i32>} : memref<1024x128xf32, #tpu.memory_space<vmem>>, vector<512x128xf32>,
        %50 = arith.truncf %38 : vector<512x128xf32> to vector<512x128xbf16>
        %51 = arith.index_cast %33 : i32 to index
        %c0_29 = arith.constant 0 : index
        %52 = vector.load %arg10[%51, %c0_29] : memref<1024x128xbf16, #tpu.memory_space<vmem>>, vector<512x128xbf16>
        tpu.vector_store %arg10[%51, %c0_29], %50 {strides = array<i32>} : memref<1024x128xbf16, #tpu.memory_space<vmem>>, vector<512x128xbf16>,
      } else {
      }
      %c2_i32_26 = arith.constant 2 : i32
      %45 = arith.cmpi eq, %arg0, %c2_i32_26 : i32
      %46 = arith.extui %45 : i1 to i32
      %c0_i32_27 = arith.constant 0 : i32
      %47 = arith.cmpi ne, %46, %c0_i32_27 : i32
      scf.if %47 {
        %cst_28 = arith.constant 2.500000e-01 : f32
        %48 = vector.broadcast %cst_28 : f32 to vector<512x128xf32>
        %49 = arith.mulf %41, %48 : vector<512x128xf32>
        %c0_29 = arith.constant 0 : index
        %c0_30 = arith.constant 0 : index
        %50 = vector.load %arg7[%c0_29, %c0_30] : memref<128x128xf32, #tpu.memory_space<vmem>>, vector<128x128xf32>
        %cst_31 = arith.constant dense<0.000000e+00> : vector<512x128xf32>
        %51 = tpu.matmul %49, %50, %cst_31 {dimension_numbers = #tpu.dot_dimension_numbers<[1], [0], [0], [1], [0, 0, 1, 1], [], []>} : vector<512x128xf32>, vector<128x128xf32>, vector<512x128xf32> -> vector<512x128xf32>
        %c0_32 = arith.constant 0 : index
        %c0_33 = arith.constant 0 : index
        %52 = vector.load %arg8[%c0_32, %c0_33] : memref<1x128xf32, #tpu.memory_space<vmem>>, vector<1x128xf32>
        %53 = vector.broadcast %52 : vector<1x128xf32> to vector<512x128xf32>
        %54 = arith.addf %51, %53 : vector<512x128xf32>
        %55 = arith.index_cast %33 : i32 to index
        %c0_34 = arith.constant 0 : index
        %56 = vector.load %arg9[%55, %c0_34] : memref<1024x128xf32, #tpu.memory_space<vmem>>, vector<512x128xf32>
        tpu.vector_store %arg9[%55, %c0_34], %54 {strides = array<i32>} : memref<1024x128xf32, #tpu.memory_space<vmem>>, vector<512x128xf32>,
      } else {
      }
    } else {
    }
    return
  }
  func.func @transform_1(%arg0: i32, %arg1: i32, %arg2: i32) -> (i32, i32) {
    %c0_i32 = arith.constant 0 : i32
    return %arg1, %arg2 : i32, i32
  }
  func.func @transform_2(%arg0: i32, %arg1: i32, %arg2: i32) -> (i32, i32, i32) {
    %c0_i32 = arith.constant 0 : i32
    %c0_i32_0 = arith.constant 0 : i32
    %c0_i32_1 = arith.constant 0 : i32
    return %arg0, %c0_i32, %c0_i32_0 : i32, i32, i32
  }
  func.func @transform_3(%arg0: i32, %arg1: i32, %arg2: i32) -> (i32, i32, i32) {
    %c0_i32 = arith.constant 0 : i32
    %c0_i32_0 = arith.constant 0 : i32
    %c0_i32_1 = arith.constant 0 : i32
    return %arg0, %c0_i32, %c0_i32_0 : i32, i32, i32
  }
  func.func @transform_4(%arg0: i32, %arg1: i32, %arg2: i32) -> (i32, i32) {
    %c0_i32 = arith.constant 0 : i32
    %c0_i32_0 = arith.constant 0 : i32
    %c0_i32_1 = arith.constant 0 : i32
    return %c0_i32, %c0_i32_0 : i32, i32
  }
  func.func @transform_5(%arg0: i32, %arg1: i32, %arg2: i32) -> (i32, i32) {
    %c0_i32 = arith.constant 0 : i32
    %c0_i32_0 = arith.constant 0 : i32
    %c0_i32_1 = arith.constant 0 : i32
    return %c0_i32, %c0_i32_0 : i32, i32
  }
  func.func @transform_6(%arg0: i32, %arg1: i32, %arg2: i32) -> (i32, i32) {
    %c0_i32 = arith.constant 0 : i32
    %c0_i32_0 = arith.constant 0 : i32
    %c0_i32_1 = arith.constant 0 : i32
    return %c0_i32, %c0_i32_0 : i32, i32
  }
}

</mosaic_0001>

<bundles_post_ra>
// kernel: tpu_custom_call.1
= control target key start
LH: loop header
LB: loop body
LE: loop exit
PB: predicated region body
PF: predicated region fallthrough
CT: control target
= control target key end

     0   :  { %s12499_s0 = inlined_call_operand.hbm [shape: f32[1024,128], index: 0, kind: input, shape index: {}]   ;;  %s12500_s1 = inlined_call_operand.hbm [shape: bf16[1024,1024], index: 1, kind: input, shape index: {}]   ;;  %s12501_s2 = inlined_call_operand.hbm [shape: bf16[3,128,128], index: 2, kind: input, shape index: {}]   ;;  %s12502_s3 = inlined_call_operand.hbm [shape: f32[3,1,128], index: 3, kind: input, shape index: {}]   ;;  %s12503_s4 = inlined_call_operand.hbm [shape: f32[128,128], index: 4, kind: input, shape index: {}]   ;;  %s12504_s5 = inlined_call_operand.hbm [shape: f32[1,128], index: 5, kind: input, shape index: {}]   ;;  %s12505_s6 = inlined_call_operand.hbm [shape: f32[1024,128], index: 6, kind: output, shape index: {}]  }
   0x1   :  { %12577 = sst [smem:[#allocation114_spill]] %s12499_s0 }
   0x2   :  { %12578 = sst [smem:[#allocation115_spill]] %s12501_s2 }
   0x3   :  { %12579 = sst [smem:[#allocation116_spill]] %s12503_s4 }
   0x4   :  { %12580 = sst [smem:[#allocation117_spill]] %s12504_s5 }
   0x5   :  { %12581 = sst [smem:[#allocation118_spill]] %s12505_s6 }
   0x6   :  { %11 = vsyncpa [#allocation7], 0 }
   0x7   :  { %13 = vsyncpa [#allocation7 + $0x1], 0 }
   0x8   :  { %14 = vsyncpa [#allocation10], 0 }
   0x9   :  { %16 = vsyncpa [#allocation10 + $0x1], 0 }
   0xa   :  { %17 = vsyncpa [#allocation13], 0 }
   0xb   :  { %18 = vsyncpa [#allocation8], 0  ;;  %s10650_s21 = smov 0   ;;  %s10652_s22 = smov 0  }
   0xc   :  { %s10654_s23 = smov 0   ;;  %s10656_s24 = smov 0  }
   0xd   :  { %s10658_s25 = smov 0   ;;  %s10660_s26 = smov 0  }
   0xe   :  { %s10662_s27 = smov 0   ;;  %s10664_s28 = smov 0  }
   0xf   :  { %s10666_s29 = smov 0   ;;  %s10668_s30 = smov 0  }
  0x10   :  { %s10670_s7 = smov 0  }
  0x11 LB: > { %12582 = sst [smem:[#allocation25_spill]] %s10586_s27  ;;  %s10706_s8 = sadd.s32 4294967295, %s10602_s7   ;;  %s10602_s7 = sphi %s10670_s7, %s24_s7   ;;  %s10598_s30 = sphi %s10668_s30, %s12852_s30   ;;  %s10594_s29 = sphi %s10666_s29, %s12843_s29   ;;  %s10590_s28 = sphi %s10664_s28, %s12851_s28   ;;  %s10586_s27 = sphi %s10662_s27, %s12842_s27   ;;  %s10582_s26 = sphi %s10660_s26, %s12850_s26   ;;  %s10578_s25 = sphi %s10658_s25, %s12849_s25   ;;  %s10574_s24 = sphi %s10656_s24, %s12848_s24   ;;  %s10570_s23 = sphi %s10654_s23, %s12847_s23   ;;  %s10566_s22 = sphi %s10652_s22, %s12846_s22   ;;  %s10562_s21 = sphi %s10650_s21, %s12845_s21  }
  0x12   : > { %12583 = sst [smem:[#allocation26_spill]] %s10590_s28  ;;  %p7058_p0 = scmp.ge.s32.totalorder %s10602_s7, 1 }
  0x13   : > { %12584 = sst [smem:[#allocation27_spill]] %s10594_s29  ;;  %p66_p1 = scmp.eq.s32.totalorder %s10706_s8, 0 }
  0x14   : > { %p191_p2 = scmp.lt.s32.totalorder %s10602_s7, 7  ;;  %s12585_s4 = sld [smem:[#allocation116_spill]] }
  0x15   : > { %s10604_s13 = smov [#allocation12]   ;;  %s10605_s16 = smov 128  }
  0x16   : > { %p10714_p3 = pnand %p7058_p0, %p191_p2  ;;  %s204_s14 = sshll.u32 %s10604_s13, 4  ;;  %s205_s14 = int_to_ptr.vmem [resolvable:$true] %s204_s14 }
  0x17   : > { %s10606_s17 = smov 8   ;;  %p60_p6 = scmp.eq.s32.totalorder %s10602_s7, 0 }
  0x18   : > { %p10161_p4 = pneg %p10714_p3  ;;  %p85_p7 = scmp.ne.s32.totalorder %s10570_s23, %s10566_s22 }
  0x19   : > { %p91_p8 = scmp.ne.s32.totalorder %s10566_s22, %s10562_s21  ;;  %p10180_p9 = scmp.lt.s32.totalorder %s10602_s7, 6 }
  0x1a   : > { %s202_s11 = sshll.u32 %s12585_s4, 4  ;;  %p10722_p5 = pnand %p10161_p4, %p66_p1  ;;  %s203_s11 = int_to_ptr.hbm [resolvable:$true] %s202_s11 }
  0x1b   : > { %p87_p10 = por %p85_p7, %p60_p6  ;;  %s255_s19 = sand.u32 1, %s10602_s7  }
  0x1c   : > { %10164 = dma.hbm_to_vmem [thread:$0]  (!%p10722_p5), %s203_s11, 2048, %s205_s14, [#allocation13], %s10605_s16, %s10605_s16, %s10606_s17  }
  0x1d   : > { %p10740_p11 = por %p91_p8, %p66_p1  ;;  %s12506_s9 = sand.u32 1, %s10570_s23  }
  0x1e   : > { %s8686_s10 = sshll.u32 %s10598_s30, 6  ;;  %s7066_s13 = sshll.u32 %s12506_s9, 6 }
  0x1f   : > { %s12589_s2 = sld [smem:[#allocation115_spill]]  ;;  %s259_s21 = scalar_lea.vmem [#allocation9], %s7066_s13 }
  0x20   : > { %s267_s17 = sshll.u32 %s259_s21, 4  ;;  %p10753_p12 = pnand %p10180_p9, %p87_p10  ;;  %s268_s17 = int_to_ptr.vmem [resolvable:$true] %s267_s17 }
  0x21   : > { %s12591_s5 = sld [smem:[#allocation117_spill]]  ;;  %s10607_s13 = smov 64  }
  0x22   : > { %s10608_s11 = smov 4   ;;  %s39_s6 = sadd.s32 1, %s10594_s29 }
  0x23   : > { %p41_p13 = scmp.ge.s32.totalorder %s39_s6, 2  ;;  %s52_s9 = sadd.s32 1, %s10582_s26 }
  0x24   : > { %p59_p0 = scmp.ne.s32.totalorder %s10582_s26, %s10578_s25  ;;  %p65_p2 = scmp.ne.s32.totalorder %s10578_s25, %s10574_s24 }
  0x25   : > { %s264_s14 = scalar_lea.hbm %s12589_s2, %s8686_s10  ;;  %s10760_s10 = scalar_lea.sflag [#allocation10], %s255_s19 }
  0x26   : > { %s265_s16 = sshll.u32 %s264_s14, 4  ;;  %s10609_s14 = smov [#allocation14]   ;;  %s266_s16 = int_to_ptr.hbm [resolvable:$true] %s265_s16 }
  0x27   : > { %s217_s4 = sshll.u32 %s12591_s5, 4  ;;  %s219_s21 = sshll.u32 %s10609_s14, 4  ;;  %s218_s4 = int_to_ptr.hbm [resolvable:$true] %s217_s4  ;;  %s220_s21 = int_to_ptr.vmem [resolvable:$true] %s219_s21 }
  0x28   : > { %10174 = dma.hbm_to_vmem [thread:$0]  (!%p10753_p12), %s266_s16, 1024, %s268_s17, %s10760_s10, %s10607_s13, %s10607_s13, %s10608_s11  }
  0x29   : > { %10167 = dma.hbm_to_vmem [thread:$0]  (!%p10722_p5), %s218_s4, 16, %s220_s21, [#allocation13]  }
  0x2a   : > { %s43_s19 = sadd.s32 1, %s10598_s30  ;;  %s12854_s6 = smov (%p41_p13, %s39_s6), 0 }
  0x2b   : > { %12592 = sst [smem:[#allocation28_spill]] %s12854_s6  ;;  %s12856_s19 = smov (!%p41_p13, %s43_s19), %s10598_s30 }
  0x2c   : > { %s47_s16 = ssub.s32 %s10594_s29, %s12854_s6  ;;  %p10781_p4 = por %p60_p6, %p59_p0 }
  0x2d   : > { %p45_p5 = scmp.ge.s32.totalorder %s12856_s19, 3  ;;  %p50_p7 = scmp.eq.s32.totalorder %s47_s16, 0 }
  0x2e   : > { %p10787_p8 = por %p66_p1, %p65_p2  ;;  %s230_s24 = sand.u32 1, %s10582_s26  }
  0x2f   : > { %s12858_s19 = smov (%p45_p5, %s12856_s19), 0  ;;  %s7062_s11 = sshll.u32 %s230_s24, 11 }
  0x30   : > { %12595 = sst [smem:[#allocation29_spill]] %s12858_s19  ;;  %s75_s13 = ssub.s32 %s10598_s30, %s12858_s19 }
  0x31   : > { %s10795_s4 = scalar_select %p50_p7, %s10582_s26, %s52_s9  }
  0x32   : > { %p76_p6 = scmp.eq.s32.totalorder %s75_s13, 0  ;;  %s8685_s14 = sshll.u32 %s10594_s29, 11 }
  0x33   : > { %12596 = sst [smem:[#allocation30_spill]] %s10795_s4  ;;  %s12597_s21 = sadd.s32 1, %s10570_s23 }
  0x34   : > { %s10803_s16 = scalar_select %p76_p6, %s10570_s23, %s12597_s21  }
  0x35   : > { %s242_s6 = scalar_lea.hbm %s12500_s1, %s8685_s14  ;;  %s234_s0 = scalar_lea.vmem [#allocation6], %s7062_s11 }
  0x36   : > { %s245_s27 = sshll.u32 %s234_s0, 4  ;;  %s243_s28 = sshll.u32 %s242_s6, 4  ;;  %s246_s27 = int_to_ptr.vmem [resolvable:$true] %s245_s27  ;;  %s244_s28 = int_to_ptr.hbm [resolvable:$true] %s243_s28 }
  0x37   : > { %p10169_p10 = pnand %p10180_p9, %p10781_p4  ;;  %s231_s9 = scalar_lea.sflag [#allocation7], %s230_s24 }
  0x38   : > { %s10610_s13 = smov 512   ;;  %s10611_s19 = smov 32  }
  0x39   : > { %10171 = dma.hbm_to_vmem [thread:$0]  (!%p10169_p10), %s244_s28, 32768, %s246_s27, %s231_s9, %s10610_s13, %s10610_s13, %s10611_s19  }
  0x3a   : > { %s283_s4 = scalar_lea.hbm %s12502_s3, %s10598_s30  ;;  %s12598_s2 = sand.u32 1, %s10570_s23  }
  0x3b   : > { %s280_s5 = scalar_lea.vmem [#allocation11], %s12598_s2  ;;  %s285_s14 = sshll.u32 %s283_s4, 4  ;;  %s286_s14 = int_to_ptr.hbm [resolvable:$true] %s285_s14 }
  0x3c   : > { %s287_s11 = sshll.u32 %s280_s5, 4  ;;  %296 = sbr.rel (%p10714_p3) target bundleno = 2540 (0x9ec), region = 40  ;;  %s288_s11 = int_to_ptr.vmem [resolvable:$true] %s287_s11 }
  0x3d   : > { %10177 = dma.hbm_to_vmem [thread:$0]  (!%p10753_p12), %s286_s14, 16, %s288_s11, %s10760_s10  }
  0x41   : > { %s298_s0 = sand.u32 1, %s10578_s25  }
  0x42   : > { %s7070_s6 = sshll.u32 %s298_s0, 11  ;;  %s299_s27 = scalar_lea.sflag [#allocation7], %s298_s0 }
  0x43   : > { %s10824_s28 = scalar_lea.vmem [#allocation6], %s7070_s6 }
  0x44   : > { %10541 = dma.done.wait (%p10787_p8), %s299_s27, 32768  }
  0x45   : > { %10543 = vsyncadd (%p10787_p8), %s299_s27, 4294934528  ;;  %s308_s29 = sand.u32 1, %s10706_s8   ;;  %s310_s18 = sand.u32 1, %s10566_s22  }
  0x46   : > { %s7071_s10 = sshll.u32 %s310_s18, 6  ;;  %s309_s12 = scalar_lea.sflag [#allocation10], %s308_s29 }
  0x47   : > { %s10832_s19 = scalar_lea.vmem [#allocation9], %s7071_s10 }
  0x48   : > { %10545 = dma.done.wait (%p10740_p11), %s309_s12, 1040  }
  0x49   : > { %10547 = vsyncadd (%p10740_p11), %s309_s12, 4294966256  ;;  %s10838_s15 = scalar_lea.vmem [#allocation11], %s310_s18 }
  0x4a   : > { %10549 = dma.done.wait (%p66_p1), [#allocation13], 2064  }
  0x4b   : > { %10551 = vsyncadd (%p66_p1), [#allocation13], 4294965232  ;;  %s12599_s17 = sld [smem:[#allocation26_spill]]  ;;  %s10612_s20 = smov [#allocation15]  }
  0x4c   : > { %s12600_s24 = sld [smem:[#allocation25_spill]]  ;;  %s10851_s2 = sshll.u32 %s10612_s20, 4  ;;  %s384_s2 = int_to_ptr.vmem [resolvable:$true] %s10851_s2 }
  0x4d   : > { %s12601_s13 = sld [smem:[#allocation114_spill]] }
  0x51   : > { %p365_p3 = scmp.eq.s32.totalorder %s12599_s17, 0 }
  0x52   : > { %p366_p9 = scmp.eq.s32.totalorder %s12600_s24, 0 }
  0x53   : > { %s381_s21 = sshll.u32 %s12601_s13, 4  ;;  %s382_s21 = int_to_ptr.hbm [resolvable:$true] %s381_s21 }
  0x54   : > { %p367_p12 = pnand %p366_p9, %p365_p3 }
  0x56   : > { %p10154_p11 = pneg %p367_p12 }
  0x57   : > { %10155 = dma.hbm_to_vmem [thread:$0]  (!%p367_p12), %s382_s21, 16384, %s384_s2, [#allocation5] }
  0x58   : > { %10553 = dma.done.wait (%p10154_p11), [#allocation5], 16384 }
  0x59   : > { %10555 = vsyncadd (%p10154_p11), [#allocation5], 4294950912  ;;  %392 = sbr.rel (%p367_p12) target bundleno = 511 (0x1ff), region = 72 }
  0x5e   : > { %v8694_v0 = vld [vmem:[%s10832_s19 + $0x38] sm:$0xff]  ;;  %v8693_v1 = vld [vmem:[%s10832_s19 + $0x30] sm:$0xff]  ;;  %v8692_v2 = vld [vmem:[%s10832_s19 + $0x28] sm:$0xff] }
  0x5f   : > { %650 = vmatpush.bf16.msra.mxu0 %v8694_v0  ;;  %10044 = vmatpush.bf16.msra.mxu1 %v8694_v0  ;;  %v8691_v3 = vld [vmem:[%s10832_s19 + $0x20] sm:$0xff]  ;;  %v8690_v4 = vld [vmem:[%s10832_s19 + $0x18] sm:$0xff]  ;;  %v8689_v5 = vld [vmem:[%s10832_s19 + $0x10] sm:$0xff] }
  0x60   : > { %10045 = vmatpush.bf16.msra.mxu2 %v8694_v0  ;;  %10046 = vmatpush.bf16.msra.mxu3 %v8694_v0  ;;  %v8688_v6 = vld [vmem:[%s10832_s19 + $0x8] sm:$0xff]  ;;  %v8687_v7 = vld [vmem:[%s10832_s19] sm:$0xff]  ;;  %v396_v20 = vld [vmem:[#allocation15 + $0x10] sm:$0xff] }
  0x61   : > { %v394_v8 = vld [vmem:[#allocation15] sm:$0xff]  ;;  %v395_v9 = vld [vmem:[#allocation15 + $0x8] sm:$0xff]  ;;  %v397_v21 = vld [vmem:[#allocation15 + $0x18] sm:$0xff] }
  0x62   : > { %v426_v10 = vld [vmem:[#allocation15 + $0x100] sm:$0xff]  ;;  %v427_v11 = vld [vmem:[#allocation15 + $0x108] sm:$0xff]  ;;  %v522_v16 = vpack.c.bf16 %v395_v9, %v394_v8  ;;  %v428_v22 = vld [vmem:[#allocation15 + $0x110] sm:$0xff]  ;;  %v523_v28 = vpack.c.bf16 %v397_v21, %v396_v20 }
  0x63   : > { %651 = vmatpush.bf16.msra.mxu0 %v8693_v1  ;;  %10047 = vmatpush.bf16.msra.mxu1 %v8693_v1  ;;  %v458_v12 = vld [vmem:[#allocation15 + $0x200] sm:$0xff]  ;;  %v459_v13 = vld [vmem:[#allocation15 + $0x208] sm:$0xff]  ;;  %v538_v17 = vpack.c.bf16 %v427_v11, %v426_v10  ;;  %v429_v23 = vld [vmem:[#allocation15 + $0x118] sm:$0xff] }
  0x64   : > { %10048 = vmatpush.bf16.msra.mxu2 %v8693_v1  ;;  %10049 = vmatpush.bf16.msra.mxu3 %v8693_v1  ;;  %v490_v14 = vld [vmem:[#allocation15 + $0x300] sm:$0xff]  ;;  %v491_v15 = vld [vmem:[#allocation15 + $0x308] sm:$0xff]  ;;  %v554_v18 = vpack.c.bf16 %v459_v13, %v458_v12  ;;  %v460_v24 = vld [vmem:[#allocation15 + $0x210] sm:$0xff]  ;;  %v539_v29 = vpack.c.bf16 %v429_v23, %v428_v22 }
  0x65   : > { %v570_v19 = vpack.c.bf16 %v491_v15, %v490_v14  ;;  %v461_v25 = vld [vmem:[#allocation15 + $0x218] sm:$0xff]  ;;  %v492_v26 = vld [vmem:[#allocation15 + $0x310] sm:$0xff]  ;;  %v398_v32 = vld [vmem:[#allocation15 + $0x20] sm:$0xff] }
  0x66   : > { %v493_v27 = vld [vmem:[#allocation15 + $0x318] sm:$0xff]  ;;  %v555_v30 = vpack.c.bf16 %v461_v25, %v460_v24  ;;  %v399_v33 = vld [vmem:[#allocation15 + $0x28] sm:$0xff]  ;;  %v430_v34 = vld [vmem:[#allocation15 + $0x120] sm:$0xff] }
  0x67   : > { %652 = vmatpush.bf16.msra.mxu0 %v8692_v2  ;;  %10050 = vmatpush.bf16.msra.mxu1 %v8692_v2  ;;  %v571_v31 = vpack.c.bf16 %v493_v27, %v492_v26  ;;  %v431_v35 = vld [vmem:[#allocation15 + $0x128] sm:$0xff]  ;;  %v462_v36 = vld [vmem:[#allocation15 + $0x220] sm:$0xff]  ;;  %v524_v40 = vpack.c.bf16 %v399_v33, %v398_v32  ;;  %v400_v44 = vld [vmem:[#allocation15 + $0x30] sm:$0xff] }
  0x68   : > { %10051 = vmatpush.bf16.msra.mxu2 %v8692_v2  ;;  %10052 = vmatpush.bf16.msra.mxu3 %v8692_v2  ;;  %v463_v37 = vld [vmem:[#allocation15 + $0x228] sm:$0xff]  ;;  %v494_v38 = vld [vmem:[#allocation15 + $0x320] sm:$0xff]  ;;  %v540_v41 = vpack.c.bf16 %v431_v35, %v430_v34  ;;  %v401_v45 = vld [vmem:[#allocation15 + $0x38] sm:$0xff] }
  0x69   : > { %v495_v39 = vld [vmem:[#allocation15 + $0x328] sm:$0xff]  ;;  %v556_v42 = vpack.c.bf16 %v463_v37, %v462_v36  ;;  %v432_v46 = vld [vmem:[#allocation15 + $0x130] sm:$0xff]  ;;  %v433_v47 = vld [vmem:[#allocation15 + $0x138] sm:$0xff]  ;;  %v525_v52 = vpack.c.bf16 %v401_v45, %v400_v44 }
  0x6a   : > { %v572_v43 = vpack.c.bf16 %v495_v39, %v494_v38  ;;  %v464_v48 = vld [vmem:[#allocation15 + $0x230] sm:$0xff]  ;;  %v465_v49 = vld [vmem:[#allocation15 + $0x238] sm:$0xff]  ;;  %v541_v53 = vpack.c.bf16 %v433_v47, %v432_v46  ;;  %v402_v56 = vld [vmem:[#allocation15 + $0x40] sm:$0xff] }
  0x6b   : > { %653 = vmatpush.bf16.msra.mxu0 %v8691_v3  ;;  %10053 = vmatpush.bf16.msra.mxu1 %v8691_v3  ;;  %v496_v50 = vld [vmem:[#allocation15 + $0x330] sm:$0xff]  ;;  %v497_v51 = vld [vmem:[#allocation15 + $0x338] sm:$0xff]  ;;  %v557_v54 = vpack.c.bf16 %v465_v49, %v464_v48  ;;  %v403_v57 = vld [vmem:[#allocation15 + $0x48] sm:$0xff] }
  0x6c   : > { %10054 = vmatpush.bf16.msra.mxu2 %v8691_v3  ;;  %10055 = vmatpush.bf16.msra.mxu3 %v8691_v3  ;;  %v573_v55 = vpack.c.bf16 %v497_v51, %v496_v50  ;;  %v434_v58 = vld [vmem:[#allocation15 + $0x140] sm:$0xff]  ;;  %v435_v59 = vld [vmem:[#allocation15 + $0x148] sm:$0xff]  ;;  %v526_v0 = vpack.c.bf16 %v403_v57, %v402_v56  ;;  %v468_v8 = vld [vmem:[#allocation15 + $0x250] sm:$0xff] }
  0x6d   : > { %v466_v60 = vld [vmem:[#allocation15 + $0x240] sm:$0xff]  ;;  %v467_v61 = vld [vmem:[#allocation15 + $0x248] sm:$0xff]  ;;  %v542_v1 = vpack.c.bf16 %v435_v59, %v434_v58  ;;  %v469_v9 = vld [vmem:[#allocation15 + $0x258] sm:$0xff] }
  0x6e   : > { %v498_v62 = vld [vmem:[#allocation15 + $0x340] sm:$0xff]  ;;  %v499_v63 = vld [vmem:[#allocation15 + $0x348] sm:$0xff]  ;;  %v558_v2 = vpack.c.bf16 %v467_v61, %v466_v60  ;;  %v500_v10 = vld [vmem:[#allocation15 + $0x350] sm:$0xff]  ;;  %v559_v14 = vpack.c.bf16 %v469_v9, %v468_v8 }
  0x6f   : > { %654 = vmatpush.bf16.msra.mxu0 %v8690_v4  ;;  %10056 = vmatpush.bf16.msra.mxu1 %v8690_v4  ;;  %v574_v3 = vpack.c.bf16 %v499_v63, %v498_v62  ;;  %v501_v11 = vld [vmem:[#allocation15 + $0x358] sm:$0xff]  ;;  %v470_v20 = vld [vmem:[#allocation15 + $0x260] sm:$0xff]  ;;  %v471_v21 = vld [vmem:[#allocation15 + $0x268] sm:$0xff] }
  0x70   : > { %10057 = vmatpush.bf16.msra.mxu2 %v8690_v4  ;;  %10058 = vmatpush.bf16.msra.mxu3 %v8690_v4  ;;  %v404_v4 = vld [vmem:[#allocation15 + $0x50] sm:$0xff]  ;;  %v575_v15 = vpack.c.bf16 %v501_v11, %v500_v10  ;;  %v502_v22 = vld [vmem:[#allocation15 + $0x360] sm:$0xff]  ;;  %v503_v23 = vld [vmem:[#allocation15 + $0x368] sm:$0xff]  ;;  %v560_v26 = vpack.c.bf16 %v471_v21, %v470_v20 }
  0x71   : > { %v576_v27 = vpack.c.bf16 %v503_v23, %v502_v22  ;;  %v472_v32 = vld [vmem:[#allocation15 + $0x270] sm:$0xff]  ;;  %v473_v33 = vld [vmem:[#allocation15 + $0x278] sm:$0xff]  ;;  %v474_v44 = vld [vmem:[#allocation15 + $0x280] sm:$0xff] }
  0x72   : > { %v504_v34 = vld [vmem:[#allocation15 + $0x370] sm:$0xff]  ;;  %v505_v35 = vld [vmem:[#allocation15 + $0x378] sm:$0xff]  ;;  %v561_v38 = vpack.c.bf16 %v473_v33, %v472_v32  ;;  %v475_v45 = vld [vmem:[#allocation15 + $0x288] sm:$0xff] }
  0x73   : > { %655 = vmatpush.bf16.msra.mxu0 %v8689_v5  ;;  %10059 = vmatpush.bf16.msra.mxu1 %v8689_v5  ;;  %v577_v39 = vpack.c.bf16 %v505_v35, %v504_v34  ;;  %v506_v46 = vld [vmem:[#allocation15 + $0x380] sm:$0xff]  ;;  %v507_v47 = vld [vmem:[#allocation15 + $0x388] sm:$0xff]  ;;  %v412_v60 = vld [vmem:[#allocation15 + $0x90] sm:$0xff] }
  0x74   : > { %10060 = vmatpush.bf16.msra.mxu2 %v8689_v5  ;;  %10061 = vmatpush.bf16.msra.mxu3 %v8689_v5  ;;  %v405_v5 = vld [vmem:[#allocation15 + $0x58] sm:$0xff]  ;;  %v444_v62 = vld [vmem:[#allocation15 + $0x190] sm:$0xff]  ;;  %v414_v20 = vld [vmem:[#allocation15 + $0xa0] sm:$0xff] }
  0x75   : > { %v527_v12 = vpack.c.bf16 %v405_v5, %v404_v4  ;;  %v413_v61 = vld [vmem:[#allocation15 + $0x98] sm:$0xff]  ;;  %v415_v21 = vld [vmem:[#allocation15 + $0xa8] sm:$0xff]  ;;  %v446_v22 = vld [vmem:[#allocation15 + $0x1a0] sm:$0xff] }
  0x76   : > { %v445_v63 = vld [vmem:[#allocation15 + $0x198] sm:$0xff]  ;;  %v447_v23 = vld [vmem:[#allocation15 + $0x1a8] sm:$0xff] }
  0x77   : > { %656 = vmatpush.bf16.msra.mxu0 %v8688_v6  ;;  %10062 = vmatpush.bf16.msra.mxu1 %v8688_v6 }
  0x78   : > { %10063 = vmatpush.bf16.msra.mxu2 %v8688_v6  ;;  %10064 = vmatpush.bf16.msra.mxu3 %v8688_v6  ;;  %v436_v6 = vld [vmem:[#allocation15 + $0x150] sm:$0xff] }
  0x7b   : > { %657 = vmatpush.bf16.msra.mxu0 %v8687_v7  ;;  %10065 = vmatpush.bf16.msra.mxu1 %v8687_v7 }
  0x7c   : > { %10066 = vmatpush.bf16.msra.mxu2 %v8687_v7  ;;  %10067 = vmatpush.bf16.msra.mxu3 %v8687_v7  ;;  %v437_v7 = vld [vmem:[#allocation15 + $0x158] sm:$0xff] }
  0x7d   : > { %v543_v13 = vpack.c.bf16 %v437_v7, %v436_v6  ;;  %v531_v6 = vpack.c.bf16 %v413_v61, %v412_v60  ;;  %v547_v7 = vpack.c.bf16 %v445_v63, %v444_v62 }
  0x7e   : > { %658 = vmatmul.bf16.vlgmr.msra.gmra.mxu0 %v522_v16  ;;  %738 = vmatmul.bf16.vlgmr.msra.gmra.mxu1 %v538_v17  ;;  %v406_v16 = vld [vmem:[#allocation15 + $0x60] sm:$0xff]  ;;  %v407_v17 = vld [vmem:[#allocation15 + $0x68] sm:$0xff] }
  0x7f   : > { %818 = vmatmul.bf16.vlgmr.msra.gmra.mxu2 %v554_v18  ;;  %898 = vmatmul.bf16.vlgmr.msra.gmra.mxu3 %v570_v19  ;;  %v438_v18 = vld [vmem:[#allocation15 + $0x160] sm:$0xff]  ;;  %v439_v19 = vld [vmem:[#allocation15 + $0x168] sm:$0xff]  ;;  %v528_v24 = vpack.c.bf16 %v407_v17, %v406_v16 }
  0x80   : > { %v544_v25 = vpack.c.bf16 %v439_v19, %v438_v18 }
  0x8e   : > { %663 = vmatmul.bf16.gmra.mxu0 %v523_v28  ;;  %743 = vmatmul.bf16.gmra.mxu1 %v539_v29  ;;  %v408_v28 = vld [vmem:[#allocation15 + $0x70] sm:$0xff]  ;;  %v409_v29 = vld [vmem:[#allocation15 + $0x78] sm:$0xff] }
  0x8f   : > { %823 = vmatmul.bf16.gmra.mxu2 %v555_v30  ;;  %903 = vmatmul.bf16.gmra.mxu3 %v571_v31  ;;  %v440_v30 = vld [vmem:[#allocation15 + $0x170] sm:$0xff]  ;;  %v441_v31 = vld [vmem:[#allocation15 + $0x178] sm:$0xff]  ;;  %v529_v36 = vpack.c.bf16 %v409_v29, %v408_v28 }
  0x90   : > { %v545_v37 = vpack.c.bf16 %v441_v31, %v440_v30  ;;  %v532_v30 = vpack.c.bf16 %v415_v21, %v414_v20  ;;  %v548_v31 = vpack.c.bf16 %v447_v23, %v446_v22 }
  0x9e   : > { %668 = vmatmul.bf16.gmra.mxu0 %v524_v40  ;;  %748 = vmatmul.bf16.gmra.mxu1 %v540_v41  ;;  %v410_v40 = vld [vmem:[#allocation15 + $0x80] sm:$0xff]  ;;  %v411_v41 = vld [vmem:[#allocation15 + $0x88] sm:$0xff] }
  0x9f   : > { %828 = vmatmul.bf16.gmra.mxu2 %v556_v42  ;;  %908 = vmatmul.bf16.gmra.mxu3 %v572_v43  ;;  %v442_v42 = vld [vmem:[#allocation15 + $0x180] sm:$0xff]  ;;  %v443_v43 = vld [vmem:[#allocation15 + $0x188] sm:$0xff]  ;;  %v530_v48 = vpack.c.bf16 %v411_v41, %v410_v40 }
  0xa0   : > { %v546_v49 = vpack.c.bf16 %v443_v43, %v442_v42 }
  0xae   : > { %673 = vmatmul.bf16.gmra.mxu0 %v525_v52  ;;  %753 = vmatmul.bf16.gmra.mxu1 %v541_v53  ;;  %v562_v52 = vpack.c.bf16 %v475_v45, %v474_v44  ;;  %v578_v53 = vpack.c.bf16 %v507_v47, %v506_v46  ;;  %v416_v44 = vld [vmem:[#allocation15 + $0xb0] sm:$0xff]  ;;  %v417_v45 = vld [vmem:[#allocation15 + $0xb8] sm:$0xff] }
  0xaf   : > { %833 = vmatmul.bf16.gmra.mxu2 %v557_v54  ;;  %913 = vmatmul.bf16.gmra.mxu3 %v573_v55  ;;  %v448_v46 = vld [vmem:[#allocation15 + $0x1b0] sm:$0xff]  ;;  %v449_v47 = vld [vmem:[#allocation15 + $0x1b8] sm:$0xff] }
  0xbe   : > { %678 = vmatmul.bf16.gmra.mxu0 %v526_v0  ;;  %758 = vmatmul.bf16.gmra.mxu1 %v542_v1  ;;  %v476_v0 = vld [vmem:[#allocation15 + $0x290] sm:$0xff]  ;;  %v477_v1 = vld [vmem:[#allocation15 + $0x298] sm:$0xff] }
  0xbf   : > { %838 = vmatmul.bf16.gmra.mxu2 %v558_v2  ;;  %918 = vmatmul.bf16.gmra.mxu3 %v574_v3  ;;  %v508_v2 = vld [vmem:[#allocation15 + $0x390] sm:$0xff]  ;;  %v509_v3 = vld [vmem:[#allocation15 + $0x398] sm:$0xff] }
  0xce   : > { %683 = vmatmul.bf16.gmra.mxu0 %v527_v12  ;;  %763 = vmatmul.bf16.gmra.mxu1 %v543_v13  ;;  %v563_v12 = vpack.c.bf16 %v477_v1, %v476_v0  ;;  %v579_v13 = vpack.c.bf16 %v509_v3, %v508_v2 }
  0xcf   : > { %843 = vmatmul.bf16.gmra.mxu2 %v559_v14  ;;  %923 = vmatmul.bf16.gmra.mxu3 %v575_v15 }
  0xde   : > { %688 = vmatmul.bf16.gmra.mxu0 %v528_v24  ;;  %768 = vmatmul.bf16.gmra.mxu1 %v544_v25  ;;  %v478_v24 = vld [vmem:[#allocation15 + $0x2a0] sm:$0xff]  ;;  %v479_v25 = vld [vmem:[#allocation15 + $0x2a8] sm:$0xff] }
  0xdf   : > { %848 = vmatmul.bf16.gmra.mxu2 %v560_v26  ;;  %928 = vmatmul.bf16.gmra.mxu3 %v576_v27  ;;  %v510_v26 = vld [vmem:[#allocation15 + $0x3a0] sm:$0xff]  ;;  %v511_v27 = vld [vmem:[#allocation15 + $0x3a8] sm:$0xff] }
  0xee   : > { %693 = vmatmul.bf16.gmra.mxu0 %v529_v36  ;;  %773 = vmatmul.bf16.gmra.mxu1 %v545_v37  ;;  %v564_v36 = vpack.c.bf16 %v479_v25, %v478_v24  ;;  %v580_v37 = vpack.c.bf16 %v511_v27, %v510_v26 }
  0xef   : > { %853 = vmatmul.bf16.gmra.mxu2 %v561_v38  ;;  %933 = vmatmul.bf16.gmra.mxu3 %v577_v39 }
  0xfb   : > { %v659_v50 = vpop.f32.mrf.mxu0  ;;  %v739_v51 = vpop.f32.mrf.mxu1 }
  0xfe   : > { %698 = vmatmul.bf16.gmra.mxu0 %v530_v48  ;;  %778 = vmatmul.bf16.gmra.mxu1 %v546_v49  ;;  %v480_v48 = vld [vmem:[#allocation15 + $0x2b0] sm:$0xff]  ;;  %v481_v49 = vld [vmem:[#allocation15 + $0x2b8] sm:$0xff] }
  0xff   : > { %858 = vmatmul.bf16.gmra.mxu2 %v562_v52  ;;  %938 = vmatmul.bf16.gmra.mxu3 %v578_v53  ;;  %v565_v60 = vpack.c.bf16 %v481_v49, %v480_v48 }
 0x102   : > { %v819_v54 = vpop.f32.mrf.mxu2  ;;  %v899_v55 = vpop.f32.mrf.mxu3 }
 0x103   : > { %v661_v56 = vpop.f32.mrf.mxu0  ;;  %v741_v57 = vpop.f32.mrf.mxu1 }
 0x104   : > { %v9090_v58 = vpack.c.bf16 %v661_v56, %v659_v50  ;;  %v9170_v59 = vpack.c.bf16 %v741_v57, %v739_v51  ;;  %v512_v50 = vld [vmem:[#allocation15 + $0x3b0] sm:$0xff]  ;;  %v513_v51 = vld [vmem:[#allocation15 + $0x3b8] sm:$0xff] }
 0x105   : > { %v581_v61 = vpack.c.bf16 %v513_v51, %v512_v50 }
 0x106   : > { %9091 = vst [vmem:[#allocation3 + $0xb0] sm:$0xff] %v9090_v58  }
 0x107   : > { %9902 = vst [vmem:[#allocation3 + $0xe0] sm:$0xff] %v9170_v59  }
 0x10a   : > { %v821_v4 = vpop.f32.mrf.mxu2  ;;  %v901_v5 = vpop.f32.mrf.mxu3 }
 0x10b   : > { %v9250_v8 = vpack.c.bf16 %v821_v4, %v819_v54  ;;  %v9330_v9 = vpack.c.bf16 %v901_v5, %v899_v55  ;;  %v664_v10 = vpop.f32.mrf.mxu0  ;;  %v744_v11 = vpop.f32.mrf.mxu1  ;;  %v533_v54 = vpack.c.bf16 %v417_v45, %v416_v44  ;;  %v549_v55 = vpack.c.bf16 %v449_v47, %v448_v46  ;;  %v418_v4 = vld [vmem:[#allocation15 + $0xc0] sm:$0xff]  ;;  %v419_v5 = vld [vmem:[#allocation15 + $0xc8] sm:$0xff] }
 0x10d   : > { %9918 = vst [vmem:[#allocation3 + $0x148] sm:$0xff] %v9250_v8   ;;  %v482_v8 = vld [vmem:[#allocation15 + $0x2c0] sm:$0xff] }
 0x10e   : > { %9934 = vst [vmem:[#allocation3 + $0xb8] sm:$0xff] %v9330_v9   ;;  %703 = vmatmul.bf16.gmra.mxu0 %v531_v6  ;;  %783 = vmatmul.bf16.gmra.mxu1 %v547_v7  ;;  %v450_v6 = vld [vmem:[#allocation15 + $0x1c0] sm:$0xff]  ;;  %v451_v7 = vld [vmem:[#allocation15 + $0x1c8] sm:$0xff] }
 0x10f   : > { %863 = vmatmul.bf16.gmra.mxu2 %v563_v12  ;;  %943 = vmatmul.bf16.gmra.mxu3 %v579_v13  ;;  %v483_v9 = vld [vmem:[#allocation15 + $0x2c8] sm:$0xff] }
 0x110   : > { %v566_v20 = vpack.c.bf16 %v483_v9, %v482_v8 }
 0x112   : > { %v824_v14 = vpop.f32.mrf.mxu2  ;;  %v904_v15 = vpop.f32.mrf.mxu3 }
 0x113   : > { %v666_v16 = vpop.f32.mrf.mxu0  ;;  %v746_v17 = vpop.f32.mrf.mxu1 }
 0x114   : > { %v9095_v18 = vpack.c.bf16 %v666_v16, %v664_v10  ;;  %v9175_v19 = vpack.c.bf16 %v746_v17, %v744_v11  ;;  %v514_v10 = vld [vmem:[#allocation15 + $0x3c0] sm:$0xff]  ;;  %v515_v11 = vld [vmem:[#allocation15 + $0x3c8] sm:$0xff] }
 0x115   : > { %v582_v21 = vpack.c.bf16 %v515_v11, %v514_v10 }
 0x116   : > { %9887 = vst [vmem:[#allocation3 + $0x1b0] sm:$0xff] %v9095_v18  }
 0x117   : > { %9903 = vst [vmem:[#allocation3 + $0x188] sm:$0xff] %v9175_v19  }
 0x11a   : > { %v826_v28 = vpop.f32.mrf.mxu2  ;;  %v906_v29 = vpop.f32.mrf.mxu3 }
 0x11b   : > { %v9255_v32 = vpack.c.bf16 %v826_v28, %v824_v14  ;;  %v9335_v33 = vpack.c.bf16 %v906_v29, %v904_v15  ;;  %v669_v34 = vpop.f32.mrf.mxu0  ;;  %v749_v35 = vpop.f32.mrf.mxu1  ;;  %v534_v14 = vpack.c.bf16 %v419_v5, %v418_v4  ;;  %v550_v15 = vpack.c.bf16 %v451_v7, %v450_v6  ;;  %v420_v28 = vld [vmem:[#allocation15 + $0xd0] sm:$0xff]  ;;  %v421_v29 = vld [vmem:[#allocation15 + $0xd8] sm:$0xff] }
 0x11d   : > { %9919 = vst [vmem:[#allocation3 + $0x1d0] sm:$0xff] %v9255_v32   ;;  %v484_v32 = vld [vmem:[#allocation15 + $0x2d0] sm:$0xff] }
 0x11e   : > { %9935 = vst [vmem:[#allocation3 + $0x88] sm:$0xff] %v9335_v33   ;;  %708 = vmatmul.bf16.gmra.mxu0 %v532_v30  ;;  %788 = vmatmul.bf16.gmra.mxu1 %v548_v31  ;;  %v452_v30 = vld [vmem:[#allocation15 + $0x1d0] sm:$0xff]  ;;  %v453_v31 = vld [vmem:[#allocation15 + $0x1d8] sm:$0xff] }
 0x11f   : > { %868 = vmatmul.bf16.gmra.mxu2 %v564_v36  ;;  %948 = vmatmul.bf16.gmra.mxu3 %v580_v37  ;;  %v485_v33 = vld [vmem:[#allocation15 + $0x2d8] sm:$0xff] }
 0x120   : > { %v567_v44 = vpack.c.bf16 %v485_v33, %v484_v32 }
 0x122   : > { %v829_v38 = vpop.f32.mrf.mxu2  ;;  %v909_v39 = vpop.f32.mrf.mxu3 }
 0x123   : > { %v671_v40 = vpop.f32.mrf.mxu0  ;;  %v751_v41 = vpop.f32.mrf.mxu1 }
 0x124   : > { %v9100_v42 = vpack.c.bf16 %v671_v40, %v669_v34  ;;  %v9180_v43 = vpack.c.bf16 %v751_v41, %v749_v35  ;;  %v516_v34 = vld [vmem:[#allocation15 + $0x3d0] sm:$0xff]  ;;  %v517_v35 = vld [vmem:[#allocation15 + $0x3d8] sm:$0xff] }
 0x125   : > { %v583_v45 = vpack.c.bf16 %v517_v35, %v516_v34 }
 0x126   : > { %9888 = vst [vmem:[#allocation3 + $0xd8] sm:$0xff] %v9100_v42  }
 0x127   : > { %9904 = vst [vmem:[#allocation3 + $0x138] sm:$0xff] %v9180_v43  }
 0x12a   : > { %v831_v52 = vpop.f32.mrf.mxu2  ;;  %v911_v53 = vpop.f32.mrf.mxu3 }
 0x12b   : > { %v9260_v56 = vpack.c.bf16 %v831_v52, %v829_v38  ;;  %v9340_v57 = vpack.c.bf16 %v911_v53, %v909_v39  ;;  %v674_v58 = vpop.f32.mrf.mxu0  ;;  %v754_v59 = vpop.f32.mrf.mxu1  ;;  %v535_v38 = vpack.c.bf16 %v421_v29, %v420_v28  ;;  %v551_v39 = vpack.c.bf16 %v453_v31, %v452_v30  ;;  %v422_v52 = vld [vmem:[#allocation15 + $0xe0] sm:$0xff]  ;;  %v423_v53 = vld [vmem:[#allocation15 + $0xe8] sm:$0xff] }
 0x12d   : > { %9920 = vst [vmem:[#allocation3 + $0x100] sm:$0xff] %v9260_v56   ;;  %v486_v56 = vld [vmem:[#allocation15 + $0x2e0] sm:$0xff] }
 0x12e   : > { %9936 = vst [vmem:[#allocation3 + $0xa8] sm:$0xff] %v9340_v57   ;;  %713 = vmatmul.bf16.gmra.mxu0 %v533_v54  ;;  %793 = vmatmul.bf16.gmra.mxu1 %v549_v55  ;;  %v454_v54 = vld [vmem:[#allocation15 + $0x1e0] sm:$0xff]  ;;  %v455_v55 = vld [vmem:[#allocation15 + $0x1e8] sm:$0xff] }
 0x12f   : > { %873 = vmatmul.bf16.gmra.mxu2 %v565_v60  ;;  %953 = vmatmul.bf16.gmra.mxu3 %v581_v61  ;;  %v487_v57 = vld [vmem:[#allocation15 + $0x2e8] sm:$0xff] }
 0x130   : > { %v568_v4 = vpack.c.bf16 %v487_v57, %v486_v56 }
 0x132   : > { %v834_v62 = vpop.f32.mrf.mxu2  ;;  %v914_v63 = vpop.f32.mrf.mxu3 }
 0x133   : > { %v676_v0 = vpop.f32.mrf.mxu0  ;;  %v756_v1 = vpop.f32.mrf.mxu1 }
 0x134   : > { %v9105_v2 = vpack.c.bf16 %v676_v0, %v674_v58  ;;  %v9185_v3 = vpack.c.bf16 %v756_v1, %v754_v59  ;;  %v518_v58 = vld [vmem:[#allocation15 + $0x3e0] sm:$0xff]  ;;  %v519_v59 = vld [vmem:[#allocation15 + $0x3e8] sm:$0xff] }
 0x135   : > { %v584_v5 = vpack.c.bf16 %v519_v59, %v518_v58 }
 0x136   : > { %9889 = vst [vmem:[#allocation3 + $0x18] sm:$0xff] %v9105_v2  }
 0x137   : > { %9905 = vst [vmem:[#allocation3 + $0x140] sm:$0xff] %v9185_v3  }
 0x13a   : > { %v836_v12 = vpop.f32.mrf.mxu2  ;;  %v916_v13 = vpop.f32.mrf.mxu3 }
 0x13b   : > { %v9265_v16 = vpack.c.bf16 %v836_v12, %v834_v62  ;;  %v9345_v17 = vpack.c.bf16 %v916_v13, %v914_v63  ;;  %v679_v18 = vpop.f32.mrf.mxu0  ;;  %v759_v19 = vpop.f32.mrf.mxu1  ;;  %v536_v62 = vpack.c.bf16 %v423_v53, %v422_v52  ;;  %v552_v63 = vpack.c.bf16 %v455_v55, %v454_v54  ;;  %v424_v12 = vld [vmem:[#allocation15 + $0xf0] sm:$0xff]  ;;  %v425_v13 = vld [vmem:[#allocation15 + $0xf8] sm:$0xff] }
 0x13d   : > { %9921 = vst [vmem:[#allocation3 + $0xc8] sm:$0xff] %v9265_v16   ;;  %v488_v16 = vld [vmem:[#allocation15 + $0x2f0] sm:$0xff] }
 0x13e   : > { %9937 = vst [vmem:[#allocation3 + $0x1c8] sm:$0xff] %v9345_v17   ;;  %718 = vmatmul.bf16.gmra.mxu0 %v534_v14  ;;  %798 = vmatmul.bf16.gmra.mxu1 %v550_v15  ;;  %v456_v14 = vld [vmem:[#allocation15 + $0x1f0] sm:$0xff]  ;;  %v457_v15 = vld [vmem:[#allocation15 + $0x1f8] sm:$0xff] }
 0x13f   : > { %878 = vmatmul.bf16.gmra.mxu2 %v566_v20  ;;  %958 = vmatmul.bf16.gmra.mxu3 %v582_v21  ;;  %v489_v17 = vld [vmem:[#allocation15 + $0x2f8] sm:$0xff] }
 0x140   : > { %v569_v28 = vpack.c.bf16 %v489_v17, %v488_v16 }
 0x142   : > { %v839_v22 = vpop.f32.mrf.mxu2  ;;  %v919_v23 = vpop.f32.mrf.mxu3 }
 0x143   : > { %v681_v24 = vpop.f32.mrf.mxu0  ;;  %v761_v25 = vpop.f32.mrf.mxu1 }
 0x144   : > { %v9110_v26 = vpack.c.bf16 %v681_v24, %v679_v18  ;;  %v9190_v27 = vpack.c.bf16 %v761_v25, %v759_v19  ;;  %v520_v18 = vld [vmem:[#allocation15 + $0x3f0] sm:$0xff]  ;;  %v521_v19 = vld [vmem:[#allocation15 + $0x3f8] sm:$0xff] }
 0x145   : > { %v585_v29 = vpack.c.bf16 %v521_v19, %v520_v18 }
 0x146   : > { %9890 = vst [vmem:[#allocation3 + $0x50] sm:$0xff] %v9110_v26  }
 0x147   : > { %9906 = vst [vmem:[#allocation3 + $0x80] sm:$0xff] %v9190_v27  }
 0x14a   : > { %v841_v36 = vpop.f32.mrf.mxu2  ;;  %v921_v37 = vpop.f32.mrf.mxu3 }
 0x14b   : > { %v9270_v40 = vpack.c.bf16 %v841_v36, %v839_v22  ;;  %v9350_v41 = vpack.c.bf16 %v921_v37, %v919_v23  ;;  %v684_v42 = vpop.f32.mrf.mxu0  ;;  %v764_v43 = vpop.f32.mrf.mxu1  ;;  %v537_v22 = vpack.c.bf16 %v425_v13, %v424_v12  ;;  %v553_v23 = vpack.c.bf16 %v457_v15, %v456_v14 }
 0x14d   : > { %9922 = vst [vmem:[#allocation3 + $0x40] sm:$0xff] %v9270_v40  }
 0x14e   : > { %9938 = vst [vmem:[#allocation3 + $0x170] sm:$0xff] %v9350_v41   ;;  %723 = vmatmul.bf16.gmra.mxu0 %v535_v38  ;;  %803 = vmatmul.bf16.gmra.mxu1 %v551_v39 }
 0x14f   : > { %883 = vmatmul.bf16.gmra.mxu2 %v567_v44  ;;  %963 = vmatmul.bf16.gmra.mxu3 %v583_v45 }
 0x152   : > { %v844_v46 = vpop.f32.mrf.mxu2  ;;  %v924_v47 = vpop.f32.mrf.mxu3 }
 0x153   : > { %v686_v48 = vpop.f32.mrf.mxu0  ;;  %v766_v49 = vpop.f32.mrf.mxu1 }
 0x154   : > { %v9115_v50 = vpack.c.bf16 %v686_v48, %v684_v42  ;;  %v9195_v51 = vpack.c.bf16 %v766_v49, %v764_v43 }
 0x156   : > { %9891 = vst [vmem:[#allocation3 + $0x168] sm:$0xff] %v9115_v50  }
 0x157   : > { %9907 = vst [vmem:[#allocation3 + $0x1a8] sm:$0xff] %v9195_v51  }
 0x15a   : > { %v846_v60 = vpop.f32.mrf.mxu2  ;;  %v926_v61 = vpop.f32.mrf.mxu3 }
 0x15b   : > { %v9275_v0 = vpack.c.bf16 %v846_v60, %v844_v46  ;;  %v9355_v1 = vpack.c.bf16 %v926_v61, %v924_v47  ;;  %v689_v2 = vpop.f32.mrf.mxu0  ;;  %v769_v3 = vpop.f32.mrf.mxu1 }
 0x15d   : > { %9923 = vst [vmem:[#allocation3 + $0x1f8] sm:$0xff] %v9275_v0  }
 0x15e   : > { %9939 = vst [vmem:[#allocation3 + $0x178] sm:$0xff] %v9355_v1   ;;  %728 = vmatmul.bf16.gmra.mxu0 %v536_v62  ;;  %808 = vmatmul.bf16.gmra.mxu1 %v552_v63 }
 0x15f   : > { %888 = vmatmul.bf16.gmra.mxu2 %v568_v4  ;;  %968 = vmatmul.bf16.gmra.mxu3 %v584_v5 }
 0x162   : > { %v849_v6 = vpop.f32.mrf.mxu2  ;;  %v929_v7 = vpop.f32.mrf.mxu3 }
 0x163   : > { %v691_v8 = vpop.f32.mrf.mxu0  ;;  %v771_v9 = vpop.f32.mrf.mxu1 }
 0x164   : > { %v9120_v10 = vpack.c.bf16 %v691_v8, %v689_v2  ;;  %v9200_v11 = vpack.c.bf16 %v771_v9, %v769_v3 }
 0x166   : > { %9892 = vst [vmem:[#allocation3 + $0x130] sm:$0xff] %v9120_v10  }
 0x167   : > { %9908 = vst [vmem:[#allocation3 + $0x1b8] sm:$0xff] %v9200_v11  }
 0x16a   : > { %v851_v20 = vpop.f32.mrf.mxu2  ;;  %v931_v21 = vpop.f32.mrf.mxu3 }
 0x16b   : > { %v9280_v24 = vpack.c.bf16 %v851_v20, %v849_v6  ;;  %v9360_v25 = vpack.c.bf16 %v931_v21, %v929_v7  ;;  %v694_v26 = vpop.f32.mrf.mxu0  ;;  %v774_v27 = vpop.f32.mrf.mxu1 }
 0x16d   : > { %9924 = vst [vmem:[#allocation3 + $0x20] sm:$0xff] %v9280_v24  }
 0x16e   : > { %9940 = vst [vmem:[#allocation3 + $0x68] sm:$0xff] %v9360_v25   ;;  %733 = vmatmul.bf16.gmra.mxu0 %v537_v22  ;;  %813 = vmatmul.bf16.gmra.mxu1 %v553_v23 }
 0x16f   : > { %893 = vmatmul.bf16.gmra.mxu2 %v569_v28  ;;  %973 = vmatmul.bf16.gmra.mxu3 %v585_v29 }
 0x172   : > { %v854_v30 = vpop.f32.mrf.mxu2  ;;  %v934_v31 = vpop.f32.mrf.mxu3 }
 0x173   : > { %v696_v32 = vpop.f32.mrf.mxu0  ;;  %v776_v33 = vpop.f32.mrf.mxu1 }
 0x174   : > { %v9125_v34 = vpack.c.bf16 %v696_v32, %v694_v26  ;;  %v9205_v35 = vpack.c.bf16 %v776_v33, %v774_v27 }
 0x176   : > { %9893 = vst [vmem:[#allocation3 + $0x48] sm:$0xff] %v9125_v34  }
 0x177   : > { %9909 = vst [vmem:[#allocation3 + $0x28] sm:$0xff] %v9205_v35  }
 0x17a   : > { %v856_v36 = vpop.f32.mrf.mxu2  ;;  %v936_v37 = vpop.f32.mrf.mxu3 }
 0x17b   : > { %v9285_v38 = vpack.c.bf16 %v856_v36, %v854_v30  ;;  %v9365_v39 = vpack.c.bf16 %v936_v37, %v934_v31  ;;  %v699_v40 = vpop.f32.mrf.mxu0  ;;  %v779_v41 = vpop.f32.mrf.mxu1 }
 0x17d   : > { %9925 = vst [vmem:[#allocation3 + $0x128] sm:$0xff] %v9285_v38  }
 0x17e   : > { %9941 = vst [vmem:[#allocation3 + $0x190] sm:$0xff] %v9365_v39  }
 0x182   : > { %v859_v42 = vpop.f32.mrf.mxu2  ;;  %v939_v43 = vpop.f32.mrf.mxu3 }
 0x183   : > { %v701_v44 = vpop.f32.mrf.mxu0  ;;  %v781_v45 = vpop.f32.mrf.mxu1 }
 0x184   : > { %v9130_v46 = vpack.c.bf16 %v701_v44, %v699_v40  ;;  %v9210_v47 = vpack.c.bf16 %v781_v45, %v779_v41 }
 0x186   : > { %9894 = vst [vmem:[#allocation3 + $0x180] sm:$0xff] %v9130_v46  }
 0x187   : > { %9910 = vst [vmem:[#allocation3 + $0x1e8] sm:$0xff] %v9210_v47  }
 0x18a   : > { %v861_v48 = vpop.f32.mrf.mxu2  ;;  %v941_v49 = vpop.f32.mrf.mxu3 }
 0x18b   : > { %v9290_v50 = vpack.c.bf16 %v861_v48, %v859_v42  ;;  %v9370_v51 = vpack.c.bf16 %v941_v49, %v939_v43  ;;  %v704_v52 = vpop.f32.mrf.mxu0  ;;  %v784_v53 = vpop.f32.mrf.mxu1 }
 0x18d   : > { %9926 = vst [vmem:[#allocation3 + $0x1a0] sm:$0xff] %v9290_v50  }
 0x18e   : > { %9942 = vst [vmem:[#allocation3 + $0x198] sm:$0xff] %v9370_v51  }
 0x192   : > { %v864_v54 = vpop.f32.mrf.mxu2  ;;  %v944_v55 = vpop.f32.mrf.mxu3 }
 0x193   : > { %v706_v56 = vpop.f32.mrf.mxu0  ;;  %v786_v57 = vpop.f32.mrf.mxu1 }
 0x194   : > { %v9135_v58 = vpack.c.bf16 %v706_v56, %v704_v52  ;;  %v9215_v59 = vpack.c.bf16 %v786_v57, %v784_v53 }
 0x196   : > { %9895 = vst [vmem:[#allocation3 + $0x110] sm:$0xff] %v9135_v58  }
 0x197   : > { %9911 = vst [vmem:[#allocation3 + $0xf8] sm:$0xff] %v9215_v59  }
 0x19a   : > { %v866_v60 = vpop.f32.mrf.mxu2  ;;  %v946_v61 = vpop.f32.mrf.mxu3 }
 0x19b   : > { %v9295_v62 = vpack.c.bf16 %v866_v60, %v864_v54  ;;  %v9375_v63 = vpack.c.bf16 %v946_v61, %v944_v55  ;;  %v709_v0 = vpop.f32.mrf.mxu0  ;;  %v789_v1 = vpop.f32.mrf.mxu1 }
 0x19d   : > { %9927 = vst [vmem:[#allocation3 + $0x1f0] sm:$0xff] %v9295_v62  }
 0x19e   : > { %9943 = vst [vmem:[#allocation3 + $0x38] sm:$0xff] %v9375_v63  }
 0x1a2   : > { %v869_v2 = vpop.f32.mrf.mxu2  ;;  %v949_v3 = vpop.f32.mrf.mxu3 }
 0x1a3   : > { %v711_v4 = vpop.f32.mrf.mxu0  ;;  %v791_v5 = vpop.f32.mrf.mxu1 }
 0x1a4   : > { %v9140_v6 = vpack.c.bf16 %v711_v4, %v709_v0  ;;  %v9220_v7 = vpack.c.bf16 %v791_v5, %v789_v1 }
 0x1a6   : > { %9896 = vst [vmem:[#allocation3 + $0x118] sm:$0xff] %v9140_v6  }
 0x1a7   : > { %9912 = vst [vmem:[#allocation3 + $0x160] sm:$0xff] %v9220_v7  }
 0x1aa   : > { %v871_v8 = vpop.f32.mrf.mxu2  ;;  %v951_v9 = vpop.f32.mrf.mxu3 }
 0x1ab   : > { %v9300_v10 = vpack.c.bf16 %v871_v8, %v869_v2  ;;  %v9380_v11 = vpack.c.bf16 %v951_v9, %v949_v3  ;;  %v714_v12 = vpop.f32.mrf.mxu0  ;;  %v794_v13 = vpop.f32.mrf.mxu1 }
 0x1ad   : > { %9928 = vst [vmem:[#allocation3 + $0xe8] sm:$0xff] %v9300_v10  }
 0x1ae   : > { %9944 = vst [vmem:[#allocation3 + $0xc0] sm:$0xff] %v9380_v11  }
 0x1b2   : > { %v874_v14 = vpop.f32.mrf.mxu2  ;;  %v954_v15 = vpop.f32.mrf.mxu3 }
 0x1b3   : > { %v716_v16 = vpop.f32.mrf.mxu0  ;;  %v796_v17 = vpop.f32.mrf.mxu1 }
 0x1b4   : > { %v9145_v18 = vpack.c.bf16 %v716_v16, %v714_v12  ;;  %v9225_v19 = vpack.c.bf16 %v796_v17, %v794_v13 }
 0x1b6   : > { %9897 = vst [vmem:[#allocation3 + $0x98] sm:$0xff] %v9145_v18  }
 0x1b7   : > { %9913 = vst [vmem:[#allocation3 + $0x30] sm:$0xff] %v9225_v19  }
 0x1ba   : > { %v876_v20 = vpop.f32.mrf.mxu2  ;;  %v956_v21 = vpop.f32.mrf.mxu3 }
 0x1bb   : > { %v9305_v22 = vpack.c.bf16 %v876_v20, %v874_v14  ;;  %v9385_v23 = vpack.c.bf16 %v956_v21, %v954_v15  ;;  %v719_v24 = vpop.f32.mrf.mxu0  ;;  %v799_v25 = vpop.f32.mrf.mxu1 }
 0x1bd   : > { %9929 = vst [vmem:[#allocation3 + $0x78] sm:$0xff] %v9305_v22  }
 0x1be   : > { %9945 = vst [vmem:[#allocation3 + $0x1c0] sm:$0xff] %v9385_v23  }
 0x1c2   : > { %v879_v26 = vpop.f32.mrf.mxu2  ;;  %v959_v27 = vpop.f32.mrf.mxu3 }
 0x1c3   : > { %v721_v28 = vpop.f32.mrf.mxu0  ;;  %v801_v29 = vpop.f32.mrf.mxu1 }
 0x1c4   : > { %v9150_v30 = vpack.c.bf16 %v721_v28, %v719_v24  ;;  %v9230_v31 = vpack.c.bf16 %v801_v29, %v799_v25 }
 0x1c6   : > { %9898 = vst [vmem:[#allocation3 + $0x120] sm:$0xff] %v9150_v30  }
 0x1c7   : > { %9914 = vst [vmem:[#allocation3 + $0x1e0] sm:$0xff] %v9230_v31  }
 0x1ca   : > { %v881_v32 = vpop.f32.mrf.mxu2  ;;  %v961_v33 = vpop.f32.mrf.mxu3 }
 0x1cb   : > { %v9310_v34 = vpack.c.bf16 %v881_v32, %v879_v26  ;;  %v9390_v35 = vpack.c.bf16 %v961_v33, %v959_v27  ;;  %v724_v36 = vpop.f32.mrf.mxu0  ;;  %v804_v37 = vpop.f32.mrf.mxu1 }
 0x1cd   : > { %9930 = vst [vmem:[#allocation3 + $0x70] sm:$0xff] %v9310_v34  }
 0x1ce   : > { %9946 = vst [vmem:[#allocation3 + $0x158] sm:$0xff] %v9390_v35  }
 0x1d2   : > { %v884_v38 = vpop.f32.mrf.mxu2  ;;  %v964_v39 = vpop.f32.mrf.mxu3 }
 0x1d3   : > { %v726_v40 = vpop.f32.mrf.mxu0  ;;  %v806_v41 = vpop.f32.mrf.mxu1 }
 0x1d4   : > { %v9155_v42 = vpack.c.bf16 %v726_v40, %v724_v36  ;;  %v9235_v43 = vpack.c.bf16 %v806_v41, %v804_v37 }
 0x1d6   : > { %9899 = vst [vmem:[#allocation3 + $0x150] sm:$0xff] %v9155_v42  }
 0x1d7   : > { %9915 = vst [vmem:[#allocation3] sm:$0xff] %v9235_v43  }
 0x1da   : > { %v886_v44 = vpop.f32.mrf.mxu2  ;;  %v966_v45 = vpop.f32.mrf.mxu3 }
 0x1db   : > { %v9315_v46 = vpack.c.bf16 %v886_v44, %v884_v38  ;;  %v9395_v47 = vpack.c.bf16 %v966_v45, %v964_v39  ;;  %v729_v48 = vpop.f32.mrf.mxu0  ;;  %v809_v49 = vpop.f32.mrf.mxu1 }
 0x1dd   : > { %9931 = vst [vmem:[#allocation3 + $0x90] sm:$0xff] %v9315_v46  }
 0x1de   : > { %9947 = vst [vmem:[#allocation3 + $0x10] sm:$0xff] %v9395_v47  }
 0x1e2   : > { %v889_v50 = vpop.f32.mrf.mxu2  ;;  %v969_v51 = vpop.f32.mrf.mxu3 }
 0x1e3   : > { %v731_v52 = vpop.f32.mrf.mxu0  ;;  %v811_v53 = vpop.f32.mrf.mxu1 }
 0x1e4   : > { %v9160_v54 = vpack.c.bf16 %v731_v52, %v729_v48  ;;  %v9240_v55 = vpack.c.bf16 %v811_v53, %v809_v49 }
 0x1e6   : > { %9900 = vst [vmem:[#allocation3 + $0x108] sm:$0xff] %v9160_v54  }
 0x1e7   : > { %9916 = vst [vmem:[#allocation3 + $0xf0] sm:$0xff] %v9240_v55  }
 0x1ea   : > { %v891_v56 = vpop.f32.mrf.mxu2  ;;  %v971_v57 = vpop.f32.mrf.mxu3 }
 0x1eb   : > { %v9320_v58 = vpack.c.bf16 %v891_v56, %v889_v50  ;;  %v9400_v59 = vpack.c.bf16 %v971_v57, %v969_v51  ;;  %v734_v60 = vpop.f32.mrf.mxu0  ;;  %v814_v61 = vpop.f32.mrf.mxu1 }
 0x1ed   : > { %9932 = vst [vmem:[#allocation3 + $0x1d8] sm:$0xff] %v9320_v58  }
 0x1ee   : > { %9948 = vst [vmem:[#allocation3 + $0x58] sm:$0xff] %v9400_v59  }
 0x1f2   : > { %v894_v62 = vpop.f32.mrf.mxu2  ;;  %v974_v63 = vpop.f32.mrf.mxu3 }
 0x1f3   : > { %v736_v0 = vpop.f32.mrf.mxu0  ;;  %v816_v1 = vpop.f32.mrf.mxu1 }
 0x1f4   : > { %v9165_v2 = vpack.c.bf16 %v736_v0, %v734_v60  ;;  %v9245_v3 = vpack.c.bf16 %v816_v1, %v814_v61 }
 0x1f6   : > { %9901 = vst [vmem:[#allocation3 + $0x60] sm:$0xff] %v9165_v2  }
 0x1f7   : > { %9917 = vst [vmem:[#allocation3 + $0x8] sm:$0xff] %v9245_v3  }
 0x1fa   : > { %v896_v4 = vpop.f32.mrf.mxu2  ;;  %v976_v5 = vpop.f32.mrf.mxu3 }
 0x1fb   : > { %v9325_v6 = vpack.c.bf16 %v896_v4, %v894_v62  ;;  %v9405_v7 = vpack.c.bf16 %v976_v5, %v974_v63 }
 0x1fd   : > { %9933 = vst [vmem:[#allocation3 + $0xd0] sm:$0xff] %v9325_v6  }
 0x1fe   : > { %9949 = vst [vmem:[#allocation3 + $0xa0] sm:$0xff] %v9405_v7  }
 0x1ff PF: > { %s12602_s5 = sld [smem:[#allocation26_spill]] }
 0x205   : > { %p1239_p1 = scmp.gt.s32.totalorder %s12602_s5, 0 }
 0x207   : > { %p1240_p13 = pnand %p1239_p1, %p366_p9 }
 0x209   : > { %1243 = sbr.rel (%p1240_p13) target bundleno = 943 (0x3af), region = 76 }
 0x20e   : > { %v8766_v8 = vld [vmem:[%s10832_s19 + $0x38] sm:$0xff]  ;;  %v8765_v9 = vld [vmem:[%s10832_s19 + $0x30] sm:$0xff]  ;;  %v8764_v10 = vld [vmem:[%s10832_s19 + $0x28] sm:$0xff] }
 0x20f   : > { %1824 = vmatpush.bf16.msra.mxu0 %v8766_v8  ;;  %10068 = vmatpush.bf16.msra.mxu1 %v8766_v8  ;;  %v8763_v11 = vld [vmem:[%s10832_s19 + $0x20] sm:$0xff]  ;;  %v8762_v12 = vld [vmem:[%s10832_s19 + $0x18] sm:$0xff]  ;;  %v8761_v13 = vld [vmem:[%s10832_s19 + $0x10] sm:$0xff] }
 0x210   : > { %10069 = vmatpush.bf16.msra.mxu2 %v8766_v8  ;;  %10070 = vmatpush.bf16.msra.mxu3 %v8766_v8  ;;  %v8760_v14 = vld [vmem:[%s10832_s19 + $0x8] sm:$0xff]  ;;  %v8759_v15 = vld [vmem:[%s10832_s19] sm:$0xff]  ;;  %v8697_v24 = vld [vmem:[#allocation2 + $0x10] sm:$0xff] }
 0x211   : > { %v8695_v16 = vld [vmem:[#allocation2] sm:$0xff]  ;;  %v8696_v20 = vld [vmem:[#allocation2 + $0x8] sm:$0xff]  ;;  %v8713_v25 = vld [vmem:[#allocation2 + $0x90] sm:$0xff] }
 0x212   : > { %v8711_v17 = vld [vmem:[#allocation2 + $0x80] sm:$0xff]  ;;  %v8712_v21 = vld [vmem:[#allocation2 + $0x88] sm:$0xff]  ;;  %v8729_v26 = vld [vmem:[#allocation2 + $0x110] sm:$0xff] }
 0x213   : > { %1825 = vmatpush.bf16.msra.mxu0 %v8765_v9  ;;  %10071 = vmatpush.bf16.msra.mxu1 %v8765_v9  ;;  %v8727_v18 = vld [vmem:[#allocation2 + $0x100] sm:$0xff]  ;;  %v8728_v22 = vld [vmem:[#allocation2 + $0x108] sm:$0xff]  ;;  %v8745_v27 = vld [vmem:[#allocation2 + $0x190] sm:$0xff] }
 0x214   : > { %10072 = vmatpush.bf16.msra.mxu2 %v8765_v9  ;;  %10073 = vmatpush.bf16.msra.mxu3 %v8765_v9  ;;  %v8743_v19 = vld [vmem:[#allocation2 + $0x180] sm:$0xff]  ;;  %v8744_v23 = vld [vmem:[#allocation2 + $0x188] sm:$0xff]  ;;  %v8698_v28 = vld [vmem:[#allocation2 + $0x18] sm:$0xff] }
 0x215   : > { %v8714_v29 = vld [vmem:[#allocation2 + $0x98] sm:$0xff]  ;;  %v8699_v32 = vld [vmem:[#allocation2 + $0x20] sm:$0xff]  ;;  %v8700_v36 = vld [vmem:[#allocation2 + $0x28] sm:$0xff] }
 0x216   : > { %v8730_v30 = vld [vmem:[#allocation2 + $0x118] sm:$0xff]  ;;  %v8715_v33 = vld [vmem:[#allocation2 + $0xa0] sm:$0xff]  ;;  %v8716_v37 = vld [vmem:[#allocation2 + $0xa8] sm:$0xff] }
 0x217   : > { %1826 = vmatpush.bf16.msra.mxu0 %v8764_v10  ;;  %10074 = vmatpush.bf16.msra.mxu1 %v8764_v10  ;;  %v8746_v31 = vld [vmem:[#allocation2 + $0x198] sm:$0xff]  ;;  %v8731_v34 = vld [vmem:[#allocation2 + $0x120] sm:$0xff]  ;;  %v8732_v38 = vld [vmem:[#allocation2 + $0x128] sm:$0xff] }
 0x218   : > { %10075 = vmatpush.bf16.msra.mxu2 %v8764_v10  ;;  %10076 = vmatpush.bf16.msra.mxu3 %v8764_v10  ;;  %v8747_v35 = vld [vmem:[#allocation2 + $0x1a0] sm:$0xff]  ;;  %v8748_v39 = vld [vmem:[#allocation2 + $0x1a8] sm:$0xff]  ;;  %v8701_v40 = vld [vmem:[#allocation2 + $0x30] sm:$0xff] }
 0x219   : > { %v8717_v41 = vld [vmem:[#allocation2 + $0xb0] sm:$0xff]  ;;  %v8702_v44 = vld [vmem:[#allocation2 + $0x38] sm:$0xff]  ;;  %v8703_v48 = vld [vmem:[#allocation2 + $0x40] sm:$0xff] }
 0x21a   : > { %v8733_v42 = vld [vmem:[#allocation2 + $0x130] sm:$0xff]  ;;  %v8718_v45 = vld [vmem:[#allocation2 + $0xb8] sm:$0xff]  ;;  %v8719_v49 = vld [vmem:[#allocation2 + $0xc0] sm:$0xff] }
 0x21b   : > { %1827 = vmatpush.bf16.msra.mxu0 %v8763_v11  ;;  %10077 = vmatpush.bf16.msra.mxu1 %v8763_v11  ;;  %v8749_v43 = vld [vmem:[#allocation2 + $0x1b0] sm:$0xff]  ;;  %v8734_v46 = vld [vmem:[#allocation2 + $0x138] sm:$0xff]  ;;  %v8735_v52 = vld [vmem:[#allocation2 + $0x140] sm:$0xff] }
 0x21c   : > { %10078 = vmatpush.bf16.msra.mxu2 %v8763_v11  ;;  %10079 = vmatpush.bf16.msra.mxu3 %v8763_v11  ;;  %v8750_v47 = vld [vmem:[#allocation2 + $0x1b8] sm:$0xff]  ;;  %v8751_v53 = vld [vmem:[#allocation2 + $0x1c0] sm:$0xff]  ;;  %v8704_v62 = vld [vmem:[#allocation2 + $0x48] sm:$0xff] }
 0x21d   : > { %v8720_v63 = vld [vmem:[#allocation2 + $0xc8] sm:$0xff] }
 0x21e   : > { %v8736_v4 = vld [vmem:[#allocation2 + $0x148] sm:$0xff] }
 0x21f   : > { %1828 = vmatpush.bf16.msra.mxu0 %v8762_v12  ;;  %10080 = vmatpush.bf16.msra.mxu1 %v8762_v12  ;;  %v8752_v5 = vld [vmem:[#allocation2 + $0x1c8] sm:$0xff] }
 0x220   : > { %10081 = vmatpush.bf16.msra.mxu2 %v8762_v12  ;;  %10082 = vmatpush.bf16.msra.mxu3 %v8762_v12 }
 0x223   : > { %1829 = vmatpush.bf16.msra.mxu0 %v8761_v13  ;;  %10083 = vmatpush.bf16.msra.mxu1 %v8761_v13 }
 0x224   : > { %10084 = vmatpush.bf16.msra.mxu2 %v8761_v13  ;;  %10085 = vmatpush.bf16.msra.mxu3 %v8761_v13 }
 0x227   : > { %1830 = vmatpush.bf16.msra.mxu0 %v8760_v14  ;;  %10086 = vmatpush.bf16.msra.mxu1 %v8760_v14 }
 0x228   : > { %10087 = vmatpush.bf16.msra.mxu2 %v8760_v14  ;;  %10088 = vmatpush.bf16.msra.mxu3 %v8760_v14  ;;  %v8705_v14 = vld [vmem:[#allocation2 + $0x50] sm:$0xff] }
 0x22b   : > { %1831 = vmatpush.bf16.msra.mxu0 %v8759_v15  ;;  %10089 = vmatpush.bf16.msra.mxu1 %v8759_v15 }
 0x22c   : > { %10090 = vmatpush.bf16.msra.mxu2 %v8759_v15  ;;  %10091 = vmatpush.bf16.msra.mxu3 %v8759_v15  ;;  %v8721_v15 = vld [vmem:[#allocation2 + $0xd0] sm:$0xff] }
 0x22e   : > { %1832 = vmatmul.bf16.vlgmr.msra.gmra.mxu0 %v8695_v16  ;;  %1912 = vmatmul.bf16.vlgmr.msra.gmra.mxu1 %v8711_v17 }
 0x22f   : > { %1992 = vmatmul.bf16.vlgmr.msra.gmra.mxu2 %v8727_v18  ;;  %2072 = vmatmul.bf16.vlgmr.msra.gmra.mxu3 %v8743_v19 }
 0x23e   : > { %1837 = vmatmul.bf16.gmra.mxu0 %v8696_v20  ;;  %1917 = vmatmul.bf16.gmra.mxu1 %v8712_v21  ;;  %v8737_v20 = vld [vmem:[#allocation2 + $0x150] sm:$0xff] }
 0x23f   : > { %1997 = vmatmul.bf16.gmra.mxu2 %v8728_v22  ;;  %2077 = vmatmul.bf16.gmra.mxu3 %v8744_v23  ;;  %v8753_v21 = vld [vmem:[#allocation2 + $0x1d0] sm:$0xff] }
 0x24e   : > { %1842 = vmatmul.bf16.gmra.mxu0 %v8697_v24  ;;  %1922 = vmatmul.bf16.gmra.mxu1 %v8713_v25 }
 0x24f   : > { %2002 = vmatmul.bf16.gmra.mxu2 %v8729_v26  ;;  %2082 = vmatmul.bf16.gmra.mxu3 %v8745_v27 }
 0x25e   : > { %1847 = vmatmul.bf16.gmra.mxu0 %v8698_v28  ;;  %1927 = vmatmul.bf16.gmra.mxu1 %v8714_v29 }
 0x25f   : > { %2007 = vmatmul.bf16.gmra.mxu2 %v8730_v30  ;;  %2087 = vmatmul.bf16.gmra.mxu3 %v8746_v31  ;;  %v8706_v30 = vld [vmem:[#allocation2 + $0x58] sm:$0xff] }
 0x260   : > { %v8722_v31 = vld [vmem:[#allocation2 + $0xd8] sm:$0xff] }
 0x26e   : > { %1852 = vmatmul.bf16.gmra.mxu0 %v8699_v32  ;;  %1932 = vmatmul.bf16.gmra.mxu1 %v8715_v33 }
 0x26f   : > { %2012 = vmatmul.bf16.gmra.mxu2 %v8731_v34  ;;  %2092 = vmatmul.bf16.gmra.mxu3 %v8747_v35 }
 0x27e   : > { %1857 = vmatmul.bf16.gmra.mxu0 %v8700_v36  ;;  %1937 = vmatmul.bf16.gmra.mxu1 %v8716_v37  ;;  %v8738_v36 = vld [vmem:[#allocation2 + $0x158] sm:$0xff] }
 0x27f   : > { %2017 = vmatmul.bf16.gmra.mxu2 %v8732_v38  ;;  %2097 = vmatmul.bf16.gmra.mxu3 %v8748_v39  ;;  %v8754_v37 = vld [vmem:[#allocation2 + $0x1d8] sm:$0xff] }
 0x28e   : > { %1862 = vmatmul.bf16.gmra.mxu0 %v8701_v40  ;;  %1942 = vmatmul.bf16.gmra.mxu1 %v8717_v41 }
 0x28f   : > { %2022 = vmatmul.bf16.gmra.mxu2 %v8733_v42  ;;  %2102 = vmatmul.bf16.gmra.mxu3 %v8749_v43 }
 0x29e   : > { %1867 = vmatmul.bf16.gmra.mxu0 %v8702_v44  ;;  %1947 = vmatmul.bf16.gmra.mxu1 %v8718_v45 }
 0x29f   : > { %2027 = vmatmul.bf16.gmra.mxu2 %v8734_v46  ;;  %2107 = vmatmul.bf16.gmra.mxu3 %v8750_v47  ;;  %v8707_v46 = vld [vmem:[#allocation2 + $0x60] sm:$0xff] }
 0x2a0   : > { %v8723_v47 = vld [vmem:[#allocation2 + $0xe0] sm:$0xff] }
 0x2ab   : > { %v1833_v50 = vpop.f32.mrf.mxu0  ;;  %v1913_v51 = vpop.f32.mrf.mxu1 }
 0x2ae   : > { %1872 = vmatmul.bf16.gmra.mxu0 %v8703_v48  ;;  %1952 = vmatmul.bf16.gmra.mxu1 %v8719_v49 }
 0x2af   : > { %2032 = vmatmul.bf16.gmra.mxu2 %v8735_v52  ;;  %2112 = vmatmul.bf16.gmra.mxu3 %v8751_v53  ;;  %v8739_v52 = vld [vmem:[#allocation2 + $0x160] sm:$0xff] }
 0x2b0   : > { %v8755_v53 = vld [vmem:[#allocation2 + $0x1e0] sm:$0xff] }
 0x2b2   : > { %v1993_v54 = vpop.f32.mrf.mxu2  ;;  %v2073_v55 = vpop.f32.mrf.mxu3 }
 0x2b3   : > { %v1835_v56 = vpop.f32.mrf.mxu0  ;;  %v1915_v57 = vpop.f32.mrf.mxu1 }
 0x2b4   : > { %v9410_v58 = vpack.c.bf16 %v1835_v56, %v1833_v50  ;;  %v9490_v59 = vpack.c.bf16 %v1915_v57, %v1913_v51 }
 0x2b6   : > { %9411 = vst [vmem:[#allocation3 + $0xb0] sm:$0xff] %v9410_v58  }
 0x2b7   : > { %9965 = vst [vmem:[#allocation3 + $0xe0] sm:$0xff] %v9490_v59  }
 0x2ba   : > { %v1995_v60 = vpop.f32.mrf.mxu2  ;;  %v2075_v61 = vpop.f32.mrf.mxu3 }
 0x2bb   : > { %v9570_v0 = vpack.c.bf16 %v1995_v60, %v1993_v54  ;;  %v9650_v1 = vpack.c.bf16 %v2075_v61, %v2073_v55  ;;  %v1838_v2 = vpop.f32.mrf.mxu0  ;;  %v1918_v3 = vpop.f32.mrf.mxu1 }
 0x2bd   : > { %9981 = vst [vmem:[#allocation3 + $0x148] sm:$0xff] %v9570_v0  }
 0x2be   : > { %9997 = vst [vmem:[#allocation3 + $0xb8] sm:$0xff] %v9650_v1   ;;  %1877 = vmatmul.bf16.gmra.mxu0 %v8704_v62  ;;  %1957 = vmatmul.bf16.gmra.mxu1 %v8720_v63  ;;  %v8708_v62 = vld [vmem:[#allocation2 + $0x68] sm:$0xff] }
 0x2bf   : > { %2037 = vmatmul.bf16.gmra.mxu2 %v8736_v4  ;;  %2117 = vmatmul.bf16.gmra.mxu3 %v8752_v5  ;;  %v8724_v63 = vld [vmem:[#allocation2 + $0xe8] sm:$0xff] }
 0x2c0   : > { %v8740_v4 = vld [vmem:[#allocation2 + $0x168] sm:$0xff] }
 0x2c1   : > { %v8756_v5 = vld [vmem:[#allocation2 + $0x1e8] sm:$0xff] }
 0x2c2   : > { %v1998_v6 = vpop.f32.mrf.mxu2  ;;  %v2078_v7 = vpop.f32.mrf.mxu3 }
 0x2c3   : > { %v1840_v8 = vpop.f32.mrf.mxu0  ;;  %v1920_v9 = vpop.f32.mrf.mxu1 }
 0x2c4   : > { %v9415_v10 = vpack.c.bf16 %v1840_v8, %v1838_v2  ;;  %v9495_v11 = vpack.c.bf16 %v1920_v9, %v1918_v3 }
 0x2c6   : > { %9950 = vst [vmem:[#allocation3 + $0x1b0] sm:$0xff] %v9415_v10  }
 0x2c7   : > { %9966 = vst [vmem:[#allocation3 + $0x188] sm:$0xff] %v9495_v11  }
 0x2ca   : > { %v2000_v12 = vpop.f32.mrf.mxu2  ;;  %v2080_v13 = vpop.f32.mrf.mxu3 }
 0x2cb   : > { %v9575_v16 = vpack.c.bf16 %v2000_v12, %v1998_v6  ;;  %v9655_v17 = vpack.c.bf16 %v2080_v13, %v2078_v7  ;;  %v1843_v18 = vpop.f32.mrf.mxu0  ;;  %v1923_v19 = vpop.f32.mrf.mxu1 }
 0x2cd   : > { %9982 = vst [vmem:[#allocation3 + $0x1d0] sm:$0xff] %v9575_v16  }
 0x2ce   : > { %9998 = vst [vmem:[#allocation3 + $0x88] sm:$0xff] %v9655_v17   ;;  %1882 = vmatmul.bf16.gmra.mxu0 %v8705_v14  ;;  %1962 = vmatmul.bf16.gmra.mxu1 %v8721_v15  ;;  %v8709_v14 = vld [vmem:[#allocation2 + $0x70] sm:$0xff] }
 0x2cf   : > { %2042 = vmatmul.bf16.gmra.mxu2 %v8737_v20  ;;  %2122 = vmatmul.bf16.gmra.mxu3 %v8753_v21  ;;  %v8725_v15 = vld [vmem:[#allocation2 + $0xf0] sm:$0xff] }
 0x2d0   : > { %v8741_v20 = vld [vmem:[#allocation2 + $0x170] sm:$0xff] }
 0x2d1   : > { %v8757_v21 = vld [vmem:[#allocation2 + $0x1f0] sm:$0xff] }
 0x2d2   : > { %v2003_v22 = vpop.f32.mrf.mxu2  ;;  %v2083_v23 = vpop.f32.mrf.mxu3 }
 0x2d3   : > { %v1845_v24 = vpop.f32.mrf.mxu0  ;;  %v1925_v25 = vpop.f32.mrf.mxu1 }
 0x2d4   : > { %v9420_v26 = vpack.c.bf16 %v1845_v24, %v1843_v18  ;;  %v9500_v27 = vpack.c.bf16 %v1925_v25, %v1923_v19 }
 0x2d6   : > { %9951 = vst [vmem:[#allocation3 + $0xd8] sm:$0xff] %v9420_v26  }
 0x2d7   : > { %9967 = vst [vmem:[#allocation3 + $0x138] sm:$0xff] %v9500_v27  }
 0x2da   : > { %v2005_v28 = vpop.f32.mrf.mxu2  ;;  %v2085_v29 = vpop.f32.mrf.mxu3 }
 0x2db   : > { %v9580_v32 = vpack.c.bf16 %v2005_v28, %v2003_v22  ;;  %v9660_v33 = vpack.c.bf16 %v2085_v29, %v2083_v23  ;;  %v1848_v34 = vpop.f32.mrf.mxu0  ;;  %v1928_v35 = vpop.f32.mrf.mxu1 }
 0x2dd   : > { %9983 = vst [vmem:[#allocation3 + $0x100] sm:$0xff] %v9580_v32  }
 0x2de   : > { %9999 = vst [vmem:[#allocation3 + $0xa8] sm:$0xff] %v9660_v33   ;;  %1887 = vmatmul.bf16.gmra.mxu0 %v8706_v30  ;;  %1967 = vmatmul.bf16.gmra.mxu1 %v8722_v31  ;;  %v8710_v30 = vld [vmem:[#allocation2 + $0x78] sm:$0xff] }
 0x2df   : > { %2047 = vmatmul.bf16.gmra.mxu2 %v8738_v36  ;;  %2127 = vmatmul.bf16.gmra.mxu3 %v8754_v37  ;;  %v8726_v31 = vld [vmem:[#allocation2 + $0xf8] sm:$0xff] }
 0x2e0   : > { %v8742_v36 = vld [vmem:[#allocation2 + $0x178] sm:$0xff] }
 0x2e1   : > { %v8758_v37 = vld [vmem:[#allocation2 + $0x1f8] sm:$0xff] }
 0x2e2   : > { %v2008_v38 = vpop.f32.mrf.mxu2  ;;  %v2088_v39 = vpop.f32.mrf.mxu3 }
 0x2e3   : > { %v1850_v40 = vpop.f32.mrf.mxu0  ;;  %v1930_v41 = vpop.f32.mrf.mxu1 }
 0x2e4   : > { %v9425_v42 = vpack.c.bf16 %v1850_v40, %v1848_v34  ;;  %v9505_v43 = vpack.c.bf16 %v1930_v41, %v1928_v35 }
 0x2e6   : > { %9952 = vst [vmem:[#allocation3 + $0x18] sm:$0xff] %v9425_v42  }
 0x2e7   : > { %9968 = vst [vmem:[#allocation3 + $0x140] sm:$0xff] %v9505_v43  }
 0x2ea   : > { %v2010_v44 = vpop.f32.mrf.mxu2  ;;  %v2090_v45 = vpop.f32.mrf.mxu3 }
 0x2eb   : > { %v9585_v48 = vpack.c.bf16 %v2010_v44, %v2008_v38  ;;  %v9665_v49 = vpack.c.bf16 %v2090_v45, %v2088_v39  ;;  %v1853_v50 = vpop.f32.mrf.mxu0  ;;  %v1933_v51 = vpop.f32.mrf.mxu1 }
 0x2ed   : > { %9984 = vst [vmem:[#allocation3 + $0xc8] sm:$0xff] %v9585_v48  }
 0x2ee   : > { %10000 = vst [vmem:[#allocation3 + $0x1c8] sm:$0xff] %v9665_v49   ;;  %1892 = vmatmul.bf16.gmra.mxu0 %v8707_v46  ;;  %1972 = vmatmul.bf16.gmra.mxu1 %v8723_v47 }
 0x2ef   : > { %2052 = vmatmul.bf16.gmra.mxu2 %v8739_v52  ;;  %2132 = vmatmul.bf16.gmra.mxu3 %v8755_v53 }
 0x2f2   : > { %v2013_v54 = vpop.f32.mrf.mxu2  ;;  %v2093_v55 = vpop.f32.mrf.mxu3 }
 0x2f3   : > { %v1855_v56 = vpop.f32.mrf.mxu0  ;;  %v1935_v57 = vpop.f32.mrf.mxu1 }
 0x2f4   : > { %v9430_v58 = vpack.c.bf16 %v1855_v56, %v1853_v50  ;;  %v9510_v59 = vpack.c.bf16 %v1935_v57, %v1933_v51 }
 0x2f6   : > { %9953 = vst [vmem:[#allocation3 + $0x50] sm:$0xff] %v9430_v58  }
 0x2f7   : > { %9969 = vst [vmem:[#allocation3 + $0x80] sm:$0xff] %v9510_v59  }
 0x2fa   : > { %v2015_v60 = vpop.f32.mrf.mxu2  ;;  %v2095_v61 = vpop.f32.mrf.mxu3 }
 0x2fb   : > { %v9590_v0 = vpack.c.bf16 %v2015_v60, %v2013_v54  ;;  %v9670_v1 = vpack.c.bf16 %v2095_v61, %v2093_v55  ;;  %v1858_v2 = vpop.f32.mrf.mxu0  ;;  %v1938_v3 = vpop.f32.mrf.mxu1 }
 0x2fd   : > { %9985 = vst [vmem:[#allocation3 + $0x40] sm:$0xff] %v9590_v0  }
 0x2fe   : > { %10001 = vst [vmem:[#allocation3 + $0x170] sm:$0xff] %v9670_v1   ;;  %1897 = vmatmul.bf16.gmra.mxu0 %v8708_v62  ;;  %1977 = vmatmul.bf16.gmra.mxu1 %v8724_v63 }
 0x2ff   : > { %2057 = vmatmul.bf16.gmra.mxu2 %v8740_v4  ;;  %2137 = vmatmul.bf16.gmra.mxu3 %v8756_v5 }
 0x302   : > { %v2018_v6 = vpop.f32.mrf.mxu2  ;;  %v2098_v7 = vpop.f32.mrf.mxu3 }
 0x303   : > { %v1860_v8 = vpop.f32.mrf.mxu0  ;;  %v1940_v9 = vpop.f32.mrf.mxu1 }
 0x304   : > { %v9435_v10 = vpack.c.bf16 %v1860_v8, %v1858_v2  ;;  %v9515_v11 = vpack.c.bf16 %v1940_v9, %v1938_v3 }
 0x306   : > { %9954 = vst [vmem:[#allocation3 + $0x168] sm:$0xff] %v9435_v10  }
 0x307   : > { %9970 = vst [vmem:[#allocation3 + $0x1a8] sm:$0xff] %v9515_v11  }
 0x30a   : > { %v2020_v12 = vpop.f32.mrf.mxu2  ;;  %v2100_v13 = vpop.f32.mrf.mxu3 }
 0x30b   : > { %v9595_v16 = vpack.c.bf16 %v2020_v12, %v2018_v6  ;;  %v9675_v17 = vpack.c.bf16 %v2100_v13, %v2098_v7  ;;  %v1863_v18 = vpop.f32.mrf.mxu0  ;;  %v1943_v19 = vpop.f32.mrf.mxu1 }
 0x30d   : > { %9986 = vst [vmem:[#allocation3 + $0x1f8] sm:$0xff] %v9595_v16  }
 0x30e   : > { %10002 = vst [vmem:[#allocation3 + $0x178] sm:$0xff] %v9675_v17   ;;  %1902 = vmatmul.bf16.gmra.mxu0 %v8709_v14  ;;  %1982 = vmatmul.bf16.gmra.mxu1 %v8725_v15 }
 0x30f   : > { %2062 = vmatmul.bf16.gmra.mxu2 %v8741_v20  ;;  %2142 = vmatmul.bf16.gmra.mxu3 %v8757_v21 }
 0x312   : > { %v2023_v22 = vpop.f32.mrf.mxu2  ;;  %v2103_v23 = vpop.f32.mrf.mxu3 }
 0x313   : > { %v1865_v24 = vpop.f32.mrf.mxu0  ;;  %v1945_v25 = vpop.f32.mrf.mxu1 }
 0x314   : > { %v9440_v26 = vpack.c.bf16 %v1865_v24, %v1863_v18  ;;  %v9520_v27 = vpack.c.bf16 %v1945_v25, %v1943_v19 }
 0x316   : > { %9955 = vst [vmem:[#allocation3 + $0x130] sm:$0xff] %v9440_v26  }
 0x317   : > { %9971 = vst [vmem:[#allocation3 + $0x1b8] sm:$0xff] %v9520_v27  }
 0x31a   : > { %v2025_v28 = vpop.f32.mrf.mxu2  ;;  %v2105_v29 = vpop.f32.mrf.mxu3 }
 0x31b   : > { %v9600_v32 = vpack.c.bf16 %v2025_v28, %v2023_v22  ;;  %v9680_v33 = vpack.c.bf16 %v2105_v29, %v2103_v23  ;;  %v1868_v34 = vpop.f32.mrf.mxu0  ;;  %v1948_v35 = vpop.f32.mrf.mxu1 }
 0x31d   : > { %9987 = vst [vmem:[#allocation3 + $0x20] sm:$0xff] %v9600_v32  }
 0x31e   : > { %10003 = vst [vmem:[#allocation3 + $0x68] sm:$0xff] %v9680_v33   ;;  %1907 = vmatmul.bf16.gmra.mxu0 %v8710_v30  ;;  %1987 = vmatmul.bf16.gmra.mxu1 %v8726_v31 }
 0x31f   : > { %2067 = vmatmul.bf16.gmra.mxu2 %v8742_v36  ;;  %2147 = vmatmul.bf16.gmra.mxu3 %v8758_v37 }
 0x322   : > { %v2028_v38 = vpop.f32.mrf.mxu2  ;;  %v2108_v39 = vpop.f32.mrf.mxu3 }
 0x323   : > { %v1870_v40 = vpop.f32.mrf.mxu0  ;;  %v1950_v41 = vpop.f32.mrf.mxu1 }
 0x324   : > { %v9445_v42 = vpack.c.bf16 %v1870_v40, %v1868_v34  ;;  %v9525_v43 = vpack.c.bf16 %v1950_v41, %v1948_v35 }
 0x326   : > { %9956 = vst [vmem:[#allocation3 + $0x48] sm:$0xff] %v9445_v42  }
 0x327   : > { %9972 = vst [vmem:[#allocation3 + $0x28] sm:$0xff] %v9525_v43  }
 0x32a   : > { %v2030_v44 = vpop.f32.mrf.mxu2  ;;  %v2110_v45 = vpop.f32.mrf.mxu3 }
 0x32b   : > { %v9605_v46 = vpack.c.bf16 %v2030_v44, %v2028_v38  ;;  %v9685_v47 = vpack.c.bf16 %v2110_v45, %v2108_v39  ;;  %v1873_v48 = vpop.f32.mrf.mxu0  ;;  %v1953_v49 = vpop.f32.mrf.mxu1 }
 0x32d   : > { %9988 = vst [vmem:[#allocation3 + $0x128] sm:$0xff] %v9605_v46  }
 0x32e   : > { %10004 = vst [vmem:[#allocation3 + $0x190] sm:$0xff] %v9685_v47  }
 0x332   : > { %v2033_v50 = vpop.f32.mrf.mxu2  ;;  %v2113_v51 = vpop.f32.mrf.mxu3 }
 0x333   : > { %v1875_v52 = vpop.f32.mrf.mxu0  ;;  %v1955_v53 = vpop.f32.mrf.mxu1 }
 0x334   : > { %v9450_v54 = vpack.c.bf16 %v1875_v52, %v1873_v48  ;;  %v9530_v55 = vpack.c.bf16 %v1955_v53, %v1953_v49 }
 0x336   : > { %9957 = vst [vmem:[#allocation3 + $0x180] sm:$0xff] %v9450_v54  }
 0x337   : > { %9973 = vst [vmem:[#allocation3 + $0x1e8] sm:$0xff] %v9530_v55  }
 0x33a   : > { %v2035_v56 = vpop.f32.mrf.mxu2  ;;  %v2115_v57 = vpop.f32.mrf.mxu3 }
 0x33b   : > { %v9610_v58 = vpack.c.bf16 %v2035_v56, %v2033_v50  ;;  %v9690_v59 = vpack.c.bf16 %v2115_v57, %v2113_v51  ;;  %v1878_v60 = vpop.f32.mrf.mxu0  ;;  %v1958_v61 = vpop.f32.mrf.mxu1 }
 0x33d   : > { %9989 = vst [vmem:[#allocation3 + $0x1a0] sm:$0xff] %v9610_v58  }
 0x33e   : > { %10005 = vst [vmem:[#allocation3 + $0x198] sm:$0xff] %v9690_v59  }
 0x342   : > { %v2038_v62 = vpop.f32.mrf.mxu2  ;;  %v2118_v63 = vpop.f32.mrf.mxu3 }
 0x343   : > { %v1880_v0 = vpop.f32.mrf.mxu0  ;;  %v1960_v1 = vpop.f32.mrf.mxu1 }
 0x344   : > { %v9455_v2 = vpack.c.bf16 %v1880_v0, %v1878_v60  ;;  %v9535_v3 = vpack.c.bf16 %v1960_v1, %v1958_v61 }
 0x346   : > { %9958 = vst [vmem:[#allocation3 + $0x110] sm:$0xff] %v9455_v2  }
 0x347   : > { %9974 = vst [vmem:[#allocation3 + $0xf8] sm:$0xff] %v9535_v3  }
 0x34a   : > { %v2040_v4 = vpop.f32.mrf.mxu2  ;;  %v2120_v5 = vpop.f32.mrf.mxu3 }
 0x34b   : > { %v9615_v6 = vpack.c.bf16 %v2040_v4, %v2038_v62  ;;  %v9695_v7 = vpack.c.bf16 %v2120_v5, %v2118_v63  ;;  %v1883_v8 = vpop.f32.mrf.mxu0  ;;  %v1963_v9 = vpop.f32.mrf.mxu1 }
 0x34d   : > { %9990 = vst [vmem:[#allocation3 + $0x1f0] sm:$0xff] %v9615_v6  }
 0x34e   : > { %10006 = vst [vmem:[#allocation3 + $0x38] sm:$0xff] %v9695_v7  }
 0x352   : > { %v2043_v10 = vpop.f32.mrf.mxu2  ;;  %v2123_v11 = vpop.f32.mrf.mxu3 }
 0x353   : > { %v1885_v12 = vpop.f32.mrf.mxu0  ;;  %v1965_v13 = vpop.f32.mrf.mxu1 }
 0x354   : > { %v9460_v14 = vpack.c.bf16 %v1885_v12, %v1883_v8  ;;  %v9540_v15 = vpack.c.bf16 %v1965_v13, %v1963_v9 }
 0x356   : > { %9959 = vst [vmem:[#allocation3 + $0x118] sm:$0xff] %v9460_v14  }
 0x357   : > { %9975 = vst [vmem:[#allocation3 + $0x160] sm:$0xff] %v9540_v15  }
 0x35a   : > { %v2045_v16 = vpop.f32.mrf.mxu2  ;;  %v2125_v17 = vpop.f32.mrf.mxu3 }
 0x35b   : > { %v9620_v18 = vpack.c.bf16 %v2045_v16, %v2043_v10  ;;  %v9700_v19 = vpack.c.bf16 %v2125_v17, %v2123_v11  ;;  %v1888_v20 = vpop.f32.mrf.mxu0  ;;  %v1968_v21 = vpop.f32.mrf.mxu1 }
 0x35d   : > { %9991 = vst [vmem:[#allocation3 + $0xe8] sm:$0xff] %v9620_v18  }
 0x35e   : > { %10007 = vst [vmem:[#allocation3 + $0xc0] sm:$0xff] %v9700_v19  }
 0x362   : > { %v2048_v22 = vpop.f32.mrf.mxu2  ;;  %v2128_v23 = vpop.f32.mrf.mxu3 }
 0x363   : > { %v1890_v24 = vpop.f32.mrf.mxu0  ;;  %v1970_v25 = vpop.f32.mrf.mxu1 }
 0x364   : > { %v9465_v26 = vpack.c.bf16 %v1890_v24, %v1888_v20  ;;  %v9545_v27 = vpack.c.bf16 %v1970_v25, %v1968_v21 }
 0x366   : > { %9960 = vst [vmem:[#allocation3 + $0x98] sm:$0xff] %v9465_v26  }
 0x367   : > { %9976 = vst [vmem:[#allocation3 + $0x30] sm:$0xff] %v9545_v27  }
 0x36a   : > { %v2050_v28 = vpop.f32.mrf.mxu2  ;;  %v2130_v29 = vpop.f32.mrf.mxu3 }
 0x36b   : > { %v9625_v30 = vpack.c.bf16 %v2050_v28, %v2048_v22  ;;  %v9705_v31 = vpack.c.bf16 %v2130_v29, %v2128_v23  ;;  %v1893_v32 = vpop.f32.mrf.mxu0  ;;  %v1973_v33 = vpop.f32.mrf.mxu1 }
 0x36d   : > { %9992 = vst [vmem:[#allocation3 + $0x78] sm:$0xff] %v9625_v30  }
 0x36e   : > { %10008 = vst [vmem:[#allocation3 + $0x1c0] sm:$0xff] %v9705_v31  }
 0x372   : > { %v2053_v34 = vpop.f32.mrf.mxu2  ;;  %v2133_v35 = vpop.f32.mrf.mxu3 }
 0x373   : > { %v1895_v36 = vpop.f32.mrf.mxu0  ;;  %v1975_v37 = vpop.f32.mrf.mxu1 }
 0x374   : > { %v9470_v38 = vpack.c.bf16 %v1895_v36, %v1893_v32  ;;  %v9550_v39 = vpack.c.bf16 %v1975_v37, %v1973_v33 }
 0x376   : > { %9961 = vst [vmem:[#allocation3 + $0x120] sm:$0xff] %v9470_v38  }
 0x377   : > { %9977 = vst [vmem:[#allocation3 + $0x1e0] sm:$0xff] %v9550_v39  }
 0x37a   : > { %v2055_v40 = vpop.f32.mrf.mxu2  ;;  %v2135_v41 = vpop.f32.mrf.mxu3 }
 0x37b   : > { %v9630_v42 = vpack.c.bf16 %v2055_v40, %v2053_v34  ;;  %v9710_v43 = vpack.c.bf16 %v2135_v41, %v2133_v35  ;;  %v1898_v44 = vpop.f32.mrf.mxu0  ;;  %v1978_v45 = vpop.f32.mrf.mxu1 }
 0x37d   : > { %9993 = vst [vmem:[#allocation3 + $0x70] sm:$0xff] %v9630_v42  }
 0x37e   : > { %10009 = vst [vmem:[#allocation3 + $0x158] sm:$0xff] %v9710_v43  }
 0x382   : > { %v2058_v46 = vpop.f32.mrf.mxu2  ;;  %v2138_v47 = vpop.f32.mrf.mxu3 }
 0x383   : > { %v1900_v48 = vpop.f32.mrf.mxu0  ;;  %v1980_v49 = vpop.f32.mrf.mxu1 }
 0x384   : > { %v9475_v50 = vpack.c.bf16 %v1900_v48, %v1898_v44  ;;  %v9555_v51 = vpack.c.bf16 %v1980_v49, %v1978_v45 }
 0x386   : > { %9962 = vst [vmem:[#allocation3 + $0x150] sm:$0xff] %v9475_v50  }
 0x387   : > { %9978 = vst [vmem:[#allocation3] sm:$0xff] %v9555_v51  }
 0x38a   : > { %v2060_v52 = vpop.f32.mrf.mxu2  ;;  %v2140_v53 = vpop.f32.mrf.mxu3 }
 0x38b   : > { %v9635_v54 = vpack.c.bf16 %v2060_v52, %v2058_v46  ;;  %v9715_v55 = vpack.c.bf16 %v2140_v53, %v2138_v47  ;;  %v1903_v56 = vpop.f32.mrf.mxu0  ;;  %v1983_v57 = vpop.f32.mrf.mxu1 }
 0x38d   : > { %9994 = vst [vmem:[#allocation3 + $0x90] sm:$0xff] %v9635_v54  }
 0x38e   : > { %10010 = vst [vmem:[#allocation3 + $0x10] sm:$0xff] %v9715_v55  }
 0x392   : > { %v2063_v58 = vpop.f32.mrf.mxu2  ;;  %v2143_v59 = vpop.f32.mrf.mxu3 }
 0x393   : > { %v1905_v60 = vpop.f32.mrf.mxu0  ;;  %v1985_v61 = vpop.f32.mrf.mxu1 }
 0x394   : > { %v9480_v62 = vpack.c.bf16 %v1905_v60, %v1903_v56  ;;  %v9560_v63 = vpack.c.bf16 %v1985_v61, %v1983_v57 }
 0x396   : > { %9963 = vst [vmem:[#allocation3 + $0x108] sm:$0xff] %v9480_v62  }
 0x397   : > { %9979 = vst [vmem:[#allocation3 + $0xf0] sm:$0xff] %v9560_v63  }
 0x39a   : > { %v2065_v0 = vpop.f32.mrf.mxu2  ;;  %v2145_v1 = vpop.f32.mrf.mxu3 }
 0x39b   : > { %v9640_v2 = vpack.c.bf16 %v2065_v0, %v2063_v58  ;;  %v9720_v3 = vpack.c.bf16 %v2145_v1, %v2143_v59  ;;  %v1908_v4 = vpop.f32.mrf.mxu0  ;;  %v1988_v5 = vpop.f32.mrf.mxu1 }
 0x39d   : > { %9995 = vst [vmem:[#allocation3 + $0x1d8] sm:$0xff] %v9640_v2  }
 0x39e   : > { %10011 = vst [vmem:[#allocation3 + $0x58] sm:$0xff] %v9720_v3  }
 0x3a2   : > { %v2068_v6 = vpop.f32.mrf.mxu2  ;;  %v2148_v7 = vpop.f32.mrf.mxu3 }
 0x3a3   : > { %v1910_v8 = vpop.f32.mrf.mxu0  ;;  %v1990_v9 = vpop.f32.mrf.mxu1 }
 0x3a4   : > { %v9485_v10 = vpack.c.bf16 %v1910_v8, %v1908_v4  ;;  %v9565_v11 = vpack.c.bf16 %v1990_v9, %v1988_v5 }
 0x3a6   : > { %9964 = vst [vmem:[#allocation3 + $0x60] sm:$0xff] %v9485_v10  }
 0x3a7   : > { %9980 = vst [vmem:[#allocation3 + $0x8] sm:$0xff] %v9565_v11  }
 0x3aa   : > { %v2070_v12 = vpop.f32.mrf.mxu2  ;;  %v2150_v13 = vpop.f32.mrf.mxu3 }
 0x3ab   : > { %v9645_v14 = vpack.c.bf16 %v2070_v12, %v2068_v6  ;;  %v9725_v15 = vpack.c.bf16 %v2150_v13, %v2148_v7 }
 0x3ad   : > { %9996 = vst [vmem:[#allocation3 + $0xd0] sm:$0xff] %v9645_v14  }
 0x3ae   : > { %10012 = vst [vmem:[#allocation3 + $0xa0] sm:$0xff] %v9725_v15  }
 0x3af PF: > { %v9030_v16 = vld [vmem:[#allocation3 + $0x48] sm:$0xff]  ;;  %v9038_v17 = vld [vmem:[#allocation3 + $0x60] sm:$0xff]  ;;  %v9029_v20 = vld [vmem:[#allocation3 + $0x130] sm:$0xff]  ;;  %s12627_s14 = sld [smem:[#allocation25_spill]] }
 0x3b0   : > { %v9046_v18 = vld [vmem:[#allocation3 + $0x28] sm:$0xff]  ;;  %4594 = vmatpush.bf16.msra.mxu0 %v9030_v16  ;;  %4763 = vmatpush.bf16.msra.mxu1 %v9038_v17  ;;  %v9045_v22 = vld [vmem:[#allocation3 + $0x1b8] sm:$0xff]  ;;  %v9053_v23 = vld [vmem:[#allocation3 + $0xf0] sm:$0xff]  ;;  %s12736_s27 = sld [smem:[#allocation26_spill]] }
 0x3b1   : > { %v9054_v19 = vld [vmem:[#allocation3 + $0x8] sm:$0xff]  ;;  %4932 = vmatpush.bf16.msra.mxu2 %v9046_v18  ;;  %v9036_v25 = vld [vmem:[#allocation3 + $0x150] sm:$0xff]  ;;  %v9052_v27 = vld [vmem:[#allocation3] sm:$0xff] }
 0x3b2   : > { %v9037_v21 = vld [vmem:[#allocation3 + $0x108] sm:$0xff]  ;;  %5101 = vmatpush.bf16.msra.mxu3 %v9054_v19  ;;  %v9027_v28 = vld [vmem:[#allocation3 + $0x50] sm:$0xff]  ;;  %v9035_v29 = vld [vmem:[#allocation3 + $0x120] sm:$0xff] }
 0x3b3   : > { %v9028_v24 = vld [vmem:[#allocation3 + $0x168] sm:$0xff]  ;;  %v9043_v30 = vld [vmem:[#allocation3 + $0x80] sm:$0xff]  ;;  %v9026_v32 = vld [vmem:[#allocation3 + $0x18] sm:$0xff] }
 0x3b4   : > { %4595 = vmatpush.bf16.msra.mxu0 %v9029_v20  ;;  %4764 = vmatpush.bf16.msra.mxu1 %v9037_v21  ;;  %v9044_v26 = vld [vmem:[#allocation3 + $0x1a8] sm:$0xff]  ;;  %v9051_v31 = vld [vmem:[#allocation3 + $0x1e0] sm:$0xff]  ;;  %v9034_v33 = vld [vmem:[#allocation3 + $0x98] sm:$0xff] }
 0x3b5   : > { %4933 = vmatpush.bf16.msra.mxu2 %v9045_v22  ;;  %v9042_v34 = vld [vmem:[#allocation3 + $0x140] sm:$0xff]  ;;  %v9050_v35 = vld [vmem:[#allocation3 + $0x30] sm:$0xff]  ;;  %v9025_v36 = vld [vmem:[#allocation3 + $0xd8] sm:$0xff]  ;;  %s8675_s0 = sshll.u32 %s12627_s14, 9 }
 0x3b6   : > { %5102 = vmatpush.bf16.msra.mxu3 %v9053_v23  ;;  %v9033_v37 = vld [vmem:[#allocation3 + $0x118] sm:$0xff]  ;;  %v9049_v39 = vld [vmem:[#allocation3 + $0x160] sm:$0xff]  ;;  %v9024_v40 = vld [vmem:[#allocation3 + $0x1b0] sm:$0xff]  ;;  %s11339_s6 = scalar_lea.vmem [#allocation15], %s8675_s0  ;;  %p8676_p0 = scmp.ge.s32.totalorder %s12736_s27, 2 }
 0x3b7   : > { %v9041_v38 = vld [vmem:[#allocation3 + $0x138] sm:$0xff]  ;;  %v9032_v41 = vld [vmem:[#allocation3 + $0x110] sm:$0xff]  ;;  %v9040_v42 = vld [vmem:[#allocation3 + $0x188] sm:$0xff]  ;;  %s6471_s29 = sshra.s32 (!%p8676_p0), %s8675_s0, 3 }
 0x3b8   : > { %4596 = vmatpush.bf16.msra.mxu0 %v9028_v24  ;;  %4765 = vmatpush.bf16.msra.mxu1 %v9036_v25  ;;  %v9048_v43 = vld [vmem:[#allocation3 + $0xf8] sm:$0xff]  ;;  %v9023_v44 = vld [vmem:[#allocation3 + $0xb0] sm:$0xff]  ;;  %v9031_v45 = vld [vmem:[#allocation3 + $0x180] sm:$0xff]  ;;  %s8677_s18 = sshll.u32 (!%p8676_p0), %s6471_s29, 2 }
 0x3b9   : > { %4934 = vmatpush.bf16.msra.mxu2 %v9044_v26  ;;  %v9039_v46 = vld [vmem:[#allocation3 + $0xe0] sm:$0xff]  ;;  %v9047_v47 = vld [vmem:[#allocation3 + $0x1e8] sm:$0xff]  ;;  %v9078_v56 = vld [vmem:[#allocation3 + $0x190] sm:$0xff]  ;;  %s12175_s10 = scalar_lea.vmem (!%p8676_p0), [#allocation2], %s8677_s18 }
 0x3ba   : > { %5103 = vmatpush.bf16.msra.mxu3 %v9052_v27  ;;  %v7397_v48 = vld [vmem:[%s10824_s28] sm:$0xf]  ;;  %v8767_v50 = vld [vmem:[%s10824_s28 + $0x4] sm:$0xf]  ;;  %v7405_v52 = vld [vmem:[%s10824_s28 + $0x8] sm:$0xf] }
 0x3bb   : > { %v8771_v49 = vld [vmem:[%s10824_s28 + $0x1c] sm:$0xf0]  ;;  %v7399_v51 = vld [vmem:[%s10824_s28 + $0x20] sm:$0xf0]  ;;  %v8772_v53 = vld [vmem:[%s10824_s28 + $0x24] sm:$0xf0] }
 0x3bc   : > { %4597 = vmatpush.bf16.msra.mxu0 %v9027_v28  ;;  %4766 = vmatpush.bf16.msra.mxu1 %v9035_v29  ;;  %v8768_v54 = vld [vmem:[%s10824_s28 + $0xc] sm:$0xf]  ;;  %v7398_v58 = vor.u32 %v8771_v49, %v7397_v48  ;;  %v7402_v59 = vor.u32 %v8767_v50, %v7399_v51  ;;  %v7406_v60 = vor.u32 %v8772_v53, %v7405_v52  ;;  %v9086_v62 = vld [vmem:[#allocation3 + $0xa0] sm:$0xff]  ;;  %v9070_v63 = vld [vmem:[#allocation3 + $0xd0] sm:$0xff] }
 0x3bd   : > { %4935 = vmatpush.bf16.msra.mxu2 %v9043_v30  ;;  %v7407_v55 = vld [vmem:[%s10824_s28 + $0x28] sm:$0xf0]  ;;  %v7429_v0 = vld [vmem:[%s10824_s28 + $0x40] sm:$0xf]  ;;  %v8775_v2 = vld [vmem:[%s10824_s28 + $0x44] sm:$0xf] }
 0x3be   : > { %5104 = vmatpush.bf16.msra.mxu3 %v9051_v31  ;;  %v9062_v57 = vld [vmem:[#allocation3 + $0x128] sm:$0xff]  ;;  %v7410_v61 = vor.u32 %v8768_v54, %v7407_v55  ;;  %v8779_v1 = vld [vmem:[%s10824_s28 + $0x5c] sm:$0xf0]  ;;  %v7431_v3 = vld [vmem:[%s10824_s28 + $0x60] sm:$0xf0] }
 0x3bf   : > { %v7437_v4 = vld [vmem:[%s10824_s28 + $0x48] sm:$0xf]  ;;  %v8776_v6 = vld [vmem:[%s10824_s28 + $0x4c] sm:$0xf]  ;;  %v7430_v8 = vor.u32 %v8779_v1, %v7429_v0  ;;  %v7434_v9 = vor.u32 %v8775_v2, %v7431_v3  ;;  %v7461_v12 = vld [vmem:[%s10824_s28 + $0x80] sm:$0xf] }
 0x3c0   : > { %4598 = vmatpush.bf16.msra.mxu0 %v9026_v32  ;;  %4767 = vmatpush.bf16.msra.mxu1 %v9034_v33  ;;  %v8780_v5 = vld [vmem:[%s10824_s28 + $0x64] sm:$0xf0]  ;;  %v7439_v7 = vld [vmem:[%s10824_s28 + $0x68] sm:$0xf0]  ;;  %v8787_v13 = vld [vmem:[%s10824_s28 + $0x9c] sm:$0xf0] }
 0x3c1   : > { %4936 = vmatpush.bf16.msra.mxu2 %v9042_v34  ;;  %v7438_v10 = vor.u32 %v8780_v5, %v7437_v4  ;;  %v7442_v11 = vor.u32 %v8776_v6, %v7439_v7  ;;  %v8783_v14 = vld [vmem:[%s10824_s28 + $0x84] sm:$0xf]  ;;  %v7469_v16 = vld [vmem:[%s10824_s28 + $0x88] sm:$0xf]  ;;  %v8784_v18 = vld [vmem:[%s10824_s28 + $0x8c] sm:$0xf]  ;;  %v7462_v20 = vor.u32 %v8787_v13, %v7461_v12 }
 0x3c2   : > { %5105 = vmatpush.bf16.msra.mxu3 %v9050_v35  ;;  %v7463_v15 = vld [vmem:[%s10824_s28 + $0xa0] sm:$0xf0]  ;;  %v8788_v17 = vld [vmem:[%s10824_s28 + $0xa4] sm:$0xf0]  ;;  %v7471_v19 = vld [vmem:[%s10824_s28 + $0xa8] sm:$0xf0] }
 0x3c3   : > { %v7466_v21 = vor.u32 %v8783_v14, %v7463_v15  ;;  %v7470_v22 = vor.u32 %v8788_v17, %v7469_v16  ;;  %v7474_v23 = vor.u32 %v8784_v18, %v7471_v19  ;;  %v9077_v24 = vld [vmem:[#allocation3 + $0x68] sm:$0xff]  ;;  %v9061_v25 = vld [vmem:[#allocation3 + $0x20] sm:$0xff]  ;;  %v9085_v26 = vld [vmem:[#allocation3 + $0x58] sm:$0xff] }
 0x3c4   : > { %4599 = vmatpush.bf16.msra.mxu0 %v9025_v36  ;;  %4768 = vmatpush.bf16.msra.mxu1 %v9033_v37  ;;  %v9069_v27 = vld [vmem:[#allocation3 + $0x1d8] sm:$0xff]  ;;  %v7493_v28 = vld [vmem:[%s10824_s28 + $0xc0] sm:$0xf]  ;;  %v8791_v30 = vld [vmem:[%s10824_s28 + $0xc4] sm:$0xf] }
 0x3c5   : > { %4937 = vmatpush.bf16.msra.mxu2 %v9041_v38  ;;  %v8795_v29 = vld [vmem:[%s10824_s28 + $0xdc] sm:$0xf0]  ;;  %v7495_v31 = vld [vmem:[%s10824_s28 + $0xe0] sm:$0xf0]  ;;  %v7501_v32 = vld [vmem:[%s10824_s28 + $0xc8] sm:$0xf] }
 0x3c6   : > { %5106 = vmatpush.bf16.msra.mxu3 %v9049_v39  ;;  %v8796_v33 = vld [vmem:[%s10824_s28 + $0xe4] sm:$0xf0]  ;;  %v8792_v34 = vld [vmem:[%s10824_s28 + $0xcc] sm:$0xf]  ;;  %v7494_v36 = vor.u32 %v8795_v29, %v7493_v28  ;;  %v7498_v37 = vor.u32 %v8791_v30, %v7495_v31  ;;  %v7557_v52 = vld [vmem:[%s10824_s28 + $0x140] sm:$0xf] }
 0x3c7   : > { %v7503_v35 = vld [vmem:[%s10824_s28 + $0xe8] sm:$0xf0]  ;;  %v7502_v38 = vor.u32 %v8796_v33, %v7501_v32  ;;  %v8811_v53 = vld [vmem:[%s10824_s28 + $0x15c] sm:$0xf0]  ;;  %v8807_v54 = vld [vmem:[%s10824_s28 + $0x144] sm:$0xf] }
 0x3c8   : > { %4600 = vmatpush.bf16.msra.mxu0 %v9024_v40  ;;  %4769 = vmatpush.bf16.msra.mxu1 %v9032_v41  ;;  %v7506_v39 = vor.u32 %v8792_v34, %v7503_v35  ;;  %v7525_v40 = vld [vmem:[%s10824_s28 + $0x100] sm:$0xf]  ;;  %v7559_v55 = vld [vmem:[%s10824_s28 + $0x160] sm:$0xf0]  ;;  %v7597_v4 = vld [vmem:[%s10824_s28 + $0x188] sm:$0xf] }
 0x3c9   : > { %4938 = vmatpush.bf16.msra.mxu2 %v9040_v42  ;;  %v8803_v41 = vld [vmem:[%s10824_s28 + $0x11c] sm:$0xf0]  ;;  %v8799_v42 = vld [vmem:[%s10824_s28 + $0x104] sm:$0xf]  ;;  %v8820_v5 = vld [vmem:[%s10824_s28 + $0x1a4] sm:$0xf0] }
 0x3ca   : > { %5107 = vmatpush.bf16.msra.mxu3 %v9048_v43  ;;  %v7527_v43 = vld [vmem:[%s10824_s28 + $0x120] sm:$0xf0]  ;;  %v7526_v48 = vor.u32 %v8803_v41, %v7525_v40  ;;  %v7589_v0 = vld [vmem:[%s10824_s28 + $0x180] sm:$0xf]  ;;  %v8816_v6 = vld [vmem:[%s10824_s28 + $0x18c] sm:$0xf] }
 0x3cb   : > { %v7530_v49 = vor.u32 %v8799_v42, %v7527_v43  ;;  %v8819_v1 = vld [vmem:[%s10824_s28 + $0x19c] sm:$0xf0]  ;;  %v8815_v2 = vld [vmem:[%s10824_s28 + $0x184] sm:$0xf]  ;;  %v7599_v7 = vld [vmem:[%s10824_s28 + $0x1a8] sm:$0xf0] }
 0x3cc   : > { %4601 = vmatpush.bf16.msra.mxu0 %v9023_v44  ;;  %4770 = vmatpush.bf16.msra.mxu1 %v9031_v45  ;;  %v7533_v44 = vld [vmem:[%s10824_s28 + $0x108] sm:$0xf]  ;;  %v7591_v3 = vld [vmem:[%s10824_s28 + $0x1a0] sm:$0xf0]  ;;  %v9076_v12 = vld [vmem:[#allocation3 + $0x178] sm:$0xff] }
 0x3cd   : > { %4939 = vmatpush.bf16.msra.mxu2 %v9039_v46  ;;  %v8804_v45 = vld [vmem:[%s10824_s28 + $0x124] sm:$0xf0]  ;;  %v8800_v46 = vld [vmem:[%s10824_s28 + $0x10c] sm:$0xf]  ;;  %v9060_v13 = vld [vmem:[#allocation3 + $0x1f8] sm:$0xff] }
 0x3ce   : > { %5108 = vmatpush.bf16.msra.mxu3 %v9047_v47  ;;  %v7535_v47 = vld [vmem:[%s10824_s28 + $0x128] sm:$0xf0]  ;;  %v7534_v50 = vor.u32 %v8804_v45, %v7533_v44  ;;  %v9084_v14 = vld [vmem:[#allocation3 + $0x10] sm:$0xff]  ;;  %v7621_v16 = vld [vmem:[%s10824_s28 + $0x1c0] sm:$0xf] }
 0x3cf   : > { %4602 = vmatmul.bf16.vlgmr.msra.gmra.mxu0 %v7398_v58  ;;  %4771 = vmatmul.bf16.vlgmr.msra.gmra.mxu1 %v7402_v59  ;;  %v7538_v51 = vor.u32 %v8800_v46, %v7535_v47  ;;  %v8808_v58 = vld [vmem:[%s10824_s28 + $0x14c] sm:$0xf]  ;;  %v9068_v15 = vld [vmem:[#allocation3 + $0x90] sm:$0xff]  ;;  %v8827_v17 = vld [vmem:[%s10824_s28 + $0x1dc] sm:$0xf0] }
 0x3d0   : > { %5270 = vmatpush.bf16.msrb.mxu0 %v9062_v57  ;;  %4940 = vmatmul.bf16.vlgmr.msra.gmra.mxu2 %v7406_v60  ;;  %v8812_v57 = vld [vmem:[%s10824_s28 + $0x164] sm:$0xf0]  ;;  %v7567_v59 = vld [vmem:[%s10824_s28 + $0x168] sm:$0xf0]  ;;  %v7558_v60 = vor.u32 %v8811_v53, %v7557_v52  ;;  %v8823_v18 = vld [vmem:[%s10824_s28 + $0x1c4] sm:$0xf] }
 0x3d1   : > { %5608 = vmatpush.bf16.msrb.mxu2 %v9078_v56  ;;  %5109 = vmatmul.bf16.vlgmr.msra.gmra.mxu3 %v7410_v61  ;;  %v7565_v56 = vld [vmem:[%s10824_s28 + $0x148] sm:$0xf]  ;;  %v7562_v61 = vor.u32 %v8807_v54, %v7559_v55  ;;  %v7623_v19 = vld [vmem:[%s10824_s28 + $0x1e0] sm:$0xf0]  ;;  %v7653_v28 = vld [vmem:[%s10824_s28 + $0x200] sm:$0xf] }
 0x3d2   : > { %5777 = vmatpush.bf16.msrb.mxu3 %v9086_v62  ;;  %5439 = vmatpush.bf16.msrb.mxu1 %v9070_v63  ;;  %v7566_v62 = vor.u32 %v8812_v57, %v7565_v56  ;;  %v7570_v63 = vor.u32 %v8808_v58, %v7567_v59  ;;  %v8835_v29 = vld [vmem:[%s10824_s28 + $0x21c] sm:$0xf0]  ;;  %v8831_v30 = vld [vmem:[%s10824_s28 + $0x204] sm:$0xf]  ;;  %v7661_v32 = vld [vmem:[%s10824_s28 + $0x208] sm:$0xf] }
 0x3d3   : > { %v7655_v31 = vld [vmem:[%s10824_s28 + $0x220] sm:$0xf0]  ;;  %v8836_v33 = vld [vmem:[%s10824_s28 + $0x224] sm:$0xf0]  ;;  %v8832_v34 = vld [vmem:[%s10824_s28 + $0x20c] sm:$0xf] }
 0x3d4   : > { %5271 = vmatpush.bf16.msrb.mxu0 %v9061_v25  ;;  %v7626_v25 = vor.u32 %v8823_v18, %v7623_v19  ;;  %v7663_v35 = vld [vmem:[%s10824_s28 + $0x228] sm:$0xf0]  ;;  %v7662_v40 = vor.u32 %v8836_v33, %v7661_v32  ;;  %v8839_v52 = vld [vmem:[%s10824_s28 + $0x244] sm:$0xf]  ;;  %v7693_v54 = vld [vmem:[%s10824_s28 + $0x248] sm:$0xf] }
 0x3d5   : > { %5609 = vmatpush.bf16.msrb.mxu2 %v9077_v24  ;;  %v7622_v24 = vor.u32 %v8827_v17, %v7621_v16  ;;  %v7666_v41 = vor.u32 %v8832_v34, %v7663_v35  ;;  %v7687_v53 = vld [vmem:[%s10824_s28 + $0x260] sm:$0xf0]  ;;  %v8844_v55 = vld [vmem:[%s10824_s28 + $0x264] sm:$0xf0]  ;;  %v8840_v56 = vld [vmem:[%s10824_s28 + $0x24c] sm:$0xf] }
 0x3d6   : > { %5778 = vmatpush.bf16.msrb.mxu3 %v9085_v26  ;;  %5440 = vmatpush.bf16.msrb.mxu1 %v9069_v27  ;;  %v7695_v57 = vld [vmem:[%s10824_s28 + $0x268] sm:$0xf0]  ;;  %v7725_v16 = vld [vmem:[%s10824_s28 + $0x288] sm:$0xf]  ;;  %v9059_v32 = vld [vmem:[#allocation3 + $0x40] sm:$0xff] }
 0x3d7   : > { %v8852_v17 = vld [vmem:[%s10824_s28 + $0x2a4] sm:$0xf0]  ;;  %v8848_v18 = vld [vmem:[%s10824_s28 + $0x28c] sm:$0xf]  ;;  %v9083_v33 = vld [vmem:[#allocation3 + $0x158] sm:$0xff] }
 0x3d8   : > { %5272 = vmatpush.bf16.msrb.mxu0 %v9060_v13  ;;  %v8851_v13 = vld [vmem:[%s10824_s28 + $0x29c] sm:$0xf0]  ;;  %v7727_v19 = vld [vmem:[%s10824_s28 + $0x2a8] sm:$0xf0] }
 0x3d9   : > { %5610 = vmatpush.bf16.msrb.mxu2 %v9076_v12  ;;  %v7717_v12 = vld [vmem:[%s10824_s28 + $0x280] sm:$0xf] }
 0x3da   : > { %5779 = vmatpush.bf16.msrb.mxu3 %v9084_v14  ;;  %5441 = vmatpush.bf16.msrb.mxu1 %v9068_v15  ;;  %v8847_v14 = vld [vmem:[%s10824_s28 + $0x284] sm:$0xf] }
 0x3db   : > { %v7719_v15 = vld [vmem:[%s10824_s28 + $0x2a0] sm:$0xf0] }
 0x3dc   : > { %5273 = vmatpush.bf16.msrb.mxu0 %v9059_v32 }
 0x3de   : > { %5780 = vmatpush.bf16.msrb.mxu3 %v9083_v33 }
 0x3df   : > { %4607 = vmatmul.bf16.gmra.mxu0 %v7430_v8  ;;  %4776 = vmatmul.bf16.gmra.mxu1 %v7434_v9  ;;  %v7590_v8 = vor.u32 %v8819_v1, %v7589_v0  ;;  %v7594_v9 = vor.u32 %v8815_v2, %v7591_v3  ;;  %v7694_v1 = vor.u32 %v8844_v55, %v7693_v54 }
 0x3e0   : > { %4945 = vmatmul.bf16.gmra.mxu2 %v7438_v10  ;;  %v7598_v10 = vor.u32 %v8820_v5, %v7597_v4  ;;  %v7698_v2 = vor.u32 %v8840_v56, %v7695_v57 }
 0x3e1   : > { %5114 = vmatmul.bf16.gmra.mxu3 %v7442_v11  ;;  %v7602_v11 = vor.u32 %v8816_v6, %v7599_v7 }
 0x3ef   : > { %4612 = vmatmul.bf16.gmra.mxu0 %v7462_v20  ;;  %4781 = vmatmul.bf16.gmra.mxu1 %v7466_v21  ;;  %v7629_v20 = vld [vmem:[%s10824_s28 + $0x1c8] sm:$0xf] }
 0x3f0   : > { %4950 = vmatmul.bf16.gmra.mxu2 %v7470_v22  ;;  %v8828_v21 = vld [vmem:[%s10824_s28 + $0x1e4] sm:$0xf0]  ;;  %v8824_v22 = vld [vmem:[%s10824_s28 + $0x1cc] sm:$0xf] }
 0x3f1   : > { %5119 = vmatmul.bf16.gmra.mxu3 %v7474_v23  ;;  %v7631_v23 = vld [vmem:[%s10824_s28 + $0x1e8] sm:$0xf0]  ;;  %v7630_v26 = vor.u32 %v8828_v21, %v7629_v20 }
 0x3f2   : > { %v7634_v27 = vor.u32 %v8824_v22, %v7631_v23  ;;  %v7718_v22 = vor.u32 %v8851_v13, %v7717_v12  ;;  %v7722_v23 = vor.u32 %v8847_v14, %v7719_v15  ;;  %v8868_v12 = vld [vmem:[%s10824_s28 + $0x324] sm:$0xf0]  ;;  %v8864_v13 = vld [vmem:[%s10824_s28 + $0x30c] sm:$0xf] }
 0x3f3   : > { %v7791_v14 = vld [vmem:[%s10824_s28 + $0x328] sm:$0xf0] }
 0x3ff   : > { %4617 = vmatmul.bf16.gmra.mxu0 %v7494_v36  ;;  %4786 = vmatmul.bf16.gmra.mxu1 %v7498_v37  ;;  %v7654_v36 = vor.u32 %v8835_v29, %v7653_v28  ;;  %v7658_v37 = vor.u32 %v8831_v30, %v7655_v31  ;;  %v7730_v28 = vor.u32 %v8848_v18, %v7727_v19  ;;  %v9075_v31 = vld [vmem:[#allocation3 + $0x170] sm:$0xff] }
 0x400   : > { %4955 = vmatmul.bf16.gmra.mxu2 %v7502_v38 }
 0x401   : > { %5124 = vmatmul.bf16.gmra.mxu3 %v7506_v39  ;;  %5611 = vmatpush.bf16.msrb.mxu2 %v9075_v31 }
 0x40f   : > { %4622 = vmatmul.bf16.gmra.mxu0 %v7526_v48  ;;  %4791 = vmatmul.bf16.gmra.mxu1 %v7530_v49 }
 0x410   : > { %4960 = vmatmul.bf16.gmra.mxu2 %v7534_v50  ;;  %v7685_v50 = vld [vmem:[%s10824_s28 + $0x240] sm:$0xf] }
 0x411   : > { %5129 = vmatmul.bf16.gmra.mxu3 %v7538_v51  ;;  %v8843_v51 = vld [vmem:[%s10824_s28 + $0x25c] sm:$0xf0] }
 0x41f   : > { %4627 = vmatmul.bf16.gmra.mxu0 %v7558_v60  ;;  %4796 = vmatmul.bf16.gmra.mxu1 %v7562_v61  ;;  %v7686_v60 = vor.u32 %v8843_v51, %v7685_v50  ;;  %v7690_v61 = vor.u32 %v8839_v52, %v7687_v53  ;;  %v7759_v50 = vld [vmem:[%s10824_s28 + $0x2e8] sm:$0xf0] }
 0x420   : > { %4965 = vmatmul.bf16.gmra.mxu2 %v7566_v62 }
 0x421   : > { %5134 = vmatmul.bf16.gmra.mxu3 %v7570_v63 }
 0x42f   : > { %4632 = vmatmul.bf16.gmra.mxu0 %v7590_v8  ;;  %4801 = vmatmul.bf16.gmra.mxu1 %v7594_v9 }
 0x430   : > { %4970 = vmatmul.bf16.gmra.mxu2 %v7598_v10 }
 0x431   : > { %5139 = vmatmul.bf16.gmra.mxu3 %v7602_v11 }
 0x43f   : > { %4637 = vmatmul.bf16.gmra.mxu0 %v7622_v24  ;;  %4806 = vmatmul.bf16.gmra.mxu1 %v7626_v25 }
 0x440   : > { %4975 = vmatmul.bf16.gmra.mxu2 %v7630_v26 }
 0x441   : > { %5144 = vmatmul.bf16.gmra.mxu3 %v7634_v27  ;;  %v7726_v27 = vor.u32 %v8852_v17, %v7725_v16 }
 0x44c   : > { %v4603_v38 = vpop.f32.mrf.mxu0  ;;  %v4772_v39 = vpop.f32.mrf.mxu1 }
 0x44d   : > { %v4773_v42 = vadd.f32 %v4772_v39, %v4603_v38 }
 0x44f   : > { %4642 = vmatmul.bf16.gmra.mxu0 %v7654_v36  ;;  %4811 = vmatmul.bf16.gmra.mxu1 %v7658_v37 }
 0x450   : > { %4980 = vmatmul.bf16.gmra.mxu2 %v7662_v40 }
 0x451   : > { %5149 = vmatmul.bf16.gmra.mxu3 %v7666_v41  ;;  %v9067_v41 = vld [vmem:[#allocation3 + $0x70] sm:$0xff] }
 0x452   : > { %5442 = vmatpush.bf16.msrb.mxu1 %v9067_v41  ;;  %v8872_v41 = vld [vmem:[%s10824_s28 + $0x34c] sm:$0xf] }
 0x453   : > { %v4941_v43 = vpop.f32.mrf.mxu2 }
 0x454   : > { %v5110_v44 = vpop.f32.mrf.mxu3  ;;  %v4942_v45 = vadd.f32 %v4941_v43, %v4773_v42  ;;  %v4605_v46 = vpop.f32.mrf.mxu0  ;;  %v7749_v42 = vld [vmem:[%s10824_s28 + $0x2c0] sm:$0xf] }
 0x455   : > { %v4774_v47 = vpop.f32.mrf.mxu1  ;;  %v8859_v43 = vld [vmem:[%s10824_s28 + $0x2dc] sm:$0xf0] }
 0x456   : > { %v4775_v48 = vadd.f32 %v4774_v47, %v4605_v46  ;;  %v10947_v49 = vadd.f32 %v5110_v44, %v4942_v45  ;;  %v8855_v44 = vld [vmem:[%s10824_s28 + $0x2c4] sm:$0xf]  ;;  %v7757_v46 = vld [vmem:[%s10824_s28 + $0x2c8] sm:$0xf]  ;;  %v7750_v53 = vor.u32 %v8859_v43, %v7749_v42  ;;  %v7823_v42 = vld [vmem:[%s10824_s28 + $0x368] sm:$0xf0] }
 0x457   : > { %v7751_v45 = vld [vmem:[%s10824_s28 + $0x2e0] sm:$0xf0]  ;;  %v8860_v47 = vld [vmem:[%s10824_s28 + $0x2e4] sm:$0xf0] }
 0x458   : > { %v7754_v54 = vor.u32 %v8855_v44, %v7751_v45 }
 0x45b   : > { %v4943_v58 = vpop.f32.mrf.mxu2 }
 0x45c   : > { %v5112_v59 = vpop.f32.mrf.mxu3  ;;  %v4944_v62 = vadd.f32 %v4943_v58, %v4775_v48  ;;  %v4608_v63 = vpop.f32.mrf.mxu0  ;;  %v8856_v48 = vld [vmem:[%s10824_s28 + $0x2cc] sm:$0xf]  ;;  %v7758_v58 = vor.u32 %v8860_v47, %v7757_v46 }
 0x45d   : > { %v4777_v0 = vpop.f32.mrf.mxu1 }
 0x45e   : > { %v4778_v3 = vadd.f32 %v4777_v0, %v4608_v63  ;;  %v10957_v4 = vadd.f32 %v5112_v59, %v4944_v62  ;;  %v7762_v59 = vor.u32 %v8856_v48, %v7759_v50 }
 0x45f   : > { %4647 = vmatmul.bf16.gmra.mxu0 %v7686_v60  ;;  %4816 = vmatmul.bf16.gmra.mxu1 %v7690_v61 }
 0x460   : > { %4985 = vmatmul.bf16.gmra.mxu2 %v7694_v1 }
 0x461   : > { %5154 = vmatmul.bf16.gmra.mxu3 %v7698_v2 }
 0x463   : > { %v4946_v5 = vpop.f32.mrf.mxu2 }
 0x464   : > { %v5115_v6 = vpop.f32.mrf.mxu3  ;;  %v4947_v7 = vadd.f32 %v4946_v5, %v4778_v3  ;;  %v4610_v8 = vpop.f32.mrf.mxu0 }
 0x465   : > { %v4779_v9 = vpop.f32.mrf.mxu1 }
 0x466   : > { %v4780_v10 = vadd.f32 %v4779_v9, %v4610_v8  ;;  %v10959_v11 = vadd.f32 %v5115_v6, %v4947_v7  ;;  %v7781_v6 = vld [vmem:[%s10824_s28 + $0x300] sm:$0xf]  ;;  %v8863_v8 = vld [vmem:[%s10824_s28 + $0x304] sm:$0xf] }
 0x467   : > { %v8867_v7 = vld [vmem:[%s10824_s28 + $0x31c] sm:$0xf0]  ;;  %v7783_v9 = vld [vmem:[%s10824_s28 + $0x320] sm:$0xf0] }
 0x468   : > { %v7782_v17 = vor.u32 %v8867_v7, %v7781_v6  ;;  %v7786_v18 = vor.u32 %v8863_v8, %v7783_v9  ;;  %v8884_v6 = vld [vmem:[%s10824_s28 + $0x3a4] sm:$0xf0]  ;;  %v8880_v7 = vld [vmem:[%s10824_s28 + $0x38c] sm:$0xf] }
 0x469   : > { %v7855_v8 = vld [vmem:[%s10824_s28 + $0x3a8] sm:$0xf0] }
 0x46b   : > { %v4948_v20 = vpop.f32.mrf.mxu2 }
 0x46c   : > { %v5117_v21 = vpop.f32.mrf.mxu3  ;;  %v4949_v24 = vadd.f32 %v4948_v20, %v4780_v10  ;;  %v4613_v25 = vpop.f32.mrf.mxu0  ;;  %v7789_v10 = vld [vmem:[%s10824_s28 + $0x308] sm:$0xf] }
 0x46d   : > { %v4782_v26 = vpop.f32.mrf.mxu1 }
 0x46e   : > { %v4783_v29 = vadd.f32 %v4782_v26, %v4613_v25  ;;  %v10969_v30 = vadd.f32 %v5117_v21, %v4949_v24 }
 0x46f   : > { %4652 = vmatmul.bf16.gmra.mxu0 %v7718_v22  ;;  %4821 = vmatmul.bf16.gmra.mxu1 %v7722_v23  ;;  %v7790_v22 = vor.u32 %v8868_v12, %v7789_v10  ;;  %v7794_v23 = vor.u32 %v8864_v13, %v7791_v14 }
 0x470   : > { %4990 = vmatmul.bf16.gmra.mxu2 %v7726_v27 }
 0x471   : > { %5159 = vmatmul.bf16.gmra.mxu3 %v7730_v28 }
 0x473   : > { %v4951_v34 = vpop.f32.mrf.mxu2 }
 0x474   : > { %v5120_v35 = vpop.f32.mrf.mxu3  ;;  %v4952_v36 = vadd.f32 %v4951_v34, %v4783_v29  ;;  %v4615_v37 = vpop.f32.mrf.mxu0  ;;  %v7813_v34 = vld [vmem:[%s10824_s28 + $0x340] sm:$0xf] }
 0x475   : > { %v4784_v38 = vpop.f32.mrf.mxu1 }
 0x476   : > { %v4785_v39 = vadd.f32 %v4784_v38, %v4615_v37  ;;  %v10971_v40 = vadd.f32 %v5120_v35, %v4952_v36  ;;  %v8875_v35 = vld [vmem:[%s10824_s28 + $0x35c] sm:$0xf0]  ;;  %v8871_v36 = vld [vmem:[%s10824_s28 + $0x344] sm:$0xf]  ;;  %v7821_v38 = vld [vmem:[%s10824_s28 + $0x348] sm:$0xf] }
 0x477   : > { %v7815_v37 = vld [vmem:[%s10824_s28 + $0x360] sm:$0xf0]  ;;  %v7814_v45 = vor.u32 %v8875_v35, %v7813_v34  ;;  %v9066_v34 = vld [vmem:[#allocation3 + $0x78] sm:$0xff]  ;;  %v7877_v35 = vld [vmem:[%s10824_s28 + $0x3c0] sm:$0xf] }
 0x478   : > { %v7818_v46 = vor.u32 %v8871_v36, %v7815_v37  ;;  %v8891_v36 = vld [vmem:[%s10824_s28 + $0x3dc] sm:$0xf0]  ;;  %v8887_v37 = vld [vmem:[%s10824_s28 + $0x3c4] sm:$0xf]  ;;  %5443 = vmatpush.bf16.msrb.mxu1 %v9066_v34 }
 0x47b   : > { %v4953_v51 = vpop.f32.mrf.mxu2 }
 0x47c   : > { %v5122_v52 = vpop.f32.mrf.mxu3  ;;  %v4954_v55 = vadd.f32 %v4953_v51, %v4785_v39  ;;  %v4618_v56 = vpop.f32.mrf.mxu0  ;;  %v8876_v39 = vld [vmem:[%s10824_s28 + $0x364] sm:$0xf0] }
 0x47d   : > { %v4787_v57 = vpop.f32.mrf.mxu1  ;;  %v7822_v51 = vor.u32 %v8876_v39, %v7821_v38  ;;  %v7879_v38 = vld [vmem:[%s10824_s28 + $0x3e0] sm:$0xf0]  ;;  %v7885_v39 = vld [vmem:[%s10824_s28 + $0x3c8] sm:$0xf] }
 0x47e   : > { %v4788_v60 = vadd.f32 %v4787_v57, %v4618_v56  ;;  %v10981_v61 = vadd.f32 %v5122_v52, %v4954_v55  ;;  %v7826_v52 = vor.u32 %v8872_v41, %v7823_v42  ;;  %v8892_v41 = vld [vmem:[%s10824_s28 + $0x3e4] sm:$0xf0]  ;;  %v8888_v42 = vld [vmem:[%s10824_s28 + $0x3cc] sm:$0xf] }
 0x47f   : > { %4657 = vmatmul.bf16.gmra.mxu0 %v7750_v53  ;;  %4826 = vmatmul.bf16.gmra.mxu1 %v7754_v54 }
 0x480   : > { %4995 = vmatmul.bf16.gmra.mxu2 %v7758_v58 }
 0x481   : > { %5164 = vmatmul.bf16.gmra.mxu3 %v7762_v59 }
 0x483   : > { %v4956_v62 = vpop.f32.mrf.mxu2 }
 0x484   : > { %v5125_v63 = vpop.f32.mrf.mxu3  ;;  %v4957_v0 = vadd.f32 %v4956_v62, %v4788_v60  ;;  %v4620_v1 = vpop.f32.mrf.mxu0 }
 0x485   : > { %v4789_v2 = vpop.f32.mrf.mxu1 }
 0x486   : > { %v4790_v3 = vadd.f32 %v4789_v2, %v4620_v1  ;;  %v10983_v5 = vadd.f32 %v5125_v63, %v4957_v0  ;;  %v7845_v63 = vld [vmem:[%s10824_s28 + $0x380] sm:$0xf]  ;;  %v8879_v1 = vld [vmem:[%s10824_s28 + $0x384] sm:$0xf] }
 0x487   : > { %v8883_v0 = vld [vmem:[%s10824_s28 + $0x39c] sm:$0xf0]  ;;  %v7847_v2 = vld [vmem:[%s10824_s28 + $0x3a0] sm:$0xf0] }
 0x488   : > { %v7846_v12 = vor.u32 %v8883_v0, %v7845_v63  ;;  %v7850_v13 = vor.u32 %v8879_v1, %v7847_v2  ;;  %v7909_v2 = vld [vmem:[%s10824_s28 + $0x400] sm:$0xf] }
 0x48b   : > { %v4958_v15 = vpop.f32.mrf.mxu2 }
 0x48c   : > { %v5127_v16 = vpop.f32.mrf.mxu3  ;;  %v4959_v19 = vadd.f32 %v4958_v15, %v4790_v3  ;;  %v4623_v20 = vpop.f32.mrf.mxu0  ;;  %v7853_v3 = vld [vmem:[%s10824_s28 + $0x388] sm:$0xf] }
 0x48d   : > { %v4792_v21 = vpop.f32.mrf.mxu1 }
 0x48e   : > { %v4793_v24 = vadd.f32 %v4792_v21, %v4623_v20  ;;  %v10993_v25 = vadd.f32 %v5127_v16, %v4959_v19  ;;  %v9074_v21 = vld [vmem:[#allocation3 + $0x1c8] sm:$0xff] }
 0x48f   : > { %4662 = vmatmul.bf16.gmra.mxu0 %v7782_v17  ;;  %4831 = vmatmul.bf16.gmra.mxu1 %v7786_v18  ;;  %v7854_v17 = vor.u32 %v8884_v6, %v7853_v3  ;;  %v7858_v18 = vor.u32 %v8880_v7, %v7855_v8  ;;  %v8899_v3 = vld [vmem:[%s10824_s28 + $0x41c] sm:$0xf0]  ;;  %v8895_v6 = vld [vmem:[%s10824_s28 + $0x404] sm:$0xf]  ;;  %v7917_v8 = vld [vmem:[%s10824_s28 + $0x408] sm:$0xf] }
 0x490   : > { %5000 = vmatmul.bf16.gmra.mxu2 %v7790_v22  ;;  %v9058_v22 = vld [vmem:[#allocation3 + $0xc8] sm:$0xff]  ;;  %v7911_v7 = vld [vmem:[%s10824_s28 + $0x420] sm:$0xf0] }
 0x491   : > { %5169 = vmatmul.bf16.gmra.mxu3 %v7794_v23  ;;  %v9082_v23 = vld [vmem:[#allocation3 + $0x1c0] sm:$0xff]  ;;  %5612 = vmatpush.bf16.msrb.mxu2 %v9074_v21 }
 0x492   : > { %5274 = vmatpush.bf16.msrb.mxu0 %v9058_v22  ;;  %5781 = vmatpush.bf16.msrb.mxu3 %v9082_v23 }
 0x493   : > { %v4961_v26 = vpop.f32.mrf.mxu2 }
 0x494   : > { %v5130_v27 = vpop.f32.mrf.mxu3  ;;  %v4962_v28 = vadd.f32 %v4961_v26, %v4793_v24  ;;  %v4625_v29 = vpop.f32.mrf.mxu0 }
 0x495   : > { %v4794_v31 = vpop.f32.mrf.mxu1 }
 0x496   : > { %v4795_v32 = vadd.f32 %v4794_v31, %v4625_v29  ;;  %v10995_v33 = vadd.f32 %v5130_v27, %v4962_v28 }
 0x49b   : > { %v4963_v43 = vpop.f32.mrf.mxu2 }
 0x49c   : > { %v5132_v44 = vpop.f32.mrf.mxu3  ;;  %v4964_v47 = vadd.f32 %v4963_v43, %v4795_v32  ;;  %v4628_v48 = vpop.f32.mrf.mxu0  ;;  %v7887_v43 = vld [vmem:[%s10824_s28 + $0x3e8] sm:$0xf0] }
 0x49d   : > { %v4797_v50 = vpop.f32.mrf.mxu1 }
 0x49e   : > { %v4798_v53 = vadd.f32 %v4797_v50, %v4628_v48  ;;  %v11005_v54 = vadd.f32 %v5132_v44, %v4964_v47  ;;  %v7882_v47 = vor.u32 %v8887_v37, %v7879_v38  ;;  %v8907_v37 = vld [vmem:[%s10824_s28 + $0x45c] sm:$0xf0]  ;;  %v8903_v38 = vld [vmem:[%s10824_s28 + $0x444] sm:$0xf] }
 0x49f   : > { %4667 = vmatmul.bf16.gmra.mxu0 %v7814_v45  ;;  %4836 = vmatmul.bf16.gmra.mxu1 %v7818_v46  ;;  %v7878_v46 = vor.u32 %v8891_v36, %v7877_v35  ;;  %v7941_v36 = vld [vmem:[%s10824_s28 + $0x440] sm:$0xf] }
 0x4a0   : > { %5005 = vmatmul.bf16.gmra.mxu2 %v7822_v51 }
 0x4a1   : > { %5174 = vmatmul.bf16.gmra.mxu3 %v7826_v52  ;;  %v7886_v52 = vor.u32 %v8892_v41, %v7885_v39  ;;  %v7943_v39 = vld [vmem:[%s10824_s28 + $0x460] sm:$0xf0]  ;;  %v7949_v41 = vld [vmem:[%s10824_s28 + $0x448] sm:$0xf] }
 0x4a3   : > { %v4966_v55 = vpop.f32.mrf.mxu2 }
 0x4a4   : > { %v5135_v56 = vpop.f32.mrf.mxu3  ;;  %v4967_v57 = vadd.f32 %v4966_v55, %v4798_v53  ;;  %v4630_v58 = vpop.f32.mrf.mxu0  ;;  %v7890_v53 = vor.u32 %v8888_v42, %v7887_v43  ;;  %v8908_v42 = vld [vmem:[%s10824_s28 + $0x464] sm:$0xf0]  ;;  %v8904_v43 = vld [vmem:[%s10824_s28 + $0x44c] sm:$0xf] }
 0x4a5   : > { %v4799_v59 = vpop.f32.mrf.mxu1 }
 0x4a6   : > { %v4800_v60 = vadd.f32 %v4799_v59, %v4630_v58  ;;  %v11007_v62 = vadd.f32 %v5135_v56, %v4967_v57 }
 0x4ab   : > { %v4968_v9 = vpop.f32.mrf.mxu2 }
 0x4ac   : > { %v5137_v10 = vpop.f32.mrf.mxu3  ;;  %v4969_v14 = vadd.f32 %v4968_v9, %v4800_v60  ;;  %v4633_v15 = vpop.f32.mrf.mxu0  ;;  %v8900_v9 = vld [vmem:[%s10824_s28 + $0x424] sm:$0xf0] }
 0x4ad   : > { %v4802_v16 = vpop.f32.mrf.mxu1  ;;  %v7918_v21 = vor.u32 %v8900_v9, %v7917_v8  ;;  %v8915_v8 = vld [vmem:[%s10824_s28 + $0x49c] sm:$0xf0]  ;;  %v8911_v9 = vld [vmem:[%s10824_s28 + $0x484] sm:$0xf] }
 0x4ae   : > { %v4803_v19 = vadd.f32 %v4802_v16, %v4633_v15  ;;  %v11017_v20 = vadd.f32 %v5137_v10, %v4969_v14  ;;  %v8896_v10 = vld [vmem:[%s10824_s28 + $0x40c] sm:$0xf]  ;;  %v7910_v15 = vor.u32 %v8899_v3, %v7909_v2  ;;  %v7914_v16 = vor.u32 %v8895_v6, %v7911_v7  ;;  %v7973_v7 = vld [vmem:[%s10824_s28 + $0x480] sm:$0xf] }
 0x4af   : > { %4672 = vmatmul.bf16.gmra.mxu0 %v7846_v12  ;;  %4841 = vmatmul.bf16.gmra.mxu1 %v7850_v13  ;;  %v7919_v12 = vld [vmem:[%s10824_s28 + $0x428] sm:$0xf0] }
 0x4b0   : > { %5010 = vmatmul.bf16.gmra.mxu2 %v7854_v17  ;;  %v7922_v22 = vor.u32 %v8896_v10, %v7919_v12  ;;  %v7975_v10 = vld [vmem:[%s10824_s28 + $0x4a0] sm:$0xf0]  ;;  %v7981_v12 = vld [vmem:[%s10824_s28 + $0x488] sm:$0xf] }
 0x4b1   : > { %5179 = vmatmul.bf16.gmra.mxu3 %v7858_v18 }
 0x4b3   : > { %v4971_v24 = vpop.f32.mrf.mxu2 }
 0x4b4   : > { %v5140_v26 = vpop.f32.mrf.mxu3  ;;  %v4972_v27 = vadd.f32 %v4971_v24, %v4803_v19  ;;  %v4635_v28 = vpop.f32.mrf.mxu0 }
 0x4b5   : > { %v4804_v29 = vpop.f32.mrf.mxu1 }
 0x4b6   : > { %v4805_v31 = vadd.f32 %v4804_v29, %v4635_v28  ;;  %v11019_v32 = vadd.f32 %v5140_v26, %v4972_v27 }
 0x4bb   : > { %v4973_v44 = vpop.f32.mrf.mxu2 }
 0x4bc   : > { %v5142_v45 = vpop.f32.mrf.mxu3  ;;  %v4974_v48 = vadd.f32 %v4973_v44, %v4805_v31  ;;  %v4638_v50 = vpop.f32.mrf.mxu0  ;;  %v7951_v44 = vld [vmem:[%s10824_s28 + $0x468] sm:$0xf0] }
 0x4bd   : > { %v4807_v51 = vpop.f32.mrf.mxu1 }
 0x4be   : > { %v4808_v55 = vadd.f32 %v4807_v51, %v4638_v50  ;;  %v11029_v56 = vadd.f32 %v5142_v45, %v4974_v48  ;;  %v7946_v48 = vor.u32 %v8903_v38, %v7943_v39 }
 0x4bf   : > { %4677 = vmatmul.bf16.gmra.mxu0 %v7878_v46  ;;  %4846 = vmatmul.bf16.gmra.mxu1 %v7882_v47  ;;  %v7942_v47 = vor.u32 %v8907_v37, %v7941_v36  ;;  %v9081_v36 = vld [vmem:[#allocation3 + $0xc0] sm:$0xff] }
 0x4c0   : > { %5015 = vmatmul.bf16.gmra.mxu2 %v7886_v52  ;;  %5782 = vmatpush.bf16.msrb.mxu3 %v9081_v36 }
 0x4c1   : > { %5184 = vmatmul.bf16.gmra.mxu3 %v7890_v53  ;;  %v7950_v53 = vor.u32 %v8908_v42, %v7949_v41 }
 0x4c3   : > { %v4976_v57 = vpop.f32.mrf.mxu2 }
 0x4c4   : > { %v5145_v58 = vpop.f32.mrf.mxu3  ;;  %v4977_v59 = vadd.f32 %v4976_v57, %v4808_v55  ;;  %v4640_v60 = vpop.f32.mrf.mxu0  ;;  %v7954_v55 = vor.u32 %v8904_v43, %v7951_v44 }
 0x4c5   : > { %v4809_v63 = vpop.f32.mrf.mxu1 }
 0x4c6   : > { %v4810_v0 = vadd.f32 %v4809_v63, %v4640_v60  ;;  %v11031_v1 = vadd.f32 %v5145_v58, %v4977_v59 }
 0x4cb   : > { %v4978_v13 = vpop.f32.mrf.mxu2 }
 0x4cc   : > { %v5147_v14 = vpop.f32.mrf.mxu3  ;;  %v4979_v17 = vadd.f32 %v4978_v13, %v4810_v0  ;;  %v4643_v18 = vpop.f32.mrf.mxu0  ;;  %v8916_v13 = vld [vmem:[%s10824_s28 + $0x4a4] sm:$0xf0] }
 0x4cd   : > { %v4812_v19 = vpop.f32.mrf.mxu1 }
 0x4ce   : > { %v4813_v23 = vadd.f32 %v4812_v19, %v4643_v18  ;;  %v11041_v24 = vadd.f32 %v5147_v14, %v4979_v17  ;;  %v8912_v14 = vld [vmem:[%s10824_s28 + $0x48c] sm:$0xf]  ;;  %v7974_v18 = vor.u32 %v8915_v8, %v7973_v7  ;;  %v7978_v19 = vor.u32 %v8911_v9, %v7975_v10 }
 0x4cf   : > { %4682 = vmatmul.bf16.gmra.mxu0 %v7910_v15  ;;  %4851 = vmatmul.bf16.gmra.mxu1 %v7914_v16  ;;  %v7983_v15 = vld [vmem:[%s10824_s28 + $0x4a8] sm:$0xf0] }
 0x4d0   : > { %5020 = vmatmul.bf16.gmra.mxu2 %v7918_v21 }
 0x4d1   : > { %5189 = vmatmul.bf16.gmra.mxu3 %v7922_v22 }
 0x4d3   : > { %v4981_v26 = vpop.f32.mrf.mxu2 }
 0x4d4   : > { %v5150_v27 = vpop.f32.mrf.mxu3  ;;  %v4982_v28 = vadd.f32 %v4981_v26, %v4813_v23  ;;  %v4645_v29 = vpop.f32.mrf.mxu0  ;;  %v7982_v26 = vor.u32 %v8916_v13, %v7981_v12 }
 0x4d5   : > { %v4814_v31 = vpop.f32.mrf.mxu1 }
 0x4d6   : > { %v4815_v34 = vadd.f32 %v4814_v31, %v4645_v29  ;;  %v11043_v35 = vadd.f32 %v5150_v27, %v4982_v28  ;;  %v7986_v27 = vor.u32 %v8912_v14, %v7983_v15  ;;  %v9073_v31 = vld [vmem:[#allocation3 + $0xa8] sm:$0xff] }
 0x4d7   : > { %5613 = vmatpush.bf16.msrb.mxu2 %v9073_v31  ;;  %v8047_v31 = vld [vmem:[%s10824_s28 + $0x528] sm:$0xf0] }
 0x4db   : > { %v4983_v45 = vpop.f32.mrf.mxu2 }
 0x4dc   : > { %v5152_v46 = vpop.f32.mrf.mxu3  ;;  %v4984_v50 = vadd.f32 %v4983_v45, %v4815_v34  ;;  %v4648_v51 = vpop.f32.mrf.mxu0  ;;  %v9057_v34 = vld [vmem:[#allocation3 + $0x100] sm:$0xff]  ;;  %v9065_v45 = vld [vmem:[#allocation3 + $0xe8] sm:$0xff] }
 0x4dd   : > { %v4817_v52 = vpop.f32.mrf.mxu1  ;;  %5275 = vmatpush.bf16.msrb.mxu0 %v9057_v34  ;;  %5444 = vmatpush.bf16.msrb.mxu1 %v9065_v45 }
 0x4de   : > { %v4818_v57 = vadd.f32 %v4817_v52, %v4648_v51  ;;  %v11053_v58 = vadd.f32 %v5152_v46, %v4984_v50  ;;  %v8005_v46 = vld [vmem:[%s10824_s28 + $0x4c0] sm:$0xf]  ;;  %v8007_v50 = vld [vmem:[%s10824_s28 + $0x4e0] sm:$0xf0]  ;;  %v8013_v51 = vld [vmem:[%s10824_s28 + $0x4c8] sm:$0xf] }
 0x4df   : > { %4687 = vmatmul.bf16.gmra.mxu0 %v7942_v47  ;;  %4856 = vmatmul.bf16.gmra.mxu1 %v7946_v48  ;;  %v8923_v47 = vld [vmem:[%s10824_s28 + $0x4dc] sm:$0xf0]  ;;  %v8919_v48 = vld [vmem:[%s10824_s28 + $0x4c4] sm:$0xf]  ;;  %v8924_v52 = vld [vmem:[%s10824_s28 + $0x4e4] sm:$0xf0] }
 0x4e0   : > { %5025 = vmatmul.bf16.gmra.mxu2 %v7950_v53  ;;  %v8920_v53 = vld [vmem:[%s10824_s28 + $0x4cc] sm:$0xf]  ;;  %v8014_v7 = vor.u32 %v8924_v52, %v8013_v51 }
 0x4e1   : > { %5194 = vmatmul.bf16.gmra.mxu3 %v7954_v55  ;;  %v8015_v55 = vld [vmem:[%s10824_s28 + $0x4e8] sm:$0xf0] }
 0x4e2   : > { %v8018_v8 = vor.u32 %v8920_v53, %v8015_v55 }
 0x4e3   : > { %v4986_v59 = vpop.f32.mrf.mxu2 }
 0x4e4   : > { %v5155_v60 = vpop.f32.mrf.mxu3  ;;  %v4987_v63 = vadd.f32 %v4986_v59, %v4818_v57  ;;  %v4650_v0 = vpop.f32.mrf.mxu0 }
 0x4e5   : > { %v4819_v2 = vpop.f32.mrf.mxu1 }
 0x4e6   : > { %v4820_v3 = vadd.f32 %v4819_v2, %v4650_v0  ;;  %v11055_v6 = vadd.f32 %v5155_v60, %v4987_v63  ;;  %v8006_v60 = vor.u32 %v8923_v47, %v8005_v46  ;;  %v8010_v63 = vor.u32 %v8919_v48, %v8007_v50 }
 0x4eb   : > { %v4988_v16 = vpop.f32.mrf.mxu2 }
 0x4ec   : > { %v5157_v17 = vpop.f32.mrf.mxu3  ;;  %v4989_v21 = vadd.f32 %v4988_v16, %v4820_v3  ;;  %v4653_v22 = vpop.f32.mrf.mxu0 }
 0x4ed   : > { %v4822_v23 = vpop.f32.mrf.mxu1 }
 0x4ee   : > { %v4823_v28 = vadd.f32 %v4822_v23, %v4653_v22  ;;  %v11065_v29 = vadd.f32 %v5157_v17, %v4989_v21  ;;  %v8931_v21 = vld [vmem:[%s10824_s28 + $0x51c] sm:$0xf0]  ;;  %v8927_v22 = vld [vmem:[%s10824_s28 + $0x504] sm:$0xf] }
 0x4ef   : > { %4692 = vmatmul.bf16.gmra.mxu0 %v7974_v18  ;;  %4861 = vmatmul.bf16.gmra.mxu1 %v7978_v19  ;;  %v8037_v19 = vld [vmem:[%s10824_s28 + $0x500] sm:$0xf]  ;;  %v8039_v23 = vld [vmem:[%s10824_s28 + $0x520] sm:$0xf0] }
 0x4f0   : > { %5030 = vmatmul.bf16.gmra.mxu2 %v7982_v26  ;;  %v8045_v26 = vld [vmem:[%s10824_s28 + $0x508] sm:$0xf] }
 0x4f1   : > { %5199 = vmatmul.bf16.gmra.mxu3 %v7986_v27  ;;  %v8932_v27 = vld [vmem:[%s10824_s28 + $0x524] sm:$0xf0] }
 0x4f3   : > { %v4991_v37 = vpop.f32.mrf.mxu2 }
 0x4f4   : > { %v5160_v38 = vpop.f32.mrf.mxu3  ;;  %v4992_v39 = vadd.f32 %v4991_v37, %v4823_v28  ;;  %v4655_v41 = vpop.f32.mrf.mxu0  ;;  %v8928_v28 = vld [vmem:[%s10824_s28 + $0x50c] sm:$0xf]  ;;  %v8038_v37 = vor.u32 %v8931_v21, %v8037_v19 }
 0x4f5   : > { %v4824_v42 = vpop.f32.mrf.mxu1  ;;  %v8050_v45 = vor.u32 %v8928_v28, %v8047_v31 }
 0x4f6   : > { %v4825_v43 = vadd.f32 %v4824_v42, %v4655_v41  ;;  %v11067_v44 = vadd.f32 %v5160_v38, %v4992_v39  ;;  %v8042_v38 = vor.u32 %v8927_v22, %v8039_v23 }
 0x4fb   : > { %v4993_v57 = vpop.f32.mrf.mxu2 }
 0x4fc   : > { %v5162_v59 = vpop.f32.mrf.mxu3  ;;  %v4994_v0 = vadd.f32 %v4993_v57, %v4825_v43  ;;  %v4658_v2 = vpop.f32.mrf.mxu0  ;;  %v8046_v43 = vor.u32 %v8932_v27, %v8045_v26 }
 0x4fd   : > { %v4827_v3 = vpop.f32.mrf.mxu1 }
 0x4fe   : > { %v4828_v9 = vadd.f32 %v4827_v3, %v4658_v2  ;;  %v11077_v10 = vadd.f32 %v5162_v59, %v4994_v0  ;;  %v8069_v59 = vld [vmem:[%s10824_s28 + $0x540] sm:$0xf]  ;;  %v8071_v0 = vld [vmem:[%s10824_s28 + $0x560] sm:$0xf0]  ;;  %v8077_v2 = vld [vmem:[%s10824_s28 + $0x548] sm:$0xf] }
 0x4ff   : > { %4697 = vmatmul.bf16.gmra.mxu0 %v8006_v60  ;;  %4866 = vmatmul.bf16.gmra.mxu1 %v8010_v63  ;;  %v8939_v60 = vld [vmem:[%s10824_s28 + $0x55c] sm:$0xf0]  ;;  %v8935_v63 = vld [vmem:[%s10824_s28 + $0x544] sm:$0xf]  ;;  %v8940_v3 = vld [vmem:[%s10824_s28 + $0x564] sm:$0xf0] }
 0x500   : > { %5035 = vmatmul.bf16.gmra.mxu2 %v8014_v7  ;;  %v8936_v7 = vld [vmem:[%s10824_s28 + $0x54c] sm:$0xf]  ;;  %v8078_v19 = vor.u32 %v8940_v3, %v8077_v2 }
 0x501   : > { %5204 = vmatmul.bf16.gmra.mxu3 %v8018_v8  ;;  %v8079_v8 = vld [vmem:[%s10824_s28 + $0x568] sm:$0xf0] }
 0x502   : > { %v8082_v21 = vor.u32 %v8936_v7, %v8079_v8  ;;  %v9072_v7 = vld [vmem:[#allocation3 + $0x88] sm:$0xff]  ;;  %v9056_v8 = vld [vmem:[#allocation3 + $0x1d0] sm:$0xff] }
 0x503   : > { %v4996_v12 = vpop.f32.mrf.mxu2  ;;  %5614 = vmatpush.bf16.msrb.mxu2 %v9072_v7  ;;  %5276 = vmatpush.bf16.msrb.mxu0 %v9056_v8  ;;  %v8165_v8 = vld [vmem:[%s10824_s28 + $0x600] sm:$0xf] }
 0x504   : > { %v5165_v13 = vpop.f32.mrf.mxu3  ;;  %v4997_v14 = vadd.f32 %v4996_v12, %v4828_v9  ;;  %v4660_v15 = vpop.f32.mrf.mxu0 }
 0x505   : > { %v4829_v16 = vpop.f32.mrf.mxu1 }
 0x506   : > { %v4830_v17 = vadd.f32 %v4829_v16, %v4660_v15  ;;  %v11079_v18 = vadd.f32 %v5165_v13, %v4997_v14  ;;  %v8070_v13 = vor.u32 %v8939_v60, %v8069_v59  ;;  %v8074_v14 = vor.u32 %v8935_v63, %v8071_v0 }
 0x50b   : > { %v4998_v34 = vpop.f32.mrf.mxu2 }
 0x50c   : > { %v5167_v36 = vpop.f32.mrf.mxu3  ;;  %v4999_v39 = vadd.f32 %v4998_v34, %v4830_v17  ;;  %v4663_v41 = vpop.f32.mrf.mxu0 }
 0x50d   : > { %v4832_v42 = vpop.f32.mrf.mxu1 }
 0x50e   : > { %v4833_v46 = vadd.f32 %v4832_v42, %v4663_v41  ;;  %v11089_v47 = vadd.f32 %v5167_v36, %v4999_v39  ;;  %v8947_v39 = vld [vmem:[%s10824_s28 + $0x59c] sm:$0xf0]  ;;  %v8943_v41 = vld [vmem:[%s10824_s28 + $0x584] sm:$0xf] }
 0x50f   : > { %4702 = vmatmul.bf16.gmra.mxu0 %v8038_v37  ;;  %4871 = vmatmul.bf16.gmra.mxu1 %v8042_v38  ;;  %v8101_v38 = vld [vmem:[%s10824_s28 + $0x580] sm:$0xf]  ;;  %v8103_v42 = vld [vmem:[%s10824_s28 + $0x5a0] sm:$0xf0] }
 0x510   : > { %5040 = vmatmul.bf16.gmra.mxu2 %v8046_v43  ;;  %v8109_v43 = vld [vmem:[%s10824_s28 + $0x588] sm:$0xf] }
 0x511   : > { %5209 = vmatmul.bf16.gmra.mxu3 %v8050_v45  ;;  %v8948_v45 = vld [vmem:[%s10824_s28 + $0x5a4] sm:$0xf0] }
 0x512   : > { %v8110_v63 = vor.u32 %v8948_v45, %v8109_v43 }
 0x513   : > { %v5001_v48 = vpop.f32.mrf.mxu2 }
 0x514   : > { %v5170_v50 = vpop.f32.mrf.mxu3  ;;  %v5002_v51 = vadd.f32 %v5001_v48, %v4833_v46  ;;  %v4665_v52 = vpop.f32.mrf.mxu0  ;;  %v8944_v46 = vld [vmem:[%s10824_s28 + $0x58c] sm:$0xf] }
 0x515   : > { %v4834_v53 = vpop.f32.mrf.mxu1  ;;  %v8111_v48 = vld [vmem:[%s10824_s28 + $0x5a8] sm:$0xf0] }
 0x516   : > { %v4835_v55 = vadd.f32 %v4834_v53, %v4665_v52  ;;  %v11091_v57 = vadd.f32 %v5170_v50, %v5002_v51  ;;  %v8102_v52 = vor.u32 %v8947_v39, %v8101_v38  ;;  %v8106_v53 = vor.u32 %v8943_v41, %v8103_v42  ;;  %v8143_v38 = vld [vmem:[%s10824_s28 + $0x5e8] sm:$0xf0] }
 0x517   : > { %v8114_v0 = vor.u32 %v8944_v46, %v8111_v48 }
 0x51b   : > { %v5003_v9 = vpop.f32.mrf.mxu2 }
 0x51c   : > { %v5172_v12 = vpop.f32.mrf.mxu3  ;;  %v5004_v15 = vadd.f32 %v5003_v9, %v4835_v55  ;;  %v4668_v16 = vpop.f32.mrf.mxu0  ;;  %v9080_v9 = vld [vmem:[#allocation3 + $0x38] sm:$0xff] }
 0x51d   : > { %v4837_v17 = vpop.f32.mrf.mxu1  ;;  %5783 = vmatpush.bf16.msrb.mxu3 %v9080_v9  ;;  %v8963_v9 = vld [vmem:[%s10824_s28 + $0x61c] sm:$0xf0] }
 0x51e   : > { %v4838_v22 = vadd.f32 %v4837_v17, %v4668_v16  ;;  %v11101_v23 = vadd.f32 %v5172_v12, %v5004_v15 }
 0x51f   : > { %4707 = vmatmul.bf16.gmra.mxu0 %v8070_v13  ;;  %4876 = vmatmul.bf16.gmra.mxu1 %v8074_v14 }
 0x520   : > { %5045 = vmatmul.bf16.gmra.mxu2 %v8078_v19 }
 0x521   : > { %5214 = vmatmul.bf16.gmra.mxu3 %v8082_v21  ;;  %v9064_v21 = vld [vmem:[#allocation3 + $0x1f0] sm:$0xff] }
 0x522   : > { %5445 = vmatpush.bf16.msrb.mxu1 %v9064_v21 }
 0x523   : > { %v5006_v26 = vpop.f32.mrf.mxu2 }
 0x524   : > { %v5175_v27 = vpop.f32.mrf.mxu3  ;;  %v5007_v28 = vadd.f32 %v5006_v26, %v4838_v22  ;;  %v4670_v31 = vpop.f32.mrf.mxu0  ;;  %v8133_v22 = vld [vmem:[%s10824_s28 + $0x5c0] sm:$0xf] }
 0x525   : > { %v4839_v34 = vpop.f32.mrf.mxu1  ;;  %v8955_v26 = vld [vmem:[%s10824_s28 + $0x5dc] sm:$0xf0] }
 0x526   : > { %v4840_v36 = vadd.f32 %v4839_v34, %v4670_v31  ;;  %v11103_v37 = vadd.f32 %v5175_v27, %v5007_v28  ;;  %v8951_v27 = vld [vmem:[%s10824_s28 + $0x5c4] sm:$0xf]  ;;  %v8141_v31 = vld [vmem:[%s10824_s28 + $0x5c8] sm:$0xf]  ;;  %v8134_v42 = vor.u32 %v8955_v26, %v8133_v22  ;;  %v8166_v26 = vor.u32 %v8963_v9, %v8165_v8  ;;  %v8207_v8 = vld [vmem:[%s10824_s28 + $0x668] sm:$0xf0] }
 0x527   : > { %v8135_v28 = vld [vmem:[%s10824_s28 + $0x5e0] sm:$0xf0]  ;;  %v8956_v34 = vld [vmem:[%s10824_s28 + $0x5e4] sm:$0xf0] }
 0x528   : > { %v8138_v43 = vor.u32 %v8951_v27, %v8135_v28 }
 0x52b   : > { %v5008_v50 = vpop.f32.mrf.mxu2 }
 0x52c   : > { %v5177_v51 = vpop.f32.mrf.mxu3  ;;  %v5009_v55 = vadd.f32 %v5008_v50, %v4840_v36  ;;  %v4673_v59 = vpop.f32.mrf.mxu0  ;;  %v8952_v36 = vld [vmem:[%s10824_s28 + $0x5cc] sm:$0xf]  ;;  %v8142_v50 = vor.u32 %v8956_v34, %v8141_v31 }
 0x52d   : > { %v4842_v60 = vpop.f32.mrf.mxu1 }
 0x52e   : > { %v4843_v2 = vadd.f32 %v4842_v60, %v4673_v59  ;;  %v11113_v3 = vadd.f32 %v5177_v51, %v5009_v55  ;;  %v8146_v51 = vor.u32 %v8952_v36, %v8143_v38 }
 0x52f   : > { %4712 = vmatmul.bf16.gmra.mxu0 %v8102_v52  ;;  %4881 = vmatmul.bf16.gmra.mxu1 %v8106_v53 }
 0x530   : > { %5050 = vmatmul.bf16.gmra.mxu2 %v8110_v63 }
 0x531   : > { %5219 = vmatmul.bf16.gmra.mxu3 %v8114_v0 }
 0x533   : > { %v5011_v12 = vpop.f32.mrf.mxu2 }
 0x534   : > { %v5180_v13 = vpop.f32.mrf.mxu3  ;;  %v5012_v14 = vadd.f32 %v5011_v12, %v4843_v2  ;;  %v4675_v15 = vpop.f32.mrf.mxu0  ;;  %v8959_v12 = vld [vmem:[%s10824_s28 + $0x604] sm:$0xf] }
 0x535   : > { %v4844_v16 = vpop.f32.mrf.mxu1 }
 0x536   : > { %v4845_v17 = vadd.f32 %v4844_v16, %v4675_v15  ;;  %v11115_v19 = vadd.f32 %v5180_v13, %v5012_v14  ;;  %v8167_v13 = vld [vmem:[%s10824_s28 + $0x620] sm:$0xf0]  ;;  %v8173_v14 = vld [vmem:[%s10824_s28 + $0x608] sm:$0xf]  ;;  %v8960_v16 = vld [vmem:[%s10824_s28 + $0x60c] sm:$0xf] }
 0x537   : > { %v8964_v15 = vld [vmem:[%s10824_s28 + $0x624] sm:$0xf0]  ;;  %v8170_v27 = vor.u32 %v8959_v12, %v8167_v13 }
 0x538   : > { %v8174_v36 = vor.u32 %v8964_v15, %v8173_v14 }
 0x53b   : > { %v5013_v39 = vpop.f32.mrf.mxu2 }
 0x53c   : > { %v5182_v41 = vpop.f32.mrf.mxu3  ;;  %v5014_v45 = vadd.f32 %v5013_v39, %v4845_v17  ;;  %v4678_v46 = vpop.f32.mrf.mxu0  ;;  %v8175_v17 = vld [vmem:[%s10824_s28 + $0x628] sm:$0xf0] }
 0x53d   : > { %v4847_v48 = vpop.f32.mrf.mxu1  ;;  %v8178_v38 = vor.u32 %v8960_v16, %v8175_v17 }
 0x53e   : > { %v4848_v52 = vadd.f32 %v4847_v48, %v4678_v46  ;;  %v11125_v53 = vadd.f32 %v5182_v41, %v5014_v45 }
 0x53f   : > { %4717 = vmatmul.bf16.gmra.mxu0 %v8134_v42  ;;  %4886 = vmatmul.bf16.gmra.mxu1 %v8138_v43 }
 0x540   : > { %5055 = vmatmul.bf16.gmra.mxu2 %v8142_v50 }
 0x541   : > { %5224 = vmatmul.bf16.gmra.mxu3 %v8146_v51 }
 0x543   : > { %v5016_v55 = vpop.f32.mrf.mxu2 }
 0x544   : > { %v5185_v59 = vpop.f32.mrf.mxu3  ;;  %v5017_v60 = vadd.f32 %v5016_v55, %v4848_v52  ;;  %v4680_v63 = vpop.f32.mrf.mxu0  ;;  %v8197_v52 = vld [vmem:[%s10824_s28 + $0x640] sm:$0xf] }
 0x545   : > { %v4849_v0 = vpop.f32.mrf.mxu1  ;;  %v8971_v55 = vld [vmem:[%s10824_s28 + $0x65c] sm:$0xf0] }
 0x546   : > { %v4850_v2 = vadd.f32 %v4849_v0, %v4680_v63  ;;  %v11127_v7 = vadd.f32 %v5185_v59, %v5017_v60  ;;  %v8967_v59 = vld [vmem:[%s10824_s28 + $0x644] sm:$0xf]  ;;  %v8205_v63 = vld [vmem:[%s10824_s28 + $0x648] sm:$0xf]  ;;  %v8198_v13 = vor.u32 %v8971_v55, %v8197_v52  ;;  %v8976_v55 = vld [vmem:[%s10824_s28 + $0x68c] sm:$0xf] }
 0x547   : > { %v8199_v60 = vld [vmem:[%s10824_s28 + $0x660] sm:$0xf0]  ;;  %v8972_v0 = vld [vmem:[%s10824_s28 + $0x664] sm:$0xf0] }
 0x548   : > { %v8202_v14 = vor.u32 %v8967_v59, %v8199_v60  ;;  %v8980_v52 = vld [vmem:[%s10824_s28 + $0x6a4] sm:$0xf0]  ;;  %v8239_v59 = vld [vmem:[%s10824_s28 + $0x6a8] sm:$0xf0] }
 0x54b   : > { %v5018_v21 = vpop.f32.mrf.mxu2 }
 0x54c   : > { %v5187_v22 = vpop.f32.mrf.mxu3  ;;  %v5019_v28 = vadd.f32 %v5018_v21, %v4850_v2  ;;  %v4683_v31 = vpop.f32.mrf.mxu0  ;;  %v8968_v2 = vld [vmem:[%s10824_s28 + $0x64c] sm:$0xf]  ;;  %v8206_v21 = vor.u32 %v8972_v0, %v8205_v63 }
 0x54d   : > { %v4852_v34 = vpop.f32.mrf.mxu1 }
 0x54e   : > { %v4853_v39 = vadd.f32 %v4852_v34, %v4683_v31  ;;  %v11137_v41 = vadd.f32 %v5187_v22, %v5019_v28  ;;  %v8210_v22 = vor.u32 %v8968_v2, %v8207_v8 }
 0x54f   : > { %4722 = vmatmul.bf16.gmra.mxu0 %v8166_v26  ;;  %4891 = vmatmul.bf16.gmra.mxu1 %v8170_v27 }
 0x550   : > { %5060 = vmatmul.bf16.gmra.mxu2 %v8174_v36 }
 0x551   : > { %5229 = vmatmul.bf16.gmra.mxu3 %v8178_v38 }
 0x553   : > { %v5021_v42 = vpop.f32.mrf.mxu2 }
 0x554   : > { %v5190_v43 = vpop.f32.mrf.mxu3  ;;  %v5022_v45 = vadd.f32 %v5021_v42, %v4853_v39  ;;  %v4685_v46 = vpop.f32.mrf.mxu0 }
 0x555   : > { %v4854_v48 = vpop.f32.mrf.mxu1 }
 0x556   : > { %v4855_v50 = vadd.f32 %v4854_v48, %v4685_v46  ;;  %v11139_v51 = vadd.f32 %v5190_v43, %v5022_v45  ;;  %v8229_v43 = vld [vmem:[%s10824_s28 + $0x680] sm:$0xf]  ;;  %v8975_v46 = vld [vmem:[%s10824_s28 + $0x684] sm:$0xf] }
 0x557   : > { %v8979_v45 = vld [vmem:[%s10824_s28 + $0x69c] sm:$0xf0]  ;;  %v8231_v48 = vld [vmem:[%s10824_s28 + $0x6a0] sm:$0xf0] }
 0x558   : > { %v8230_v0 = vor.u32 %v8979_v45, %v8229_v43  ;;  %v8234_v2 = vor.u32 %v8975_v46, %v8231_v48  ;;  %v9063_v43 = vld [vmem:[#allocation3 + $0x1a0] sm:$0xff] }
 0x559   : > { %v8261_v45 = vld [vmem:[%s10824_s28 + $0x6c0] sm:$0xf]  ;;  %v8983_v48 = vld [vmem:[%s10824_s28 + $0x6c4] sm:$0xf]  ;;  %5446 = vmatpush.bf16.msrb.mxu1 %v9063_v43 }
 0x55a   : > { %v8987_v46 = vld [vmem:[%s10824_s28 + $0x6dc] sm:$0xf0] }
 0x55b   : > { %v5023_v9 = vpop.f32.mrf.mxu2  ;;  %v8293_v43 = vld [vmem:[%s10824_s28 + $0x700] sm:$0xf] }
 0x55c   : > { %v5192_v12 = vpop.f32.mrf.mxu3  ;;  %v5024_v15 = vadd.f32 %v5023_v9, %v4855_v50  ;;  %v4688_v16 = vpop.f32.mrf.mxu0  ;;  %v8237_v50 = vld [vmem:[%s10824_s28 + $0x688] sm:$0xf] }
 0x55d   : > { %v4857_v17 = vpop.f32.mrf.mxu1 }
 0x55e   : > { %v4858_v26 = vadd.f32 %v4857_v17, %v4688_v16  ;;  %v11149_v27 = vadd.f32 %v5192_v12, %v5024_v15  ;;  %v9071_v17 = vld [vmem:[#allocation3 + $0xb8] sm:$0xff] }
 0x55f   : > { %4727 = vmatmul.bf16.gmra.mxu0 %v8198_v13  ;;  %4896 = vmatmul.bf16.gmra.mxu1 %v8202_v14  ;;  %v8238_v13 = vor.u32 %v8980_v52, %v8237_v50  ;;  %v8242_v14 = vor.u32 %v8976_v55, %v8239_v59  ;;  %v8263_v50 = vld [vmem:[%s10824_s28 + $0x6e0] sm:$0xf0]  ;;  %v8269_v52 = vld [vmem:[%s10824_s28 + $0x6c8] sm:$0xf]  ;;  %v8984_v59 = vld [vmem:[%s10824_s28 + $0x6cc] sm:$0xf] }
 0x560   : > { %5065 = vmatmul.bf16.gmra.mxu2 %v8206_v21  ;;  %v9055_v21 = vld [vmem:[#allocation3 + $0x148] sm:$0xff] }
 0x561   : > { %5234 = vmatmul.bf16.gmra.mxu3 %v8210_v22  ;;  %v9079_v22 = vld [vmem:[#allocation3 + $0x198] sm:$0xff]  ;;  %5615 = vmatpush.bf16.msrb.mxu2 %v9071_v17  ;;  %v8988_v55 = vld [vmem:[%s10824_s28 + $0x6e4] sm:$0xf0] }
 0x562   : > { %5277 = vmatpush.bf16.msrb.mxu0 %v9055_v21  ;;  %5784 = vmatpush.bf16.msrb.mxu3 %v9079_v22 }
 0x563   : > { %v5026_v28 = vpop.f32.mrf.mxu2 }
 0x564   : > { %v5195_v31 = vpop.f32.mrf.mxu3  ;;  %v5027_v34 = vadd.f32 %v5026_v28, %v4858_v26  ;;  %v4690_v36 = vpop.f32.mrf.mxu0 }
 0x565   : > { %v4859_v38 = vpop.f32.mrf.mxu1 }
 0x566   : > { %v4860_v39 = vadd.f32 %v4859_v38, %v4690_v36  ;;  %v11151_v42 = vadd.f32 %v5195_v31, %v5027_v34 }
 0x56b   : > { %v5028_v60 = vpop.f32.mrf.mxu2 }
 0x56c   : > { %v5197_v63 = vpop.f32.mrf.mxu3  ;;  %v5029_v8 = vadd.f32 %v5028_v60, %v4860_v39  ;;  %v4693_v9 = vpop.f32.mrf.mxu0  ;;  %v8271_v60 = vld [vmem:[%s10824_s28 + $0x6e8] sm:$0xf0] }
 0x56d   : > { %v4862_v12 = vpop.f32.mrf.mxu1 }
 0x56e   : > { %v4863_v15 = vadd.f32 %v4862_v12, %v4693_v9  ;;  %v11161_v16 = vadd.f32 %v5197_v63, %v5029_v8  ;;  %v8266_v8 = vor.u32 %v8983_v48, %v8263_v50  ;;  %v8295_v48 = vld [vmem:[%s10824_s28 + $0x720] sm:$0xf0]  ;;  %v8301_v50 = vld [vmem:[%s10824_s28 + $0x708] sm:$0xf] }
 0x56f   : > { %4732 = vmatmul.bf16.gmra.mxu0 %v8230_v0  ;;  %4901 = vmatmul.bf16.gmra.mxu1 %v8234_v2  ;;  %v8262_v2 = vor.u32 %v8987_v46, %v8261_v45  ;;  %v8995_v45 = vld [vmem:[%s10824_s28 + $0x71c] sm:$0xf0]  ;;  %v8991_v46 = vld [vmem:[%s10824_s28 + $0x704] sm:$0xf] }
 0x570   : > { %5070 = vmatmul.bf16.gmra.mxu2 %v8238_v13 }
 0x571   : > { %5239 = vmatmul.bf16.gmra.mxu3 %v8242_v14  ;;  %v8270_v14 = vor.u32 %v8988_v55, %v8269_v52  ;;  %v8996_v52 = vld [vmem:[%s10824_s28 + $0x724] sm:$0xf0]  ;;  %v8992_v55 = vld [vmem:[%s10824_s28 + $0x70c] sm:$0xf] }
 0x573   : > { %v5031_v26 = vpop.f32.mrf.mxu2 }
 0x574   : > { %v5200_v28 = vpop.f32.mrf.mxu3  ;;  %v5032_v31 = vadd.f32 %v5031_v26, %v4863_v15  ;;  %v4695_v34 = vpop.f32.mrf.mxu0  ;;  %v8274_v15 = vor.u32 %v8984_v59, %v8271_v60  ;;  %v8303_v59 = vld [vmem:[%s10824_s28 + $0x728] sm:$0xf0] }
 0x575   : > { %v4864_v36 = vpop.f32.mrf.mxu1 }
 0x576   : > { %v4865_v38 = vadd.f32 %v4864_v36, %v4695_v34  ;;  %v11163_v39 = vadd.f32 %v5200_v28, %v5032_v31 }
 0x57b   : > { %v5033_v63 = vpop.f32.mrf.mxu2 }
 0x57c   : > { %v5202_v0 = vpop.f32.mrf.mxu3  ;;  %v5034_v9 = vadd.f32 %v5033_v63, %v4865_v38  ;;  %v4698_v12 = vpop.f32.mrf.mxu0 }
 0x57d   : > { %v4867_v13 = vpop.f32.mrf.mxu1 }
 0x57e   : > { %v4868_v17 = vadd.f32 %v4867_v13, %v4698_v12  ;;  %v11173_v21 = vadd.f32 %v5202_v0, %v5034_v9  ;;  %v8294_v0 = vor.u32 %v8995_v45, %v8293_v43  ;;  %v8302_v13 = vor.u32 %v8996_v52, %v8301_v50  ;;  %v8325_v45 = vld [vmem:[%s10824_s28 + $0x740] sm:$0xf]  ;;  %v8327_v50 = vld [vmem:[%s10824_s28 + $0x760] sm:$0xf0]  ;;  %v8333_v52 = vld [vmem:[%s10824_s28 + $0x748] sm:$0xf] }
 0x57f   : > { %4737 = vmatmul.bf16.gmra.mxu0 %v8262_v2  ;;  %4906 = vmatmul.bf16.gmra.mxu1 %v8266_v8  ;;  %v8298_v2 = vor.u32 %v8991_v46, %v8295_v48  ;;  %v9003_v46 = vld [vmem:[%s10824_s28 + $0x75c] sm:$0xf0]  ;;  %v8999_v48 = vld [vmem:[%s10824_s28 + $0x744] sm:$0xf] }
 0x580   : > { %5075 = vmatmul.bf16.gmra.mxu2 %v8270_v14  ;;  %v8306_v14 = vor.u32 %v8992_v55, %v8303_v59  ;;  %v9004_v55 = vld [vmem:[%s10824_s28 + $0x764] sm:$0xf0]  ;;  %v9000_v59 = vld [vmem:[%s10824_s28 + $0x74c] sm:$0xf] }
 0x581   : > { %5244 = vmatmul.bf16.gmra.mxu3 %v8274_v15 }
 0x583   : > { %v5036_v22 = vpop.f32.mrf.mxu2 }
 0x584   : > { %v5205_v26 = vpop.f32.mrf.mxu3  ;;  %v5037_v28 = vadd.f32 %v5036_v22, %v4868_v17  ;;  %v4700_v31 = vpop.f32.mrf.mxu0 }
 0x585   : > { %v4869_v34 = vpop.f32.mrf.mxu1 }
 0x586   : > { %v4870_v36 = vadd.f32 %v4869_v34, %v4700_v31  ;;  %v11175_v38 = vadd.f32 %v5205_v26, %v5037_v28 }
 0x58b   : > { %v5038_v60 = vpop.f32.mrf.mxu2 }
 0x58c   : > { %v5207_v63 = vpop.f32.mrf.mxu3  ;;  %v5039_v8 = vadd.f32 %v5038_v60, %v4870_v36  ;;  %v4703_v9 = vpop.f32.mrf.mxu0  ;;  %v8335_v60 = vld [vmem:[%s10824_s28 + $0x768] sm:$0xf0] }
 0x58d   : > { %v4872_v12 = vpop.f32.mrf.mxu1 }
 0x58e   : > { %v4873_v15 = vadd.f32 %v4872_v12, %v4703_v9  ;;  %v11185_v17 = vadd.f32 %v5207_v63, %v5039_v8  ;;  %v8330_v8 = vor.u32 %v8999_v48, %v8327_v50  ;;  %v8357_v50 = vld [vmem:[%s10824_s28 + $0x780] sm:$0xf] }
 0x58f   : > { %4742 = vmatmul.bf16.gmra.mxu0 %v8294_v0  ;;  %4911 = vmatmul.bf16.gmra.mxu1 %v8298_v2  ;;  %v8326_v2 = vor.u32 %v9003_v46, %v8325_v45 }
 0x590   : > { %5080 = vmatmul.bf16.gmra.mxu2 %v8302_v13 }
 0x591   : > { %5249 = vmatmul.bf16.gmra.mxu3 %v8306_v14  ;;  %v8334_v14 = vor.u32 %v9004_v55, %v8333_v52  ;;  %v9011_v52 = vld [vmem:[%s10824_s28 + $0x79c] sm:$0xf0]  ;;  %v9007_v55 = vld [vmem:[%s10824_s28 + $0x784] sm:$0xf] }
 0x593   : > { %v5041_v22 = vpop.f32.mrf.mxu2 }
 0x594   : > { %v5210_v26 = vpop.f32.mrf.mxu3  ;;  %v5042_v28 = vadd.f32 %v5041_v22, %v4873_v15  ;;  %v4705_v31 = vpop.f32.mrf.mxu0  ;;  %v8338_v15 = vor.u32 %v9000_v59, %v8335_v60  ;;  %v8359_v59 = vld [vmem:[%s10824_s28 + $0x7a0] sm:$0xf0]  ;;  %v8365_v60 = vld [vmem:[%s10824_s28 + $0x788] sm:$0xf] }
 0x595   : > { %v4874_v34 = vpop.f32.mrf.mxu1 }
 0x596   : > { %v4875_v36 = vadd.f32 %v4874_v34, %v4705_v31  ;;  %v11187_v43 = vadd.f32 %v5210_v26, %v5042_v28 }
 0x598   : > { %12604 = vst [vmem:[#allocation31_spill] sm:$0xff] %v11187_v43 }
 0x59b   : > { %v5043_v63 = vpop.f32.mrf.mxu2 }
 0x59c   : > { %v5212_v0 = vpop.f32.mrf.mxu3  ;;  %v5044_v9 = vadd.f32 %v5043_v63, %v4875_v36  ;;  %v4708_v12 = vpop.f32.mrf.mxu0  ;;  %v9012_v63 = vld [vmem:[%s10824_s28 + $0x7a4] sm:$0xf0] }
 0x59d   : > { %v4877_v13 = vpop.f32.mrf.mxu1 }
 0x59e   : > { %v4878_v22 = vadd.f32 %v4877_v13, %v4708_v12  ;;  %v11197_v26 = vadd.f32 %v5212_v0, %v5044_v9  ;;  %v9008_v0 = vld [vmem:[%s10824_s28 + $0x78c] sm:$0xf]  ;;  %v8358_v12 = vor.u32 %v9011_v52, %v8357_v50  ;;  %v8362_v13 = vor.u32 %v9007_v55, %v8359_v59 }
 0x59f   : > { %4747 = vmatmul.bf16.gmra.mxu0 %v8326_v2  ;;  %4916 = vmatmul.bf16.gmra.mxu1 %v8330_v8  ;;  %v8367_v2 = vld [vmem:[%s10824_s28 + $0x7a8] sm:$0xf0] }
 0x5a0   : > { %12605 = vst [vmem:[#allocation32_spill] sm:$0xff] %v11197_v26  ;;  %5085 = vmatmul.bf16.gmra.mxu2 %v8334_v14  ;;  %v6212_v26 = vld [vmem:[%s11339_s6 + $0x8] sm:$0xff] }
 0x5a1   : > { %5254 = vmatmul.bf16.gmra.mxu3 %v8338_v15 }
 0x5a3   : > { %v5046_v28 = vpop.f32.mrf.mxu2 }
 0x5a4   : > { %v5215_v31 = vpop.f32.mrf.mxu3  ;;  %v5047_v34 = vadd.f32 %v5046_v28, %v4878_v22  ;;  %v4710_v36 = vpop.f32.mrf.mxu0  ;;  %v8366_v28 = vor.u32 %v9012_v63, %v8365_v60  ;;  %v8389_v63 = vld [vmem:[%s10824_s28 + $0x7c0] sm:$0xf] }
 0x5a5   : > { %v4879_v45 = vpop.f32.mrf.mxu1 }
 0x5a6   : > { %v4880_v46 = vadd.f32 %v4879_v45, %v4710_v36  ;;  %v11199_v48 = vadd.f32 %v5215_v31, %v5047_v34  ;;  %v8370_v31 = vor.u32 %v9008_v0, %v8367_v2  ;;  %v9019_v0 = vld [vmem:[%s10824_s28 + $0x7dc] sm:$0xf0]  ;;  %v9015_v2 = vld [vmem:[%s10824_s28 + $0x7c4] sm:$0xf] }
 0x5a8   : > { %12606 = vst [vmem:[#allocation33_spill] sm:$0xff] %v11199_v48 }
 0x5ab   : > { %v5048_v8 = vpop.f32.mrf.mxu2 }
 0x5ac   : > { %v5217_v9 = vpop.f32.mrf.mxu3  ;;  %v5049_v14 = vadd.f32 %v5048_v8, %v4880_v46  ;;  %v4713_v15 = vpop.f32.mrf.mxu0  ;;  %v8391_v8 = vld [vmem:[%s10824_s28 + $0x7e0] sm:$0xf0] }
 0x5ad   : > { %v4882_v22 = vpop.f32.mrf.mxu1 }
 0x5ae   : > { %v4883_v34 = vadd.f32 %v4882_v22, %v4713_v15  ;;  %v11209_v36 = vadd.f32 %v5217_v9, %v5049_v14  ;;  %v8397_v9 = vld [vmem:[%s10824_s28 + $0x7c8] sm:$0xf]  ;;  %v9016_v14 = vld [vmem:[%s10824_s28 + $0x7cc] sm:$0xf] }
 0x5af   : > { %4752 = vmatmul.bf16.gmra.mxu0 %v8358_v12  ;;  %4921 = vmatmul.bf16.gmra.mxu1 %v8362_v13  ;;  %v9020_v12 = vld [vmem:[%s10824_s28 + $0x7e4] sm:$0xf0]  ;;  %v8399_v13 = vld [vmem:[%s10824_s28 + $0x7e8] sm:$0xf0] }
 0x5b0   : > { %12607 = vst [vmem:[#allocation34_spill] sm:$0xff] %v11209_v36  ;;  %5090 = vmatmul.bf16.gmra.mxu2 %v8366_v28  ;;  %v8390_v28 = vor.u32 %v9019_v0, %v8389_v63 }
 0x5b1   : > { %5259 = vmatmul.bf16.gmra.mxu3 %v8370_v31  ;;  %v8394_v31 = vor.u32 %v9015_v2, %v8391_v8 }
 0x5b3   : > { %v5051_v45 = vpop.f32.mrf.mxu2 }
 0x5b4   : > { %v5220_v46 = vpop.f32.mrf.mxu3  ;;  %v5052_v50 = vadd.f32 %v5051_v45, %v4883_v34  ;;  %v4715_v52 = vpop.f32.mrf.mxu0  ;;  %v8398_v45 = vor.u32 %v9020_v12, %v8397_v9  ;;  %v8773_v12 = vld [vmem:[%s10824_s28 + $0x2c] sm:$0xf0] }
 0x5b5   : > { %v4884_v55 = vpop.f32.mrf.mxu1 }
 0x5b6   : > { %v4885_v59 = vadd.f32 %v4884_v55, %v4715_v52  ;;  %v11211_v60 = vadd.f32 %v5220_v46, %v5052_v50  ;;  %v8402_v46 = vor.u32 %v9016_v14, %v8399_v13  ;;  %v7415_v14 = vld [vmem:[%s10824_s28 + $0x30] sm:$0xf0]  ;;  %v7421_v13 = vld [vmem:[%s10824_s28 + $0x18] sm:$0xf] }
 0x5b8   : > { %12608 = vst [vmem:[#allocation35_spill] sm:$0xff] %v11211_v60 }
 0x5bb   : > { %v5053_v15 = vpop.f32.mrf.mxu2 }
 0x5bc   : > { %v5222_v22 = vpop.f32.mrf.mxu3  ;;  %v5054_v36 = vadd.f32 %v5053_v15, %v4885_v59  ;;  %v4718_v48 = vpop.f32.mrf.mxu0  ;;  %v8774_v15 = vld [vmem:[%s10824_s28 + $0x34] sm:$0xf0] }
 0x5bd   : > { %v4887_v34 = vpop.f32.mrf.mxu1 }
 0x5be   : > { %v4888_v50 = vadd.f32 %v4887_v34, %v4718_v48  ;;  %v11221_v52 = vadd.f32 %v5222_v22, %v5054_v36  ;;  %v7413_v48 = vld [vmem:[%s10824_s28 + $0x10] sm:$0xf]  ;;  %v8769_v36 = vld [vmem:[%s10824_s28 + $0x14] sm:$0xf]  ;;  %v8770_v22 = vld [vmem:[%s10824_s28 + $0x1c] sm:$0xf] }
 0x5bf   : > { %4757 = vmatmul.bf16.gmra.mxu0 %v8390_v28  ;;  %4926 = vmatmul.bf16.gmra.mxu1 %v8394_v31  ;;  %v7423_v28 = vld [vmem:[%s10824_s28 + $0x38] sm:$0xf0] }
 0x5c0   : > { %12609 = vst [vmem:[#allocation36_spill] sm:$0xff] %v11221_v52  ;;  %5095 = vmatmul.bf16.gmra.mxu2 %v8398_v45  ;;  %v7414_v45 = vor.u32 %v8773_v12, %v7413_v48 }
 0x5c1   : > { %5264 = vmatmul.bf16.gmra.mxu3 %v8402_v46  ;;  %v7418_v46 = vor.u32 %v8769_v36, %v7415_v14 }
 0x5c3   : > { %v5056_v55 = vpop.f32.mrf.mxu2 }
 0x5c4   : > { %v5225_v59 = vpop.f32.mrf.mxu3  ;;  %v5057_v63 = vadd.f32 %v5056_v55, %v4888_v50  ;;  %v4720_v0 = vpop.f32.mrf.mxu0  ;;  %v7422_v55 = vor.u32 %v8774_v15, %v7421_v13  ;;  %v8781_v15 = vld [vmem:[%s10824_s28 + $0x6c] sm:$0xf0] }
 0x5c5   : > { %v4889_v2 = vpop.f32.mrf.mxu1 }
 0x5c6   : > { %v4890_v8 = vadd.f32 %v4889_v2, %v4720_v0  ;;  %v11223_v9 = vadd.f32 %v5225_v59, %v5057_v63  ;;  %v7426_v59 = vor.u32 %v8770_v22, %v7423_v28  ;;  %v7447_v22 = vld [vmem:[%s10824_s28 + $0x70] sm:$0xf0]  ;;  %v7453_v28 = vld [vmem:[%s10824_s28 + $0x58] sm:$0xf] }
 0x5c8   : > { %12610 = vst [vmem:[#allocation37_spill] sm:$0xff] %v11223_v9 }
 0x5cb   : > { %v5058_v31 = vpop.f32.mrf.mxu2 }
 0x5cc   : > { %v5227_v34 = vpop.f32.mrf.mxu3  ;;  %v5059_v52 = vadd.f32 %v5058_v31, %v4890_v8  ;;  %v4723_v60 = vpop.f32.mrf.mxu0  ;;  %v8782_v31 = vld [vmem:[%s10824_s28 + $0x74] sm:$0xf0] }
 0x5cd   : > { %v4892_v50 = vpop.f32.mrf.mxu1 }
 0x5ce   : > { %v4893_v63 = vadd.f32 %v4892_v50, %v4723_v60  ;;  %v11233_v0 = vadd.f32 %v5227_v34, %v5059_v52  ;;  %v7445_v60 = vld [vmem:[%s10824_s28 + $0x50] sm:$0xf]  ;;  %v8777_v52 = vld [vmem:[%s10824_s28 + $0x54] sm:$0xf]  ;;  %v8778_v34 = vld [vmem:[%s10824_s28 + $0x5c] sm:$0xf] }
 0x5cf   : > { %5278 = vmatmul.bf16.vlgmr.msrb.gmra.mxu0 %v7414_v45  ;;  %5447 = vmatmul.bf16.vlgmr.msrb.gmra.mxu1 %v7418_v46  ;;  %v7455_v45 = vld [vmem:[%s10824_s28 + $0x78] sm:$0xf0] }
 0x5d0   : > { %12611 = vst [vmem:[#allocation38_spill] sm:$0xff] %v11233_v0  ;;  %5616 = vmatmul.bf16.vlgmr.msrb.gmra.mxu2 %v7422_v55  ;;  %v7446_v55 = vor.u32 %v8781_v15, %v7445_v60 }
 0x5d1   : > { %5785 = vmatmul.bf16.vlgmr.msrb.gmra.mxu3 %v7426_v59  ;;  %v7450_v59 = vor.u32 %v8777_v52, %v7447_v22 }
 0x5d3   : > { %v5061_v2 = vpop.f32.mrf.mxu2 }
 0x5d4   : > { %v5230_v8 = vpop.f32.mrf.mxu3  ;;  %v5062_v48 = vadd.f32 %v5061_v2, %v4893_v63  ;;  %v4725_v12 = vpop.f32.mrf.mxu0  ;;  %v7454_v2 = vor.u32 %v8782_v31, %v7453_v28  ;;  %v8789_v31 = vld [vmem:[%s10824_s28 + $0xac] sm:$0xf0] }
 0x5d5   : > { %v4894_v36 = vpop.f32.mrf.mxu1 }
 0x5d6   : > { %v4895_v14 = vadd.f32 %v4894_v36, %v4725_v12  ;;  %v11235_v13 = vadd.f32 %v5230_v8, %v5062_v48  ;;  %v7458_v8 = vor.u32 %v8778_v34, %v7455_v45  ;;  %v7479_v34 = vld [vmem:[%s10824_s28 + $0xb0] sm:$0xf0]  ;;  %v7485_v45 = vld [vmem:[%s10824_s28 + $0x98] sm:$0xf] }
 0x5d8   : > { %12612 = vst [vmem:[#allocation39_spill] sm:$0xff] %v11235_v13 }
 0x5db   : > { %v5063_v46 = vpop.f32.mrf.mxu2 }
 0x5dc   : > { %v5232_v50 = vpop.f32.mrf.mxu3  ;;  %v5064_v0 = vadd.f32 %v5063_v46, %v4895_v14  ;;  %v4728_v9 = vpop.f32.mrf.mxu0  ;;  %v8790_v46 = vld [vmem:[%s10824_s28 + $0xb4] sm:$0xf0] }
 0x5dd   : > { %v4897_v63 = vpop.f32.mrf.mxu1 }
 0x5de   : > { %v4898_v48 = vadd.f32 %v4897_v63, %v4728_v9  ;;  %v11245_v12 = vadd.f32 %v5232_v50, %v5064_v0  ;;  %v7477_v9 = vld [vmem:[%s10824_s28 + $0x90] sm:$0xf]  ;;  %v8785_v0 = vld [vmem:[%s10824_s28 + $0x94] sm:$0xf]  ;;  %v8786_v50 = vld [vmem:[%s10824_s28 + $0x9c] sm:$0xf] }
 0x5df   : > { %5283 = vmatmul.bf16.gmra.mxu0 %v7446_v55  ;;  %5452 = vmatmul.bf16.gmra.mxu1 %v7450_v59  ;;  %v7487_v55 = vld [vmem:[%s10824_s28 + $0xb8] sm:$0xf0] }
 0x5e0   : > { %12613 = vst [vmem:[#allocation40_spill] sm:$0xff] %v11245_v12  ;;  %5621 = vmatmul.bf16.gmra.mxu2 %v7454_v2  ;;  %v7478_v2 = vor.u32 %v8789_v31, %v7477_v9 }
 0x5e1   : > { %5790 = vmatmul.bf16.gmra.mxu3 %v7458_v8  ;;  %v7482_v8 = vor.u32 %v8785_v0, %v7479_v34 }
 0x5e3   : > { %v5066_v36 = vpop.f32.mrf.mxu2 }
 0x5e4   : > { %v5235_v14 = vpop.f32.mrf.mxu3  ;;  %v5067_v60 = vadd.f32 %v5066_v36, %v4898_v48  ;;  %v4730_v15 = vpop.f32.mrf.mxu0  ;;  %v7486_v36 = vor.u32 %v8790_v46, %v7485_v45  ;;  %v8797_v46 = vld [vmem:[%s10824_s28 + $0xec] sm:$0xf0] }
 0x5e5   : > { %v4899_v52 = vpop.f32.mrf.mxu1 }
 0x5e6   : > { %v4900_v22 = vadd.f32 %v4899_v52, %v4730_v15  ;;  %v11247_v28 = vadd.f32 %v5235_v14, %v5067_v60  ;;  %v7490_v14 = vor.u32 %v8786_v50, %v7487_v55  ;;  %v7511_v50 = vld [vmem:[%s10824_s28 + $0xf0] sm:$0xf0]  ;;  %v7517_v55 = vld [vmem:[%s10824_s28 + $0xd8] sm:$0xf] }
 0x5e8   : > { %12614 = vst [vmem:[#allocation41_spill] sm:$0xff] %v11247_v28 }
 0x5eb   : > { %v5068_v59 = vpop.f32.mrf.mxu2 }
 0x5ec   : > { %v5237_v63 = vpop.f32.mrf.mxu3  ;;  %v5069_v12 = vadd.f32 %v5068_v59, %v4900_v22  ;;  %v4733_v13 = vpop.f32.mrf.mxu0  ;;  %v8798_v59 = vld [vmem:[%s10824_s28 + $0xf4] sm:$0xf0] }
 0x5ed   : > { %v4902_v48 = vpop.f32.mrf.mxu1 }
 0x5ee   : > { %v4903_v60 = vadd.f32 %v4902_v48, %v4733_v13  ;;  %v11257_v15 = vadd.f32 %v5237_v63, %v5069_v12  ;;  %v7509_v13 = vld [vmem:[%s10824_s28 + $0xd0] sm:$0xf]  ;;  %v8793_v12 = vld [vmem:[%s10824_s28 + $0xd4] sm:$0xf]  ;;  %v8794_v63 = vld [vmem:[%s10824_s28 + $0xdc] sm:$0xf] }
 0x5ef   : > { %5288 = vmatmul.bf16.gmra.mxu0 %v7478_v2  ;;  %5457 = vmatmul.bf16.gmra.mxu1 %v7482_v8  ;;  %v7519_v2 = vld [vmem:[%s10824_s28 + $0xf8] sm:$0xf0] }
 0x5f0   : > { %12615 = vst [vmem:[#allocation42_spill] sm:$0xff] %v11257_v15  ;;  %5626 = vmatmul.bf16.gmra.mxu2 %v7486_v36  ;;  %v7510_v36 = vor.u32 %v8797_v46, %v7509_v13 }
 0x5f1   : > { %5795 = vmatmul.bf16.gmra.mxu3 %v7490_v14  ;;  %v7514_v14 = vor.u32 %v8793_v12, %v7511_v50 }
 0x5f3   : > { %v5071_v52 = vpop.f32.mrf.mxu2 }
 0x5f4   : > { %v5240_v22 = vpop.f32.mrf.mxu3  ;;  %v5072_v9 = vadd.f32 %v5071_v52, %v4903_v60  ;;  %v4735_v31 = vpop.f32.mrf.mxu0  ;;  %v7518_v52 = vor.u32 %v8798_v59, %v7517_v55  ;;  %v8805_v59 = vld [vmem:[%s10824_s28 + $0x12c] sm:$0xf0] }
 0x5f5   : > { %v4904_v0 = vpop.f32.mrf.mxu1 }
 0x5f6   : > { %v4905_v34 = vadd.f32 %v4904_v0, %v4735_v31  ;;  %v11259_v45 = vadd.f32 %v5240_v22, %v5072_v9  ;;  %v7522_v22 = vor.u32 %v8794_v63, %v7519_v2  ;;  %v7543_v63 = vld [vmem:[%s10824_s28 + $0x130] sm:$0xf0]  ;;  %v7549_v2 = vld [vmem:[%s10824_s28 + $0x118] sm:$0xf] }
 0x5f8   : > { %12616 = vst [vmem:[#allocation43_spill] sm:$0xff] %v11259_v45 }
 0x5fb   : > { %v5073_v8 = vpop.f32.mrf.mxu2 }
 0x5fc   : > { %v5242_v48 = vpop.f32.mrf.mxu3  ;;  %v5074_v15 = vadd.f32 %v5073_v8, %v4905_v34  ;;  %v4738_v28 = vpop.f32.mrf.mxu0  ;;  %v8806_v8 = vld [vmem:[%s10824_s28 + $0x134] sm:$0xf0] }
 0x5fd   : > { %v4907_v60 = vpop.f32.mrf.mxu1 }
 0x5fe   : > { %v4908_v9 = vadd.f32 %v4907_v60, %v4738_v28  ;;  %v11269_v31 = vadd.f32 %v5242_v48, %v5074_v15  ;;  %v7541_v28 = vld [vmem:[%s10824_s28 + $0x110] sm:$0xf]  ;;  %v8801_v15 = vld [vmem:[%s10824_s28 + $0x114] sm:$0xf]  ;;  %v8802_v48 = vld [vmem:[%s10824_s28 + $0x11c] sm:$0xf] }
 0x5ff   : > { %5293 = vmatmul.bf16.gmra.mxu0 %v7510_v36  ;;  %5462 = vmatmul.bf16.gmra.mxu1 %v7514_v14  ;;  %v7551_v36 = vld [vmem:[%s10824_s28 + $0x138] sm:$0xf0] }
 0x600   : > { %12617 = vst [vmem:[#allocation44_spill] sm:$0xff] %v11269_v31  ;;  %5631 = vmatmul.bf16.gmra.mxu2 %v7518_v52  ;;  %v7542_v52 = vor.u32 %v8805_v59, %v7541_v28 }
 0x601   : > { %5800 = vmatmul.bf16.gmra.mxu3 %v7522_v22  ;;  %v7546_v22 = vor.u32 %v8801_v15, %v7543_v63 }
 0x603   : > { %v5076_v0 = vpop.f32.mrf.mxu2 }
 0x604   : > { %v5245_v34 = vpop.f32.mrf.mxu3  ;;  %v5077_v13 = vadd.f32 %v5076_v0, %v4908_v9  ;;  %v4740_v46 = vpop.f32.mrf.mxu0  ;;  %v7550_v0 = vor.u32 %v8806_v8, %v7549_v2  ;;  %v8813_v8 = vld [vmem:[%s10824_s28 + $0x16c] sm:$0xf0] }
 0x605   : > { %v4909_v12 = vpop.f32.mrf.mxu1 }
 0x606   : > { %v4910_v50 = vadd.f32 %v4909_v12, %v4740_v46  ;;  %v11271_v55 = vadd.f32 %v5245_v34, %v5077_v13  ;;  %v7554_v34 = vor.u32 %v8802_v48, %v7551_v36  ;;  %v7575_v48 = vld [vmem:[%s10824_s28 + $0x170] sm:$0xf0]  ;;  %v7581_v36 = vld [vmem:[%s10824_s28 + $0x158] sm:$0xf] }
 0x608   : > { %12618 = vst [vmem:[#allocation45_spill] sm:$0xff] %v11271_v55 }
 0x60b   : > { %v5078_v14 = vpop.f32.mrf.mxu2 }
 0x60c   : > { %v5247_v60 = vpop.f32.mrf.mxu3  ;;  %v5079_v31 = vadd.f32 %v5078_v14, %v4910_v50  ;;  %v4743_v45 = vpop.f32.mrf.mxu0  ;;  %v8814_v14 = vld [vmem:[%s10824_s28 + $0x174] sm:$0xf0] }
 0x60d   : > { %v4912_v9 = vpop.f32.mrf.mxu1 }
 0x60e   : > { %v4913_v13 = vadd.f32 %v4912_v9, %v4743_v45  ;;  %v11281_v46 = vadd.f32 %v5247_v60, %v5079_v31  ;;  %v7573_v45 = vld [vmem:[%s10824_s28 + $0x150] sm:$0xf]  ;;  %v8809_v31 = vld [vmem:[%s10824_s28 + $0x154] sm:$0xf]  ;;  %v8810_v60 = vld [vmem:[%s10824_s28 + $0x15c] sm:$0xf] }
 0x60f   : > { %5298 = vmatmul.bf16.gmra.mxu0 %v7542_v52  ;;  %5467 = vmatmul.bf16.gmra.mxu1 %v7546_v22  ;;  %v7583_v52 = vld [vmem:[%s10824_s28 + $0x178] sm:$0xf0] }
 0x610   : > { %12619 = vst [vmem:[#allocation46_spill] sm:$0xff] %v11281_v46  ;;  %5636 = vmatmul.bf16.gmra.mxu2 %v7550_v0  ;;  %v7574_v0 = vor.u32 %v8813_v8, %v7573_v45 }
 0x611   : > { %5805 = vmatmul.bf16.gmra.mxu3 %v7554_v34  ;;  %v7578_v34 = vor.u32 %v8809_v31, %v7575_v48 }
 0x613   : > { %v5081_v12 = vpop.f32.mrf.mxu2 }
 0x614   : > { %v5250_v50 = vpop.f32.mrf.mxu3  ;;  %v5082_v28 = vadd.f32 %v5081_v12, %v4913_v13  ;;  %v4745_v59 = vpop.f32.mrf.mxu0  ;;  %v7582_v12 = vor.u32 %v8814_v14, %v7581_v36  ;;  %v8821_v14 = vld [vmem:[%s10824_s28 + $0x1ac] sm:$0xf0] }
 0x615   : > { %v4914_v15 = vpop.f32.mrf.mxu1 }
 0x616   : > { %v4915_v63 = vadd.f32 %v4914_v15, %v4745_v59  ;;  %v11283_v2 = vadd.f32 %v5250_v50, %v5082_v28  ;;  %v7586_v50 = vor.u32 %v8810_v60, %v7583_v52  ;;  %v7607_v60 = vld [vmem:[%s10824_s28 + $0x1b0] sm:$0xf0]  ;;  %v7613_v52 = vld [vmem:[%s10824_s28 + $0x198] sm:$0xf] }
 0x618   : > { %12620 = vst [vmem:[#allocation47_spill] sm:$0xff] %v11283_v2 }
 0x61b   : > { %v5083_v22 = vpop.f32.mrf.mxu2 }
 0x61c   : > { %v5252_v9 = vpop.f32.mrf.mxu3  ;;  %v5084_v46 = vadd.f32 %v5083_v22, %v4915_v63  ;;  %v4748_v55 = vpop.f32.mrf.mxu0  ;;  %v8822_v22 = vld [vmem:[%s10824_s28 + $0x1b4] sm:$0xf0] }
 0x61d   : > { %v4917_v13 = vpop.f32.mrf.mxu1 }
 0x61e   : > { %v4918_v28 = vadd.f32 %v4917_v13, %v4748_v55  ;;  %v11293_v59 = vadd.f32 %v5252_v9, %v5084_v46  ;;  %v7605_v55 = vld [vmem:[%s10824_s28 + $0x190] sm:$0xf]  ;;  %v8817_v46 = vld [vmem:[%s10824_s28 + $0x194] sm:$0xf]  ;;  %v8818_v9 = vld [vmem:[%s10824_s28 + $0x19c] sm:$0xf] }
 0x61f   : > { %5303 = vmatmul.bf16.gmra.mxu0 %v7574_v0  ;;  %5472 = vmatmul.bf16.gmra.mxu1 %v7578_v34  ;;  %v7615_v0 = vld [vmem:[%s10824_s28 + $0x1b8] sm:$0xf0] }
 0x620   : > { %12621 = vst [vmem:[#allocation48_spill] sm:$0xff] %v11293_v59  ;;  %5641 = vmatmul.bf16.gmra.mxu2 %v7582_v12  ;;  %v7606_v12 = vor.u32 %v8821_v14, %v7605_v55 }
 0x621   : > { %5810 = vmatmul.bf16.gmra.mxu3 %v7586_v50  ;;  %v7610_v50 = vor.u32 %v8817_v46, %v7607_v60 }
 0x623   : > { %v5086_v15 = vpop.f32.mrf.mxu2 }
 0x624   : > { %v5255_v63 = vpop.f32.mrf.mxu3  ;;  %v5087_v45 = vadd.f32 %v5086_v15, %v4918_v28  ;;  %v4750_v8 = vpop.f32.mrf.mxu0  ;;  %v7614_v15 = vor.u32 %v8822_v22, %v7613_v52  ;;  %v8829_v22 = vld [vmem:[%s10824_s28 + $0x1ec] sm:$0xf0] }
 0x625   : > { %v4919_v31 = vpop.f32.mrf.mxu1 }
 0x626   : > { %v4920_v48 = vadd.f32 %v4919_v31, %v4750_v8  ;;  %v11295_v36 = vadd.f32 %v5255_v63, %v5087_v45  ;;  %v7618_v63 = vor.u32 %v8818_v9, %v7615_v0  ;;  %v7639_v9 = vld [vmem:[%s10824_s28 + $0x1f0] sm:$0xf0]  ;;  %v7645_v0 = vld [vmem:[%s10824_s28 + $0x1d8] sm:$0xf] }
 0x628   : > { %12622 = vst [vmem:[#allocation49_spill] sm:$0xff] %v11295_v36 }
 0x62b   : > { %v5088_v34 = vpop.f32.mrf.mxu2 }
 0x62c   : > { %v5257_v13 = vpop.f32.mrf.mxu3  ;;  %v5089_v59 = vadd.f32 %v5088_v34, %v4920_v48  ;;  %v4753_v2 = vpop.f32.mrf.mxu0  ;;  %v8830_v34 = vld [vmem:[%s10824_s28 + $0x1f4] sm:$0xf0] }
 0x62d   : > { %v4922_v28 = vpop.f32.mrf.mxu1 }
 0x62e   : > { %v4923_v45 = vadd.f32 %v4922_v28, %v4753_v2  ;;  %v11305_v8 = vadd.f32 %v5257_v13, %v5089_v59  ;;  %v7637_v2 = vld [vmem:[%s10824_s28 + $0x1d0] sm:$0xf]  ;;  %v8825_v59 = vld [vmem:[%s10824_s28 + $0x1d4] sm:$0xf]  ;;  %v8826_v13 = vld [vmem:[%s10824_s28 + $0x1dc] sm:$0xf] }
 0x62f   : > { %5308 = vmatmul.bf16.gmra.mxu0 %v7606_v12  ;;  %5477 = vmatmul.bf16.gmra.mxu1 %v7610_v50  ;;  %v7647_v12 = vld [vmem:[%s10824_s28 + $0x1f8] sm:$0xf0] }
 0x630   : > { %12623 = vst [vmem:[#allocation50_spill] sm:$0xff] %v11305_v8  ;;  %5646 = vmatmul.bf16.gmra.mxu2 %v7614_v15  ;;  %v7638_v15 = vor.u32 %v8829_v22, %v7637_v2 }
 0x631   : > { %5815 = vmatmul.bf16.gmra.mxu3 %v7618_v63  ;;  %v7642_v63 = vor.u32 %v8825_v59, %v7639_v9 }
 0x633   : > { %v5091_v31 = vpop.f32.mrf.mxu2 }
 0x634   : > { %v5260_v48 = vpop.f32.mrf.mxu3  ;;  %v5092_v55 = vadd.f32 %v5091_v31, %v4923_v45  ;;  %v4755_v14 = vpop.f32.mrf.mxu0  ;;  %v7646_v31 = vor.u32 %v8830_v34, %v7645_v0  ;;  %v8837_v34 = vld [vmem:[%s10824_s28 + $0x22c] sm:$0xf0] }
 0x635   : > { %v4924_v46 = vpop.f32.mrf.mxu1 }
 0x636   : > { %v4925_v60 = vadd.f32 %v4924_v46, %v4755_v14  ;;  %v11307_v52 = vadd.f32 %v5260_v48, %v5092_v55  ;;  %v7650_v48 = vor.u32 %v8826_v13, %v7647_v12  ;;  %v7671_v13 = vld [vmem:[%s10824_s28 + $0x230] sm:$0xf0]  ;;  %v7677_v12 = vld [vmem:[%s10824_s28 + $0x218] sm:$0xf] }
 0x638   : > { %12624 = vst [vmem:[#allocation51_spill] sm:$0xff] %v11307_v52 }
 0x63b   : > { %v5093_v50 = vpop.f32.mrf.mxu2 }
 0x63c   : > { %v5262_v28 = vpop.f32.mrf.mxu3  ;;  %v5094_v8 = vadd.f32 %v5093_v50, %v4925_v60  ;;  %v4758_v36 = vpop.f32.mrf.mxu0  ;;  %v8838_v50 = vld [vmem:[%s10824_s28 + $0x234] sm:$0xf0] }
 0x63d   : > { %v4927_v45 = vpop.f32.mrf.mxu1 }
 0x63e   : > { %v4928_v55 = vadd.f32 %v4927_v45, %v4758_v36  ;;  %v11317_v14 = vadd.f32 %v5262_v28, %v5094_v8  ;;  %v7669_v36 = vld [vmem:[%s10824_s28 + $0x210] sm:$0xf]  ;;  %v8833_v8 = vld [vmem:[%s10824_s28 + $0x214] sm:$0xf]  ;;  %v8834_v28 = vld [vmem:[%s10824_s28 + $0x21c] sm:$0xf] }
 0x63f   : > { %5313 = vmatmul.bf16.gmra.mxu0 %v7638_v15  ;;  %5482 = vmatmul.bf16.gmra.mxu1 %v7642_v63  ;;  %v7679_v15 = vld [vmem:[%s10824_s28 + $0x238] sm:$0xf0] }
 0x640   : > { %12625 = vst [vmem:[#allocation52_spill] sm:$0xff] %v11317_v14  ;;  %5651 = vmatmul.bf16.gmra.mxu2 %v7646_v31  ;;  %v7670_v31 = vor.u32 %v8837_v34, %v7669_v36 }
 0x641   : > { %5820 = vmatmul.bf16.gmra.mxu3 %v7650_v48  ;;  %v7674_v48 = vor.u32 %v8833_v8, %v7671_v13 }
 0x643   : > { %v5096_v46 = vpop.f32.mrf.mxu2 }
 0x644   : > { %v5265_v60 = vpop.f32.mrf.mxu3  ;;  %v5097_v2 = vadd.f32 %v5096_v46, %v4928_v55  ;;  %v4760_v22 = vpop.f32.mrf.mxu0 }
 0x645   : > { %v4929_v59 = vpop.f32.mrf.mxu1 }
 0x646   : > { %v4930_v9 = vadd.f32 %v4929_v59, %v4760_v22  ;;  %v11319_v0 = vadd.f32 %v5265_v60, %v5097_v2  ;;  %v7678_v22 = vor.u32 %v8838_v50, %v7677_v12  ;;  %v7682_v60 = vor.u32 %v8834_v28, %v7679_v15  ;;  %v6211_v50 = vld [vmem:[%s11339_s6] sm:$0xff]  ;;  %v7701_v15 = vld [vmem:[%s10824_s28 + $0x250] sm:$0xf] }
 0x648   : > { %12626 = vst [vmem:[#allocation53_spill] sm:$0xff] %v11319_v0 }
 0x64b   : > { %v5098_v63 = vpop.f32.mrf.mxu2 }
 0x64c   : > { %v5267_v45 = vpop.f32.mrf.mxu3  ;;  %v5099_v14 = vadd.f32 %v5098_v63, %v4930_v9  ;;  %v5279_v55 = vpop.f32.mrf.mxu0  ;;  %v8845_v63 = vld [vmem:[%s10824_s28 + $0x26c] sm:$0xf0] }
 0x64d   : > { %v5448_v46 = vpop.f32.mrf.mxu1  ;;  %v5280_v2 = vadd.f32 %v5279_v55, %v10947_v49  ;;  %v11334_v49 = vld [vmem:[%s10838_s15] ss:$0 sm:$0xff]  ;;  %v8846_v55 = vld [vmem:[%s10824_s28 + $0x274] sm:$0xf0] }
 0x64e   : > { %v11330_v59 = vadd.f32 %v5267_v45, %v5099_v14 }
 0x64f   : > { %v5449_v0 = vadd.f32 %v5448_v46, %v5280_v2  ;;  %5318 = vmatmul.bf16.gmra.mxu0 %v7670_v31  ;;  %5487 = vmatmul.bf16.gmra.mxu1 %v7674_v48  ;;  %v7703_v31 = vld [vmem:[%s10824_s28 + $0x270] sm:$0xf0]  ;;  %v7709_v48 = vld [vmem:[%s10824_s28 + $0x258] sm:$0xf]  ;;  %v8842_v46 = vld [vmem:[%s10824_s28 + $0x25c] sm:$0xf] }
 0x650   : > { %12628 = vst [vmem:[#allocation54_spill] sm:$0xff] %v11330_v59  ;;  %5656 = vmatmul.bf16.gmra.mxu2 %v7678_v22  ;;  %v7711_v22 = vld [vmem:[%s10824_s28 + $0x278] sm:$0xf0] }
 0x651   : > { %5825 = vmatmul.bf16.gmra.mxu3 %v7682_v60 }
 0x653   : > { %v5617_v9 = vpop.f32.mrf.mxu2 }
 0x654   : > { %v5786_v36 = vpop.f32.mrf.mxu3  ;;  %v5618_v34 = vadd.f32 %v5617_v9, %v5449_v0  ;;  %v5281_v14 = vpop.f32.mrf.mxu0  ;;  %v8841_v0 = vld [vmem:[%s10824_s28 + $0x254] sm:$0xf]  ;;  %v7702_v9 = vor.u32 %v8845_v63, %v7701_v15 }
 0x655   : > { %v5450_v8 = vpop.f32.mrf.mxu1  ;;  %v5282_v13 = vadd.f32 %v5281_v14, %v10957_v4 }
 0x656   : > { %v5787_v12 = vadd.f32 %v5786_v36, %v5618_v34  ;;  %v7706_v36 = vor.u32 %v8841_v0, %v7703_v31 }
 0x657   : > { %v5451_v28 = vadd.f32 %v5450_v8, %v5282_v13  ;;  %v7710_v13 = vor.u32 %v8846_v55, %v7709_v48  ;;  %v6213_v48 = vld [vmem:[%s11339_s6 + $0x10] sm:$0xff] }
 0x658   : > { %v11345_v45 = vadd.f32 %v11334_v49, %v5787_v12  ;;  %v7714_v12 = vor.u32 %v8842_v46, %v7711_v22  ;;  %v7733_v46 = vld [vmem:[%s10824_s28 + $0x290] sm:$0xf] }
 0x659   : > { %v8853_v22 = vld [vmem:[%s10824_s28 + $0x2ac] sm:$0xf0] }
 0x65a   : > { %12629 = vst [vmem:[#allocation55_spill] sm:$0xff] %v11345_v45  ;;  %v11354_v4 = vadd.f32 %v6211_v50, %v11345_v45 }
 0x65b   : > { %v5619_v60 = vpop.f32.mrf.mxu2 }
 0x65c   : > { %v5788_v2 = vpop.f32.mrf.mxu3  ;;  %v5620_v34 = vadd.f32 %v5619_v60, %v5451_v28  ;;  %v5284_v14 = vpop.f32.mrf.mxu0 }
 0x65d   : > { %v5453_v8 = vpop.f32.mrf.mxu1  ;;  %v5285_v59 = vadd.f32 %v5284_v14, %v10959_v11  ;;  %v7743_v14 = vld [vmem:[%s10824_s28 + $0x2b8] sm:$0xf0] }
 0x65e   : > { %v5789_v52 = vadd.f32 %v5788_v2, %v5620_v34  ;;  %v7735_v2 = vld [vmem:[%s10824_s28 + $0x2b0] sm:$0xf0]  ;;  %v8850_v34 = vld [vmem:[%s10824_s28 + $0x29c] sm:$0xf] }
 0x65f   : > { %v5454_v43 = vadd.f32 %v5453_v8, %v5285_v59  ;;  %5323 = vmatmul.bf16.gmra.mxu0 %v7702_v9  ;;  %5492 = vmatmul.bf16.gmra.mxu1 %v7706_v36  ;;  %v7741_v9 = vld [vmem:[%s10824_s28 + $0x298] sm:$0xf] }
 0x660   : > { %v11359_v50 = vadd.f32 %v11334_v49, %v5789_v52  ;;  %5661 = vmatmul.bf16.gmra.mxu2 %v7710_v13  ;;  %v8854_v36 = vld [vmem:[%s10824_s28 + $0x2b4] sm:$0xf0]  ;;  %v7734_v13 = vor.u32 %v8853_v22, %v7733_v46 }
 0x661   : > { %5830 = vmatmul.bf16.gmra.mxu3 %v7714_v12 }
 0x662   : > { %12630 = vst [vmem:[#allocation56_spill] sm:$0xff] %v11359_v50  ;;  %v11362_v28 = vadd.f32 %v6212_v26, %v11359_v50  ;;  %v8849_v26 = vld [vmem:[%s10824_s28 + $0x294] sm:$0xf]  ;;  %v6214_v50 = vld [vmem:[%s11339_s6 + $0x18] sm:$0xff] }
 0x663   : > { %v5622_v11 = vpop.f32.mrf.mxu2  ;;  %v7738_v12 = vor.u32 %v8849_v26, %v7735_v2 }
 0x664   : > { %v5791_v15 = vpop.f32.mrf.mxu3  ;;  %v5623_v59 = vadd.f32 %v5622_v11, %v5454_v43  ;;  %v5286_v63 = vpop.f32.mrf.mxu0 }
 0x665   : > { %v5455_v0 = vpop.f32.mrf.mxu1  ;;  %v5287_v31 = vadd.f32 %v5286_v63, %v10969_v30  ;;  %v7742_v63 = vor.u32 %v8854_v36, %v7741_v9 }
 0x666   : > { %v5792_v52 = vadd.f32 %v5791_v15, %v5623_v59 }
 0x667   : > { %v5456_v55 = vadd.f32 %v5455_v0, %v5287_v31  ;;  %v7746_v0 = vor.u32 %v8850_v34, %v7743_v14  ;;  %v6215_v34 = vld [vmem:[%s11339_s6 + $0x20] sm:$0xff] }
 0x668   : > { %v11369_v60 = vadd.f32 %v11334_v49, %v5792_v52 }
 0x66a   : > { %12631 = vst [vmem:[#allocation57_spill] sm:$0xff] %v11369_v60  ;;  %v11378_v43 = vadd.f32 %v6213_v48, %v11369_v60 }
 0x66b   : > { %v5624_v8 = vpop.f32.mrf.mxu2 }
 0x66c   : > { %v5793_v30 = vpop.f32.mrf.mxu3  ;;  %v5625_v11 = vadd.f32 %v5624_v8, %v5456_v55  ;;  %v5289_v15 = vpop.f32.mrf.mxu0  ;;  %v7765_v8 = vld [vmem:[%s10824_s28 + $0x2d0] sm:$0xf] }
 0x66d   : > { %v5458_v59 = vpop.f32.mrf.mxu1  ;;  %v5290_v31 = vadd.f32 %v5289_v15, %v10971_v40  ;;  %v8862_v15 = vld [vmem:[%s10824_s28 + $0x2f4] sm:$0xf0] }
 0x66e   : > { %v5794_v52 = vadd.f32 %v5793_v30, %v5625_v11  ;;  %v8861_v30 = vld [vmem:[%s10824_s28 + $0x2ec] sm:$0xf0]  ;;  %v7773_v11 = vld [vmem:[%s10824_s28 + $0x2d8] sm:$0xf] }
 0x66f   : > { %v5459_v45 = vadd.f32 %v5458_v59, %v5290_v31  ;;  %5328 = vmatmul.bf16.gmra.mxu0 %v7734_v13  ;;  %5497 = vmatmul.bf16.gmra.mxu1 %v7738_v12  ;;  %v7767_v12 = vld [vmem:[%s10824_s28 + $0x2f0] sm:$0xf0]  ;;  %v8858_v59 = vld [vmem:[%s10824_s28 + $0x2dc] sm:$0xf]  ;;  %v7766_v31 = vor.u32 %v8861_v30, %v7765_v8 }
 0x670   : > { %v11383_v48 = vadd.f32 %v11334_v49, %v5794_v52  ;;  %5666 = vmatmul.bf16.gmra.mxu2 %v7742_v63  ;;  %v7775_v63 = vld [vmem:[%s10824_s28 + $0x2f8] sm:$0xf0] }
 0x671   : > { %5835 = vmatmul.bf16.gmra.mxu3 %v7746_v0 }
 0x672   : > { %12632 = vst [vmem:[#allocation58_spill] sm:$0xff] %v11383_v48  ;;  %v11386_v55 = vadd.f32 %v6214_v50, %v11383_v48  ;;  %v8857_v50 = vld [vmem:[%s10824_s28 + $0x2d4] sm:$0xf]  ;;  %v6216_v48 = vld [vmem:[%s11339_s6 + $0x28] sm:$0xff] }
 0x673   : > { %v5627_v40 = vpop.f32.mrf.mxu2  ;;  %v7770_v52 = vor.u32 %v8857_v50, %v7767_v12 }
 0x674   : > { %v5796_v46 = vpop.f32.mrf.mxu3  ;;  %v5628_v22 = vadd.f32 %v5627_v40, %v5459_v45  ;;  %v5291_v26 = vpop.f32.mrf.mxu0 }
 0x675   : > { %v5460_v2 = vpop.f32.mrf.mxu1  ;;  %v5292_v9 = vadd.f32 %v5291_v26, %v10981_v61  ;;  %v7774_v26 = vor.u32 %v8862_v15, %v7773_v11 }
 0x676   : > { %v5797_v36 = vadd.f32 %v5796_v46, %v5628_v22 }
 0x677   : > { %v5461_v14 = vadd.f32 %v5460_v2, %v5292_v9  ;;  %v7778_v2 = vor.u32 %v8858_v59, %v7775_v63  ;;  %v6217_v59 = vld [vmem:[%s11339_s6 + $0x30] sm:$0xff] }
 0x678   : > { %v11393_v13 = vadd.f32 %v11334_v49, %v5797_v36 }
 0x67a   : > { %12633 = vst [vmem:[#allocation59_spill] sm:$0xff] %v11393_v13  ;;  %v11402_v45 = vadd.f32 %v6215_v34, %v11393_v13 }
 0x67b   : > { %v5629_v0 = vpop.f32.mrf.mxu2 }
 0x67c   : > { %v5798_v61 = vpop.f32.mrf.mxu3  ;;  %v5630_v40 = vadd.f32 %v5629_v0, %v5461_v14  ;;  %v5294_v46 = vpop.f32.mrf.mxu0  ;;  %v7797_v0 = vld [vmem:[%s10824_s28 + $0x310] sm:$0xf] }
 0x67d   : > { %v5463_v22 = vpop.f32.mrf.mxu1  ;;  %v5295_v9 = vadd.f32 %v5294_v46, %v10983_v5  ;;  %v8870_v46 = vld [vmem:[%s10824_s28 + $0x334] sm:$0xf0] }
 0x67e   : > { %v5799_v36 = vadd.f32 %v5798_v61, %v5630_v40  ;;  %v8869_v61 = vld [vmem:[%s10824_s28 + $0x32c] sm:$0xf0]  ;;  %v7805_v40 = vld [vmem:[%s10824_s28 + $0x318] sm:$0xf] }
 0x67f   : > { %v5464_v60 = vadd.f32 %v5463_v22, %v5295_v9  ;;  %5333 = vmatmul.bf16.gmra.mxu0 %v7766_v31  ;;  %5502 = vmatmul.bf16.gmra.mxu1 %v7770_v52  ;;  %v7799_v52 = vld [vmem:[%s10824_s28 + $0x330] sm:$0xf0]  ;;  %v8866_v22 = vld [vmem:[%s10824_s28 + $0x31c] sm:$0xf]  ;;  %v7798_v9 = vor.u32 %v8869_v61, %v7797_v0 }
 0x680   : > { %v11407_v34 = vadd.f32 %v11334_v49, %v5799_v36  ;;  %5671 = vmatmul.bf16.gmra.mxu2 %v7774_v26  ;;  %v7807_v26 = vld [vmem:[%s10824_s28 + $0x338] sm:$0xf0] }
 0x681   : > { %5840 = vmatmul.bf16.gmra.mxu3 %v7778_v2 }
 0x682   : > { %12634 = vst [vmem:[#allocation60_spill] sm:$0xff] %v11407_v34  ;;  %v11410_v14 = vadd.f32 %v6216_v48, %v11407_v34  ;;  %v8865_v48 = vld [vmem:[%s10824_s28 + $0x314] sm:$0xf]  ;;  %v6218_v34 = vld [vmem:[%s11339_s6 + $0x38] sm:$0xff] }
 0x683   : > { %v5632_v5 = vpop.f32.mrf.mxu2  ;;  %v7802_v36 = vor.u32 %v8865_v48, %v7799_v52 }
 0x684   : > { %v5801_v8 = vpop.f32.mrf.mxu3  ;;  %v5633_v30 = vadd.f32 %v5632_v5, %v5464_v60  ;;  %v5296_v50 = vpop.f32.mrf.mxu0 }
 0x685   : > { %v5465_v12 = vpop.f32.mrf.mxu1  ;;  %v5297_v11 = vadd.f32 %v5296_v50, %v10993_v25  ;;  %v7806_v50 = vor.u32 %v8870_v46, %v7805_v40 }
 0x686   : > { %v5802_v15 = vadd.f32 %v5801_v8, %v5633_v30 }
 0x687   : > { %v5466_v63 = vadd.f32 %v5465_v12, %v5297_v11  ;;  %v7810_v12 = vor.u32 %v8866_v22, %v7807_v26  ;;  %v6219_v22 = vld [vmem:[%s11339_s6 + $0x40] sm:$0xff] }
 0x688   : > { %v11417_v31 = vadd.f32 %v11334_v49, %v5802_v15 }
 0x68a   : > { %12635 = vst [vmem:[#allocation61_spill] sm:$0xff] %v11417_v31  ;;  %v11426_v60 = vadd.f32 %v6217_v59, %v11417_v31 }
 0x68b   : > { %v5634_v2 = vpop.f32.mrf.mxu2 }
 0x68c   : > { %v5803_v25 = vpop.f32.mrf.mxu3  ;;  %v5635_v5 = vadd.f32 %v5634_v2, %v5466_v63  ;;  %v5299_v8 = vpop.f32.mrf.mxu0  ;;  %v7829_v2 = vld [vmem:[%s10824_s28 + $0x350] sm:$0xf] }
 0x68d   : > { %v5468_v30 = vpop.f32.mrf.mxu1  ;;  %v5300_v11 = vadd.f32 %v5299_v8, %v10995_v33  ;;  %v8878_v8 = vld [vmem:[%s10824_s28 + $0x374] sm:$0xf0] }
 0x68e   : > { %v5804_v15 = vadd.f32 %v5803_v25, %v5635_v5  ;;  %v8877_v25 = vld [vmem:[%s10824_s28 + $0x36c] sm:$0xf0]  ;;  %v7837_v5 = vld [vmem:[%s10824_s28 + $0x358] sm:$0xf] }
 0x68f   : > { %v5469_v13 = vadd.f32 %v5468_v30, %v5300_v11  ;;  %5338 = vmatmul.bf16.gmra.mxu0 %v7798_v9  ;;  %5507 = vmatmul.bf16.gmra.mxu1 %v7802_v36  ;;  %v7831_v36 = vld [vmem:[%s10824_s28 + $0x370] sm:$0xf0]  ;;  %v8874_v30 = vld [vmem:[%s10824_s28 + $0x35c] sm:$0xf]  ;;  %v7830_v11 = vor.u32 %v8877_v25, %v7829_v2 }
 0x690   : > { %v11431_v59 = vadd.f32 %v11334_v49, %v5804_v15  ;;  %5676 = vmatmul.bf16.gmra.mxu2 %v7806_v50  ;;  %v7839_v50 = vld [vmem:[%s10824_s28 + $0x378] sm:$0xf0] }
 0x691   : > { %5845 = vmatmul.bf16.gmra.mxu3 %v7810_v12 }
 0x692   : > { %12636 = vst [vmem:[#allocation62_spill] sm:$0xff] %v11431_v59  ;;  %v11434_v63 = vadd.f32 %v6218_v34, %v11431_v59  ;;  %v8873_v34 = vld [vmem:[%s10824_s28 + $0x354] sm:$0xf]  ;;  %v6220_v59 = vld [vmem:[%s11339_s6 + $0x48] sm:$0xff] }
 0x693   : > { %v5637_v33 = vpop.f32.mrf.mxu2  ;;  %v7834_v15 = vor.u32 %v8873_v34, %v7831_v36 }
 0x694   : > { %v5806_v0 = vpop.f32.mrf.mxu3  ;;  %v5638_v61 = vadd.f32 %v5637_v33, %v5469_v13  ;;  %v5301_v48 = vpop.f32.mrf.mxu0 }
 0x695   : > { %v5470_v52 = vpop.f32.mrf.mxu1  ;;  %v5302_v40 = vadd.f32 %v5301_v48, %v11005_v54  ;;  %v7838_v48 = vor.u32 %v8878_v8, %v7837_v5 }
 0x696   : > { %v5807_v46 = vadd.f32 %v5806_v0, %v5638_v61 }
 0x697   : > { %v5471_v26 = vadd.f32 %v5470_v52, %v5302_v40  ;;  %v7842_v52 = vor.u32 %v8874_v30, %v7839_v50  ;;  %v6221_v30 = vld [vmem:[%s11339_s6 + $0x50] sm:$0xff] }
 0x698   : > { %v11441_v9 = vadd.f32 %v11334_v49, %v5807_v46 }
 0x69a   : > { %12637 = vst [vmem:[#allocation63_spill] sm:$0xff] %v11441_v9  ;;  %v11450_v13 = vadd.f32 %v6219_v22, %v11441_v9 }
 0x69b   : > { %v5639_v12 = vpop.f32.mrf.mxu2 }
 0x69c   : > { %v5808_v54 = vpop.f32.mrf.mxu3  ;;  %v5640_v33 = vadd.f32 %v5639_v12, %v5471_v26  ;;  %v5304_v0 = vpop.f32.mrf.mxu0  ;;  %v7861_v12 = vld [vmem:[%s10824_s28 + $0x390] sm:$0xf] }
 0x69d   : > { %v5473_v61 = vpop.f32.mrf.mxu1  ;;  %v5305_v40 = vadd.f32 %v5304_v0, %v11007_v62  ;;  %v8886_v0 = vld [vmem:[%s10824_s28 + $0x3b4] sm:$0xf0] }
 0x69e   : > { %v5809_v46 = vadd.f32 %v5808_v54, %v5640_v33  ;;  %v8885_v54 = vld [vmem:[%s10824_s28 + $0x3ac] sm:$0xf0]  ;;  %v7869_v33 = vld [vmem:[%s10824_s28 + $0x398] sm:$0xf] }
 0x69f   : > { %v5474_v31 = vadd.f32 %v5473_v61, %v5305_v40  ;;  %5343 = vmatmul.bf16.gmra.mxu0 %v7830_v11  ;;  %5512 = vmatmul.bf16.gmra.mxu1 %v7834_v15  ;;  %v7863_v15 = vld [vmem:[%s10824_s28 + $0x3b0] sm:$0xf0]  ;;  %v8882_v61 = vld [vmem:[%s10824_s28 + $0x39c] sm:$0xf]  ;;  %v7862_v40 = vor.u32 %v8885_v54, %v7861_v12 }
 0x6a0   : > { %v11455_v22 = vadd.f32 %v11334_v49, %v5809_v46  ;;  %5681 = vmatmul.bf16.gmra.mxu2 %v7838_v48  ;;  %v7871_v48 = vld [vmem:[%s10824_s28 + $0x3b8] sm:$0xf0] }
 0x6a1   : > { %5850 = vmatmul.bf16.gmra.mxu3 %v7842_v52 }
 0x6a2   : > { %12638 = vst [vmem:[#allocation64_spill] sm:$0xff] %v11455_v22  ;;  %v11458_v26 = vadd.f32 %v6220_v59, %v11455_v22  ;;  %v8881_v59 = vld [vmem:[%s10824_s28 + $0x394] sm:$0xf]  ;;  %v6222_v22 = vld [vmem:[%s11339_s6 + $0x58] sm:$0xff] }
 0x6a3   : > { %v5642_v62 = vpop.f32.mrf.mxu2  ;;  %v7866_v46 = vor.u32 %v8881_v59, %v7863_v15 }
 0x6a4   : > { %v5811_v2 = vpop.f32.mrf.mxu3  ;;  %v5643_v25 = vadd.f32 %v5642_v62, %v5474_v31  ;;  %v5306_v34 = vpop.f32.mrf.mxu0 }
 0x6a5   : > { %v5475_v36 = vpop.f32.mrf.mxu1  ;;  %v5307_v5 = vadd.f32 %v5306_v34, %v11017_v20  ;;  %v7870_v34 = vor.u32 %v8886_v0, %v7869_v33 }
 0x6a6   : > { %v5812_v8 = vadd.f32 %v5811_v2, %v5643_v25 }
 0x6a7   : > { %v5476_v50 = vadd.f32 %v5475_v36, %v5307_v5  ;;  %v7874_v36 = vor.u32 %v8882_v61, %v7871_v48  ;;  %v6223_v61 = vld [vmem:[%s11339_s6 + $0x60] sm:$0xff] }
 0x6a8   : > { %v11465_v11 = vadd.f32 %v11334_v49, %v5812_v8 }
 0x6aa   : > { %12639 = vst [vmem:[#allocation65_spill] sm:$0xff] %v11465_v11  ;;  %v11474_v31 = vadd.f32 %v6221_v30, %v11465_v11 }
 0x6ab   : > { %v5644_v52 = vpop.f32.mrf.mxu2 }
 0x6ac   : > { %v5813_v20 = vpop.f32.mrf.mxu3  ;;  %v5645_v62 = vadd.f32 %v5644_v52, %v5476_v50  ;;  %v5309_v2 = vpop.f32.mrf.mxu0  ;;  %v7893_v52 = vld [vmem:[%s10824_s28 + $0x3d0] sm:$0xf] }
 0x6ad   : > { %v5478_v25 = vpop.f32.mrf.mxu1  ;;  %v5310_v5 = vadd.f32 %v5309_v2, %v11019_v32  ;;  %v8894_v2 = vld [vmem:[%s10824_s28 + $0x3f4] sm:$0xf0] }
 0x6ae   : > { %v5814_v8 = vadd.f32 %v5813_v20, %v5645_v62  ;;  %v8893_v20 = vld [vmem:[%s10824_s28 + $0x3ec] sm:$0xf0]  ;;  %v7901_v62 = vld [vmem:[%s10824_s28 + $0x3d8] sm:$0xf] }
 0x6af   : > { %v5479_v9 = vadd.f32 %v5478_v25, %v5310_v5  ;;  %5348 = vmatmul.bf16.gmra.mxu0 %v7862_v40  ;;  %5517 = vmatmul.bf16.gmra.mxu1 %v7866_v46  ;;  %v7895_v46 = vld [vmem:[%s10824_s28 + $0x3f0] sm:$0xf0]  ;;  %v8890_v25 = vld [vmem:[%s10824_s28 + $0x3dc] sm:$0xf]  ;;  %v7894_v5 = vor.u32 %v8893_v20, %v7893_v52 }
 0x6b0   : > { %v11479_v30 = vadd.f32 %v11334_v49, %v5814_v8  ;;  %5686 = vmatmul.bf16.gmra.mxu2 %v7870_v34  ;;  %v7903_v34 = vld [vmem:[%s10824_s28 + $0x3f8] sm:$0xf0] }
 0x6b1   : > { %5855 = vmatmul.bf16.gmra.mxu3 %v7874_v36 }
 0x6b2   : > { %12640 = vst [vmem:[#allocation66_spill] sm:$0xff] %v11479_v30  ;;  %v11482_v50 = vadd.f32 %v6222_v22, %v11479_v30  ;;  %v8889_v22 = vld [vmem:[%s10824_s28 + $0x3d4] sm:$0xf]  ;;  %v6224_v30 = vld [vmem:[%s11339_s6 + $0x68] sm:$0xff] }
 0x6b3   : > { %v5647_v32 = vpop.f32.mrf.mxu2  ;;  %v7898_v8 = vor.u32 %v8889_v22, %v7895_v46 }
 0x6b4   : > { %v5816_v12 = vpop.f32.mrf.mxu3  ;;  %v5648_v54 = vadd.f32 %v5647_v32, %v5479_v9  ;;  %v5311_v59 = vpop.f32.mrf.mxu0 }
 0x6b5   : > { %v5480_v15 = vpop.f32.mrf.mxu1  ;;  %v5312_v33 = vadd.f32 %v5311_v59, %v11029_v56  ;;  %v7902_v59 = vor.u32 %v8894_v2, %v7901_v62 }
 0x6b6   : > { %v5817_v0 = vadd.f32 %v5816_v12, %v5648_v54 }
 0x6b7   : > { %v5481_v48 = vadd.f32 %v5480_v15, %v5312_v33  ;;  %v7906_v15 = vor.u32 %v8890_v25, %v7903_v34  ;;  %v6225_v25 = vld [vmem:[%s11339_s6 + $0x70] sm:$0xff] }
 0x6b8   : > { %v11489_v40 = vadd.f32 %v11334_v49, %v5817_v0 }
 0x6ba   : > { %12641 = vst [vmem:[#allocation67_spill] sm:$0xff] %v11489_v40  ;;  %v11498_v9 = vadd.f32 %v6223_v61, %v11489_v40 }
 0x6bb   : > { %v5649_v36 = vpop.f32.mrf.mxu2 }
 0x6bc   : > { %v5818_v56 = vpop.f32.mrf.mxu3  ;;  %v5650_v32 = vadd.f32 %v5649_v36, %v5481_v48  ;;  %v5314_v12 = vpop.f32.mrf.mxu0  ;;  %v7925_v36 = vld [vmem:[%s10824_s28 + $0x410] sm:$0xf] }
 0x6bd   : > { %v5483_v54 = vpop.f32.mrf.mxu1  ;;  %v5315_v33 = vadd.f32 %v5314_v12, %v11031_v1  ;;  %v8902_v12 = vld [vmem:[%s10824_s28 + $0x434] sm:$0xf0] }
 0x6be   : > { %v5819_v0 = vadd.f32 %v5818_v56, %v5650_v32  ;;  %v8901_v56 = vld [vmem:[%s10824_s28 + $0x42c] sm:$0xf0]  ;;  %v7933_v32 = vld [vmem:[%s10824_s28 + $0x418] sm:$0xf] }
 0x6bf   : > { %v5484_v11 = vadd.f32 %v5483_v54, %v5315_v33  ;;  %5353 = vmatmul.bf16.gmra.mxu0 %v7894_v5  ;;  %5522 = vmatmul.bf16.gmra.mxu1 %v7898_v8  ;;  %v7927_v8 = vld [vmem:[%s10824_s28 + $0x430] sm:$0xf0]  ;;  %v8898_v54 = vld [vmem:[%s10824_s28 + $0x41c] sm:$0xf]  ;;  %v7926_v33 = vor.u32 %v8901_v56, %v7925_v36 }
 0x6c0   : > { %v11503_v61 = vadd.f32 %v11334_v49, %v5819_v0  ;;  %5691 = vmatmul.bf16.gmra.mxu2 %v7902_v59  ;;  %v7935_v59 = vld [vmem:[%s10824_s28 + $0x438] sm:$0xf0] }
 0x6c1   : > { %5860 = vmatmul.bf16.gmra.mxu3 %v7906_v15 }
 0x6c2   : > { %12642 = vst [vmem:[#allocation68_spill] sm:$0xff] %v11503_v61  ;;  %v11506_v48 = vadd.f32 %v6224_v30, %v11503_v61  ;;  %v8897_v30 = vld [vmem:[%s10824_s28 + $0x414] sm:$0xf]  ;;  %v6226_v61 = vld [vmem:[%s11339_s6 + $0x78] sm:$0xff] }
 0x6c3   : > { %v5652_v1 = vpop.f32.mrf.mxu2  ;;  %v7930_v0 = vor.u32 %v8897_v30, %v7927_v8 }
 0x6c4   : > { %v5821_v52 = vpop.f32.mrf.mxu3  ;;  %v5653_v20 = vadd.f32 %v5652_v1, %v5484_v11  ;;  %v5316_v22 = vpop.f32.mrf.mxu0 }
 0x6c5   : > { %v5485_v46 = vpop.f32.mrf.mxu1  ;;  %v5317_v62 = vadd.f32 %v5316_v22, %v11041_v24  ;;  %v7934_v22 = vor.u32 %v8902_v12, %v7933_v32 }
 0x6c6   : > { %v5822_v2 = vadd.f32 %v5821_v52, %v5653_v20 }
 0x6c7   : > { %v5486_v34 = vadd.f32 %v5485_v46, %v5317_v62  ;;  %v7938_v46 = vor.u32 %v8898_v54, %v7935_v59  ;;  %v6227_v54 = vld [vmem:[%s11339_s6 + $0x80] sm:$0xff] }
 0x6c8   : > { %v11513_v5 = vadd.f32 %v11334_v49, %v5822_v2 }
 0x6ca   : > { %12643 = vst [vmem:[#allocation69_spill] sm:$0xff] %v11513_v5  ;;  %v11522_v11 = vadd.f32 %v6225_v25, %v11513_v5 }
 0x6cb   : > { %v5654_v15 = vpop.f32.mrf.mxu2 }
 0x6cc   : > { %v5823_v24 = vpop.f32.mrf.mxu3  ;;  %v5655_v1 = vadd.f32 %v5654_v15, %v5486_v34  ;;  %v5319_v52 = vpop.f32.mrf.mxu0  ;;  %v7957_v15 = vld [vmem:[%s10824_s28 + $0x450] sm:$0xf] }
 0x6cd   : > { %v5488_v20 = vpop.f32.mrf.mxu1  ;;  %v5320_v62 = vadd.f32 %v5319_v52, %v11043_v35  ;;  %v8910_v52 = vld [vmem:[%s10824_s28 + $0x474] sm:$0xf0] }
 0x6ce   : > { %v5824_v2 = vadd.f32 %v5823_v24, %v5655_v1  ;;  %v8909_v24 = vld [vmem:[%s10824_s28 + $0x46c] sm:$0xf0]  ;;  %v7965_v1 = vld [vmem:[%s10824_s28 + $0x458] sm:$0xf] }
 0x6cf   : > { %v5489_v40 = vadd.f32 %v5488_v20, %v5320_v62  ;;  %5358 = vmatmul.bf16.gmra.mxu0 %v7926_v33  ;;  %5527 = vmatmul.bf16.gmra.mxu1 %v7930_v0  ;;  %v7959_v0 = vld [vmem:[%s10824_s28 + $0x470] sm:$0xf0]  ;;  %v8906_v20 = vld [vmem:[%s10824_s28 + $0x45c] sm:$0xf]  ;;  %v7958_v62 = vor.u32 %v8909_v24, %v7957_v15 }
 0x6d0   : > { %v11527_v25 = vadd.f32 %v11334_v49, %v5824_v2  ;;  %5696 = vmatmul.bf16.gmra.mxu2 %v7934_v22  ;;  %v7967_v22 = vld [vmem:[%s10824_s28 + $0x478] sm:$0xf0] }
 0x6d1   : > { %5865 = vmatmul.bf16.gmra.mxu3 %v7938_v46 }
 0x6d2   : > { %12644 = vst [vmem:[#allocation70_spill] sm:$0xff] %v11527_v25  ;;  %v11530_v34 = vadd.f32 %v6226_v61, %v11527_v25  ;;  %v8905_v61 = vld [vmem:[%s10824_s28 + $0x454] sm:$0xf]  ;;  %v6228_v25 = vld [vmem:[%s11339_s6 + $0x88] sm:$0xff] }
 0x6d3   : > { %v5657_v35 = vpop.f32.mrf.mxu2  ;;  %v7962_v2 = vor.u32 %v8905_v61, %v7959_v0 }
 0x6d4   : > { %12645 = vst [vmem:[#allocation71_spill] sm:$0xff] %v11530_v34  ;;  %v5826_v36 = vpop.f32.mrf.mxu3  ;;  %v5658_v56 = vadd.f32 %v5657_v35, %v5489_v40  ;;  %v5321_v30 = vpop.f32.mrf.mxu0 }
 0x6d5   : > { %v5490_v8 = vpop.f32.mrf.mxu1  ;;  %v5322_v32 = vadd.f32 %v5321_v30, %v11053_v58  ;;  %v7966_v30 = vor.u32 %v8910_v52, %v7965_v1 }
 0x6d6   : > { %v5827_v12 = vadd.f32 %v5826_v36, %v5658_v56 }
 0x6d7   : > { %v5491_v59 = vadd.f32 %v5490_v8, %v5322_v32  ;;  %v7970_v8 = vor.u32 %v8906_v20, %v7967_v22  ;;  %v6229_v20 = vld [vmem:[%s11339_s6 + $0x90] sm:$0xff] }
 0x6d8   : > { %v11537_v33 = vadd.f32 %v11334_v49, %v5827_v12 }
 0x6da   : > { %12646 = vst [vmem:[#allocation72_spill] sm:$0xff] %v11537_v33  ;;  %v11546_v40 = vadd.f32 %v6227_v54, %v11537_v33 }
 0x6db   : > { %v5659_v46 = vpop.f32.mrf.mxu2 }
 0x6dc   : > { %v5828_v58 = vpop.f32.mrf.mxu3  ;;  %v5660_v35 = vadd.f32 %v5659_v46, %v5491_v59  ;;  %v5324_v36 = vpop.f32.mrf.mxu0  ;;  %v7989_v46 = vld [vmem:[%s10824_s28 + $0x490] sm:$0xf] }
 0x6dd   : > { %v5493_v56 = vpop.f32.mrf.mxu1  ;;  %v5325_v32 = vadd.f32 %v5324_v36, %v11055_v6  ;;  %v8918_v36 = vld [vmem:[%s10824_s28 + $0x4b4] sm:$0xf0] }
 0x6de   : > { %v5829_v12 = vadd.f32 %v5828_v58, %v5660_v35  ;;  %v8917_v58 = vld [vmem:[%s10824_s28 + $0x4ac] sm:$0xf0]  ;;  %v7997_v35 = vld [vmem:[%s10824_s28 + $0x498] sm:$0xf] }
 0x6df   : > { %v5494_v5 = vadd.f32 %v5493_v56, %v5325_v32  ;;  %5363 = vmatmul.bf16.gmra.mxu0 %v7958_v62  ;;  %5532 = vmatmul.bf16.gmra.mxu1 %v7962_v2  ;;  %v7991_v2 = vld [vmem:[%s10824_s28 + $0x4b0] sm:$0xf0]  ;;  %v8914_v56 = vld [vmem:[%s10824_s28 + $0x49c] sm:$0xf]  ;;  %v7990_v32 = vor.u32 %v8917_v58, %v7989_v46 }
 0x6e0   : > { %v11551_v54 = vadd.f32 %v11334_v49, %v5829_v12  ;;  %5701 = vmatmul.bf16.gmra.mxu2 %v7966_v30  ;;  %v7999_v30 = vld [vmem:[%s10824_s28 + $0x4b8] sm:$0xf0] }
 0x6e1   : > { %5870 = vmatmul.bf16.gmra.mxu3 %v7970_v8 }
 0x6e2   : > { %12647 = vst [vmem:[#allocation73_spill] sm:$0xff] %v11551_v54  ;;  %v11554_v59 = vadd.f32 %v6228_v25, %v11551_v54  ;;  %v8913_v25 = vld [vmem:[%s10824_s28 + $0x494] sm:$0xf]  ;;  %v6230_v54 = vld [vmem:[%s11339_s6 + $0x98] sm:$0xff] }
 0x6e3   : > { %v5662_v6 = vpop.f32.mrf.mxu2  ;;  %v7994_v12 = vor.u32 %v8913_v25, %v7991_v2 }
 0x6e4   : > { %v5831_v15 = vpop.f32.mrf.mxu3  ;;  %v5663_v24 = vadd.f32 %v5662_v6, %v5494_v5  ;;  %v5326_v61 = vpop.f32.mrf.mxu0 }
 0x6e5   : > { %v5495_v0 = vpop.f32.mrf.mxu1  ;;  %v5327_v1 = vadd.f32 %v5326_v61, %v11065_v29  ;;  %v7998_v61 = vor.u32 %v8918_v36, %v7997_v35 }
 0x6e6   : > { %v5832_v52 = vadd.f32 %v5831_v15, %v5663_v24 }
 0x6e7   : > { %v5496_v22 = vadd.f32 %v5495_v0, %v5327_v1  ;;  %v8002_v0 = vor.u32 %v8914_v56, %v7999_v30  ;;  %v6231_v56 = vld [vmem:[%s11339_s6 + $0xa0] sm:$0xff] }
 0x6e8   : > { %v11561_v62 = vadd.f32 %v11334_v49, %v5832_v52 }
 0x6ea   : > { %12648 = vst [vmem:[#allocation74_spill] sm:$0xff] %v11561_v62  ;;  %v11570_v5 = vadd.f32 %v6229_v20, %v11561_v62 }
 0x6eb   : > { %v5664_v8 = vpop.f32.mrf.mxu2 }
 0x6ec   : > { %v5833_v29 = vpop.f32.mrf.mxu3  ;;  %v5665_v6 = vadd.f32 %v5664_v8, %v5496_v22  ;;  %v5329_v15 = vpop.f32.mrf.mxu0  ;;  %v8021_v8 = vld [vmem:[%s10824_s28 + $0x4d0] sm:$0xf] }
 0x6ed   : > { %v5498_v24 = vpop.f32.mrf.mxu1  ;;  %v5330_v1 = vadd.f32 %v5329_v15, %v11067_v44  ;;  %v8926_v15 = vld [vmem:[%s10824_s28 + $0x4f4] sm:$0xf0] }
 0x6ee   : > { %v5834_v52 = vadd.f32 %v5833_v29, %v5665_v6  ;;  %v8925_v29 = vld [vmem:[%s10824_s28 + $0x4ec] sm:$0xf0]  ;;  %v8029_v6 = vld [vmem:[%s10824_s28 + $0x4d8] sm:$0xf] }
 0x6ef   : > { %v5499_v33 = vadd.f32 %v5498_v24, %v5330_v1  ;;  %5368 = vmatmul.bf16.gmra.mxu0 %v7990_v32  ;;  %5537 = vmatmul.bf16.gmra.mxu1 %v7994_v12  ;;  %v8023_v12 = vld [vmem:[%s10824_s28 + $0x4f0] sm:$0xf0]  ;;  %v8922_v24 = vld [vmem:[%s10824_s28 + $0x4dc] sm:$0xf]  ;;  %v8022_v1 = vor.u32 %v8925_v29, %v8021_v8 }
 0x6f0   : > { %v11575_v20 = vadd.f32 %v11334_v49, %v5834_v52  ;;  %5706 = vmatmul.bf16.gmra.mxu2 %v7998_v61  ;;  %v8031_v61 = vld [vmem:[%s10824_s28 + $0x4f8] sm:$0xf0] }
 0x6f1   : > { %5875 = vmatmul.bf16.gmra.mxu3 %v8002_v0 }
 0x6f2   : > { %12649 = vst [vmem:[#allocation75_spill] sm:$0xff] %v11575_v20  ;;  %v11578_v22 = vadd.f32 %v6230_v54, %v11575_v20  ;;  %v8921_v54 = vld [vmem:[%s10824_s28 + $0x4d4] sm:$0xf]  ;;  %v6232_v20 = vld [vmem:[%s11339_s6 + $0xa8] sm:$0xff] }
 0x6f3   : > { %v5667_v44 = vpop.f32.mrf.mxu2  ;;  %v8026_v52 = vor.u32 %v8921_v54, %v8023_v12 }
 0x6f4   : > { %v5836_v46 = vpop.f32.mrf.mxu3  ;;  %v5668_v58 = vadd.f32 %v5667_v44, %v5499_v33  ;;  %v5331_v25 = vpop.f32.mrf.mxu0 }
 0x6f5   : > { %v5500_v2 = vpop.f32.mrf.mxu1  ;;  %v5332_v35 = vadd.f32 %v5331_v25, %v11077_v10  ;;  %v8030_v25 = vor.u32 %v8926_v15, %v8029_v6 }
 0x6f6   : > { %v5837_v36 = vadd.f32 %v5836_v46, %v5668_v58 }
 0x6f7   : > { %v5501_v30 = vadd.f32 %v5500_v2, %v5332_v35  ;;  %v8034_v2 = vor.u32 %v8922_v24, %v8031_v61  ;;  %v6233_v24 = vld [vmem:[%s11339_s6 + $0xb0] sm:$0xff] }
 0x6f8   : > { %v11585_v32 = vadd.f32 %v11334_v49, %v5837_v36 }
 0x6fa   : > { %12650 = vst [vmem:[#allocation76_spill] sm:$0xff] %v11585_v32  ;;  %v11594_v33 = vadd.f32 %v6231_v56, %v11585_v32 }
 0x6fb   : > { %v5669_v0 = vpop.f32.mrf.mxu2 }
 0x6fc   : > { %v5838_v10 = vpop.f32.mrf.mxu3  ;;  %v5670_v44 = vadd.f32 %v5669_v0, %v5501_v30  ;;  %v5334_v46 = vpop.f32.mrf.mxu0  ;;  %v8053_v0 = vld [vmem:[%s10824_s28 + $0x510] sm:$0xf] }
 0x6fd   : > { %v5503_v58 = vpop.f32.mrf.mxu1  ;;  %v5335_v35 = vadd.f32 %v5334_v46, %v11079_v18  ;;  %v8934_v46 = vld [vmem:[%s10824_s28 + $0x534] sm:$0xf0] }
 0x6fe   : > { %v5839_v36 = vadd.f32 %v5838_v10, %v5670_v44  ;;  %v8933_v10 = vld [vmem:[%s10824_s28 + $0x52c] sm:$0xf0]  ;;  %v8061_v44 = vld [vmem:[%s10824_s28 + $0x518] sm:$0xf] }
 0x6ff   : > { %v5504_v62 = vadd.f32 %v5503_v58, %v5335_v35  ;;  %5373 = vmatmul.bf16.gmra.mxu0 %v8022_v1  ;;  %5542 = vmatmul.bf16.gmra.mxu1 %v8026_v52  ;;  %v8055_v52 = vld [vmem:[%s10824_s28 + $0x530] sm:$0xf0]  ;;  %v8930_v58 = vld [vmem:[%s10824_s28 + $0x51c] sm:$0xf]  ;;  %v8054_v35 = vor.u32 %v8933_v10, %v8053_v0 }
 0x700   : > { %v11599_v56 = vadd.f32 %v11334_v49, %v5839_v36  ;;  %5711 = vmatmul.bf16.gmra.mxu2 %v8030_v25  ;;  %v8063_v25 = vld [vmem:[%s10824_s28 + $0x538] sm:$0xf0] }
 0x701   : > { %5880 = vmatmul.bf16.gmra.mxu3 %v8034_v2 }
 0x702   : > { %12651 = vst [vmem:[#allocation77_spill] sm:$0xff] %v11599_v56  ;;  %v11602_v30 = vadd.f32 %v6232_v20, %v11599_v56  ;;  %v8929_v20 = vld [vmem:[%s10824_s28 + $0x514] sm:$0xf]  ;;  %v6234_v56 = vld [vmem:[%s11339_s6 + $0xb8] sm:$0xff] }
 0x703   : > { %v5672_v18 = vpop.f32.mrf.mxu2  ;;  %v8058_v36 = vor.u32 %v8929_v20, %v8055_v52 }
 0x704   : > { %v5841_v8 = vpop.f32.mrf.mxu3  ;;  %v5673_v29 = vadd.f32 %v5672_v18, %v5504_v62  ;;  %v5336_v54 = vpop.f32.mrf.mxu0 }
 0x705   : > { %v5505_v12 = vpop.f32.mrf.mxu1  ;;  %v5337_v6 = vadd.f32 %v5336_v54, %v11089_v47  ;;  %v8062_v54 = vor.u32 %v8934_v46, %v8061_v44 }
 0x706   : > { %v5842_v15 = vadd.f32 %v5841_v8, %v5673_v29 }
 0x707   : > { %v5506_v61 = vadd.f32 %v5505_v12, %v5337_v6  ;;  %v8066_v12 = vor.u32 %v8930_v58, %v8063_v25  ;;  %v6235_v58 = vld [vmem:[%s11339_s6 + $0xc0] sm:$0xff] }
 0x708   : > { %v11609_v1 = vadd.f32 %v11334_v49, %v5842_v15 }
 0x70a   : > { %12652 = vst [vmem:[#allocation78_spill] sm:$0xff] %v11609_v1  ;;  %v11618_v62 = vadd.f32 %v6233_v24, %v11609_v1 }
 0x70b   : > { %v5674_v2 = vpop.f32.mrf.mxu2 }
 0x70c   : > { %v5843_v47 = vpop.f32.mrf.mxu3  ;;  %v5675_v18 = vadd.f32 %v5674_v2, %v5506_v61  ;;  %v5339_v8 = vpop.f32.mrf.mxu0  ;;  %v8085_v2 = vld [vmem:[%s10824_s28 + $0x550] sm:$0xf] }
 0x70d   : > { %v5508_v29 = vpop.f32.mrf.mxu1  ;;  %v5340_v6 = vadd.f32 %v5339_v8, %v11091_v57  ;;  %v8942_v8 = vld [vmem:[%s10824_s28 + $0x574] sm:$0xf0] }
 0x70e   : > { %v5844_v15 = vadd.f32 %v5843_v47, %v5675_v18  ;;  %v8941_v47 = vld [vmem:[%s10824_s28 + $0x56c] sm:$0xf0]  ;;  %v8093_v18 = vld [vmem:[%s10824_s28 + $0x558] sm:$0xf] }
 0x70f   : > { %v5509_v32 = vadd.f32 %v5508_v29, %v5340_v6  ;;  %5378 = vmatmul.bf16.gmra.mxu0 %v8054_v35  ;;  %5547 = vmatmul.bf16.gmra.mxu1 %v8058_v36  ;;  %v8087_v36 = vld [vmem:[%s10824_s28 + $0x570] sm:$0xf0]  ;;  %v8938_v29 = vld [vmem:[%s10824_s28 + $0x55c] sm:$0xf]  ;;  %v8086_v6 = vor.u32 %v8941_v47, %v8085_v2 }
 0x710   : > { %v11623_v24 = vadd.f32 %v11334_v49, %v5844_v15  ;;  %5716 = vmatmul.bf16.gmra.mxu2 %v8062_v54  ;;  %v8095_v54 = vld [vmem:[%s10824_s28 + $0x578] sm:$0xf0] }
 0x711   : > { %5885 = vmatmul.bf16.gmra.mxu3 %v8066_v12 }
 0x712   : > { %12653 = vst [vmem:[#allocation79_spill] sm:$0xff] %v11623_v24  ;;  %v11626_v61 = vadd.f32 %v6234_v56, %v11623_v24  ;;  %v8937_v56 = vld [vmem:[%s10824_s28 + $0x554] sm:$0xf]  ;;  %v6236_v24 = vld [vmem:[%s11339_s6 + $0xc8] sm:$0xff] }
 0x713   : > { %v5677_v57 = vpop.f32.mrf.mxu2  ;;  %v8090_v15 = vor.u32 %v8937_v56, %v8087_v36 }
 0x714   : > { %v5846_v0 = vpop.f32.mrf.mxu3  ;;  %v5678_v10 = vadd.f32 %v5677_v57, %v5509_v32  ;;  %v5341_v20 = vpop.f32.mrf.mxu0 }
 0x715   : > { %v5510_v52 = vpop.f32.mrf.mxu1  ;;  %v5342_v44 = vadd.f32 %v5341_v20, %v11101_v23  ;;  %v8094_v20 = vor.u32 %v8942_v8, %v8093_v18 }
 0x716   : > { %v5847_v46 = vadd.f32 %v5846_v0, %v5678_v10 }
 0x717   : > { %v5511_v25 = vadd.f32 %v5510_v52, %v5342_v44  ;;  %v8098_v52 = vor.u32 %v8938_v29, %v8095_v54  ;;  %v6237_v29 = vld [vmem:[%s11339_s6 + $0xd0] sm:$0xff] }
 0x718   : > { %v11633_v35 = vadd.f32 %v11334_v49, %v5847_v46 }
 0x71a   : > { %12654 = vst [vmem:[#allocation80_spill] sm:$0xff] %v11633_v35  ;;  %v11642_v32 = vadd.f32 %v6235_v58, %v11633_v35 }
 0x71b   : > { %v5679_v12 = vpop.f32.mrf.mxu2 }
 0x71c   : > { %v5848_v23 = vpop.f32.mrf.mxu3  ;;  %v5680_v57 = vadd.f32 %v5679_v12, %v5511_v25  ;;  %v5344_v0 = vpop.f32.mrf.mxu0  ;;  %v8117_v12 = vld [vmem:[%s10824_s28 + $0x590] sm:$0xf] }
 0x71d   : > { %v5513_v10 = vpop.f32.mrf.mxu1  ;;  %v5345_v44 = vadd.f32 %v5344_v0, %v11103_v37  ;;  %v8950_v0 = vld [vmem:[%s10824_s28 + $0x5b4] sm:$0xf0] }
 0x71e   : > { %v5849_v46 = vadd.f32 %v5848_v23, %v5680_v57  ;;  %v8949_v23 = vld [vmem:[%s10824_s28 + $0x5ac] sm:$0xf0]  ;;  %v8125_v57 = vld [vmem:[%s10824_s28 + $0x598] sm:$0xf] }
 0x71f   : > { %v5514_v1 = vadd.f32 %v5513_v10, %v5345_v44  ;;  %5383 = vmatmul.bf16.gmra.mxu0 %v8086_v6  ;;  %5552 = vmatmul.bf16.gmra.mxu1 %v8090_v15  ;;  %v8119_v15 = vld [vmem:[%s10824_s28 + $0x5b0] sm:$0xf0]  ;;  %v8946_v10 = vld [vmem:[%s10824_s28 + $0x59c] sm:$0xf]  ;;  %v8118_v44 = vor.u32 %v8949_v23, %v8117_v12 }
 0x720   : > { %v11647_v58 = vadd.f32 %v11334_v49, %v5849_v46  ;;  %5721 = vmatmul.bf16.gmra.mxu2 %v8094_v20  ;;  %v8127_v20 = vld [vmem:[%s10824_s28 + $0x5b8] sm:$0xf0] }
 0x721   : > { %5890 = vmatmul.bf16.gmra.mxu3 %v8098_v52 }
 0x722   : > { %12655 = vst [vmem:[#allocation81_spill] sm:$0xff] %v11647_v58  ;;  %v11650_v25 = vadd.f32 %v6236_v24, %v11647_v58  ;;  %v8945_v24 = vld [vmem:[%s10824_s28 + $0x594] sm:$0xf] }
 0x723   : > { %v5682_v37 = vpop.f32.mrf.mxu2  ;;  %v8122_v46 = vor.u32 %v8945_v24, %v8119_v15 }
 0x724   : > { %v5851_v2 = vpop.f32.mrf.mxu3  ;;  %v5683_v47 = vadd.f32 %v5682_v37, %v5514_v1  ;;  %v5346_v56 = vpop.f32.mrf.mxu0 }
 0x725   : > { %v5515_v36 = vpop.f32.mrf.mxu1  ;;  %v5347_v18 = vadd.f32 %v5346_v56, %v11113_v3  ;;  %v8130_v56 = vor.u32 %v8946_v10, %v8127_v20  ;;  %v6239_v20 = vld [vmem:[%s11339_s6 + $0xe0] sm:$0xff] }
 0x726   : > { %v5852_v8 = vadd.f32 %v5851_v2, %v5683_v47 }
 0x727   : > { %v5516_v54 = vadd.f32 %v5515_v36, %v5347_v18 }
 0x728   : > { %v11657_v6 = vadd.f32 %v11334_v49, %v5852_v8  ;;  %v8126_v49 = vor.u32 %v8950_v0, %v8125_v57  ;;  %v6238_v8 = vld [vmem:[%s11339_s6 + $0xd8] sm:$0xff] }
 0x72a   : > { %12656 = vst [vmem:[#allocation82_spill] sm:$0xff] %v11657_v6  ;;  %v11666_v1 = vadd.f32 %v6237_v29, %v11657_v6  ;;  %v11671_v29 = vld [vmem:[%s10838_s15] ss:$0 sm:$0xff]  ;;  %v6240_v6 = vld [vmem:[%s11339_s6 + $0xe8] sm:$0xff] }
 0x72b   : > { %v5684_v3 = vpop.f32.mrf.mxu2 }
 0x72c   : > { %v5853_v52 = vpop.f32.mrf.mxu3  ;;  %v5685_v37 = vadd.f32 %v5684_v3, %v5516_v54  ;;  %v5349_v2 = vpop.f32.mrf.mxu0 }
 0x72d   : > { %v5518_v47 = vpop.f32.mrf.mxu1  ;;  %v5350_v36 = vadd.f32 %v5349_v2, %v11115_v19  ;;  %v8151_v2 = vld [vmem:[%s10824_s28 + $0x5f0] sm:$0xf0] }
 0x72e   : > { %v5854_v18 = vadd.f32 %v5853_v52, %v5685_v37  ;;  %v8149_v52 = vld [vmem:[%s10824_s28 + $0x5d0] sm:$0xf]  ;;  %v8953_v37 = vld [vmem:[%s10824_s28 + $0x5d4] sm:$0xf] }
 0x72f   : > { %v5519_v58 = vadd.f32 %v5518_v47, %v5350_v36  ;;  %5388 = vmatmul.bf16.gmra.mxu0 %v8118_v44  ;;  %5557 = vmatmul.bf16.gmra.mxu1 %v8122_v46  ;;  %v8957_v44 = vld [vmem:[%s10824_s28 + $0x5ec] sm:$0xf0]  ;;  %v8157_v47 = vld [vmem:[%s10824_s28 + $0x5d8] sm:$0xf]  ;;  %v8159_v36 = vld [vmem:[%s10824_s28 + $0x5f8] sm:$0xf0] }
 0x730   : > { %v11674_v12 = vadd.f32 %v11671_v29, %v5854_v18  ;;  %5726 = vmatmul.bf16.gmra.mxu2 %v8126_v49  ;;  %v8958_v49 = vld [vmem:[%s10824_s28 + $0x5f4] sm:$0xf0] }
 0x731   : > { %5895 = vmatmul.bf16.gmra.mxu3 %v8130_v56  ;;  %v8954_v56 = vld [vmem:[%s10824_s28 + $0x5dc] sm:$0xf] }
 0x732   : > { %12657 = vst [vmem:[#allocation83_spill] sm:$0xff] %v11674_v12  ;;  %v11677_v19 = vadd.f32 %v6238_v8, %v11674_v12  ;;  %v8150_v8 = vor.u32 %v8957_v44, %v8149_v52 }
 0x733   : > { %v5687_v54 = vpop.f32.mrf.mxu2 }
 0x734   : > { %v5856_v23 = vpop.f32.mrf.mxu3  ;;  %v5688_v24 = vadd.f32 %v5687_v54, %v5519_v58  ;;  %v5351_v15 = vpop.f32.mrf.mxu0  ;;  %v8154_v54 = vor.u32 %v8953_v37, %v8151_v2 }
 0x735   : > { %v5520_v57 = vpop.f32.mrf.mxu1  ;;  %v5352_v0 = vadd.f32 %v5351_v15, %v11125_v53 }
 0x736   : > { %v5857_v10 = vadd.f32 %v5856_v23, %v5688_v24 }
 0x737   : > { %v5521_v3 = vadd.f32 %v5520_v57, %v5352_v0  ;;  %v8158_v57 = vor.u32 %v8958_v49, %v8157_v47  ;;  %v8162_v0 = vor.u32 %v8954_v56, %v8159_v36  ;;  %v6241_v49 = vld [vmem:[%s11339_s6 + $0xf0] sm:$0xff] }
 0x738   : > { %v11684_v46 = vadd.f32 %v11671_v29, %v5857_v10  ;;  %v8181_v36 = vld [vmem:[%s10824_s28 + $0x610] sm:$0xf] }
 0x73a   : > { %12658 = vst [vmem:[#allocation84_spill] sm:$0xff] %v11684_v46  ;;  %v11693_v58 = vadd.f32 %v6239_v20, %v11684_v46 }
 0x73b   : > { %v5689_v18 = vpop.f32.mrf.mxu2 }
 0x73c   : > { %v5858_v53 = vpop.f32.mrf.mxu3  ;;  %v5690_v23 = vadd.f32 %v5689_v18, %v5521_v3  ;;  %v5354_v24 = vpop.f32.mrf.mxu0  ;;  %v8965_v18 = vld [vmem:[%s10824_s28 + $0x62c] sm:$0xf0] }
 0x73d   : > { %v5523_v15 = vpop.f32.mrf.mxu1  ;;  %v5355_v10 = vadd.f32 %v5354_v24, %v11127_v7  ;;  %v8962_v24 = vld [vmem:[%s10824_s28 + $0x61c] sm:$0xf] }
 0x73e   : > { %v5859_v12 = vadd.f32 %v5858_v53, %v5690_v23  ;;  %v8966_v23 = vld [vmem:[%s10824_s28 + $0x634] sm:$0xf0] }
 0x73f   : > { %v5524_v35 = vadd.f32 %v5523_v15, %v5355_v10  ;;  %5393 = vmatmul.bf16.gmra.mxu0 %v8150_v8  ;;  %5562 = vmatmul.bf16.gmra.mxu1 %v8154_v54  ;;  %v8183_v8 = vld [vmem:[%s10824_s28 + $0x630] sm:$0xf0]  ;;  %v8189_v54 = vld [vmem:[%s10824_s28 + $0x618] sm:$0xf]  ;;  %v8191_v15 = vld [vmem:[%s10824_s28 + $0x638] sm:$0xf0] }
 0x740   : > { %v11698_v20 = vadd.f32 %v11671_v29, %v5859_v12  ;;  %5731 = vmatmul.bf16.gmra.mxu2 %v8158_v57 }
 0x741   : > { %5900 = vmatmul.bf16.gmra.mxu3 %v8162_v0  ;;  %v8182_v0 = vor.u32 %v8965_v18, %v8181_v36 }
 0x742   : > { %12659 = vst [vmem:[#allocation85_spill] sm:$0xff] %v11698_v20  ;;  %v11701_v3 = vadd.f32 %v6240_v6, %v11698_v20  ;;  %v8961_v6 = vld [vmem:[%s10824_s28 + $0x614] sm:$0xf]  ;;  %v6242_v20 = vld [vmem:[%s11339_s6 + $0xf8] sm:$0xff] }
 0x743   : > { %v5692_v7 = vpop.f32.mrf.mxu2  ;;  %v8186_v10 = vor.u32 %v8961_v6, %v8183_v8 }
 0x744   : > { %v5861_v52 = vpop.f32.mrf.mxu3  ;;  %v5693_v44 = vadd.f32 %v5692_v7, %v5524_v35  ;;  %v5356_v37 = vpop.f32.mrf.mxu0 }
 0x745   : > { %v5525_v2 = vpop.f32.mrf.mxu1  ;;  %v5357_v47 = vadd.f32 %v5356_v37, %v11137_v41  ;;  %v8190_v37 = vor.u32 %v8966_v23, %v8189_v54 }
 0x746   : > { %v5862_v12 = vadd.f32 %v5861_v52, %v5693_v44 }
 0x747   : > { %v5526_v56 = vadd.f32 %v5525_v2, %v5357_v47  ;;  %v8194_v2 = vor.u32 %v8962_v24, %v8191_v15  ;;  %v6243_v24 = vld [vmem:[%s11339_s6 + $0x100] sm:$0xff] }
 0x748   : > { %v11708_v53 = vadd.f32 %v11671_v29, %v5862_v12 }
 0x74a   : > { %12660 = vst [vmem:[#allocation86_spill] sm:$0xff] %v11708_v53  ;;  %v11717_v35 = vadd.f32 %v6241_v49, %v11708_v53 }
 0x74b   : > { %v5694_v57 = vpop.f32.mrf.mxu2 }
 0x74c   : > { %v5863_v41 = vpop.f32.mrf.mxu3  ;;  %v5695_v7 = vadd.f32 %v5694_v57, %v5526_v56  ;;  %v5359_v52 = vpop.f32.mrf.mxu0  ;;  %v8213_v57 = vld [vmem:[%s10824_s28 + $0x650] sm:$0xf] }
 0x74d   : > { %v5528_v44 = vpop.f32.mrf.mxu1  ;;  %v5360_v47 = vadd.f32 %v5359_v52, %v11139_v51  ;;  %v8974_v52 = vld [vmem:[%s10824_s28 + $0x674] sm:$0xf0] }
 0x74e   : > { %v5864_v12 = vadd.f32 %v5863_v41, %v5695_v7  ;;  %v8973_v41 = vld [vmem:[%s10824_s28 + $0x66c] sm:$0xf0]  ;;  %v8221_v7 = vld [vmem:[%s10824_s28 + $0x658] sm:$0xf] }
 0x74f   : > { %v5529_v46 = vadd.f32 %v5528_v44, %v5360_v47  ;;  %5398 = vmatmul.bf16.gmra.mxu0 %v8182_v0  ;;  %5567 = vmatmul.bf16.gmra.mxu1 %v8186_v10  ;;  %v8215_v10 = vld [vmem:[%s10824_s28 + $0x670] sm:$0xf0]  ;;  %v8970_v44 = vld [vmem:[%s10824_s28 + $0x65c] sm:$0xf]  ;;  %v8214_v47 = vor.u32 %v8973_v41, %v8213_v57 }
 0x750   : > { %v11722_v49 = vadd.f32 %v11671_v29, %v5864_v12  ;;  %5736 = vmatmul.bf16.gmra.mxu2 %v8190_v37  ;;  %v8223_v37 = vld [vmem:[%s10824_s28 + $0x678] sm:$0xf0] }
 0x751   : > { %5905 = vmatmul.bf16.gmra.mxu3 %v8194_v2 }
 0x752   : > { %12661 = vst [vmem:[#allocation87_spill] sm:$0xff] %v11722_v49  ;;  %v11725_v56 = vadd.f32 %v6242_v20, %v11722_v49  ;;  %v8969_v20 = vld [vmem:[%s10824_s28 + $0x654] sm:$0xf]  ;;  %v6244_v49 = vld [vmem:[%s11339_s6 + $0x108] sm:$0xff] }
 0x753   : > { %v5697_v51 = vpop.f32.mrf.mxu2  ;;  %v8218_v12 = vor.u32 %v8969_v20, %v8215_v10 }
 0x754   : > { %12662 = vst [vmem:[#allocation88_spill] sm:$0xff] %v11725_v56  ;;  %v5866_v36 = vpop.f32.mrf.mxu3  ;;  %v5698_v18 = vadd.f32 %v5697_v51, %v5529_v46  ;;  %v5361_v6 = vpop.f32.mrf.mxu0 }
 0x755   : > { %v5530_v8 = vpop.f32.mrf.mxu1  ;;  %v5362_v54 = vadd.f32 %v5361_v6, %v11149_v27  ;;  %v8222_v6 = vor.u32 %v8974_v52, %v8221_v7 }
 0x756   : > { %v5867_v23 = vadd.f32 %v5866_v36, %v5698_v18 }
 0x757   : > { %v5531_v15 = vadd.f32 %v5530_v8, %v5362_v54  ;;  %v8226_v8 = vor.u32 %v8970_v44, %v8223_v37  ;;  %v6245_v44 = vld [vmem:[%s11339_s6 + $0x110] sm:$0xff] }
 0x758   : > { %v11732_v0 = vadd.f32 %v11671_v29, %v5867_v23 }
 0x75a   : > { %12663 = vst [vmem:[#allocation89_spill] sm:$0xff] %v11732_v0  ;;  %v11741_v46 = vadd.f32 %v6243_v24, %v11732_v0 }
 0x75b   : > { %v5699_v2 = vpop.f32.mrf.mxu2 }
 0x75c   : > { %v5868_v27 = vpop.f32.mrf.mxu3  ;;  %v5700_v51 = vadd.f32 %v5699_v2, %v5531_v15  ;;  %v5364_v36 = vpop.f32.mrf.mxu0  ;;  %v8245_v2 = vld [vmem:[%s10824_s28 + $0x690] sm:$0xf] }
 0x75d   : > { %v5533_v18 = vpop.f32.mrf.mxu1  ;;  %v5365_v54 = vadd.f32 %v5364_v36, %v11151_v42  ;;  %v8982_v36 = vld [vmem:[%s10824_s28 + $0x6b4] sm:$0xf0] }
 0x75e   : > { %v5869_v23 = vadd.f32 %v5868_v27, %v5700_v51  ;;  %v8981_v27 = vld [vmem:[%s10824_s28 + $0x6ac] sm:$0xf0]  ;;  %v8253_v51 = vld [vmem:[%s10824_s28 + $0x698] sm:$0xf] }
 0x75f   : > { %v5534_v53 = vadd.f32 %v5533_v18, %v5365_v54  ;;  %5403 = vmatmul.bf16.gmra.mxu0 %v8214_v47  ;;  %5572 = vmatmul.bf16.gmra.mxu1 %v8218_v12  ;;  %v8247_v12 = vld [vmem:[%s10824_s28 + $0x6b0] sm:$0xf0]  ;;  %v8978_v18 = vld [vmem:[%s10824_s28 + $0x69c] sm:$0xf]  ;;  %v8246_v54 = vor.u32 %v8981_v27, %v8245_v2 }
 0x760   : > { %v11746_v24 = vadd.f32 %v11671_v29, %v5869_v23  ;;  %5741 = vmatmul.bf16.gmra.mxu2 %v8222_v6  ;;  %v8255_v6 = vld [vmem:[%s10824_s28 + $0x6b8] sm:$0xf0] }
 0x761   : > { %5910 = vmatmul.bf16.gmra.mxu3 %v8226_v8 }
 0x762   : > { %12664 = vst [vmem:[#allocation90_spill] sm:$0xff] %v11746_v24  ;;  %v11749_v15 = vadd.f32 %v6244_v49, %v11746_v24  ;;  %v8977_v49 = vld [vmem:[%s10824_s28 + $0x694] sm:$0xf]  ;;  %v6246_v24 = vld [vmem:[%s11339_s6 + $0x118] sm:$0xff] }
 0x763   : > { %v5702_v42 = vpop.f32.mrf.mxu2  ;;  %v8250_v23 = vor.u32 %v8977_v49, %v8247_v12 }
 0x764   : > { %v5871_v57 = vpop.f32.mrf.mxu3  ;;  %v5703_v41 = vadd.f32 %v5702_v42, %v5534_v53  ;;  %v5366_v20 = vpop.f32.mrf.mxu0 }
 0x765   : > { %v5535_v10 = vpop.f32.mrf.mxu1  ;;  %v5367_v7 = vadd.f32 %v5366_v20, %v11161_v16  ;;  %v8254_v20 = vor.u32 %v8982_v36, %v8253_v51 }
 0x766   : > { %v5872_v52 = vadd.f32 %v5871_v57, %v5703_v41 }
 0x767   : > { %v5536_v37 = vadd.f32 %v5535_v10, %v5367_v7  ;;  %v8258_v10 = vor.u32 %v8978_v18, %v8255_v6  ;;  %v6247_v18 = vld [vmem:[%s11339_s6 + $0x120] sm:$0xff] }
 0x768   : > { %v11756_v47 = vadd.f32 %v11671_v29, %v5872_v52 }
 0x76a   : > { %12665 = vst [vmem:[#allocation91_spill] sm:$0xff] %v11756_v47  ;;  %v11765_v53 = vadd.f32 %v6245_v44, %v11756_v47 }
 0x76b   : > { %v5704_v8 = vpop.f32.mrf.mxu2 }
 0x76c   : > { %v5873_v16 = vpop.f32.mrf.mxu3  ;;  %v5705_v42 = vadd.f32 %v5704_v8, %v5536_v37  ;;  %v5369_v57 = vpop.f32.mrf.mxu0  ;;  %v8277_v8 = vld [vmem:[%s10824_s28 + $0x6d0] sm:$0xf] }
 0x76d   : > { %v5538_v41 = vpop.f32.mrf.mxu1  ;;  %v5370_v7 = vadd.f32 %v5369_v57, %v11163_v39  ;;  %v8990_v57 = vld [vmem:[%s10824_s28 + $0x6f4] sm:$0xf0] }
 0x76e   : > { %v5874_v52 = vadd.f32 %v5873_v16, %v5705_v42  ;;  %v8989_v16 = vld [vmem:[%s10824_s28 + $0x6ec] sm:$0xf0]  ;;  %v8285_v42 = vld [vmem:[%s10824_s28 + $0x6d8] sm:$0xf] }
 0x76f   : > { %v5539_v0 = vadd.f32 %v5538_v41, %v5370_v7  ;;  %5408 = vmatmul.bf16.gmra.mxu0 %v8246_v54  ;;  %5577 = vmatmul.bf16.gmra.mxu1 %v8250_v23  ;;  %v8279_v23 = vld [vmem:[%s10824_s28 + $0x6f0] sm:$0xf0]  ;;  %v8986_v41 = vld [vmem:[%s10824_s28 + $0x6dc] sm:$0xf]  ;;  %v8278_v7 = vor.u32 %v8989_v16, %v8277_v8 }
 0x770   : > { %v11770_v44 = vadd.f32 %v11671_v29, %v5874_v52  ;;  %5746 = vmatmul.bf16.gmra.mxu2 %v8254_v20  ;;  %v8287_v20 = vld [vmem:[%s10824_s28 + $0x6f8] sm:$0xf0] }
 0x771   : > { %5915 = vmatmul.bf16.gmra.mxu3 %v8258_v10 }
 0x772   : > { %12666 = vst [vmem:[#allocation92_spill] sm:$0xff] %v11770_v44  ;;  %v11773_v37 = vadd.f32 %v6246_v24, %v11770_v44  ;;  %v8985_v24 = vld [vmem:[%s10824_s28 + $0x6d4] sm:$0xf]  ;;  %v6248_v44 = vld [vmem:[%s11339_s6 + $0x128] sm:$0xff] }
 0x773   : > { %v5707_v39 = vpop.f32.mrf.mxu2  ;;  %v8282_v52 = vor.u32 %v8985_v24, %v8279_v23 }
 0x774   : > { %v5876_v2 = vpop.f32.mrf.mxu3  ;;  %v5708_v27 = vadd.f32 %v5707_v39, %v5539_v0  ;;  %v5371_v49 = vpop.f32.mrf.mxu0 }
 0x775   : > { %v5540_v12 = vpop.f32.mrf.mxu1  ;;  %v5372_v51 = vadd.f32 %v5371_v49, %v11173_v21  ;;  %v8286_v49 = vor.u32 %v8990_v57, %v8285_v42 }
 0x776   : > { %v5877_v36 = vadd.f32 %v5876_v2, %v5708_v27 }
 0x777   : > { %v5541_v6 = vadd.f32 %v5540_v12, %v5372_v51  ;;  %v8290_v12 = vor.u32 %v8986_v41, %v8287_v20  ;;  %v6249_v41 = vld [vmem:[%s11339_s6 + $0x130] sm:$0xff] }
 0x778   : > { %v11780_v54 = vadd.f32 %v11671_v29, %v5877_v36 }
 0x77a   : > { %12667 = vst [vmem:[#allocation93_spill] sm:$0xff] %v11780_v54  ;;  %v11789_v0 = vadd.f32 %v6247_v18, %v11780_v54  ;;  %v6250_v54 = vld [vmem:[%s11339_s6 + $0x138] sm:$0xff] }
 0x77b   : > { %v5709_v10 = vpop.f32.mrf.mxu2 }
 0x77c   : > { %v5878_v21 = vpop.f32.mrf.mxu3  ;;  %v5710_v39 = vadd.f32 %v5709_v10, %v5541_v6  ;;  %v5374_v2 = vpop.f32.mrf.mxu0  ;;  %v8309_v10 = vld [vmem:[%s10824_s28 + $0x710] sm:$0xf] }
 0x77d   : > { %v5543_v27 = vpop.f32.mrf.mxu1  ;;  %v5375_v51 = vadd.f32 %v5374_v2, %v11175_v38  ;;  %v8998_v2 = vld [vmem:[%s10824_s28 + $0x734] sm:$0xf0] }
 0x77e   : > { %v5879_v36 = vadd.f32 %v5878_v21, %v5710_v39  ;;  %v8997_v21 = vld [vmem:[%s10824_s28 + $0x72c] sm:$0xf0]  ;;  %v8317_v39 = vld [vmem:[%s10824_s28 + $0x718] sm:$0xf] }
 0x77f   : > { %v5544_v47 = vadd.f32 %v5543_v27, %v5375_v51  ;;  %5413 = vmatmul.bf16.gmra.mxu0 %v8278_v7  ;;  %5582 = vmatmul.bf16.gmra.mxu1 %v8282_v52  ;;  %v8311_v52 = vld [vmem:[%s10824_s28 + $0x730] sm:$0xf0]  ;;  %v8994_v27 = vld [vmem:[%s10824_s28 + $0x71c] sm:$0xf]  ;;  %v8310_v51 = vor.u32 %v8997_v21, %v8309_v10 }
 0x780   : > { %v11794_v18 = vadd.f32 %v11671_v29, %v5879_v36  ;;  %5751 = vmatmul.bf16.gmra.mxu2 %v8286_v49  ;;  %v8319_v49 = vld [vmem:[%s10824_s28 + $0x738] sm:$0xf0] }
 0x781   : > { %5920 = vmatmul.bf16.gmra.mxu3 %v8290_v12 }
 0x782   : > { %12668 = vst [vmem:[#allocation94_spill] sm:$0xff] %v11794_v18  ;;  %v11797_v6 = vadd.f32 %v6248_v44, %v11794_v18  ;;  %v8993_v44 = vld [vmem:[%s10824_s28 + $0x714] sm:$0xf] }
 0x783   : > { %v5712_v38 = vpop.f32.mrf.mxu2  ;;  %v8314_v36 = vor.u32 %v8993_v44, %v8311_v52 }
 0x784   : > { %12669 = vst [vmem:[#allocation95_spill] sm:$0xff] %v11797_v6  ;;  %v5881_v8 = vpop.f32.mrf.mxu3  ;;  %v5713_v16 = vadd.f32 %v5712_v38, %v5544_v47  ;;  %v5376_v24 = vpop.f32.mrf.mxu0 }
 0x785   : > { %v5545_v23 = vpop.f32.mrf.mxu1  ;;  %v5377_v42 = vadd.f32 %v5376_v24, %v11185_v17  ;;  %v8318_v24 = vor.u32 %v8998_v2, %v8317_v39  ;;  %v12675_v2 = vld [vmem:[#allocation32_spill] sm:$0xff] }
 0x786   : > { %v5882_v57 = vadd.f32 %v5881_v8, %v5713_v16 }
 0x787   : > { %v5546_v20 = vadd.f32 %v5545_v23, %v5377_v42  ;;  %v8322_v23 = vor.u32 %v8994_v27, %v8319_v49  ;;  %v12672_v42 = vld [vmem:[#allocation31_spill] sm:$0xff] }
 0x788   : > { %v11804_v7 = vadd.f32 %v11671_v29, %v5882_v57  ;;  %v6251_v49 = vld [vmem:[%s11339_s6 + $0x140] sm:$0xff] }
 0x78a   : > { %12670 = vst [vmem:[#allocation96_spill] sm:$0xff] %v11804_v7  ;;  %v11813_v47 = vadd.f32 %v6249_v41, %v11804_v7 }
 0x78b   : > { %v5714_v12 = vpop.f32.mrf.mxu2 }
 0x78c   : > { %12671 = vst [vmem:[#allocation97_spill] sm:$0xff] %v11813_v47  ;;  %v5883_v17 = vpop.f32.mrf.mxu3  ;;  %v5715_v38 = vadd.f32 %v5714_v12, %v5546_v20  ;;  %v5379_v8 = vpop.f32.mrf.mxu0 }
 0x78d   : > { %v5548_v16 = vpop.f32.mrf.mxu1  ;;  %v5380_v57 = vadd.f32 %v5379_v8, %v12672_v42  ;;  %v8349_v8 = vld [vmem:[%s10824_s28 + $0x758] sm:$0xf] }
 0x78e   : > { %v5884_v18 = vadd.f32 %v5883_v17, %v5715_v38  ;;  %v8341_v17 = vld [vmem:[%s10824_s28 + $0x750] sm:$0xf]  ;;  %v8343_v38 = vld [vmem:[%s10824_s28 + $0x770] sm:$0xf0] }
 0x78f   : > { %v5549_v6 = vadd.f32 %v5548_v16, %v5380_v57  ;;  %5418 = vmatmul.bf16.gmra.mxu0 %v8310_v51  ;;  %5587 = vmatmul.bf16.gmra.mxu1 %v8314_v36  ;;  %v9005_v51 = vld [vmem:[%s10824_s28 + $0x76c] sm:$0xf0]  ;;  %v9006_v16 = vld [vmem:[%s10824_s28 + $0x774] sm:$0xf0] }
 0x790   : > { %v11818_v41 = vadd.f32 %v11671_v29, %v5884_v18  ;;  %5756 = vmatmul.bf16.gmra.mxu2 %v8318_v24  ;;  %v9002_v24 = vld [vmem:[%s10824_s28 + $0x75c] sm:$0xf] }
 0x791   : > { %5925 = vmatmul.bf16.gmra.mxu3 %v8322_v23  ;;  %v8351_v23 = vld [vmem:[%s10824_s28 + $0x778] sm:$0xf0] }
 0x792   : > { %12673 = vst [vmem:[#allocation31_spill] sm:$0xff] %v11818_v41  ;;  %v11821_v20 = vadd.f32 %v6250_v54, %v11818_v41  ;;  %v9001_v54 = vld [vmem:[%s10824_s28 + $0x754] sm:$0xf] }
 0x793   : > { %v5717_v10 = vpop.f32.mrf.mxu2 }
 0x794   : > { %12674 = vst [vmem:[#allocation98_spill] sm:$0xff] %v11821_v20  ;;  %v5886_v21 = vpop.f32.mrf.mxu3  ;;  %v5718_v44 = vadd.f32 %v5717_v10, %v5549_v6  ;;  %v5381_v52 = vpop.f32.mrf.mxu0  ;;  %v8342_v10 = vor.u32 %v9005_v51, %v8341_v17  ;;  %v6252_v20 = vld [vmem:[%s11339_s6 + $0x148] sm:$0xff] }
 0x795   : > { %v5550_v39 = vpop.f32.mrf.mxu1  ;;  %v5382_v27 = vadd.f32 %v5381_v52, %v12675_v2  ;;  %v8350_v2 = vor.u32 %v9006_v16, %v8349_v8  ;;  %v12681_v8 = vld [vmem:[#allocation34_spill] sm:$0xff] }
 0x796   : > { %v5887_v18 = vadd.f32 %v5886_v21, %v5718_v44  ;;  %v8346_v21 = vor.u32 %v9001_v54, %v8343_v38 }
 0x797   : > { %v5551_v12 = vadd.f32 %v5550_v39, %v5382_v27  ;;  %v8354_v27 = vor.u32 %v9002_v24, %v8351_v23  ;;  %v6253_v24 = vld [vmem:[%s11339_s6 + $0x150] sm:$0xff] }
 0x798   : > { %v11828_v36 = vadd.f32 %v11671_v29, %v5887_v18  ;;  %v12678_v18 = vld [vmem:[#allocation33_spill] sm:$0xff] }
 0x79a   : > { %12676 = vst [vmem:[#allocation32_spill] sm:$0xff] %v11828_v36  ;;  %v11837_v6 = vadd.f32 %v6251_v49, %v11828_v36 }
 0x79b   : > { %v5719_v42 = vpop.f32.mrf.mxu2 }
 0x79c   : > { %12677 = vst [vmem:[#allocation99_spill] sm:$0xff] %v11837_v6  ;;  %v5888_v57 = vpop.f32.mrf.mxu3  ;;  %v5720_v44 = vadd.f32 %v5719_v42, %v5551_v12  ;;  %v5384_v52 = vpop.f32.mrf.mxu0  ;;  %v8373_v42 = vld [vmem:[%s10824_s28 + $0x790] sm:$0xf] }
 0x79d   : > { %v5553_v39 = vpop.f32.mrf.mxu1  ;;  %v5385_v41 = vadd.f32 %v5384_v52, %v12678_v18  ;;  %v9014_v52 = vld [vmem:[%s10824_s28 + $0x7b4] sm:$0xf0] }
 0x79e   : > { %v5889_v7 = vadd.f32 %v5888_v57, %v5720_v44  ;;  %v9013_v57 = vld [vmem:[%s10824_s28 + $0x7ac] sm:$0xf0]  ;;  %v8381_v44 = vld [vmem:[%s10824_s28 + $0x798] sm:$0xf] }
 0x79f   : > { %v5554_v47 = vadd.f32 %v5553_v39, %v5385_v41  ;;  %5423 = vmatmul.bf16.gmra.mxu0 %v8342_v10  ;;  %5592 = vmatmul.bf16.gmra.mxu1 %v8346_v21  ;;  %v8375_v21 = vld [vmem:[%s10824_s28 + $0x7b0] sm:$0xf0]  ;;  %v9010_v39 = vld [vmem:[%s10824_s28 + $0x79c] sm:$0xf] }
 0x7a0   : > { %v11842_v49 = vadd.f32 %v11671_v29, %v5889_v7  ;;  %5761 = vmatmul.bf16.gmra.mxu2 %v8350_v2  ;;  %v8383_v2 = vld [vmem:[%s10824_s28 + $0x7b8] sm:$0xf0] }
 0x7a1   : > { %5930 = vmatmul.bf16.gmra.mxu3 %v8354_v27 }
 0x7a2   : > { %12679 = vst [vmem:[#allocation33_spill] sm:$0xff] %v11842_v49  ;;  %v11845_v12 = vadd.f32 %v6252_v20, %v11842_v49  ;;  %v9009_v20 = vld [vmem:[%s10824_s28 + $0x794] sm:$0xf] }
 0x7a3   : > { %v5722_v17 = vpop.f32.mrf.mxu2 }
 0x7a4   : > { %12680 = vst [vmem:[#allocation100_spill] sm:$0xff] %v11845_v12  ;;  %v5891_v51 = vpop.f32.mrf.mxu3  ;;  %v5723_v41 = vadd.f32 %v5722_v17, %v5554_v47  ;;  %v5386_v54 = vpop.f32.mrf.mxu0  ;;  %v8374_v17 = vor.u32 %v9013_v57, %v8373_v42  ;;  %v6254_v12 = vld [vmem:[%s11339_s6 + $0x158] sm:$0xff] }
 0x7a5   : > { %v5555_v38 = vpop.f32.mrf.mxu1  ;;  %v5387_v16 = vadd.f32 %v5386_v54, %v12681_v8  ;;  %v8382_v8 = vor.u32 %v9014_v52, %v8381_v44  ;;  %v12687_v44 = vld [vmem:[#allocation36_spill] sm:$0xff] }
 0x7a6   : > { %v5892_v7 = vadd.f32 %v5891_v51, %v5723_v41  ;;  %v8378_v51 = vor.u32 %v9009_v20, %v8375_v21 }
 0x7a7   : > { %v5556_v23 = vadd.f32 %v5555_v38, %v5387_v16  ;;  %v8386_v16 = vor.u32 %v9010_v39, %v8383_v2  ;;  %v6255_v39 = vld [vmem:[%s11339_s6 + $0x160] sm:$0xff] }
 0x7a8   : > { %v11852_v10 = vadd.f32 %v11671_v29, %v5892_v7  ;;  %v12684_v7 = vld [vmem:[#allocation35_spill] sm:$0xff] }
 0x7aa   : > { %12682 = vst [vmem:[#allocation34_spill] sm:$0xff] %v11852_v10  ;;  %v11861_v47 = vadd.f32 %v6253_v24, %v11852_v10 }
 0x7ab   : > { %v5724_v27 = vpop.f32.mrf.mxu2 }
 0x7ac   : > { %12683 = vst [vmem:[#allocation101_spill] sm:$0xff] %v11861_v47  ;;  %v5893_v18 = vpop.f32.mrf.mxu3  ;;  %v5725_v41 = vadd.f32 %v5724_v27, %v5556_v23  ;;  %v5389_v54 = vpop.f32.mrf.mxu0  ;;  %v8405_v27 = vld [vmem:[%s10824_s28 + $0x7d0] sm:$0xf] }
 0x7ad   : > { %v5558_v38 = vpop.f32.mrf.mxu1  ;;  %v5390_v49 = vadd.f32 %v5389_v54, %v12684_v7  ;;  %v9022_v54 = vld [vmem:[%s10824_s28 + $0x7f4] sm:$0xf0] }
 0x7ae   : > { %v5894_v36 = vadd.f32 %v5893_v18, %v5725_v41  ;;  %v9021_v18 = vld [vmem:[%s10824_s28 + $0x7ec] sm:$0xf0]  ;;  %v8413_v41 = vld [vmem:[%s10824_s28 + $0x7d8] sm:$0xf] }
 0x7af   : > { %v5559_v6 = vadd.f32 %v5558_v38, %v5390_v49  ;;  %5428 = vmatmul.bf16.gmra.mxu0 %v8374_v17  ;;  %5597 = vmatmul.bf16.gmra.mxu1 %v8378_v51  ;;  %v8407_v51 = vld [vmem:[%s10824_s28 + $0x7f0] sm:$0xf0]  ;;  %v9018_v38 = vld [vmem:[%s10824_s28 + $0x7dc] sm:$0xf] }
 0x7b0   : > { %v11866_v24 = vadd.f32 %v11671_v29, %v5894_v36  ;;  %5766 = vmatmul.bf16.gmra.mxu2 %v8382_v8  ;;  %v8415_v8 = vld [vmem:[%s10824_s28 + $0x7f8] sm:$0xf0] }
 0x7b1   : > { %5935 = vmatmul.bf16.gmra.mxu3 %v8386_v16 }
 0x7b2   : > { %12685 = vst [vmem:[#allocation35_spill] sm:$0xff] %v11866_v24  ;;  %v11869_v23 = vadd.f32 %v6254_v12, %v11866_v24  ;;  %v9017_v12 = vld [vmem:[%s10824_s28 + $0x7d4] sm:$0xf] }
 0x7b3   : > { %v5727_v42 = vpop.f32.mrf.mxu2 }
 0x7b4   : > { %12686 = vst [vmem:[#allocation102_spill] sm:$0xff] %v11869_v23  ;;  %v5896_v57 = vpop.f32.mrf.mxu3  ;;  %v5728_v49 = vadd.f32 %v5727_v42, %v5559_v6  ;;  %v5391_v20 = vpop.f32.mrf.mxu0  ;;  %v8406_v42 = vor.u32 %v9021_v18, %v8405_v27  ;;  %v6256_v23 = vld [vmem:[%s11339_s6 + $0x168] sm:$0xff] }
 0x7b5   : > { %v5560_v21 = vpop.f32.mrf.mxu1  ;;  %v5392_v52 = vadd.f32 %v5391_v20, %v12687_v44  ;;  %v8414_v44 = vor.u32 %v9022_v54, %v8413_v41  ;;  %v12691_v54 = vld [vmem:[#allocation38_spill] sm:$0xff] }
 0x7b6   : > { %v5897_v36 = vadd.f32 %v5896_v57, %v5728_v49  ;;  %v8410_v57 = vor.u32 %v9017_v12, %v8407_v51 }
 0x7b7   : > { %v5561_v2 = vadd.f32 %v5560_v21, %v5392_v52  ;;  %v8418_v52 = vor.u32 %v9018_v38, %v8415_v8 }
 0x7b8   : > { %v11876_v17 = vadd.f32 %v11671_v29, %v5897_v36  ;;  %v12689_v36 = vld [vmem:[#allocation37_spill] sm:$0xff] }
 0x7ba   : > { %12688 = vst [vmem:[#allocation36_spill] sm:$0xff] %v11876_v17  ;;  %v11885_v6 = vadd.f32 %v6255_v39, %v11876_v17  ;;  %v6262_v17 = vld [vmem:[%s11339_s6 + $0x198] sm:$0xff] }
 0x7bb   : > { %v5729_v16 = vpop.f32.mrf.mxu2 }
 0x7bc   : > { %v5898_v7 = vpop.f32.mrf.mxu3  ;;  %v5730_v49 = vadd.f32 %v5729_v16, %v5561_v2  ;;  %v5394_v20 = vpop.f32.mrf.mxu0 }
 0x7bd   : > { %v5563_v21 = vpop.f32.mrf.mxu1  ;;  %v5395_v24 = vadd.f32 %v5394_v20, %v12689_v36  ;;  %v12693_v20 = vld [vmem:[#allocation39_spill] sm:$0xff] }
 0x7be   : > { %v5899_v10 = vadd.f32 %v5898_v7, %v5730_v49 }
 0x7bf   : > { %v5564_v47 = vadd.f32 %v5563_v21, %v5395_v24  ;;  %5433 = vmatmul.bf16.gmra.mxu0 %v8406_v42  ;;  %5602 = vmatmul.bf16.gmra.mxu1 %v8410_v57  ;;  %v6257_v24 = vld [vmem:[%s11339_s6 + $0x170] sm:$0xff] }
 0x7c0   : > { %v11890_v39 = vadd.f32 %v11671_v29, %v5899_v10  ;;  %5771 = vmatmul.bf16.gmra.mxu2 %v8414_v44 }
 0x7c1   : > { %5940 = vmatmul.bf16.gmra.mxu3 %v8418_v52  ;;  %v6258_v52 = vld [vmem:[%s11339_s6 + $0x178] sm:$0xff] }
 0x7c2   : > { %12690 = vst [vmem:[#allocation37_spill] sm:$0xff] %v11890_v39  ;;  %v11893_v27 = vadd.f32 %v6256_v23, %v11890_v39  ;;  %v6261_v39 = vld [vmem:[%s11339_s6 + $0x190] sm:$0xff] }
 0x7c3   : > { %v5732_v2 = vpop.f32.mrf.mxu2 }
 0x7c4   : > { %v5901_v18 = vpop.f32.mrf.mxu3  ;;  %v5733_v12 = vadd.f32 %v5732_v2, %v5564_v47  ;;  %v5396_v51 = vpop.f32.mrf.mxu0 }
 0x7c5   : > { %v5565_v41 = vpop.f32.mrf.mxu1  ;;  %v5397_v38 = vadd.f32 %v5396_v51, %v12691_v54 }
 0x7c6   : > { %v5902_v8 = vadd.f32 %v5901_v18, %v5733_v12 }
 0x7c7   : > { %v5566_v16 = vadd.f32 %v5565_v41, %v5397_v38 }
 0x7c8   : > { %v11898_v7 = vadd.f32 %v11671_v29, %v5902_v8  ;;  %v12695_v8 = vld [vmem:[#allocation40_spill] sm:$0xff] }
 0x7ca   : > { %12692 = vst [vmem:[#allocation38_spill] sm:$0xff] %v11898_v7  ;;  %v11901_v10 = vadd.f32 %v6257_v24, %v11898_v7  ;;  %v6260_v7 = vld [vmem:[%s11339_s6 + $0x188] sm:$0xff] }
 0x7cb   : > { %v5734_v42 = vpop.f32.mrf.mxu2 }
 0x7cc   : > { %v5903_v23 = vpop.f32.mrf.mxu3  ;;  %v5735_v57 = vadd.f32 %v5734_v42, %v5566_v16  ;;  %v5399_v49 = vpop.f32.mrf.mxu0  ;;  %v6259_v42 = vld [vmem:[%s11339_s6 + $0x180] sm:$0xff] }
 0x7cd   : > { %v5568_v47 = vpop.f32.mrf.mxu1  ;;  %v5400_v21 = vadd.f32 %v5399_v49, %v12693_v20 }
 0x7ce   : > { %v5904_v44 = vadd.f32 %v5903_v23, %v5735_v57 }
 0x7cf   : > { %v5569_v36 = vadd.f32 %v5568_v47, %v5400_v21 }
 0x7d0   : > { %v11906_v2 = vadd.f32 %v11671_v29, %v5904_v44 }
 0x7d2   : > { %12694 = vst [vmem:[#allocation39_spill] sm:$0xff] %v11906_v2  ;;  %v11909_v18 = vadd.f32 %v6258_v52, %v11906_v2 }
 0x7d3   : > { %v5737_v12 = vpop.f32.mrf.mxu2 }
 0x7d4   : > { %v5906_v51 = vpop.f32.mrf.mxu3  ;;  %v5738_v41 = vadd.f32 %v5737_v12, %v5569_v36  ;;  %v5401_v54 = vpop.f32.mrf.mxu0  ;;  %v12697_v36 = vld [vmem:[#allocation41_spill] sm:$0xff] }
 0x7d5   : > { %v5570_v38 = vpop.f32.mrf.mxu1  ;;  %v5402_v24 = vadd.f32 %v5401_v54, %v12695_v8 }
 0x7d6   : > { %v5907_v16 = vadd.f32 %v5906_v51, %v5738_v41 }
 0x7d7   : > { %v5571_v49 = vadd.f32 %v5570_v38, %v5402_v24 }
 0x7d8   : > { %v11914_v23 = vadd.f32 %v11671_v29, %v5907_v16 }
 0x7da   : > { %12696 = vst [vmem:[#allocation40_spill] sm:$0xff] %v11914_v23  ;;  %v11917_v57 = vadd.f32 %v6259_v42, %v11914_v23 }
 0x7db   : > { %v5739_v47 = vpop.f32.mrf.mxu2 }
 0x7dc   : > { %v5908_v20 = vpop.f32.mrf.mxu3  ;;  %v5740_v21 = vadd.f32 %v5739_v47, %v5571_v49  ;;  %v5404_v44 = vpop.f32.mrf.mxu0  ;;  %v12699_v49 = vld [vmem:[#allocation42_spill] sm:$0xff] }
 0x7dd   : > { %v5573_v52 = vpop.f32.mrf.mxu1  ;;  %v5405_v12 = vadd.f32 %v5404_v44, %v12697_v36 }
 0x7de   : > { %v5909_v2 = vadd.f32 %v5908_v20, %v5740_v21 }
 0x7df   : > { %v5574_v54 = vadd.f32 %v5573_v52, %v5405_v12 }
 0x7e0   : > { %v11922_v51 = vadd.f32 %v11671_v29, %v5909_v2 }
 0x7e2   : > { %12698 = vst [vmem:[#allocation41_spill] sm:$0xff] %v11922_v51  ;;  %v11925_v41 = vadd.f32 %v6260_v7, %v11922_v51 }
 0x7e3   : > { %v5742_v38 = vpop.f32.mrf.mxu2 }
 0x7e4   : > { %v5911_v8 = vpop.f32.mrf.mxu3  ;;  %v5743_v24 = vadd.f32 %v5742_v38, %v5574_v54  ;;  %v5406_v16 = vpop.f32.mrf.mxu0  ;;  %v12702_v54 = vld [vmem:[#allocation43_spill] sm:$0xff] }
 0x7e5   : > { %v5575_v42 = vpop.f32.mrf.mxu1  ;;  %v5407_v47 = vadd.f32 %v5406_v16, %v12699_v49 }
 0x7e6   : > { %v5912_v23 = vadd.f32 %v5911_v8, %v5743_v24 }
 0x7e7   : > { %v5576_v44 = vadd.f32 %v5575_v42, %v5407_v47 }
 0x7e8   : > { %v11930_v20 = vadd.f32 %v11671_v29, %v5912_v23 }
 0x7ea   : > { %12700 = vst [vmem:[#allocation42_spill] sm:$0xff] %v11930_v20  ;;  %v11933_v2 = vadd.f32 %v6261_v39, %v11930_v20 }
 0x7eb   : > { %v5744_v21 = vpop.f32.mrf.mxu2 }
 0x7ec   : > { %12701 = vst [vmem:[#allocation103_spill] sm:$0xff] %v11933_v2  ;;  %v5913_v7 = vpop.f32.mrf.mxu3  ;;  %v5745_v52 = vadd.f32 %v5744_v21, %v5576_v44  ;;  %v5409_v36 = vpop.f32.mrf.mxu0  ;;  %v12705_v44 = vld [vmem:[#allocation44_spill] sm:$0xff]  ;;  %v6263_v2 = vld [vmem:[%s11339_s6 + $0x1a0] sm:$0xff] }
 0x7ed   : > { %v5578_v12 = vpop.f32.mrf.mxu1  ;;  %v5410_v38 = vadd.f32 %v5409_v36, %v12702_v54 }
 0x7ee   : > { %v5914_v51 = vadd.f32 %v5913_v7, %v5745_v52 }
 0x7ef   : > { %v5579_v16 = vadd.f32 %v5578_v12, %v5410_v38 }
 0x7f0   : > { %v11938_v8 = vadd.f32 %v11671_v29, %v5914_v51 }
 0x7f2   : > { %12703 = vst [vmem:[#allocation43_spill] sm:$0xff] %v11938_v8  ;;  %v11941_v23 = vadd.f32 %v6262_v17, %v11938_v8 }
 0x7f3   : > { %v5747_v24 = vpop.f32.mrf.mxu2 }
 0x7f4   : > { %12704 = vst [vmem:[#allocation104_spill] sm:$0xff] %v11941_v23  ;;  %v5916_v39 = vpop.f32.mrf.mxu3  ;;  %v5748_v42 = vadd.f32 %v5747_v24, %v5579_v16  ;;  %v5411_v49 = vpop.f32.mrf.mxu0  ;;  %v12708_v16 = vld [vmem:[#allocation45_spill] sm:$0xff]  ;;  %v6264_v23 = vld [vmem:[%s11339_s6 + $0x1a8] sm:$0xff] }
 0x7f5   : > { %v5580_v47 = vpop.f32.mrf.mxu1  ;;  %v5412_v21 = vadd.f32 %v5411_v49, %v12705_v44 }
 0x7f6   : > { %v5917_v20 = vadd.f32 %v5916_v39, %v5748_v42 }
 0x7f7   : > { %v5581_v36 = vadd.f32 %v5580_v47, %v5412_v21 }
 0x7f8   : > { %v11946_v7 = vadd.f32 %v11671_v29, %v5917_v20 }
 0x7fa   : > { %12706 = vst [vmem:[#allocation44_spill] sm:$0xff] %v11946_v7  ;;  %v11949_v51 = vadd.f32 %v6263_v2, %v11946_v7 }
 0x7fb   : > { %v5749_v52 = vpop.f32.mrf.mxu2 }
 0x7fc   : > { %12707 = vst [vmem:[#allocation105_spill] sm:$0xff] %v11949_v51  ;;  %v5918_v17 = vpop.f32.mrf.mxu3  ;;  %v5750_v12 = vadd.f32 %v5749_v52, %v5581_v36  ;;  %v5414_v54 = vpop.f32.mrf.mxu0  ;;  %v12711_v36 = vld [vmem:[#allocation46_spill] sm:$0xff]  ;;  %v6265_v51 = vld [vmem:[%s11339_s6 + $0x1b0] sm:$0xff] }
 0x7fd   : > { %v5583_v38 = vpop.f32.mrf.mxu1  ;;  %v5415_v24 = vadd.f32 %v5414_v54, %v12708_v16 }
 0x7fe   : > { %v5919_v8 = vadd.f32 %v5918_v17, %v5750_v12 }
 0x7ff   : > { %v5584_v49 = vadd.f32 %v5583_v38, %v5415_v24 }
 0x800   : > { %v11954_v39 = vadd.f32 %v11671_v29, %v5919_v8 }
 0x802   : > { %12709 = vst [vmem:[#allocation45_spill] sm:$0xff] %v11954_v39  ;;  %v11957_v20 = vadd.f32 %v6264_v23, %v11954_v39 }
 0x803   : > { %v5752_v42 = vpop.f32.mrf.mxu2 }
 0x804   : > { %12710 = vst [vmem:[#allocation106_spill] sm:$0xff] %v11957_v20  ;;  %v5921_v2 = vpop.f32.mrf.mxu3  ;;  %v5753_v47 = vadd.f32 %v5752_v42, %v5584_v49  ;;  %v5416_v44 = vpop.f32.mrf.mxu0  ;;  %v12713_v42 = vld [vmem:[#allocation47_spill] sm:$0xff]  ;;  %v6266_v20 = vld [vmem:[%s11339_s6 + $0x1b8] sm:$0xff] }
 0x805   : > { %v5585_v21 = vpop.f32.mrf.mxu1  ;;  %v5417_v52 = vadd.f32 %v5416_v44, %v12711_v36 }
 0x806   : > { %v5922_v7 = vadd.f32 %v5921_v2, %v5753_v47 }
 0x807   : > { %v5586_v54 = vadd.f32 %v5585_v21, %v5417_v52 }
 0x808   : > { %v11962_v17 = vadd.f32 %v11671_v29, %v5922_v7 }
 0x80a   : > { %12712 = vst [vmem:[#allocation46_spill] sm:$0xff] %v11962_v17  ;;  %v11965_v8 = vadd.f32 %v6265_v51, %v11962_v17 }
 0x80b   : > { %v5754_v12 = vpop.f32.mrf.mxu2 }
 0x80c   : > { %v5923_v23 = vpop.f32.mrf.mxu3  ;;  %v5755_v38 = vadd.f32 %v5754_v12, %v5586_v54  ;;  %v5419_v16 = vpop.f32.mrf.mxu0  ;;  %v12716_v12 = vld [vmem:[#allocation48_spill] sm:$0xff] }
 0x80d   : > { %v5588_v24 = vpop.f32.mrf.mxu1  ;;  %v5420_v39 = vadd.f32 %v5419_v16, %v12713_v42 }
 0x80e   : > { %v5924_v49 = vadd.f32 %v5923_v23, %v5755_v38  ;;  %v6267_v23 = vld [vmem:[%s11339_s6 + $0x1c0] sm:$0xff] }
 0x80f   : > { %v5589_v7 = vadd.f32 %v5588_v24, %v5420_v39 }
 0x810   : > { %v11970_v2 = vadd.f32 %v11671_v29, %v5924_v49 }
 0x812   : > { %12714 = vst [vmem:[#allocation47_spill] sm:$0xff] %v11970_v2  ;;  %v11973_v47 = vadd.f32 %v6266_v20, %v11970_v2  ;;  %v12719_v2 = vld [vmem:[#allocation49_spill] sm:$0xff] }
 0x813   : > { %v5757_v44 = vpop.f32.mrf.mxu2 }
 0x814   : > { %12715 = vst [vmem:[#allocation107_spill] sm:$0xff] %v11973_v47  ;;  %v5926_v51 = vpop.f32.mrf.mxu3  ;;  %v5758_v21 = vadd.f32 %v5757_v44, %v5589_v7  ;;  %v5421_v36 = vpop.f32.mrf.mxu0 }
 0x815   : > { %v5590_v52 = vpop.f32.mrf.mxu1  ;;  %v5422_v17 = vadd.f32 %v5421_v36, %v12716_v12 }
 0x816   : > { %v5927_v54 = vadd.f32 %v5926_v51, %v5758_v21  ;;  %v6268_v51 = vld [vmem:[%s11339_s6 + $0x1c8] sm:$0xff] }
 0x817   : > { %v5591_v49 = vadd.f32 %v5590_v52, %v5422_v17 }
 0x818   : > { %v11978_v38 = vadd.f32 %v11671_v29, %v5927_v54 }
 0x81a   : > { %12717 = vst [vmem:[#allocation48_spill] sm:$0xff] %v11978_v38  ;;  %v11981_v16 = vadd.f32 %v6267_v23, %v11978_v38  ;;  %v12722_v38 = vld [vmem:[#allocation50_spill] sm:$0xff] }
 0x81b   : > { %v5759_v20 = vpop.f32.mrf.mxu2 }
 0x81c   : > { %12718 = vst [vmem:[#allocation108_spill] sm:$0xff] %v11981_v16  ;;  %v5928_v42 = vpop.f32.mrf.mxu3  ;;  %v5760_v39 = vadd.f32 %v5759_v20, %v5591_v49  ;;  %v5424_v24 = vpop.f32.mrf.mxu0 }
 0x81d   : > { %v5593_v7 = vpop.f32.mrf.mxu1  ;;  %v5425_v47 = vadd.f32 %v5424_v24, %v12719_v2 }
 0x81e   : > { %v5929_v44 = vadd.f32 %v5928_v42, %v5760_v39  ;;  %v6269_v42 = vld [vmem:[%s11339_s6 + $0x1d0] sm:$0xff] }
 0x81f   : > { %v5594_v54 = vadd.f32 %v5593_v7, %v5425_v47 }
 0x820   : > { %v11986_v21 = vadd.f32 %v11671_v29, %v5929_v44 }
 0x822   : > { %12720 = vst [vmem:[#allocation49_spill] sm:$0xff] %v11986_v21  ;;  %v11989_v36 = vadd.f32 %v6268_v51, %v11986_v21  ;;  %v12725_v21 = vld [vmem:[#allocation51_spill] sm:$0xff] }
 0x823   : > { %v5762_v12 = vpop.f32.mrf.mxu2 }
 0x824   : > { %12721 = vst [vmem:[#allocation109_spill] sm:$0xff] %v11989_v36  ;;  %v5931_v23 = vpop.f32.mrf.mxu3  ;;  %v5763_v17 = vadd.f32 %v5762_v12, %v5594_v54  ;;  %v5426_v52 = vpop.f32.mrf.mxu0 }
 0x825   : > { %v5595_v49 = vpop.f32.mrf.mxu1  ;;  %v5427_v16 = vadd.f32 %v5426_v52, %v12722_v38 }
 0x826   : > { %v5932_v20 = vadd.f32 %v5931_v23, %v5763_v17  ;;  %v6270_v23 = vld [vmem:[%s11339_s6 + $0x1d8] sm:$0xff] }
 0x827   : > { %v5596_v24 = vadd.f32 %v5595_v49, %v5427_v16 }
 0x828   : > { %v11994_v2 = vadd.f32 %v11671_v29, %v5932_v20 }
 0x82a   : > { %12723 = vst [vmem:[#allocation50_spill] sm:$0xff] %v11994_v2  ;;  %v11997_v39 = vadd.f32 %v6269_v42, %v11994_v2  ;;  %v12728_v2 = vld [vmem:[#allocation52_spill] sm:$0xff] }
 0x82b   : > { %v5764_v44 = vpop.f32.mrf.mxu2 }
 0x82c   : > { %12724 = vst [vmem:[#allocation110_spill] sm:$0xff] %v11997_v39  ;;  %v5933_v51 = vpop.f32.mrf.mxu3  ;;  %v5765_v47 = vadd.f32 %v5764_v44, %v5596_v24  ;;  %v5429_v7 = vpop.f32.mrf.mxu0  ;;  %v6272_v39 = vld [vmem:[%s11339_s6 + $0x1e8] sm:$0xff] }
 0x82d   : > { %v5598_v54 = vpop.f32.mrf.mxu1  ;;  %v5430_v36 = vadd.f32 %v5429_v7, %v12725_v21 }
 0x82e   : > { %v5934_v12 = vadd.f32 %v5933_v51, %v5765_v47  ;;  %v6271_v47 = vld [vmem:[%s11339_s6 + $0x1e0] sm:$0xff] }
 0x82f   : > { %v5599_v52 = vadd.f32 %v5598_v54, %v5430_v36 }
 0x830   : > { %v12002_v38 = vadd.f32 %v11671_v29, %v5934_v12 }
 0x832   : > { %12726 = vst [vmem:[#allocation51_spill] sm:$0xff] %v12002_v38  ;;  %v12005_v17 = vadd.f32 %v6270_v23, %v12002_v38 }
 0x833   : > { %v5767_v20 = vpop.f32.mrf.mxu2 }
 0x834   : > { %12727 = vst [vmem:[#allocation111_spill] sm:$0xff] %v12005_v17  ;;  %v5936_v42 = vpop.f32.mrf.mxu3  ;;  %v5768_v16 = vadd.f32 %v5767_v20, %v5599_v52  ;;  %v5431_v49 = vpop.f32.mrf.mxu0  ;;  %v12731_v20 = vld [vmem:[#allocation53_spill] sm:$0xff] }
 0x835   : > { %v5600_v24 = vpop.f32.mrf.mxu1  ;;  %v5432_v51 = vadd.f32 %v5431_v49, %v12728_v2 }
 0x836   : > { %v5937_v44 = vadd.f32 %v5936_v42, %v5768_v16  ;;  %v10286_v16 = vld [vmem:[%s10838_s15] ss:$0 sm:$0xff] }
 0x837   : > { %v5601_v12 = vadd.f32 %v5600_v24, %v5432_v51 }
 0x838   : > { %v12010_v21 = vadd.f32 %v11671_v29, %v5937_v44 }
 0x83a   : > { %12729 = vst [vmem:[#allocation52_spill] sm:$0xff] %v12010_v21  ;;  %v12013_v7 = vadd.f32 %v6271_v47, %v12010_v21 }
 0x83b   : > { %v5769_v23 = vpop.f32.mrf.mxu2 }
 0x83c   : > { %12730 = vst [vmem:[#allocation112_spill] sm:$0xff] %v12013_v7  ;;  %v5938_v36 = vpop.f32.mrf.mxu3  ;;  %v5770_v54 = vadd.f32 %v5769_v23, %v5601_v12  ;;  %v5434_v38 = vpop.f32.mrf.mxu0  ;;  %v12734_v23 = vld [vmem:[#allocation54_spill] sm:$0xff] }
 0x83d   : > { %v5435_v17 = vadd.f32 %v5434_v38, %v12731_v20  ;;  %v5603_v42 = vpop.f32.mrf.mxu1 }
 0x83e   : > { %v5939_v52 = vadd.f32 %v5938_v36, %v5770_v54  ;;  %v6273_v36 = vld [vmem:[%s11339_s6 + $0x1f0] sm:$0xff] }
 0x83f   : > { %v5604_v49 = vadd.f32 %v5603_v42, %v5435_v17  ;;  %v6274_v42 = vld [vmem:[%s11339_s6 + $0x1f8] sm:$0xff] }
 0x840   : > { %v12018_v2 = vadd.f32 %v10286_v16, %v5939_v52 }
 0x842   : > { %12732 = vst [vmem:[#allocation53_spill] sm:$0xff] %v12018_v2  ;;  %v12021_v29 = vadd.f32 %v6272_v39, %v12018_v2 }
 0x843   : > { %v5772_v44 = vpop.f32.mrf.mxu2 }
 0x844   : > { %12733 = vst [vmem:[#allocation113_spill] sm:$0xff] %v12021_v29  ;;  %v5941_v24 = vpop.f32.mrf.mxu3  ;;  %v5773_v51 = vadd.f32 %v5772_v44, %v5604_v49  ;;  %v5436_v47 = vpop.f32.mrf.mxu0 }
 0x845   : > { %v5437_v21 = vadd.f32 %v5436_v47, %v12734_v23  ;;  %v5605_v38 = vpop.f32.mrf.mxu1 }
 0x846   : > { %v5942_v12 = vadd.f32 %v5941_v24, %v5773_v51 }
 0x847   : > { %v5606_v52 = vadd.f32 %v5605_v38, %v5437_v21 }
 0x848   : > { %v12025_v54 = vadd.f32 %v10286_v16, %v5942_v12 }
 0x84a   : > { %v12028_v20 = vadd.f32 %v6273_v36, %v12025_v54 }
 0x84b   : > { %v5774_v7 = vpop.f32.mrf.mxu2 }
 0x84c   : > { %v5775_v39 = vadd.f32 %v5774_v7, %v5606_v52  ;;  %v5943_v2 = vpop.f32.mrf.mxu3 }
 0x84e   : > { %v5944_v17 = vadd.f32 %v5943_v2, %v5775_v39 }
 0x850   : > { %v12031_v29 = vadd.f32 %v10286_v16, %v5944_v17  ;;  %6342 = sbr.rel (%p8676_p0) target bundleno = 2229 (0x8b5), region = 88 }
 0x852   : > { %v12034_v49 = vadd.f32 %v6274_v42, %v12031_v29 }
 0x854   : > { %12735 = vst [vmem:[#allocation54_spill] sm:$0xff] %v12034_v49 }
 0x855   : > { %6343 = vst [vmem:[%s11339_s6] sm:$0xff] %v11354_v4  ;;  %v12737_v21 = vld [vmem:[#allocation95_spill] sm:$0xff]  ;;  %v12738_v7 = vld [vmem:[#allocation97_spill] sm:$0xff]  ;;  %v12739_v16 = vld [vmem:[#allocation98_spill] sm:$0xff] }
 0x856   : > { %6344 = vst [vmem:[%s11339_s6 + $0x8] sm:$0xff] %v11362_v28  ;;  %v12740_v2 = vld [vmem:[#allocation99_spill] sm:$0xff]  ;;  %v12741_v44 = vld [vmem:[#allocation100_spill] sm:$0xff]  ;;  %v12743_v24 = vld [vmem:[#allocation101_spill] sm:$0xff] }
 0x857   : > { %6345 = vst [vmem:[%s11339_s6 + $0x10] sm:$0xff] %v11378_v43  ;;  %v12744_v51 = vld [vmem:[#allocation102_spill] sm:$0xff]  ;;  %v12745_v47 = vld [vmem:[#allocation103_spill] sm:$0xff]  ;;  %v12746_v12 = vld [vmem:[#allocation104_spill] sm:$0xff] }
 0x858   : > { %6346 = vst [vmem:[%s11339_s6 + $0x18] sm:$0xff] %v11386_v55  ;;  %v12747_v23 = vld [vmem:[#allocation105_spill] sm:$0xff]  ;;  %v12748_v36 = vld [vmem:[#allocation106_spill] sm:$0xff]  ;;  %v12749_v38 = vld [vmem:[#allocation107_spill] sm:$0xff] }
 0x859   : > { %6347 = vst [vmem:[%s11339_s6 + $0x20] sm:$0xff] %v11402_v45  ;;  %v12750_v52 = vld [vmem:[#allocation108_spill] sm:$0xff]  ;;  %v12751_v39 = vld [vmem:[#allocation109_spill] sm:$0xff]  ;;  %v12752_v17 = vld [vmem:[#allocation110_spill] sm:$0xff] }
 0x85a   : > { %6348 = vst [vmem:[%s11339_s6 + $0x28] sm:$0xff] %v11410_v14  ;;  %v12753_v42 = vld [vmem:[#allocation111_spill] sm:$0xff] }
 0x85b   : > { %6349 = vst [vmem:[%s11339_s6 + $0x30] sm:$0xff] %v11426_v60 }
 0x85c   : > { %6350 = vst [vmem:[%s11339_s6 + $0x38] sm:$0xff] %v11434_v63 }
 0x85d   : > { %6351 = vst [vmem:[%s11339_s6 + $0x40] sm:$0xff] %v11450_v13 }
 0x85e   : > { %6352 = vst [vmem:[%s11339_s6 + $0x48] sm:$0xff] %v11458_v26 }
 0x85f   : > { %6353 = vst [vmem:[%s11339_s6 + $0x50] sm:$0xff] %v11474_v31 }
 0x860   : > { %6354 = vst [vmem:[%s11339_s6 + $0x58] sm:$0xff] %v11482_v50 }
 0x861   : > { %6355 = vst [vmem:[%s11339_s6 + $0x60] sm:$0xff] %v11498_v9 }
 0x862   : > { %6356 = vst [vmem:[%s11339_s6 + $0x68] sm:$0xff] %v11506_v48 }
 0x863   : > { %6357 = vst [vmem:[%s11339_s6 + $0x70] sm:$0xff] %v11522_v11 }
 0x864   : > { %6358 = vst [vmem:[%s11339_s6 + $0x78] sm:$0xff] %v11530_v34 }
 0x865   : > { %6359 = vst [vmem:[%s11339_s6 + $0x80] sm:$0xff] %v11546_v40 }
 0x866   : > { %6360 = vst [vmem:[%s11339_s6 + $0x88] sm:$0xff] %v11554_v59 }
 0x867   : > { %6361 = vst [vmem:[%s11339_s6 + $0x90] sm:$0xff] %v11570_v5 }
 0x868   : > { %6362 = vst [vmem:[%s11339_s6 + $0x98] sm:$0xff] %v11578_v22 }
 0x869   : > { %6363 = vst [vmem:[%s11339_s6 + $0xa0] sm:$0xff] %v11594_v33 }
 0x86a   : > { %6364 = vst [vmem:[%s11339_s6 + $0xa8] sm:$0xff] %v11602_v30 }
 0x86b   : > { %6365 = vst [vmem:[%s11339_s6 + $0xb0] sm:$0xff] %v11618_v62 }
 0x86c   : > { %6366 = vst [vmem:[%s11339_s6 + $0xb8] sm:$0xff] %v11626_v61 }
 0x86d   : > { %6367 = vst [vmem:[%s11339_s6 + $0xc0] sm:$0xff] %v11642_v32 }
 0x86e   : > { %6368 = vst [vmem:[%s11339_s6 + $0xc8] sm:$0xff] %v11650_v25 }
 0x86f   : > { %6369 = vst [vmem:[%s11339_s6 + $0xd0] sm:$0xff] %v11666_v1 }
 0x870   : > { %6370 = vst [vmem:[%s11339_s6 + $0xd8] sm:$0xff] %v11677_v19 }
 0x871   : > { %6371 = vst [vmem:[%s11339_s6 + $0xe0] sm:$0xff] %v11693_v58 }
 0x872   : > { %6372 = vst [vmem:[%s11339_s6 + $0xe8] sm:$0xff] %v11701_v3 }
 0x873   : > { %6373 = vst [vmem:[%s11339_s6 + $0xf0] sm:$0xff] %v11717_v35 }
 0x874   : > { %6374 = vst [vmem:[%s11339_s6 + $0xf8] sm:$0xff] %v11725_v56  ;;  %v12773_v56 = vld [vmem:[#allocation73_spill] sm:$0xff] }
 0x875   : > { %6375 = vst [vmem:[%s11339_s6 + $0x100] sm:$0xff] %v11741_v46 }
 0x876   : > { %6376 = vst [vmem:[%s11339_s6 + $0x108] sm:$0xff] %v11749_v15 }
 0x877   : > { %6377 = vst [vmem:[%s11339_s6 + $0x110] sm:$0xff] %v11765_v53 }
 0x878   : > { %6378 = vst [vmem:[%s11339_s6 + $0x118] sm:$0xff] %v11773_v37 }
 0x879   : > { %6379 = vst [vmem:[%s11339_s6 + $0x120] sm:$0xff] %v11789_v0 }
 0x87a   : > { %6380 = vst [vmem:[%s11339_s6 + $0x128] sm:$0xff] %v12737_v21  ;;  %v12754_v21 = vld [vmem:[#allocation112_spill] sm:$0xff] }
 0x87b   : > { %6381 = vst [vmem:[%s11339_s6 + $0x130] sm:$0xff] %v12738_v7  ;;  %v12755_v7 = vld [vmem:[#allocation55_spill] sm:$0xff] }
 0x87c   : > { %6382 = vst [vmem:[%s11339_s6 + $0x138] sm:$0xff] %v12739_v16  ;;  %v12756_v16 = vld [vmem:[#allocation56_spill] sm:$0xff] }
 0x87d   : > { %6383 = vst [vmem:[%s11339_s6 + $0x140] sm:$0xff] %v12740_v2  ;;  %v9730_v2 = vpack.c.bf16 %v12756_v16, %v12755_v7  ;;  %v12766_v7 = vld [vmem:[#allocation65_spill] sm:$0xff]  ;;  %v12767_v16 = vld [vmem:[#allocation66_spill] sm:$0xff] }
 0x87e   : > { %6384 = vst [vmem:[%s11339_s6 + $0x148] sm:$0xff] %v12741_v44  ;;  %v12757_v44 = vld [vmem:[#allocation113_spill] sm:$0xff] }
 0x87f   : > { %6385 = vst [vmem:[%s11339_s6 + $0x150] sm:$0xff] %v12743_v24  ;;  %v12758_v24 = vld [vmem:[#allocation57_spill] sm:$0xff] }
 0x880   : > { %6386 = vst [vmem:[%s11339_s6 + $0x158] sm:$0xff] %v12744_v51  ;;  %v12759_v51 = vld [vmem:[#allocation58_spill] sm:$0xff] }
 0x881   : > { %6387 = vst [vmem:[%s11339_s6 + $0x160] sm:$0xff] %v11885_v6 }
 0x882   : > { %6388 = vst [vmem:[%s11339_s6 + $0x168] sm:$0xff] %v11893_v27 }
 0x883   : > { %6389 = vst [vmem:[%s11339_s6 + $0x170] sm:$0xff] %v11901_v10 }
 0x884   : > { %6390 = vst [vmem:[%s11339_s6 + $0x178] sm:$0xff] %v11909_v18 }
 0x885   : > { %6391 = vst [vmem:[%s11339_s6 + $0x180] sm:$0xff] %v11917_v57 }
 0x886   : > { %6392 = vst [vmem:[%s11339_s6 + $0x188] sm:$0xff] %v11925_v41 }
 0x887   : > { %6393 = vst [vmem:[%s11339_s6 + $0x190] sm:$0xff] %v12745_v47  ;;  %v9735_v47 = vpack.c.bf16 %v12759_v51, %v12758_v24  ;;  %v12768_v24 = vld [vmem:[#allocation67_spill] sm:$0xff]  ;;  %v12769_v51 = vld [vmem:[#allocation68_spill] sm:$0xff] }
 0x888   : > { %6394 = vst [vmem:[%s11339_s6 + $0x198] sm:$0xff] %v12746_v12  ;;  %v12760_v12 = vld [vmem:[#allocation59_spill] sm:$0xff] }
 0x889   : > { %6395 = vst [vmem:[%s11339_s6 + $0x1a0] sm:$0xff] %v12747_v23  ;;  %v12761_v23 = vld [vmem:[#allocation60_spill] sm:$0xff] }
 0x88a   : > { %6396 = vst [vmem:[%s11339_s6 + $0x1a8] sm:$0xff] %v12748_v36  ;;  %v9740_v36 = vpack.c.bf16 %v12761_v23, %v12760_v12  ;;  %v9760_v12 = vpack.c.bf16 %v12769_v51, %v12768_v24  ;;  %v12770_v23 = vld [vmem:[#allocation69_spill] sm:$0xff]  ;;  %v12779_v51 = vld [vmem:[#allocation79_spill] sm:$0xff] }
 0x88b   : > { %6397 = vst [vmem:[%s11339_s6 + $0x1b0] sm:$0xff] %v11965_v8 }
 0x88c   : > { %6398 = vst [vmem:[%s11339_s6 + $0x1b8] sm:$0xff] %v12749_v38  ;;  %v12762_v38 = vld [vmem:[#allocation61_spill] sm:$0xff] }
 0x88d   : > { %6399 = vst [vmem:[%s11339_s6 + $0x1c0] sm:$0xff] %v12750_v52  ;;  %v12763_v52 = vld [vmem:[#allocation62_spill] sm:$0xff] }
 0x88e   : > { %6400 = vst [vmem:[%s11339_s6 + $0x1c8] sm:$0xff] %v12751_v39  ;;  %v9745_v39 = vpack.c.bf16 %v12763_v52, %v12762_v38  ;;  %v12771_v38 = vld [vmem:[#allocation70_spill] sm:$0xff] }
 0x88f   : > { %6401 = vst [vmem:[%s11339_s6 + $0x1d0] sm:$0xff] %v12752_v17  ;;  %v12764_v17 = vld [vmem:[#allocation63_spill] sm:$0xff]  ;;  %v9765_v52 = vpack.c.bf16 %v12771_v38, %v12770_v23  ;;  %v12781_v38 = vld [vmem:[#allocation81_spill] sm:$0xff] }
 0x890   : > { %6402 = vst [vmem:[%s11339_s6 + $0x1d8] sm:$0xff] %v12753_v42  ;;  %v12765_v42 = vld [vmem:[#allocation64_spill] sm:$0xff] }
 0x891   : > { %6403 = vst [vmem:[%s11339_s6 + $0x1e0] sm:$0xff] %v12754_v21  ;;  %v9750_v21 = vpack.c.bf16 %v12765_v42, %v12764_v17  ;;  %v12775_v42 = vld [vmem:[#allocation75_spill] sm:$0xff] }
 0x892   : > { %6404 = vst [vmem:[%s11339_s6 + $0x1e8] sm:$0xff] %v12757_v44  ;;  %v9755_v44 = vpack.c.bf16 %v12767_v16, %v12766_v7  ;;  %v12777_v16 = vld [vmem:[#allocation77_spill] sm:$0xff] }
 0x893   : > { %6405 = vst [vmem:[%s11339_s6 + $0x1f0] sm:$0xff] %v12028_v20 }
 0x894   : > { %6406 = vst [vmem:[%s11339_s6 + $0x1f8] sm:$0xff] %v12034_v49  ;;  %v12816_v49 = vld [vmem:[#allocation52_spill] sm:$0xff] }
 0x895   : > { %9731 = vst [vmem:[%s12175_s10] sm:$0xff] %v9730_v2   ;;  %v12772_v2 = vld [vmem:[#allocation72_spill] sm:$0xff] }
 0x896   : > { %10013 = vst [vmem:[%s12175_s10 + $0x8] sm:$0xff] %v9735_v47   ;;  %v9770_v17 = vpack.c.bf16 %v12773_v56, %v12772_v2  ;;  %v12774_v47 = vld [vmem:[#allocation74_spill] sm:$0xff]  ;;  %v12783_v2 = vld [vmem:[#allocation83_spill] sm:$0xff] }
 0x897   : > { %10014 = vst [vmem:[%s12175_s10 + $0x10] sm:$0xff] %v9740_v36   ;;  %v9775_v7 = vpack.c.bf16 %v12775_v42, %v12774_v47  ;;  %v12776_v36 = vld [vmem:[#allocation76_spill] sm:$0xff]  ;;  %v12785_v42 = vld [vmem:[#allocation85_spill] sm:$0xff] }
 0x898   : > { %10015 = vst [vmem:[%s12175_s10 + $0x18] sm:$0xff] %v9745_v39   ;;  %v9780_v24 = vpack.c.bf16 %v12777_v16, %v12776_v36  ;;  %v12778_v39 = vld [vmem:[#allocation78_spill] sm:$0xff]  ;;  %v12787_v16 = vld [vmem:[#allocation87_spill] sm:$0xff] }
 0x899   : > { %10016 = vst [vmem:[%s12175_s10 + $0x20] sm:$0xff] %v9750_v21   ;;  %v9785_v23 = vpack.c.bf16 %v12779_v51, %v12778_v39  ;;  %v12780_v21 = vld [vmem:[#allocation80_spill] sm:$0xff]  ;;  %v12789_v51 = vld [vmem:[#allocation90_spill] sm:$0xff] }
 0x89a   : > { %10017 = vst [vmem:[%s12175_s10 + $0x28] sm:$0xff] %v9755_v44   ;;  %v9790_v56 = vpack.c.bf16 %v12781_v38, %v12780_v21  ;;  %v12782_v44 = vld [vmem:[#allocation82_spill] sm:$0xff]  ;;  %v12791_v38 = vld [vmem:[#allocation92_spill] sm:$0xff] }
 0x89b   : > { %10018 = vst [vmem:[%s12175_s10 + $0x30] sm:$0xff] %v9760_v12   ;;  %v9795_v47 = vpack.c.bf16 %v12783_v2, %v12782_v44  ;;  %v12784_v12 = vld [vmem:[#allocation84_spill] sm:$0xff]  ;;  %v12793_v2 = vld [vmem:[#allocation94_spill] sm:$0xff] }
 0x89c   : > { %10019 = vst [vmem:[%s12175_s10 + $0x38] sm:$0xff] %v9765_v52   ;;  %v9800_v36 = vpack.c.bf16 %v12785_v42, %v12784_v12  ;;  %v12786_v52 = vld [vmem:[#allocation86_spill] sm:$0xff]  ;;  %v12795_v42 = vld [vmem:[#allocation31_spill] sm:$0xff] }
 0x89d   : > { %10020 = vst [vmem:[%s12175_s10 + $0x40] sm:$0xff] %v9770_v17   ;;  %v9805_v39 = vpack.c.bf16 %v12787_v16, %v12786_v52  ;;  %v12788_v17 = vld [vmem:[#allocation89_spill] sm:$0xff] }
 0x89e   : > { %10021 = vst [vmem:[%s12175_s10 + $0x48] sm:$0xff] %v9775_v7   ;;  %v9810_v21 = vpack.c.bf16 %v12789_v51, %v12788_v17  ;;  %v12790_v7 = vld [vmem:[#allocation91_spill] sm:$0xff]  ;;  %v12797_v16 = vld [vmem:[#allocation33_spill] sm:$0xff] }
 0x89f   : > { %10022 = vst [vmem:[%s12175_s10 + $0x50] sm:$0xff] %v9780_v24   ;;  %v9815_v44 = vpack.c.bf16 %v12791_v38, %v12790_v7  ;;  %v12792_v24 = vld [vmem:[#allocation93_spill] sm:$0xff]  ;;  %v12799_v51 = vld [vmem:[#allocation35_spill] sm:$0xff] }
 0x8a0   : > { %10023 = vst [vmem:[%s12175_s10 + $0x58] sm:$0xff] %v9785_v23   ;;  %v9820_v12 = vpack.c.bf16 %v12793_v2, %v12792_v24  ;;  %v12794_v23 = vld [vmem:[#allocation96_spill] sm:$0xff]  ;;  %v12801_v38 = vld [vmem:[#allocation37_spill] sm:$0xff]  ;;  %v12803_v2 = vld [vmem:[#allocation39_spill] sm:$0xff] }
 0x8a1   : > { %10024 = vst [vmem:[%s12175_s10 + $0x60] sm:$0xff] %v9790_v56   ;;  %v9825_v52 = vpack.c.bf16 %v12795_v42, %v12794_v23  ;;  %v12796_v56 = vld [vmem:[#allocation32_spill] sm:$0xff]  ;;  %v12805_v42 = vld [vmem:[#allocation41_spill] sm:$0xff] }
 0x8a2   : > { %10025 = vst [vmem:[%s12175_s10 + $0x68] sm:$0xff] %v9795_v47   ;;  %v9830_v17 = vpack.c.bf16 %v12797_v16, %v12796_v56  ;;  %v12798_v47 = vld [vmem:[#allocation34_spill] sm:$0xff]  ;;  %v12807_v16 = vld [vmem:[#allocation43_spill] sm:$0xff] }
 0x8a3   : > { %10026 = vst [vmem:[%s12175_s10 + $0x70] sm:$0xff] %v9800_v36   ;;  %v9835_v7 = vpack.c.bf16 %v12799_v51, %v12798_v47  ;;  %v12800_v36 = vld [vmem:[#allocation36_spill] sm:$0xff]  ;;  %v12809_v51 = vld [vmem:[#allocation45_spill] sm:$0xff] }
 0x8a4   : > { %10027 = vst [vmem:[%s12175_s10 + $0x78] sm:$0xff] %v9805_v39   ;;  %v9840_v24 = vpack.c.bf16 %v12801_v38, %v12800_v36  ;;  %v12802_v39 = vld [vmem:[#allocation38_spill] sm:$0xff]  ;;  %v12808_v47 = vld [vmem:[#allocation44_spill] sm:$0xff]  ;;  %v12811_v38 = vld [vmem:[#allocation47_spill] sm:$0xff] }
 0x8a5   : > { %10028 = vst [vmem:[%s12175_s10 + $0x80] sm:$0xff] %v9810_v21   ;;  %v9845_v23 = vpack.c.bf16 %v12803_v2, %v12802_v39  ;;  %v12804_v21 = vld [vmem:[#allocation40_spill] sm:$0xff]  ;;  %v12810_v36 = vld [vmem:[#allocation46_spill] sm:$0xff]  ;;  %v12813_v2 = vld [vmem:[#allocation49_spill] sm:$0xff] }
 0x8a6   : > { %10029 = vst [vmem:[%s12175_s10 + $0x88] sm:$0xff] %v9815_v44   ;;  %v9850_v56 = vpack.c.bf16 %v12805_v42, %v12804_v21  ;;  %v12806_v44 = vld [vmem:[#allocation42_spill] sm:$0xff]  ;;  %v9865_v39 = vpack.c.bf16 %v12811_v38, %v12810_v36 }
 0x8a7   : > { %10030 = vst [vmem:[%s12175_s10 + $0x90] sm:$0xff] %v9820_v12   ;;  %v9855_v12 = vpack.c.bf16 %v12807_v16, %v12806_v44  ;;  %v12814_v21 = vld [vmem:[#allocation50_spill] sm:$0xff]  ;;  %v12817_v44 = vld [vmem:[#allocation53_spill] sm:$0xff] }
 0x8a8   : > { %10031 = vst [vmem:[%s12175_s10 + $0x98] sm:$0xff] %v9825_v52   ;;  %v9860_v52 = vpack.c.bf16 %v12809_v51, %v12808_v47  ;;  %v9880_v16 = vpack.c.bf16 %v12817_v44, %v12816_v49 }
 0x8a9   : > { %10032 = vst [vmem:[%s12175_s10 + $0xa0] sm:$0xff] %v9830_v17   ;;  %v12812_v17 = vld [vmem:[#allocation48_spill] sm:$0xff] }
 0x8aa   : > { %10033 = vst [vmem:[%s12175_s10 + $0xa8] sm:$0xff] %v9835_v7   ;;  %v9870_v34 = vpack.c.bf16 %v12813_v2, %v12812_v17  ;;  %v12815_v7 = vld [vmem:[#allocation51_spill] sm:$0xff] }
 0x8ab   : > { %10034 = vst [vmem:[%s12175_s10 + $0xb0] sm:$0xff] %v9840_v24   ;;  %v9875_v42 = vpack.c.bf16 %v12815_v7, %v12814_v21  ;;  %v9885_v24 = vpack.c.bf16 %v12031_v29, %v12025_v54 }
 0x8ac   : > { %10035 = vst [vmem:[%s12175_s10 + $0xb8] sm:$0xff] %v9845_v23  }
 0x8ad   : > { %10036 = vst [vmem:[%s12175_s10 + $0xc0] sm:$0xff] %v9850_v56  }
 0x8ae   : > { %10037 = vst [vmem:[%s12175_s10 + $0xc8] sm:$0xff] %v9855_v12  }
 0x8af   : > { %10038 = vst [vmem:[%s12175_s10 + $0xd0] sm:$0xff] %v9860_v52  }
 0x8b0   : > { %10039 = vst [vmem:[%s12175_s10 + $0xd8] sm:$0xff] %v9865_v39  }
 0x8b1   : > { %10040 = vst [vmem:[%s12175_s10 + $0xe0] sm:$0xff] %v9870_v34  }
 0x8b2   : > { %10041 = vst [vmem:[%s12175_s10 + $0xe8] sm:$0xff] %v9875_v42  }
 0x8b3   : > { %10042 = vst [vmem:[%s12175_s10 + $0xf0] sm:$0xff] %v9880_v16  }
 0x8b4   : > { %10043 = vst [vmem:[%s12175_s10 + $0xf8] sm:$0xff] %v9885_v24  }
 0x8b5 PF: > { %s12818_s12 = sld [smem:[#allocation26_spill]] }
 0x8bb   : > { %p8678_p2 = scmp.ne.s32.totalorder %s12818_s12, 2 }
 0x8bd   : > { %6542 = sbr.rel (%p8678_p2) target bundleno = 2530 (0x9e2), region = 92 }
 0x8c2   : > { %v6622_v23 = vld [vmem:[#allocation12 + $0x78] sm:$0xff]  ;;  %v6621_v56 = vld [vmem:[#allocation12 + $0x70] sm:$0xff]  ;;  %v6620_v12 = vld [vmem:[#allocation12 + $0x68] sm:$0xff]  ;;  %v6575_v7 = vmul.f32 0.25, %v11741_v46  ;;  %v6591_v42 = vmul.f32 0.25, %v11917_v57  ;;  %v6543_v44 = vmul.f32 0.25, %v11354_v4 }
 0x8c3   : > { %10093 = vmatpush.msra.mxu2 %v6622_v23  ;;  %10094 = vmatpush.msra.mxu3 %v6622_v23  ;;  %v6619_v49 = vld [vmem:[#allocation12 + $0x60] sm:$0xff]  ;;  %v6618_v34 = vld [vmem:[#allocation12 + $0x58] sm:$0xff]  ;;  %v6617_v29 = vld [vmem:[#allocation12 + $0x50] sm:$0xff]  ;;  %v6559_v16 = vmul.f32 0.25, %v11546_v40  ;;  %v6576_v46 = vmul.f32 0.25, %v11749_v15  ;;  %v6592_v57 = vmul.f32 0.25, %v11925_v41 }
 0x8c4   : > { %6627 = vmatpush.msra.mxu0 %v6622_v23  ;;  %10092 = vmatpush.msra.mxu1 %v6622_v23  ;;  %v6616_v54 = vld [vmem:[#allocation12 + $0x48] sm:$0xff]  ;;  %v6615_v47 = vld [vmem:[#allocation12 + $0x40] sm:$0xff]  ;;  %v6614_v51 = vld [vmem:[#allocation12 + $0x38] sm:$0xff]  ;;  %v6544_v24 = vmul.f32 0.25, %v11362_v28  ;;  %v6560_v23 = vmul.f32 0.25, %v11554_v59  ;;  %v6577_v4 = vmul.f32 0.25, %v11765_v53 }
 0x8c5   : > { %10096 = vmatpush.msra.mxu2 %v6621_v56  ;;  %10097 = vmatpush.msra.mxu3 %v6621_v56  ;;  %v6613_v52 = vld [vmem:[#allocation12 + $0x30] sm:$0xff]  ;;  %v6612_v36 = vld [vmem:[#allocation12 + $0x28] sm:$0xff]  ;;  %v6611_v38 = vld [vmem:[#allocation12 + $0x20] sm:$0xff]  ;;  %v6578_v28 = vmul.f32 0.25, %v11773_v37  ;;  %v6546_v41 = vmul.f32 0.25, %v11386_v55 }
 0x8c6   : > { %6628 = vmatpush.msra.mxu0 %v6621_v56  ;;  %10095 = vmatpush.msra.mxu1 %v6621_v56  ;;  %v6610_v39 = vld [vmem:[#allocation12 + $0x18] sm:$0xff]  ;;  %v6609_v17 = vld [vmem:[#allocation12 + $0x10] sm:$0xff]  ;;  %v6608_v2 = vld [vmem:[#allocation12 + $0x8] sm:$0xff] }
 0x8c7   : > { %10099 = vmatpush.msra.mxu2 %v6620_v12  ;;  %10100 = vmatpush.msra.mxu3 %v6620_v12  ;;  %v6607_v21 = vld [vmem:[#allocation12] sm:$0xff]  ;;  %v12820_v15 = vld [vmem:[#allocation104_spill] sm:$0xff]  ;;  %v12821_v53 = vld [vmem:[#allocation105_spill] sm:$0xff] }
 0x8c8   : > { %6629 = vmatpush.msra.mxu0 %v6620_v12  ;;  %10098 = vmatpush.msra.mxu1 %v6620_v12  ;;  %v12819_v40 = vld [vmem:[#allocation103_spill] sm:$0xff]  ;;  %v6545_v12 = vmul.f32 0.25, %v11378_v43  ;;  %v6594_v59 = vmul.f32 0.25, %v12820_v15  ;;  %v6579_v43 = vmul.f32 0.25, %v11789_v0  ;;  %v12824_v0 = vld [vmem:[#allocation97_spill] sm:$0xff]  ;;  %v6570_v15 = vmul.f32 0.25, %v11677_v19 }
 0x8c9   : > { %10102 = vmatpush.msra.mxu2 %v6619_v49  ;;  %10103 = vmatpush.msra.mxu3 %v6619_v49  ;;  %v6593_v56 = vmul.f32 0.25, %v12819_v40  ;;  %v12822_v37 = vld [vmem:[#allocation95_spill] sm:$0xff]  ;;  %v6553_v40 = vmul.f32 0.25, %v11474_v31  ;;  %v6587_v31 = vmul.f32 0.25, %v11885_v6  ;;  %v6557_v6 = vmul.f32 0.25, %v11522_v11 }
 0x8ca   : > { %6630 = vmatpush.msra.mxu0 %v6619_v49  ;;  %10101 = vmatpush.msra.mxu1 %v6619_v49  ;;  %v6561_v49 = vmul.f32 0.25, %v11570_v5  ;;  %v6595_v5 = vmul.f32 0.25, %v12821_v53  ;;  %v6580_v55 = vmul.f32 0.25, %v12822_v37  ;;  %v6556_v53 = vmul.f32 0.25, %v11506_v48  ;;  %v12330_v11 = vld [vmem:[#allocation14] ss:$0 sm:$0xff] }
 0x8cb   : > { %10105 = vmatpush.msra.mxu2 %v6618_v34  ;;  %10106 = vmatpush.msra.mxu3 %v6618_v34  ;;  %v6590_v48 = vmul.f32 0.25, %v11909_v18 }
 0x8cc   : > { %6631 = vmatpush.msra.mxu0 %v6618_v34  ;;  %10104 = vmatpush.msra.mxu1 %v6618_v34  ;;  %v6562_v34 = vmul.f32 0.25, %v11578_v22 }
 0x8cd   : > { %10108 = vmatpush.msra.mxu2 %v6617_v29  ;;  %10109 = vmatpush.msra.mxu3 %v6617_v29 }
 0x8ce   : > { %6632 = vmatpush.msra.mxu0 %v6617_v29  ;;  %10107 = vmatpush.msra.mxu1 %v6617_v29  ;;  %v6547_v29 = vmul.f32 0.25, %v11402_v45  ;;  %v6581_v45 = vmul.f32 0.25, %v12824_v0 }
 0x8cf   : > { %10111 = vmatpush.msra.mxu2 %v6616_v54  ;;  %10112 = vmatpush.msra.mxu3 %v6616_v54 }
 0x8d0   : > { %6633 = vmatpush.msra.mxu0 %v6616_v54  ;;  %10110 = vmatpush.msra.mxu1 %v6616_v54  ;;  %v6563_v54 = vmul.f32 0.25, %v11594_v33  ;;  %v6597_v33 = vmul.f32 0.25, %v11965_v8  ;;  %v12827_v8 = vld [vmem:[#allocation99_spill] sm:$0xff] }
 0x8d1   : > { %10114 = vmatpush.msra.mxu2 %v6615_v47  ;;  %10115 = vmatpush.msra.mxu3 %v6615_v47 }
 0x8d2   : > { %6634 = vmatpush.msra.mxu0 %v6615_v47  ;;  %10113 = vmatpush.msra.mxu1 %v6615_v47  ;;  %v12823_v47 = vld [vmem:[#allocation106_spill] sm:$0xff] }
 0x8d3   : > { %10117 = vmatpush.msra.mxu2 %v6614_v51  ;;  %10118 = vmatpush.msra.mxu3 %v6614_v51  ;;  %v6596_v22 = vmul.f32 0.25, %v12823_v47 }
 0x8d4   : > { %6635 = vmatpush.msra.mxu0 %v6614_v51  ;;  %10116 = vmatpush.msra.mxu1 %v6614_v51  ;;  %v6548_v51 = vmul.f32 0.25, %v11410_v14 }
 0x8d5   : > { %10120 = vmatpush.msra.mxu2 %v6613_v52  ;;  %10121 = vmatpush.msra.mxu3 %v6613_v52 }
 0x8d6   : > { %6636 = vmatpush.msra.mxu0 %v6613_v52  ;;  %10119 = vmatpush.msra.mxu1 %v6613_v52  ;;  %v6564_v52 = vmul.f32 0.25, %v11602_v30 }
 0x8d7   : > { %10123 = vmatpush.msra.mxu2 %v6612_v36  ;;  %10124 = vmatpush.msra.mxu3 %v6612_v36 }
 0x8d8   : > { %6637 = vmatpush.msra.mxu0 %v6612_v36  ;;  %10122 = vmatpush.msra.mxu1 %v6612_v36  ;;  %v6549_v36 = vmul.f32 0.25, %v11426_v60  ;;  %v6583_v60 = vmul.f32 0.25, %v12827_v8 }
 0x8d9   : > { %10126 = vmatpush.msra.mxu2 %v6611_v38  ;;  %10127 = vmatpush.msra.mxu3 %v6611_v38 }
 0x8da   : > { %6638 = vmatpush.msra.mxu0 %v6611_v38  ;;  %10125 = vmatpush.msra.mxu1 %v6611_v38  ;;  %v6565_v38 = vmul.f32 0.25, %v11618_v62 }
 0x8db   : > { %10129 = vmatpush.msra.mxu2 %v6610_v39  ;;  %10130 = vmatpush.msra.mxu3 %v6610_v39 }
 0x8dc   : > { %6639 = vmatpush.msra.mxu0 %v6610_v39  ;;  %10128 = vmatpush.msra.mxu1 %v6610_v39  ;;  %v12825_v39 = vld [vmem:[#allocation98_spill] sm:$0xff] }
 0x8dd   : > { %10132 = vmatpush.msra.mxu2 %v6609_v17  ;;  %10133 = vmatpush.msra.mxu3 %v6609_v17  ;;  %v6582_v14 = vmul.f32 0.25, %v12825_v39 }
 0x8de   : > { %6640 = vmatpush.msra.mxu0 %v6609_v17  ;;  %10131 = vmatpush.msra.mxu1 %v6609_v17  ;;  %v12826_v17 = vld [vmem:[#allocation107_spill] sm:$0xff] }
 0x8df   : > { %10135 = vmatpush.msra.mxu2 %v6608_v2  ;;  %10136 = vmatpush.msra.mxu3 %v6608_v2  ;;  %v6598_v30 = vmul.f32 0.25, %v12826_v17 }
 0x8e0   : > { %6641 = vmatpush.msra.mxu0 %v6608_v2  ;;  %10134 = vmatpush.msra.mxu1 %v6608_v2  ;;  %v6550_v2 = vmul.f32 0.25, %v11434_v63 }
 0x8e1   : > { %10138 = vmatpush.msra.mxu2 %v6607_v21  ;;  %10139 = vmatpush.msra.mxu3 %v6607_v21 }
 0x8e2   : > { %6739 = vmatmul.f32.vlgmr.msra.gmra.mxu2 %v6575_v7  ;;  %6787 = vmatmul.f32.vlgmr.msra.gmra.mxu3 %v6591_v42  ;;  %v12828_v7 = vld [vmem:[#allocation108_spill] sm:$0xff]  ;;  %v6551_v42 = vmul.f32 0.25, %v11450_v13 }
 0x8e3   : > { %6642 = vmatpush.msra.mxu0 %v6607_v21  ;;  %10137 = vmatpush.msra.mxu1 %v6607_v21  ;;  %v6566_v21 = vmul.f32 0.25, %v11626_v61  ;;  %v6599_v62 = vmul.f32 0.25, %v12828_v7 }
 0x8e4   : > { %6643 = vmatmul.f32.vlgmr.msra.gmra.mxu0 %v6543_v44  ;;  %6691 = vmatmul.f32.vlgmr.msra.gmra.mxu1 %v6559_v16  ;;  %v6567_v44 = vmul.f32 0.25, %v11642_v32  ;;  %v12829_v16 = vld [vmem:[#allocation100_spill] sm:$0xff] }
 0x8e5   : > { %v6584_v63 = vmul.f32 0.25, %v12829_v16 }
 0x8ea   : > { %6742 = vmatmul.f32.gmra.mxu2 %v6576_v46  ;;  %6790 = vmatmul.f32.gmra.mxu3 %v6592_v57  ;;  %v12830_v46 = vld [vmem:[#allocation109_spill] sm:$0xff]  ;;  %v6552_v57 = vmul.f32 0.25, %v11458_v26 }
 0x8eb   : > { %v6600_v61 = vmul.f32 0.25, %v12830_v46 }
 0x8ec   : > { %6646 = vmatmul.f32.gmra.mxu0 %v6544_v24  ;;  %6694 = vmatmul.f32.gmra.mxu1 %v6560_v23  ;;  %v6568_v24 = vmul.f32 0.25, %v11650_v25  ;;  %v12831_v23 = vld [vmem:[#allocation101_spill] sm:$0xff] }
 0x8ed   : > { %v6585_v13 = vmul.f32 0.25, %v12831_v23 }
 0x8f2   : > { %6745 = vmatmul.f32.gmra.mxu2 %v6577_v4  ;;  %6793 = vmatmul.f32.gmra.mxu3 %v6593_v56  ;;  %v12832_v4 = vld [vmem:[#allocation110_spill] sm:$0xff]  ;;  %v6569_v56 = vmul.f32 0.25, %v11666_v1 }
 0x8f3   : > { %v6601_v32 = vmul.f32 0.25, %v12832_v4 }
 0x8f4   : > { %6649 = vmatmul.f32.gmra.mxu0 %v6545_v12  ;;  %6697 = vmatmul.f32.gmra.mxu1 %v6561_v49  ;;  %v12833_v12 = vld [vmem:[#allocation102_spill] sm:$0xff]  ;;  %v12834_v49 = vld [vmem:[#allocation111_spill] sm:$0xff] }
 0x8f5   : > { %v6586_v26 = vmul.f32 0.25, %v12833_v12  ;;  %v6602_v25 = vmul.f32 0.25, %v12834_v49 }
 0x8fa   : > { %6748 = vmatmul.f32.gmra.mxu2 %v6578_v28  ;;  %6796 = vmatmul.f32.gmra.mxu3 %v6594_v59  ;;  %v6554_v28 = vmul.f32 0.25, %v11482_v50  ;;  %v12835_v59 = vld [vmem:[#allocation112_spill] sm:$0xff]  ;;  %v6588_v50 = vmul.f32 0.25, %v11893_v27 }
 0x8fb   : > { %v6603_v1 = vmul.f32 0.25, %v12835_v59 }
 0x8fc   : > { %6652 = vmatmul.f32.gmra.mxu0 %v6546_v41  ;;  %6700 = vmatmul.f32.gmra.mxu1 %v6562_v34  ;;  %v6555_v41 = vmul.f32 0.25, %v11498_v9  ;;  %v6571_v34 = vmul.f32 0.25, %v11693_v58  ;;  %v6589_v9 = vmul.f32 0.25, %v11901_v10  ;;  %v6605_v58 = vmul.f32 0.25, %v12028_v20 }
 0x902   : > { %6751 = vmatmul.f32.gmra.mxu2 %v6579_v43  ;;  %6799 = vmatmul.f32.gmra.mxu3 %v6595_v5  ;;  %v12836_v43 = vld [vmem:[#allocation113_spill] sm:$0xff]  ;;  %v6572_v5 = vmul.f32 0.25, %v11701_v3  ;;  %v12837_v3 = vld [vmem:[#allocation54_spill] sm:$0xff] }
 0x903   : > { %v6604_v19 = vmul.f32 0.25, %v12836_v43  ;;  %v6606_v27 = vmul.f32 0.25, %v12837_v3 }
 0x904   : > { %6655 = vmatmul.f32.gmra.mxu0 %v6547_v29  ;;  %6703 = vmatmul.f32.gmra.mxu1 %v6563_v54  ;;  %v6573_v29 = vmul.f32 0.25, %v11717_v35  ;;  %v12838_v54 = vld [vmem:[#allocation71_spill] sm:$0xff] }
 0x905   : > { %v6558_v37 = vmul.f32 0.25, %v12838_v54 }
 0x90a   : > { %6754 = vmatmul.f32.gmra.mxu2 %v6580_v55  ;;  %6802 = vmatmul.f32.gmra.mxu3 %v6596_v22  ;;  %v12839_v55 = vld [vmem:[#allocation88_spill] sm:$0xff] }
 0x90b   : > { %v6574_v10 = vmul.f32 0.25, %v12839_v55 }
 0x90c   : > { %6658 = vmatmul.f32.gmra.mxu0 %v6548_v51  ;;  %6706 = vmatmul.f32.gmra.mxu1 %v6564_v52 }
 0x912   : > { %6757 = vmatmul.f32.gmra.mxu2 %v6581_v45  ;;  %6805 = vmatmul.f32.gmra.mxu3 %v6597_v33 }
 0x914   : > { %6661 = vmatmul.f32.gmra.mxu0 %v6549_v36  ;;  %6709 = vmatmul.f32.gmra.mxu1 %v6565_v38 }
 0x91a   : > { %6760 = vmatmul.f32.gmra.mxu2 %v6582_v14  ;;  %6808 = vmatmul.f32.gmra.mxu3 %v6598_v30 }
 0x91c   : > { %6664 = vmatmul.f32.gmra.mxu0 %v6550_v2  ;;  %6712 = vmatmul.f32.gmra.mxu1 %v6566_v21 }
 0x922   : > { %6763 = vmatmul.f32.gmra.mxu2 %v6583_v60  ;;  %6811 = vmatmul.f32.gmra.mxu3 %v6599_v62 }
 0x924   : > { %6667 = vmatmul.f32.gmra.mxu0 %v6551_v42  ;;  %6715 = vmatmul.f32.gmra.mxu1 %v6567_v44 }
 0x92a   : > { %6766 = vmatmul.f32.gmra.mxu2 %v6584_v63  ;;  %6814 = vmatmul.f32.gmra.mxu3 %v6600_v61 }
 0x92c   : > { %6670 = vmatmul.f32.gmra.mxu0 %v6552_v57  ;;  %6718 = vmatmul.f32.gmra.mxu1 %v6568_v24 }
 0x932   : > { %6769 = vmatmul.f32.gmra.mxu2 %v6585_v13  ;;  %6817 = vmatmul.f32.gmra.mxu3 %v6601_v32 }
 0x934   : > { %6673 = vmatmul.f32.gmra.mxu0 %v6553_v40  ;;  %6721 = vmatmul.f32.gmra.mxu1 %v6569_v56 }
 0x93a   : > { %6772 = vmatmul.f32.gmra.mxu2 %v6586_v26  ;;  %6820 = vmatmul.f32.gmra.mxu3 %v6602_v25 }
 0x93c   : > { %6676 = vmatmul.f32.gmra.mxu0 %v6554_v28  ;;  %6724 = vmatmul.f32.gmra.mxu1 %v6570_v15 }
 0x942   : > { %6775 = vmatmul.f32.gmra.mxu2 %v6587_v31  ;;  %6823 = vmatmul.f32.gmra.mxu3 %v6603_v1 }
 0x944   : > { %6679 = vmatmul.f32.gmra.mxu0 %v6555_v41  ;;  %6727 = vmatmul.f32.gmra.mxu1 %v6571_v34 }
 0x94a   : > { %6778 = vmatmul.f32.gmra.mxu2 %v6588_v50  ;;  %6826 = vmatmul.f32.gmra.mxu3 %v6604_v19 }
 0x94c   : > { %6682 = vmatmul.f32.gmra.mxu0 %v6556_v53  ;;  %6730 = vmatmul.f32.gmra.mxu1 %v6572_v5 }
 0x952   : > { %6781 = vmatmul.f32.gmra.mxu2 %v6589_v9  ;;  %6829 = vmatmul.f32.gmra.mxu3 %v6605_v58 }
 0x954   : > { %6685 = vmatmul.f32.gmra.mxu0 %v6557_v6  ;;  %6733 = vmatmul.f32.gmra.mxu1 %v6573_v29 }
 0x95a   : > { %6784 = vmatmul.f32.gmra.mxu2 %v6590_v48  ;;  %6832 = vmatmul.f32.gmra.mxu3 %v6606_v27 }
 0x95c   : > { %6688 = vmatmul.f32.gmra.mxu0 %v6558_v37  ;;  %6736 = vmatmul.f32.gmra.mxu1 %v6574_v10 }
 0x961   : > { %v6644_v35 = vpop.f32.mrf.mxu0  ;;  %v6692_v20 = vpop.f32.mrf.mxu1 }
 0x962   : > { %v6645_v18 = vadd.f32 %v12330_v11, %v6644_v35  ;;  %v6693_v47 = vadd.f32 %v12330_v11, %v6692_v20 }
 0x964   : > { %6836 = vst [vmem:[%s11339_s6] sm:$0xff] %v6645_v18 }
 0x965   : > { %6852 = vst [vmem:[%s11339_s6 + $0x80] sm:$0xff] %v6693_v47  ;;  %v6740_v22 = vpop.f32.mrf.mxu2  ;;  %v6788_v51 = vpop.f32.mrf.mxu3 }
 0x966   : > { %v6741_v52 = vadd.f32 %v12330_v11, %v6740_v22  ;;  %v6789_v0 = vadd.f32 %v12330_v11, %v6788_v51 }
 0x968   : > { %6868 = vst [vmem:[%s11339_s6 + $0x100] sm:$0xff] %v6741_v52 }
 0x969   : > { %6884 = vst [vmem:[%s11339_s6 + $0x180] sm:$0xff] %v6789_v0  ;;  %v6647_v45 = vpop.f32.mrf.mxu0  ;;  %v6695_v33 = vpop.f32.mrf.mxu1 }
 0x96a   : > { %v6648_v36 = vadd.f32 %v12330_v11, %v6647_v45  ;;  %v6696_v38 = vadd.f32 %v12330_v11, %v6695_v33 }
 0x96c   : > { %6837 = vst [vmem:[%s11339_s6 + $0x8] sm:$0xff] %v6648_v36 }
 0x96d   : > { %6853 = vst [vmem:[%s11339_s6 + $0x88] sm:$0xff] %v6696_v38  ;;  %v6743_v39 = vpop.f32.mrf.mxu2  ;;  %v6791_v14 = vpop.f32.mrf.mxu3 }
 0x96e   : > { %v6744_v17 = vadd.f32 %v12330_v11, %v6743_v39  ;;  %v6792_v30 = vadd.f32 %v12330_v11, %v6791_v14 }
 0x970   : > { %6869 = vst [vmem:[%s11339_s6 + $0x108] sm:$0xff] %v6744_v17 }
 0x971   : > { %6885 = vst [vmem:[%s11339_s6 + $0x188] sm:$0xff] %v6792_v30  ;;  %v6650_v2 = vpop.f32.mrf.mxu0  ;;  %v6698_v21 = vpop.f32.mrf.mxu1 }
 0x972   : > { %v6651_v8 = vadd.f32 %v12330_v11, %v6650_v2  ;;  %v6699_v60 = vadd.f32 %v12330_v11, %v6698_v21 }
 0x974   : > { %6838 = vst [vmem:[%s11339_s6 + $0x10] sm:$0xff] %v6651_v8 }
 0x975   : > { %6854 = vst [vmem:[%s11339_s6 + $0x90] sm:$0xff] %v6699_v60  ;;  %v6746_v7 = vpop.f32.mrf.mxu2  ;;  %v6794_v62 = vpop.f32.mrf.mxu3 }
 0x976   : > { %v6747_v42 = vadd.f32 %v12330_v11, %v6746_v7  ;;  %v6795_v44 = vadd.f32 %v12330_v11, %v6794_v62 }
 0x978   : > { %6870 = vst [vmem:[%s11339_s6 + $0x110] sm:$0xff] %v6747_v42 }
 0x979   : > { %6886 = vst [vmem:[%s11339_s6 + $0x190] sm:$0xff] %v6795_v44  ;;  %v6653_v16 = vpop.f32.mrf.mxu0  ;;  %v6701_v63 = vpop.f32.mrf.mxu1 }
 0x97a   : > { %v6654_v46 = vadd.f32 %v12330_v11, %v6653_v16  ;;  %v6702_v61 = vadd.f32 %v12330_v11, %v6701_v63 }
 0x97c   : > { %6839 = vst [vmem:[%s11339_s6 + $0x18] sm:$0xff] %v6654_v46 }
 0x97d   : > { %6855 = vst [vmem:[%s11339_s6 + $0x98] sm:$0xff] %v6702_v61  ;;  %v6749_v57 = vpop.f32.mrf.mxu2  ;;  %v6797_v24 = vpop.f32.mrf.mxu3 }
 0x97e   : > { %v6750_v23 = vadd.f32 %v12330_v11, %v6749_v57  ;;  %v6798_v13 = vadd.f32 %v12330_v11, %v6797_v24 }
 0x980   : > { %6871 = vst [vmem:[%s11339_s6 + $0x118] sm:$0xff] %v6750_v23 }
 0x981   : > { %6887 = vst [vmem:[%s11339_s6 + $0x198] sm:$0xff] %v6798_v13  ;;  %v6656_v4 = vpop.f32.mrf.mxu0  ;;  %v6704_v32 = vpop.f32.mrf.mxu1 }
 0x982   : > { %v6657_v40 = vadd.f32 %v12330_v11, %v6656_v4  ;;  %v6705_v56 = vadd.f32 %v12330_v11, %v6704_v32 }
 0x984   : > { %6840 = vst [vmem:[%s11339_s6 + $0x20] sm:$0xff] %v6657_v40 }
 0x985   : > { %6856 = vst [vmem:[%s11339_s6 + $0xa0] sm:$0xff] %v6705_v56  ;;  %v6752_v12 = vpop.f32.mrf.mxu2  ;;  %v6800_v26 = vpop.f32.mrf.mxu3 }
 0x986   : > { %v6753_v49 = vadd.f32 %v12330_v11, %v6752_v12  ;;  %v6801_v25 = vadd.f32 %v12330_v11, %v6800_v26 }
 0x988   : > { %6872 = vst [vmem:[%s11339_s6 + $0x120] sm:$0xff] %v6753_v49 }
 0x989   : > { %6888 = vst [vmem:[%s11339_s6 + $0x1a0] sm:$0xff] %v6801_v25  ;;  %v6659_v28 = vpop.f32.mrf.mxu0  ;;  %v6707_v15 = vpop.f32.mrf.mxu1 }
 0x98a   : > { %v6660_v31 = vadd.f32 %v12330_v11, %v6659_v28  ;;  %v6708_v59 = vadd.f32 %v12330_v11, %v6707_v15 }
 0x98c   : > { %6841 = vst [vmem:[%s11339_s6 + $0x28] sm:$0xff] %v6660_v31 }
 0x98d   : > { %6857 = vst [vmem:[%s11339_s6 + $0xa8] sm:$0xff] %v6708_v59  ;;  %v6755_v1 = vpop.f32.mrf.mxu2  ;;  %v6803_v41 = vpop.f32.mrf.mxu3 }
 0x98e   : > { %v6756_v34 = vadd.f32 %v12330_v11, %v6755_v1  ;;  %v6804_v50 = vadd.f32 %v12330_v11, %v6803_v41 }
 0x990   : > { %6873 = vst [vmem:[%s11339_s6 + $0x128] sm:$0xff] %v6756_v34 }
 0x991   : > { %6889 = vst [vmem:[%s11339_s6 + $0x1a8] sm:$0xff] %v6804_v50  ;;  %v6662_v43 = vpop.f32.mrf.mxu0  ;;  %v6710_v19 = vpop.f32.mrf.mxu1 }
 0x992   : > { %v6663_v53 = vadd.f32 %v12330_v11, %v6662_v43  ;;  %v6711_v5 = vadd.f32 %v12330_v11, %v6710_v19 }
 0x994   : > { %6842 = vst [vmem:[%s11339_s6 + $0x30] sm:$0xff] %v6663_v53 }
 0x995   : > { %6858 = vst [vmem:[%s11339_s6 + $0xb0] sm:$0xff] %v6711_v5  ;;  %v6758_v9 = vpop.f32.mrf.mxu2  ;;  %v6806_v58 = vpop.f32.mrf.mxu3 }
 0x996   : > { %v6759_v6 = vadd.f32 %v12330_v11, %v6758_v9  ;;  %v6807_v29 = vadd.f32 %v12330_v11, %v6806_v58 }
 0x998   : > { %6874 = vst [vmem:[%s11339_s6 + $0x130] sm:$0xff] %v6759_v6 }
 0x999   : > { %6890 = vst [vmem:[%s11339_s6 + $0x1b0] sm:$0xff] %v6807_v29  ;;  %v6665_v48 = vpop.f32.mrf.mxu0  ;;  %v6713_v3 = vpop.f32.mrf.mxu1 }
 0x99a   : > { %v6666_v27 = vadd.f32 %v12330_v11, %v6665_v48  ;;  %v6714_v54 = vadd.f32 %v12330_v11, %v6713_v3 }
 0x99c   : > { %6843 = vst [vmem:[%s11339_s6 + $0x38] sm:$0xff] %v6666_v27 }
 0x99d   : > { %6859 = vst [vmem:[%s11339_s6 + $0xb8] sm:$0xff] %v6714_v54  ;;  %v6761_v37 = vpop.f32.mrf.mxu2  ;;  %v6809_v55 = vpop.f32.mrf.mxu3 }
 0x99e   : > { %v6762_v10 = vadd.f32 %v12330_v11, %v6761_v37  ;;  %v6810_v35 = vadd.f32 %v12330_v11, %v6809_v55 }
 0x9a0   : > { %6875 = vst [vmem:[%s11339_s6 + $0x138] sm:$0xff] %v6762_v10 }
 0x9a1   : > { %6891 = vst [vmem:[%s11339_s6 + $0x1b8] sm:$0xff] %v6810_v35  ;;  %v6668_v20 = vpop.f32.mrf.mxu0  ;;  %v6716_v18 = vpop.f32.mrf.mxu1 }
 0x9a2   : > { %v6669_v47 = vadd.f32 %v12330_v11, %v6668_v20  ;;  %v6717_v22 = vadd.f32 %v12330_v11, %v6716_v18 }
 0x9a4   : > { %6844 = vst [vmem:[%s11339_s6 + $0x40] sm:$0xff] %v6669_v47 }
 0x9a5   : > { %6860 = vst [vmem:[%s11339_s6 + $0xc0] sm:$0xff] %v6717_v22  ;;  %v6764_v51 = vpop.f32.mrf.mxu2  ;;  %v6812_v52 = vpop.f32.mrf.mxu3 }
 0x9a6   : > { %v6765_v0 = vadd.f32 %v12330_v11, %v6764_v51  ;;  %v6813_v45 = vadd.f32 %v12330_v11, %v6812_v52 }
 0x9a8   : > { %6876 = vst [vmem:[%s11339_s6 + $0x140] sm:$0xff] %v6765_v0 }
 0x9a9   : > { %6892 = vst [vmem:[%s11339_s6 + $0x1c0] sm:$0xff] %v6813_v45  ;;  %v6671_v33 = vpop.f32.mrf.mxu0  ;;  %v6719_v36 = vpop.f32.mrf.mxu1 }
 0x9aa   : > { %v6672_v38 = vadd.f32 %v12330_v11, %v6671_v33  ;;  %v6720_v39 = vadd.f32 %v12330_v11, %v6719_v36 }
 0x9ac   : > { %6845 = vst [vmem:[%s11339_s6 + $0x48] sm:$0xff] %v6672_v38 }
 0x9ad   : > { %6861 = vst [vmem:[%s11339_s6 + $0xc8] sm:$0xff] %v6720_v39  ;;  %v6767_v14 = vpop.f32.mrf.mxu2  ;;  %v6815_v17 = vpop.f32.mrf.mxu3 }
 0x9ae   : > { %v6768_v30 = vadd.f32 %v12330_v11, %v6767_v14  ;;  %v6816_v2 = vadd.f32 %v12330_v11, %v6815_v17 }
 0x9b0   : > { %6877 = vst [vmem:[%s11339_s6 + $0x148] sm:$0xff] %v6768_v30 }
 0x9b1   : > { %6893 = vst [vmem:[%s11339_s6 + $0x1c8] sm:$0xff] %v6816_v2  ;;  %v6674_v21 = vpop.f32.mrf.mxu0  ;;  %v6722_v8 = vpop.f32.mrf.mxu1 }
 0x9b2   : > { %v6675_v60 = vadd.f32 %v12330_v11, %v6674_v21  ;;  %v6723_v7 = vadd.f32 %v12330_v11, %v6722_v8 }
 0x9b4   : > { %6846 = vst [vmem:[%s11339_s6 + $0x50] sm:$0xff] %v6675_v60 }
 0x9b5   : > { %6862 = vst [vmem:[%s11339_s6 + $0xd0] sm:$0xff] %v6723_v7  ;;  %v6770_v62 = vpop.f32.mrf.mxu2  ;;  %v6818_v42 = vpop.f32.mrf.mxu3 }
 0x9b6   : > { %v6771_v44 = vadd.f32 %v12330_v11, %v6770_v62  ;;  %v6819_v16 = vadd.f32 %v12330_v11, %v6818_v42 }
 0x9b8   : > { %6878 = vst [vmem:[%s11339_s6 + $0x150] sm:$0xff] %v6771_v44 }
 0x9b9   : > { %6894 = vst [vmem:[%s11339_s6 + $0x1d0] sm:$0xff] %v6819_v16  ;;  %v6677_v63 = vpop.f32.mrf.mxu0  ;;  %v6725_v46 = vpop.f32.mrf.mxu1 }
 0x9ba   : > { %v6678_v61 = vadd.f32 %v12330_v11, %v6677_v63  ;;  %v6726_v57 = vadd.f32 %v12330_v11, %v6725_v46 }
 0x9bc   : > { %6847 = vst [vmem:[%s11339_s6 + $0x58] sm:$0xff] %v6678_v61 }
 0x9bd   : > { %6863 = vst [vmem:[%s11339_s6 + $0xd8] sm:$0xff] %v6726_v57  ;;  %v6773_v24 = vpop.f32.mrf.mxu2  ;;  %v6821_v23 = vpop.f32.mrf.mxu3 }
 0x9be   : > { %v6774_v13 = vadd.f32 %v12330_v11, %v6773_v24  ;;  %v6822_v4 = vadd.f32 %v12330_v11, %v6821_v23 }
 0x9c0   : > { %6879 = vst [vmem:[%s11339_s6 + $0x158] sm:$0xff] %v6774_v13 }
 0x9c1   : > { %6895 = vst [vmem:[%s11339_s6 + $0x1d8] sm:$0xff] %v6822_v4  ;;  %v6680_v32 = vpop.f32.mrf.mxu0  ;;  %v6728_v40 = vpop.f32.mrf.mxu1 }
 0x9c2   : > { %v6681_v56 = vadd.f32 %v12330_v11, %v6680_v32  ;;  %v6729_v12 = vadd.f32 %v12330_v11, %v6728_v40 }
 0x9c4   : > { %6848 = vst [vmem:[%s11339_s6 + $0x60] sm:$0xff] %v6681_v56 }
 0x9c5   : > { %6864 = vst [vmem:[%s11339_s6 + $0xe0] sm:$0xff] %v6729_v12  ;;  %v6776_v26 = vpop.f32.mrf.mxu2  ;;  %v6824_v49 = vpop.f32.mrf.mxu3 }
 0x9c6   : > { %v6777_v25 = vadd.f32 %v12330_v11, %v6776_v26  ;;  %v6825_v28 = vadd.f32 %v12330_v11, %v6824_v49 }
 0x9c8   : > { %6880 = vst [vmem:[%s11339_s6 + $0x160] sm:$0xff] %v6777_v25 }
 0x9c9   : > { %6896 = vst [vmem:[%s11339_s6 + $0x1e0] sm:$0xff] %v6825_v28  ;;  %v6683_v15 = vpop.f32.mrf.mxu0  ;;  %v6731_v31 = vpop.f32.mrf.mxu1 }
 0x9ca   : > { %v6684_v59 = vadd.f32 %v12330_v11, %v6683_v15  ;;  %v6732_v1 = vadd.f32 %v12330_v11, %v6731_v31 }
 0x9cc   : > { %6849 = vst [vmem:[%s11339_s6 + $0x68] sm:$0xff] %v6684_v59 }
 0x9cd   : > { %6865 = vst [vmem:[%s11339_s6 + $0xe8] sm:$0xff] %v6732_v1  ;;  %v6779_v41 = vpop.f32.mrf.mxu2  ;;  %v6827_v34 = vpop.f32.mrf.mxu3 }
 0x9ce   : > { %v6780_v50 = vadd.f32 %v12330_v11, %v6779_v41  ;;  %v6828_v43 = vadd.f32 %v12330_v11, %v6827_v34 }
 0x9d0   : > { %6881 = vst [vmem:[%s11339_s6 + $0x168] sm:$0xff] %v6780_v50 }
 0x9d1   : > { %6897 = vst [vmem:[%s11339_s6 + $0x1e8] sm:$0xff] %v6828_v43  ;;  %v6686_v19 = vpop.f32.mrf.mxu0  ;;  %v6734_v53 = vpop.f32.mrf.mxu1 }
 0x9d2   : > { %v6687_v5 = vadd.f32 %v12330_v11, %v6686_v19  ;;  %v6735_v9 = vadd.f32 %v12330_v11, %v6734_v53 }
 0x9d4   : > { %6850 = vst [vmem:[%s11339_s6 + $0x70] sm:$0xff] %v6687_v5 }
 0x9d5   : > { %6866 = vst [vmem:[%s11339_s6 + $0xf0] sm:$0xff] %v6735_v9  ;;  %v6782_v58 = vpop.f32.mrf.mxu2  ;;  %v6830_v6 = vpop.f32.mrf.mxu3 }
 0x9d6   : > { %v6783_v29 = vadd.f32 %v12330_v11, %v6782_v58  ;;  %v6831_v48 = vadd.f32 %v12330_v11, %v6830_v6 }
 0x9d8   : > { %6882 = vst [vmem:[%s11339_s6 + $0x170] sm:$0xff] %v6783_v29 }
 0x9d9   : > { %6898 = vst [vmem:[%s11339_s6 + $0x1f0] sm:$0xff] %v6831_v48  ;;  %v6689_v3 = vpop.f32.mrf.mxu0  ;;  %v6737_v27 = vpop.f32.mrf.mxu1 }
 0x9da   : > { %v6690_v54 = vadd.f32 %v12330_v11, %v6689_v3  ;;  %v6738_v37 = vadd.f32 %v12330_v11, %v6737_v27 }
 0x9dc   : > { %6851 = vst [vmem:[%s11339_s6 + $0x78] sm:$0xff] %v6690_v54 }
 0x9dd   : > { %6867 = vst [vmem:[%s11339_s6 + $0xf8] sm:$0xff] %v6738_v37  ;;  %v6785_v55 = vpop.f32.mrf.mxu2  ;;  %v6833_v10 = vpop.f32.mrf.mxu3 }
 0x9de   : > { %v6786_v35 = vadd.f32 %v12330_v11, %v6785_v55  ;;  %v6834_v20 = vadd.f32 %v12330_v11, %v6833_v10 }
 0x9e0   : > { %6883 = vst [vmem:[%s11339_s6 + $0x178] sm:$0xff] %v6786_v35 }
 0x9e1   : > { %6899 = vst [vmem:[%s11339_s6 + $0x1f8] sm:$0xff] %v6834_v20 }
 0x9e2 PF: > { %p10183_p4 = scmp.eq.s32.totalorder %s10706_s8, 5  ;;  %s12840_s17 = sld [smem:[#allocation118_spill]] }
 0x9e3   : > { %s10613_s4 = smov 128   ;;  %s10614_s9 = smov 8  }
 0x9e8   : > { %s6907_s24 = sshll.u32 %s12840_s17, 4  ;;  %s6908_s24 = int_to_ptr.hbm [resolvable:$true] %s6907_s24 }
 0x9e9   : > { %10158 = dma.vmem_to_hbm [thread:$0]  (%p10183_p4), %s384_s2, 16384, %s6908_s24, [#allocation8], %s10613_s4, %s10613_s4, %s10614_s9  }
 0x9ea   : > { %10557 = dma.done.wait (%p10183_p4), [#allocation8], 16384  }
 0x9eb   : > { %10559 = vsyncadd (%p10183_p4), [#allocation8], 4294950912 }
 0x9ec PF: > { %s24_s7 = sadd.s32 1, %s10602_s7   ;;  %s12841_s8 = sld [smem:[#allocation30_spill]] }
 0x9ed   : > { %p21_p5 = scmp.ge.s32.totalorder %s24_s7, 8   ;;  %s12842_s27 = sld [smem:[#allocation27_spill]] }
 0x9ee   : > { %s12843_s29 = sld [smem:[#allocation28_spill]]  ;;  %s12845_s21 = smov %s10566_s22 }
 0x9ef   : > { %s12844_s13 = sld [smem:[#allocation29_spill]]  ;;  %s12846_s22 = smov %s10570_s23 }
 0x9f0   : > { %s12847_s23 = smov %s10803_s16  ;;  %s12848_s24 = smov %s10578_s25 }
 0x9f1   : > { %s12849_s25 = smov %s10582_s26  ;;  %s12851_s28 = smov %s10598_s30 }
 0x9f2   : > { %s12850_s26 = smov %s12841_s8  ;;  %23 = sbr.rel (!%p21_p5) target bundleno = 17 (0x11), region = 148 }
 0x9f5   : > { %s12852_s30 = smov %s12844_s13 }
 0x9f7   :  { %6924 = vsyncpa [#allocation7], 1 }
 0x9f8   :  { %6926 = vsyncpa [#allocation7 + $0x1], 1 }
 0x9f9   :  { %6927 = vsyncpa [#allocation10], 1 }
 0x9fa   :  { %6929 = vsyncpa [#allocation10 + $0x1], 1 }
 0x9fb   :  { %6930 = vsyncpa [#allocation13], 1 }
 0x9fc   :  { %6931 = vsyncpa [#allocation8], 1 }
 0x9fd   :  { %6933 = vsyncpa [#allocation8 + $0x1], 1 }
 0x9fe   :  { %6934 = vsyncmov [#allocation5] }
 0xa01   :  { %s6935_s16 = vpop.sfrf %6934 }
 0xa02   :  { %p8683_p7 = scmp.ne.s32.totalorder %s6935_s16, 0 }
 0xa04   :  { %6939 = shalt.err (%p8683_p7)  }

</bundles_post_ra>
